<compile_context>
chip_gen: v7x
topology: tpu7x:2x2x1
jax: 0.10.0
libtpu: 0.0.40
codegen_flags: <defaults>
</compile_context>

<pallas_src>
import functools

import jax
import jax.numpy as jnp
import numpy as np
from jax.experimental import pallas as pl

NEG_SLOPE = 0.01  # F.leaky_relu default


def _lrelu(y):
    return jnp.where(y > 0, y, NEG_SLOPE * y)


def _shift_rows(x, off):
    """y[r] = x[r + off]; rows shifted in from outside the array are zero."""
    if off == 0:
        return x
    n, c = x.shape
    pad = jnp.zeros((abs(off), c), dtype=x.dtype)
    if off > 0:
        return jnp.concatenate([x[off:, :], pad], axis=0)
    return jnp.concatenate([pad, x[: n + off, :]], axis=0)


# ------------------------------- fused kernel -------------------------------

def fused_forward_kernel(p1_ref, w1_ref, b1_ref, w2_ref, b2_ref, w3_ref,
                         b3_ref, m2_ref, m3_ref, wl_ref, bl_ref, o_ref, *,
                         batch):
    """Entire CNN_LRELU forward for the whole batch in one invocation.

    Row layouts (channels / taps on the lane axis):
      p1 : (4*B*196, 9)  row = k1*(B*196) + g*(B*49) + s*B + b
                         (k1 = pool window pos on the 28-grid, g = parity of
                          the 14-grid position, s = 7*hp + wp on the 7-grid)
      x1 : (B*196, 8)    row = g*(B*49) + s*B + b   (14x14 grid, parity slabs)
      x2 : (B*49, 16)    row = s*B + b              (7x7 grid)
      y3 : (B*49, 32)    row = s*B + b
      out: (B, 10)
    """
    B = batch
    n14 = B * 196          # rows of x1 (= 4 parity slabs of B*49)
    n7 = B * 49            # rows per parity slab / of x2, y3

    # ---- stage 1: conv1 as ONE (4*B*196, 9) @ (9, 8) matmul; 2x2 pool = max
    #      over the 4 pool-window slabs; bias + leaky-relu AFTER the max
    #      (exact: bias is shared across the window, lrelu is monotonic).
    y1 = jnp.dot(p1_ref[...], w1_ref[...], preferred_element_type=jnp.float32)
    m1 = jnp.maximum(jnp.maximum(y1[0 * n14:1 * n14], y1[1 * n14:2 * n14]),
                     jnp.maximum(y1[2 * n14:3 * n14], y1[3 * n14:4 * n14]))
    x1 = _lrelu(m1 + b1_ref[...])                                # (B*196, 8)

    # ---- stage 2: K-folded 3x3 im2col (9 taps on lanes), built per output
    #      parity group from static slab slices + row shifts; ONE
    #      (4*B*49, 72) @ (72, 16) matmul; the 2x2/stride-2 pool is then just
    #      the max over the 4 parity slabs (structural subsample, no gather).
    group_rows = []
    for g in range(4):
        gh, gw = g // 2, g % 2
        taps = []
        for t in range(9):
            dh, dw = t // 3 - 1, t % 3 - 1
            qh, qw = (gh + dh) // 2, (gw + dw) // 2          # half-grid offset
            g_src = 2 * ((gh + dh) % 2) + ((gw + dw) % 2)    # source parity slab
            slab = x1[g_src * n7:(g_src + 1) * n7, :]
            taps.append(_shift_rows(slab, (7 * qh + qw) * B))
        group_rows.append(jnp.concatenate(taps, axis=1))         # (B*49, 72)
    l2 = jnp.concatenate(group_rows, axis=0) * m2_ref[...]       # (4*B*49, 72)
    y2 = jnp.dot(l2, w2_ref[...], preferred_element_type=jnp.float32)
    pm = jnp.maximum(jnp.maximum(y2[0 * n7:1 * n7], y2[1 * n7:2 * n7]),
                     jnp.maximum(y2[2 * n7:3 * n7], y2[3 * n7:4 * n7]))
    x2 = _lrelu(pm + b2_ref[...])                                # (B*49, 16)

    # ---- stage 3: K-folded 3x3 im2col, ONE (B*49, 144) @ (144, 32) matmul.
    taps = []
    for t in range(9):
        dh, dw = t // 3 - 1, t % 3 - 1
        taps.append(_shift_rows(x2, (7 * dh + dw) * B))
    l3 = jnp.concatenate(taps, axis=1) * m3_ref[...]             # (B*49, 144)
    y3 = _lrelu(jnp.dot(l3, w3_ref[...], preferred_element_type=jnp.float32)
                + b3_ref[...])                                   # (B*49, 32)

    # ---- head: flatten = lane concat of the 49 contiguous (B, 32) position
    #      blocks, then linear 1568 -> 10 and softmax over dim 0 (the batch),
    #      all in-kernel.
    xf = jnp.concatenate([y3[s * B:(s + 1) * B, :] for s in range(49)],
                         axis=1)                                 # (B, 1568)
    logits = (jnp.dot(xf, wl_ref[...], preferred_element_type=jnp.float32)
              + bl_ref[...])
    z = logits - jnp.max(logits, axis=0, keepdims=True)
    e = jnp.exp(z)
    o_ref[...] = e / jnp.sum(e, axis=0, keepdims=True)


# --------------------------- host-side preparation ---------------------------

def stage1_patches(x):
    """x: (B, 1, 28, 28) -> (4*B*196, 9) im2col with pool+parity grouped rows.

    Row = k1*(B*196) + g*(B*49) + (7*hp + wp)*B + b, with conv position
    (2h + a, 2w + a'), k1 = 2a + a', 14-grid position (h, w) = (2hp + gh,
    2wp + gw), g = 2*gh + gw.  Feature = 3*kh + kw.
    """
    # Note: this prep could itself move in-kernel (DMA the padded image and
    # reuse the shift machinery); kept as jit'ed XLA glue since it is tiny.
    B = x.shape[0]
    xp = jnp.pad(x[:, 0], ((0, 0), (1, 1), (1, 1)))              # (B, 30, 30)
    cols = [xp[:, kh:kh + 28, kw:kw + 28] for kh in range(3) for kw in range(3)]
    p = jnp.stack(cols, axis=-1)                                 # (B, 28, 28, 9)
    p = p.reshape(B, 7, 2, 2, 7, 2, 2, 9)        # b, hp, gh, a, wp, gw, a', f
    p = jnp.transpose(p, (3, 6, 2, 5, 1, 4, 0, 7))  # a, a', gh, gw, hp, wp, b, f
    return p.reshape(4 * B * 196, 9)


def make_masks(B):
    """0/1 boundary masks for the K-folded stage-2 / stage-3 im2col (O(B))."""
    s = np.arange(49)
    hp, wp = s // 7, s % 7

    m2 = np.zeros((4, 49, 9), np.float32)
    for g in range(4):
        gh, gw = g // 2, g % 2
        for t in range(9):
            dh, dw = t // 3 - 1, t % 3 - 1
            qh, qw = (gh + dh) // 2, (gw + dw) // 2
            ok = ((hp + qh >= 0) & (hp + qh < 7) &
                  (wp + qw >= 0) & (wp + qw < 7))
            m2[g, :, t] = ok.astype(np.float32)
    m2 = np.repeat(m2, B, axis=1).reshape(4 * B * 49, 9)   # rows g,(s,b)
    m2 = np.repeat(m2, 8, axis=1)                          # lanes t*8 + ci

    m3 = np.zeros((49, 9), np.float32)
    for t in range(9):
        dh, dw = t // 3 - 1, t % 3 - 1
        ok = ((hp + dh >= 0) & (hp + dh < 7) &
              (wp + dw >= 0) & (wp + dw < 7))
        m3[:, t] = ok.astype(np.float32)
    m3 = np.repeat(np.repeat(m3, B, axis=0), 16, axis=1)   # (B*49, 144)
    return jnp.asarray(m2), jnp.asarray(m3)


def make_kernel_params(tp, B):
    """Re-layout torch-convention params + constants ONCE, at init time."""
    m2, m3 = make_masks(B)
    return {
        "w1m": tp["w1"].reshape(8, 9).T,                           # (9, 8)
        "b1k": tp["b1"].reshape(1, 8),
        "w2s": tp["w2"].transpose(2, 3, 1, 0).reshape(72, 16),     # (t*8+ci, co)
        "b2k": tp["b2"].reshape(1, 16),
        "w3s": tp["w3"].transpose(2, 3, 1, 0).reshape(144, 32),    # (t*16+ci, co)
        "b3k": tp["b3"].reshape(1, 32),
        "wlm": tp["wl"].reshape(10, 32, 49).transpose(2, 1, 0).reshape(1568, 10),
        "blk": tp["bl"].reshape(1, 10),
        "m2": m2, "m3": m3,
    }


@jax.jit
def cnn_lrelu_forward(x, kp):
    B = x.shape[0]
    p1 = stage1_patches(x)
    kernel = functools.partial(fused_forward_kernel, batch=B)
    return pl.pallas_call(
        kernel,
        out_shape=jax.ShapeDtypeStruct((B, 10), jnp.float32),
    )(p1, kp["w1m"], kp["b1k"], kp["w2s"], kp["b2k"], kp["w3s"], kp["b3k"],
      kp["m2"], kp["m3"], kp["wlm"], kp["blk"])


# ------------------------- parameters and reference -------------------------

def init_torch_params(key):
    ks = jax.random.split(key, 8)
    return {
        "w1": jax.random.normal(ks[0], (8, 1, 3, 3), jnp.float32) * 0.2,
        "b1": jax.random.normal(ks[1], (8,), jnp.float32) * 0.1,
        "w2": jax.random.normal(ks[2], (16, 8, 3, 3), jnp.float32) * 0.1,
        "b2": jax.random.normal(ks[3], (16,), jnp.float32) * 0.1,
        "w3": jax.random.normal(ks[4], (32, 16, 3, 3), jnp.float32) * 0.1,
        "b3": jax.random.normal(ks[5], (32,), jnp.float32) * 0.1,
        "wl": jax.random.normal(ks[6], (10, 1568), jnp.float32) * 0.05,
        "bl": jax.random.normal(ks[7], (10,), jnp.float32) * 0.05,
    }


def reference_forward(x, tp):
    def conv2d(v, w, b):
        y = jax.lax.conv_general_dilated(
            v, w, (1, 1), ((1, 1), (1, 1)),
            dimension_numbers=("NCHW", "OIHW", "NCHW"))
        return y + b[None, :, None, None]

    def maxpool2(v):
        b, c, h, w = v.shape
        return jnp.max(v.reshape(b, c, h // 2, 2, w // 2, 2), axis=(3, 5))

    v = maxpool2(_lrelu(conv2d(x, tp["w1"], tp["b1"])))
    v = maxpool2(_lrelu(conv2d(v, tp["w2"], tp["b2"])))
    v = _lrelu(conv2d(v, tp["w3"], tp["b3"]))
    v = v.reshape(v.shape[0], -1)                        # torch flatten (c,h,w)
    logits = v @ tp["wl"].T + tp["bl"]
    m = jnp.max(logits, axis=0, keepdims=True)
    e = jnp.exp(logits - m)
    return e / jnp.sum(e, axis=0, keepdims=True)         # softmax over dim 0


if __name__ == "__main__":
    key = jax.random.PRNGKey(0)
    kx, kp_key = jax.random.split(key)
    # 28x28 input is required by the 1568-wide linear (32 * 7 * 7 after 2 pools)
    x = jax.random.normal(kx, (2, 1, 28, 28), jnp.float32)
    tp = init_torch_params(kp_key)
    kp = make_kernel_params(tp, B=x.shape[0])

    out = jax.block_until_ready(cnn_lrelu_forward(x, kp))
    assert out.shape == (2, 10), out.shape

    ref = reference_forward(x, tp)
    if not bool(jnp.allclose(out, ref, atol=1e-4, rtol=1e-4)):
        raise AssertionError(f"Pallas output mismatch vs reference:\n{out}\n{ref}")
    print("KERNEL_OK")
</pallas_src>

<mosaic_0001>
module attributes {stable_mosaic.version = 11 : i64} {
  func.func @fused_forward_kernel(%arg0: memref<1568x9xf32, #tpu.memory_space<vmem>>, %arg1: memref<9x8xf32, #tpu.memory_space<vmem>>, %arg2: memref<1x8xf32, #tpu.memory_space<vmem>>, %arg3: memref<72x16xf32, #tpu.memory_space<vmem>>, %arg4: memref<1x16xf32, #tpu.memory_space<vmem>>, %arg5: memref<144x32xf32, #tpu.memory_space<vmem>>, %arg6: memref<1x32xf32, #tpu.memory_space<vmem>>, %arg7: memref<392x72xf32, #tpu.memory_space<vmem>>, %arg8: memref<98x144xf32, #tpu.memory_space<vmem>>, %arg9: memref<1568x10xf32, #tpu.memory_space<vmem>>, %arg10: memref<1x10xf32, #tpu.memory_space<vmem>>, %arg11: memref<2x10xf32, #tpu.memory_space<vmem>>) attributes {dimension_semantics = [], scalar_prefetch = 0 : i64, scratch_operands = 0 : i64, tpu.core_type = #tpu.core_type<tc>} {
    %c0 = arith.constant 0 : index
    %c0_0 = arith.constant 0 : index
    %0 = vector.load %arg0[%c0, %c0_0] : memref<1568x9xf32, #tpu.memory_space<vmem>>, vector<1568x9xf32>
    %c0_1 = arith.constant 0 : index
    %c0_2 = arith.constant 0 : index
    %1 = vector.load %arg1[%c0_1, %c0_2] : memref<9x8xf32, #tpu.memory_space<vmem>>, vector<9x8xf32>
    %cst = arith.constant dense<0.000000e+00> : vector<1568x8xf32>
    %2 = tpu.matmul %0, %1, %cst {dimension_numbers = #tpu.dot_dimension_numbers<[1], [0], [0], [1], [0, 0, 1, 1], [], []>} : vector<1568x9xf32>, vector<9x8xf32>, vector<1568x8xf32> -> vector<1568x8xf32>
    %3 = vector.extract_strided_slice %2 {offsets = [0, 0], sizes = [392, 8], strides = [1, 1]} : vector<1568x8xf32> to vector<392x8xf32>
    %4 = vector.extract_strided_slice %2 {offsets = [392, 0], sizes = [392, 8], strides = [1, 1]} : vector<1568x8xf32> to vector<392x8xf32>
    %5 = arith.maximumf %3, %4 : vector<392x8xf32>
    %6 = vector.extract_strided_slice %2 {offsets = [784, 0], sizes = [392, 8], strides = [1, 1]} : vector<1568x8xf32> to vector<392x8xf32>
    %7 = vector.extract_strided_slice %2 {offsets = [1176, 0], sizes = [392, 8], strides = [1, 1]} : vector<1568x8xf32> to vector<392x8xf32>
    %8 = arith.maximumf %6, %7 : vector<392x8xf32>
    %9 = arith.maximumf %5, %8 : vector<392x8xf32>
    %c0_3 = arith.constant 0 : index
    %c0_4 = arith.constant 0 : index
    %10 = vector.load %arg2[%c0_3, %c0_4] : memref<1x8xf32, #tpu.memory_space<vmem>>, vector<1x8xf32>
    %11 = vector.broadcast %10 : vector<1x8xf32> to vector<392x8xf32>
    %12 = arith.addf %9, %11 : vector<392x8xf32>
    %cst_5 = arith.constant 0.000000e+00 : f32
    %13 = vector.broadcast %cst_5 : f32 to vector<392x8xf32>
    %14 = arith.cmpf ogt, %12, %13 : vector<392x8xf32>
    %cst_6 = arith.constant 0.00999999977 : f32
    %15 = vector.broadcast %cst_6 : f32 to vector<392x8xf32>
    %16 = arith.mulf %15, %12 : vector<392x8xf32>
    %17 = arith.select %14, %12, %16 : vector<392x8xi1>, vector<392x8xf32>
    %18 = vector.extract_strided_slice %17 {offsets = [294, 0], sizes = [98, 8], strides = [1, 1]} : vector<392x8xf32> to vector<98x8xf32>
    %cst_7 = arith.constant 0.000000e+00 : f32
    %19 = vector.broadcast %cst_7 : f32 to vector<16x8xf32>
    %20 = vector.extract_strided_slice %18 {offsets = [0, 0], sizes = [82, 8], strides = [1, 1]} : vector<98x8xf32> to vector<82x8xf32>
    %21 = tpu.concatenate %19, %20 in 0 : vector<16x8xf32>, vector<82x8xf32> -> vector<98x8xf32>
    %22 = vector.extract_strided_slice %17 {offsets = [196, 0], sizes = [98, 8], strides = [1, 1]} : vector<392x8xf32> to vector<98x8xf32>
    %cst_8 = arith.constant 0.000000e+00 : f32
    %23 = vector.broadcast %cst_8 : f32 to vector<14x8xf32>
    %24 = vector.extract_strided_slice %22 {offsets = [0, 0], sizes = [84, 8], strides = [1, 1]} : vector<98x8xf32> to vector<84x8xf32>
    %25 = tpu.concatenate %23, %24 in 0 : vector<14x8xf32>, vector<84x8xf32> -> vector<98x8xf32>
    %26 = vector.extract_strided_slice %17 {offsets = [294, 0], sizes = [98, 8], strides = [1, 1]} : vector<392x8xf32> to vector<98x8xf32>
    %cst_9 = arith.constant 0.000000e+00 : f32
    %27 = vector.broadcast %cst_9 : f32 to vector<14x8xf32>
    %28 = vector.extract_strided_slice %26 {offsets = [0, 0], sizes = [84, 8], strides = [1, 1]} : vector<98x8xf32> to vector<84x8xf32>
    %29 = tpu.concatenate %27, %28 in 0 : vector<14x8xf32>, vector<84x8xf32> -> vector<98x8xf32>
    %30 = vector.extract_strided_slice %17 {offsets = [98, 0], sizes = [98, 8], strides = [1, 1]} : vector<392x8xf32> to vector<98x8xf32>
    %cst_10 = arith.constant 0.000000e+00 : f32
    %31 = vector.broadcast %cst_10 : f32 to vector<2x8xf32>
    %32 = vector.extract_strided_slice %30 {offsets = [0, 0], sizes = [96, 8], strides = [1, 1]} : vector<98x8xf32> to vector<96x8xf32>
    %33 = tpu.concatenate %31, %32 in 0 : vector<2x8xf32>, vector<96x8xf32> -> vector<98x8xf32>
    %34 = vector.extract_strided_slice %17 {offsets = [0, 0], sizes = [98, 8], strides = [1, 1]} : vector<392x8xf32> to vector<98x8xf32>
    %35 = vector.extract_strided_slice %17 {offsets = [98, 0], sizes = [98, 8], strides = [1, 1]} : vector<392x8xf32> to vector<98x8xf32>
    %36 = vector.extract_strided_slice %17 {offsets = [294, 0], sizes = [98, 8], strides = [1, 1]} : vector<392x8xf32> to vector<98x8xf32>
    %cst_11 = arith.constant 0.000000e+00 : f32
    %37 = vector.broadcast %cst_11 : f32 to vector<2x8xf32>
    %38 = vector.extract_strided_slice %36 {offsets = [0, 0], sizes = [96, 8], strides = [1, 1]} : vector<98x8xf32> to vector<96x8xf32>
    %39 = tpu.concatenate %37, %38 in 0 : vector<2x8xf32>, vector<96x8xf32> -> vector<98x8xf32>
    %40 = vector.extract_strided_slice %17 {offsets = [196, 0], sizes = [98, 8], strides = [1, 1]} : vector<392x8xf32> to vector<98x8xf32>
    %41 = vector.extract_strided_slice %17 {offsets = [294, 0], sizes = [98, 8], strides = [1, 1]} : vector<392x8xf32> to vector<98x8xf32>
    %42 = tpu.concatenate %21, %25, %29, %33, %34, %35, %39, %40, %41 in 1 : vector<98x8xf32>, vector<98x8xf32>, vector<98x8xf32>, vector<98x8xf32>, vector<98x8xf32>, vector<98x8xf32>, vector<98x8xf32>, vector<98x8xf32>, vector<98x8xf32> -> vector<98x72xf32>
    %43 = vector.extract_strided_slice %17 {offsets = [196, 0], sizes = [98, 8], strides = [1, 1]} : vector<392x8xf32> to vector<98x8xf32>
    %cst_12 = arith.constant 0.000000e+00 : f32
    %44 = vector.broadcast %cst_12 : f32 to vector<14x8xf32>
    %45 = vector.extract_strided_slice %43 {offsets = [0, 0], sizes = [84, 8], strides = [1, 1]} : vector<98x8xf32> to vector<84x8xf32>
    %46 = tpu.concatenate %44, %45 in 0 : vector<14x8xf32>, vector<84x8xf32> -> vector<98x8xf32>
    %47 = vector.extract_strided_slice %17 {offsets = [294, 0], sizes = [98, 8], strides = [1, 1]} : vector<392x8xf32> to vector<98x8xf32>
    %cst_13 = arith.constant 0.000000e+00 : f32
    %48 = vector.broadcast %cst_13 : f32 to vector<14x8xf32>
    %49 = vector.extract_strided_slice %47 {offsets = [0, 0], sizes = [84, 8], strides = [1, 1]} : vector<98x8xf32> to vector<84x8xf32>
    %50 = tpu.concatenate %48, %49 in 0 : vector<14x8xf32>, vector<84x8xf32> -> vector<98x8xf32>
    %51 = vector.extract_strided_slice %17 {offsets = [196, 0], sizes = [98, 8], strides = [1, 1]} : vector<392x8xf32> to vector<98x8xf32>
    %cst_14 = arith.constant 0.000000e+00 : f32
    %52 = vector.broadcast %cst_14 : f32 to vector<12x8xf32>
    %53 = vector.extract_strided_slice %51 {offsets = [0, 0], sizes = [86, 8], strides = [1, 1]} : vector<98x8xf32> to vector<86x8xf32>
    %54 = tpu.concatenate %52, %53 in 0 : vector<12x8xf32>, vector<86x8xf32> -> vector<98x8xf32>
    %55 = vector.extract_strided_slice %17 {offsets = [0, 0], sizes = [98, 8], strides = [1, 1]} : vector<392x8xf32> to vector<98x8xf32>
    %56 = vector.extract_strided_slice %17 {offsets = [98, 0], sizes = [98, 8], strides = [1, 1]} : vector<392x8xf32> to vector<98x8xf32>
    %57 = vector.extract_strided_slice %17 {offsets = [0, 0], sizes = [98, 8], strides = [1, 1]} : vector<392x8xf32> to vector<98x8xf32>
    %cst_15 = arith.constant 0.000000e+00 : f32
    %58 = vector.broadcast %cst_15 : f32 to vector<2x8xf32>
    %59 = vector.extract_strided_slice %57 {offsets = [2, 0], sizes = [96, 8], strides = [1, 1]} : vector<98x8xf32> to vector<96x8xf32>
    %60 = tpu.concatenate %59, %58 in 0 : vector<96x8xf32>, vector<2x8xf32> -> vector<98x8xf32>
    %61 = vector.extract_strided_slice %17 {offsets = [196, 0], sizes = [98, 8], strides = [1, 1]} : vector<392x8xf32> to vector<98x8xf32>
    %62 = vector.extract_strided_slice %17 {offsets = [294, 0], sizes = [98, 8], strides = [1, 1]} : vector<392x8xf32> to vector<98x8xf32>
    %63 = vector.extract_strided_slice %17 {offsets = [196, 0], sizes = [98, 8], strides = [1, 1]} : vector<392x8xf32> to vector<98x8xf32>
    %cst_16 = arith.constant 0.000000e+00 : f32
    %64 = vector.broadcast %cst_16 : f32 to vector<2x8xf32>
    %65 = vector.extract_strided_slice %63 {offsets = [2, 0], sizes = [96, 8], strides = [1, 1]} : vector<98x8xf32> to vector<96x8xf32>
    %66 = tpu.concatenate %65, %64 in 0 : vector<96x8xf32>, vector<2x8xf32> -> vector<98x8xf32>
    %67 = tpu.concatenate %46, %50, %54, %55, %56, %60, %61, %62, %66 in 1 : vector<98x8xf32>, vector<98x8xf32>, vector<98x8xf32>, vector<98x8xf32>, vector<98x8xf32>, vector<98x8xf32>, vector<98x8xf32>, vector<98x8xf32>, vector<98x8xf32> -> vector<98x72xf32>
    %68 = vector.extract_strided_slice %17 {offsets = [98, 0], sizes = [98, 8], strides = [1, 1]} : vector<392x8xf32> to vector<98x8xf32>
    %cst_17 = arith.constant 0.000000e+00 : f32
    %69 = vector.broadcast %cst_17 : f32 to vector<2x8xf32>
    %70 = vector.extract_strided_slice %68 {offsets = [0, 0], sizes = [96, 8], strides = [1, 1]} : vector<98x8xf32> to vector<96x8xf32>
    %71 = tpu.concatenate %69, %70 in 0 : vector<2x8xf32>, vector<96x8xf32> -> vector<98x8xf32>
    %72 = vector.extract_strided_slice %17 {offsets = [0, 0], sizes = [98, 8], strides = [1, 1]} : vector<392x8xf32> to vector<98x8xf32>
    %73 = vector.extract_strided_slice %17 {offsets = [98, 0], sizes = [98, 8], strides = [1, 1]} : vector<392x8xf32> to vector<98x8xf32>
    %74 = vector.extract_strided_slice %17 {offsets = [294, 0], sizes = [98, 8], strides = [1, 1]} : vector<392x8xf32> to vector<98x8xf32>
    %cst_18 = arith.constant 0.000000e+00 : f32
    %75 = vector.broadcast %cst_18 : f32 to vector<2x8xf32>
    %76 = vector.extract_strided_slice %74 {offsets = [0, 0], sizes = [96, 8], strides = [1, 1]} : vector<98x8xf32> to vector<96x8xf32>
    %77 = tpu.concatenate %75, %76 in 0 : vector<2x8xf32>, vector<96x8xf32> -> vector<98x8xf32>
    %78 = vector.extract_strided_slice %17 {offsets = [196, 0], sizes = [98, 8], strides = [1, 1]} : vector<392x8xf32> to vector<98x8xf32>
    %79 = vector.extract_strided_slice %17 {offsets = [294, 0], sizes = [98, 8], strides = [1, 1]} : vector<392x8xf32> to vector<98x8xf32>
    %80 = vector.extract_strided_slice %17 {offsets = [98, 0], sizes = [98, 8], strides = [1, 1]} : vector<392x8xf32> to vector<98x8xf32>
    %cst_19 = arith.constant 0.000000e+00 : f32
    %81 = vector.broadcast %cst_19 : f32 to vector<12x8xf32>
    %82 = vector.extract_strided_slice %80 {offsets = [12, 0], sizes = [86, 8], strides = [1, 1]} : vector<98x8xf32> to vector<86x8xf32>
    %83 = tpu.concatenate %82, %81 in 0 : vector<86x8xf32>, vector<12x8xf32> -> vector<98x8xf32>
    %84 = vector.extract_strided_slice %17 {offsets = [0, 0], sizes = [98, 8], strides = [1, 1]} : vector<392x8xf32> to vector<98x8xf32>
    %cst_20 = arith.constant 0.000000e+00 : f32
    %85 = vector.broadcast %cst_20 : f32 to vector<14x8xf32>
    %86 = vector.extract_strided_slice %84 {offsets = [14, 0], sizes = [84, 8], strides = [1, 1]} : vector<98x8xf32> to vector<84x8xf32>
    %87 = tpu.concatenate %86, %85 in 0 : vector<84x8xf32>, vector<14x8xf32> -> vector<98x8xf32>
    %88 = vector.extract_strided_slice %17 {offsets = [98, 0], sizes = [98, 8], strides = [1, 1]} : vector<392x8xf32> to vector<98x8xf32>
    %cst_21 = arith.constant 0.000000e+00 : f32
    %89 = vector.broadcast %cst_21 : f32 to vector<14x8xf32>
    %90 = vector.extract_strided_slice %88 {offsets = [14, 0], sizes = [84, 8], strides = [1, 1]} : vector<98x8xf32> to vector<84x8xf32>
    %91 = tpu.concatenate %90, %89 in 0 : vector<84x8xf32>, vector<14x8xf32> -> vector<98x8xf32>
    %92 = tpu.concatenate %71, %72, %73, %77, %78, %79, %83, %87, %91 in 1 : vector<98x8xf32>, vector<98x8xf32>, vector<98x8xf32>, vector<98x8xf32>, vector<98x8xf32>, vector<98x8xf32>, vector<98x8xf32>, vector<98x8xf32>, vector<98x8xf32> -> vector<98x72xf32>
    %93 = vector.extract_strided_slice %17 {offsets = [0, 0], sizes = [98, 8], strides = [1, 1]} : vector<392x8xf32> to vector<98x8xf32>
    %94 = vector.extract_strided_slice %17 {offsets = [98, 0], sizes = [98, 8], strides = [1, 1]} : vector<392x8xf32> to vector<98x8xf32>
    %95 = vector.extract_strided_slice %17 {offsets = [0, 0], sizes = [98, 8], strides = [1, 1]} : vector<392x8xf32> to vector<98x8xf32>
    %cst_22 = arith.constant 0.000000e+00 : f32
    %96 = vector.broadcast %cst_22 : f32 to vector<2x8xf32>
    %97 = vector.extract_strided_slice %95 {offsets = [2, 0], sizes = [96, 8], strides = [1, 1]} : vector<98x8xf32> to vector<96x8xf32>
    %98 = tpu.concatenate %97, %96 in 0 : vector<96x8xf32>, vector<2x8xf32> -> vector<98x8xf32>
    %99 = vector.extract_strided_slice %17 {offsets = [196, 0], sizes = [98, 8], strides = [1, 1]} : vector<392x8xf32> to vector<98x8xf32>
    %100 = vector.extract_strided_slice %17 {offsets = [294, 0], sizes = [98, 8], strides = [1, 1]} : vector<392x8xf32> to vector<98x8xf32>
    %101 = vector.extract_strided_slice %17 {offsets = [196, 0], sizes = [98, 8], strides = [1, 1]} : vector<392x8xf32> to vector<98x8xf32>
    %cst_23 = arith.constant 0.000000e+00 : f32
    %102 = vector.broadcast %cst_23 : f32 to vector<2x8xf32>
    %103 = vector.extract_strided_slice %101 {offsets = [2, 0], sizes = [96, 8], strides = [1, 1]} : vector<98x8xf32> to vector<96x8xf32>
    %104 = tpu.concatenate %103, %102 in 0 : vector<96x8xf32>, vector<2x8xf32> -> vector<98x8xf32>
    %105 = vector.extract_strided_slice %17 {offsets = [0, 0], sizes = [98, 8], strides = [1, 1]} : vector<392x8xf32> to vector<98x8xf32>
    %cst_24 = arith.constant 0.000000e+00 : f32
    %106 = vector.broadcast %cst_24 : f32 to vector<14x8xf32>
    %107 = vector.extract_strided_slice %105 {offsets = [14, 0], sizes = [84, 8], strides = [1, 1]} : vector<98x8xf32> to vector<84x8xf32>
    %108 = tpu.concatenate %107, %106 in 0 : vector<84x8xf32>, vector<14x8xf32> -> vector<98x8xf32>
    %109 = vector.extract_strided_slice %17 {offsets = [98, 0], sizes = [98, 8], strides = [1, 1]} : vector<392x8xf32> to vector<98x8xf32>
    %cst_25 = arith.constant 0.000000e+00 : f32
    %110 = vector.broadcast %cst_25 : f32 to vector<14x8xf32>
    %111 = vector.extract_strided_slice %109 {offsets = [14, 0], sizes = [84, 8], strides = [1, 1]} : vector<98x8xf32> to vector<84x8xf32>
    %112 = tpu.concatenate %111, %110 in 0 : vector<84x8xf32>, vector<14x8xf32> -> vector<98x8xf32>
    %113 = vector.extract_strided_slice %17 {offsets = [0, 0], sizes = [98, 8], strides = [1, 1]} : vector<392x8xf32> to vector<98x8xf32>
    %cst_26 = arith.constant 0.000000e+00 : f32
    %114 = vector.broadcast %cst_26 : f32 to vector<16x8xf32>
    %115 = vector.extract_strided_slice %113 {offsets = [16, 0], sizes = [82, 8], strides = [1, 1]} : vector<98x8xf32> to vector<82x8xf32>
    %116 = tpu.concatenate %115, %114 in 0 : vector<82x8xf32>, vector<16x8xf32> -> vector<98x8xf32>
    %117 = tpu.concatenate %93, %94, %98, %99, %100, %104, %108, %112, %116 in 1 : vector<98x8xf32>, vector<98x8xf32>, vector<98x8xf32>, vector<98x8xf32>, vector<98x8xf32>, vector<98x8xf32>, vector<98x8xf32>, vector<98x8xf32>, vector<98x8xf32> -> vector<98x72xf32>
    %118 = tpu.concatenate %42, %67, %92, %117 in 0 : vector<98x72xf32>, vector<98x72xf32>, vector<98x72xf32>, vector<98x72xf32> -> vector<392x72xf32>
    %c0_27 = arith.constant 0 : index
    %c0_28 = arith.constant 0 : index
    %119 = vector.load %arg7[%c0_27, %c0_28] : memref<392x72xf32, #tpu.memory_space<vmem>>, vector<392x72xf32>
    %120 = arith.mulf %118, %119 : vector<392x72xf32>
    %c0_29 = arith.constant 0 : index
    %c0_30 = arith.constant 0 : index
    %121 = vector.load %arg3[%c0_29, %c0_30] : memref<72x16xf32, #tpu.memory_space<vmem>>, vector<72x16xf32>
    %cst_31 = arith.constant dense<0.000000e+00> : vector<392x16xf32>
    %122 = tpu.matmul %120, %121, %cst_31 {dimension_numbers = #tpu.dot_dimension_numbers<[1], [0], [0], [1], [0, 0, 1, 1], [], []>} : vector<392x72xf32>, vector<72x16xf32>, vector<392x16xf32> -> vector<392x16xf32>
    %123 = vector.extract_strided_slice %122 {offsets = [0, 0], sizes = [98, 16], strides = [1, 1]} : vector<392x16xf32> to vector<98x16xf32>
    %124 = vector.extract_strided_slice %122 {offsets = [98, 0], sizes = [98, 16], strides = [1, 1]} : vector<392x16xf32> to vector<98x16xf32>
    %125 = arith.maximumf %123, %124 : vector<98x16xf32>
    %126 = vector.extract_strided_slice %122 {offsets = [196, 0], sizes = [98, 16], strides = [1, 1]} : vector<392x16xf32> to vector<98x16xf32>
    %127 = vector.extract_strided_slice %122 {offsets = [294, 0], sizes = [98, 16], strides = [1, 1]} : vector<392x16xf32> to vector<98x16xf32>
    %128 = arith.maximumf %126, %127 : vector<98x16xf32>
    %129 = arith.maximumf %125, %128 : vector<98x16xf32>
    %c0_32 = arith.constant 0 : index
    %c0_33 = arith.constant 0 : index
    %130 = vector.load %arg4[%c0_32, %c0_33] : memref<1x16xf32, #tpu.memory_space<vmem>>, vector<1x16xf32>
    %131 = vector.broadcast %130 : vector<1x16xf32> to vector<98x16xf32>
    %132 = arith.addf %129, %131 : vector<98x16xf32>
    %cst_34 = arith.constant 0.000000e+00 : f32
    %133 = vector.broadcast %cst_34 : f32 to vector<98x16xf32>
    %134 = arith.cmpf ogt, %132, %133 : vector<98x16xf32>
    %cst_35 = arith.constant 0.00999999977 : f32
    %135 = vector.broadcast %cst_35 : f32 to vector<98x16xf32>
    %136 = arith.mulf %135, %132 : vector<98x16xf32>
    %137 = arith.select %134, %132, %136 : vector<98x16xi1>, vector<98x16xf32>
    %cst_36 = arith.constant 0.000000e+00 : f32
    %138 = vector.broadcast %cst_36 : f32 to vector<16x16xf32>
    %139 = vector.extract_strided_slice %137 {offsets = [0, 0], sizes = [82, 16], strides = [1, 1]} : vector<98x16xf32> to vector<82x16xf32>
    %140 = tpu.concatenate %138, %139 in 0 : vector<16x16xf32>, vector<82x16xf32> -> vector<98x16xf32>
    %cst_37 = arith.constant 0.000000e+00 : f32
    %141 = vector.broadcast %cst_37 : f32 to vector<14x16xf32>
    %142 = vector.extract_strided_slice %137 {offsets = [0, 0], sizes = [84, 16], strides = [1, 1]} : vector<98x16xf32> to vector<84x16xf32>
    %143 = tpu.concatenate %141, %142 in 0 : vector<14x16xf32>, vector<84x16xf32> -> vector<98x16xf32>
    %cst_38 = arith.constant 0.000000e+00 : f32
    %144 = vector.broadcast %cst_38 : f32 to vector<12x16xf32>
    %145 = vector.extract_strided_slice %137 {offsets = [0, 0], sizes = [86, 16], strides = [1, 1]} : vector<98x16xf32> to vector<86x16xf32>
    %146 = tpu.concatenate %144, %145 in 0 : vector<12x16xf32>, vector<86x16xf32> -> vector<98x16xf32>
    %cst_39 = arith.constant 0.000000e+00 : f32
    %147 = vector.broadcast %cst_39 : f32 to vector<2x16xf32>
    %148 = vector.extract_strided_slice %137 {offsets = [0, 0], sizes = [96, 16], strides = [1, 1]} : vector<98x16xf32> to vector<96x16xf32>
    %149 = tpu.concatenate %147, %148 in 0 : vector<2x16xf32>, vector<96x16xf32> -> vector<98x16xf32>
    %cst_40 = arith.constant 0.000000e+00 : f32
    %150 = vector.broadcast %cst_40 : f32 to vector<2x16xf32>
    %151 = vector.extract_strided_slice %137 {offsets = [2, 0], sizes = [96, 16], strides = [1, 1]} : vector<98x16xf32> to vector<96x16xf32>
    %152 = tpu.concatenate %151, %150 in 0 : vector<96x16xf32>, vector<2x16xf32> -> vector<98x16xf32>
    %cst_41 = arith.constant 0.000000e+00 : f32
    %153 = vector.broadcast %cst_41 : f32 to vector<12x16xf32>
    %154 = vector.extract_strided_slice %137 {offsets = [12, 0], sizes = [86, 16], strides = [1, 1]} : vector<98x16xf32> to vector<86x16xf32>
    %155 = tpu.concatenate %154, %153 in 0 : vector<86x16xf32>, vector<12x16xf32> -> vector<98x16xf32>
    %cst_42 = arith.constant 0.000000e+00 : f32
    %156 = vector.broadcast %cst_42 : f32 to vector<14x16xf32>
    %157 = vector.extract_strided_slice %137 {offsets = [14, 0], sizes = [84, 16], strides = [1, 1]} : vector<98x16xf32> to vector<84x16xf32>
    %158 = tpu.concatenate %157, %156 in 0 : vector<84x16xf32>, vector<14x16xf32> -> vector<98x16xf32>
    %cst_43 = arith.constant 0.000000e+00 : f32
    %159 = vector.broadcast %cst_43 : f32 to vector<16x16xf32>
    %160 = vector.extract_strided_slice %137 {offsets = [16, 0], sizes = [82, 16], strides = [1, 1]} : vector<98x16xf32> to vector<82x16xf32>
    %161 = tpu.concatenate %160, %159 in 0 : vector<82x16xf32>, vector<16x16xf32> -> vector<98x16xf32>
    %162 = tpu.concatenate %140, %143, %146, %149, %137, %152, %155, %158, %161 in 1 : vector<98x16xf32>, vector<98x16xf32>, vector<98x16xf32>, vector<98x16xf32>, vector<98x16xf32>, vector<98x16xf32>, vector<98x16xf32>, vector<98x16xf32>, vector<98x16xf32> -> vector<98x144xf32>
    %c0_44 = arith.constant 0 : index
    %c0_45 = arith.constant 0 : index
    %163 = vector.load %arg8[%c0_44, %c0_45] : memref<98x144xf32, #tpu.memory_space<vmem>>, vector<98x144xf32>
    %164 = arith.mulf %162, %163 : vector<98x144xf32>
    %c0_46 = arith.constant 0 : index
    %c0_47 = arith.constant 0 : index
    %165 = vector.load %arg5[%c0_46, %c0_47] : memref<144x32xf32, #tpu.memory_space<vmem>>, vector<144x32xf32>
    %cst_48 = arith.constant dense<0.000000e+00> : vector<98x32xf32>
    %166 = tpu.matmul %164, %165, %cst_48 {dimension_numbers = #tpu.dot_dimension_numbers<[1], [0], [0], [1], [0, 0, 1, 1], [], []>} : vector<98x144xf32>, vector<144x32xf32>, vector<98x32xf32> -> vector<98x32xf32>
    %c0_49 = arith.constant 0 : index
    %c0_50 = arith.constant 0 : index
    %167 = vector.load %arg6[%c0_49, %c0_50] : memref<1x32xf32, #tpu.memory_space<vmem>>, vector<1x32xf32>
    %168 = vector.broadcast %167 : vector<1x32xf32> to vector<98x32xf32>
    %169 = arith.addf %166, %168 : vector<98x32xf32>
    %cst_51 = arith.constant 0.000000e+00 : f32
    %170 = vector.broadcast %cst_51 : f32 to vector<98x32xf32>
    %171 = arith.cmpf ogt, %169, %170 : vector<98x32xf32>
    %cst_52 = arith.constant 0.00999999977 : f32
    %172 = vector.broadcast %cst_52 : f32 to vector<98x32xf32>
    %173 = arith.mulf %172, %169 : vector<98x32xf32>
    %174 = arith.select %171, %169, %173 : vector<98x32xi1>, vector<98x32xf32>
    %175 = vector.extract_strided_slice %174 {offsets = [0, 0], sizes = [2, 32], strides = [1, 1]} : vector<98x32xf32> to vector<2x32xf32>
    %176 = vector.extract_strided_slice %174 {offsets = [2, 0], sizes = [2, 32], strides = [1, 1]} : vector<98x32xf32> to vector<2x32xf32>
    %177 = vector.extract_strided_slice %174 {offsets = [4, 0], sizes = [2, 32], strides = [1, 1]} : vector<98x32xf32> to vector<2x32xf32>
    %178 = vector.extract_strided_slice %174 {offsets = [6, 0], sizes = [2, 32], strides = [1, 1]} : vector<98x32xf32> to vector<2x32xf32>
    %179 = vector.extract_strided_slice %174 {offsets = [8, 0], sizes = [2, 32], strides = [1, 1]} : vector<98x32xf32> to vector<2x32xf32>
    %180 = vector.extract_strided_slice %174 {offsets = [10, 0], sizes = [2, 32], strides = [1, 1]} : vector<98x32xf32> to vector<2x32xf32>
    %181 = vector.extract_strided_slice %174 {offsets = [12, 0], sizes = [2, 32], strides = [1, 1]} : vector<98x32xf32> to vector<2x32xf32>
    %182 = vector.extract_strided_slice %174 {offsets = [14, 0], sizes = [2, 32], strides = [1, 1]} : vector<98x32xf32> to vector<2x32xf32>
    %183 = vector.extract_strided_slice %174 {offsets = [16, 0], sizes = [2, 32], strides = [1, 1]} : vector<98x32xf32> to vector<2x32xf32>
    %184 = vector.extract_strided_slice %174 {offsets = [18, 0], sizes = [2, 32], strides = [1, 1]} : vector<98x32xf32> to vector<2x32xf32>
    %185 = vector.extract_strided_slice %174 {offsets = [20, 0], sizes = [2, 32], strides = [1, 1]} : vector<98x32xf32> to vector<2x32xf32>
    %186 = vector.extract_strided_slice %174 {offsets = [22, 0], sizes = [2, 32], strides = [1, 1]} : vector<98x32xf32> to vector<2x32xf32>
    %187 = vector.extract_strided_slice %174 {offsets = [24, 0], sizes = [2, 32], strides = [1, 1]} : vector<98x32xf32> to vector<2x32xf32>
    %188 = vector.extract_strided_slice %174 {offsets = [26, 0], sizes = [2, 32], strides = [1, 1]} : vector<98x32xf32> to vector<2x32xf32>
    %189 = vector.extract_strided_slice %174 {offsets = [28, 0], sizes = [2, 32], strides = [1, 1]} : vector<98x32xf32> to vector<2x32xf32>
    %190 = vector.extract_strided_slice %174 {offsets = [30, 0], sizes = [2, 32], strides = [1, 1]} : vector<98x32xf32> to vector<2x32xf32>
    %191 = vector.extract_strided_slice %174 {offsets = [32, 0], sizes = [2, 32], strides = [1, 1]} : vector<98x32xf32> to vector<2x32xf32>
    %192 = vector.extract_strided_slice %174 {offsets = [34, 0], sizes = [2, 32], strides = [1, 1]} : vector<98x32xf32> to vector<2x32xf32>
    %193 = vector.extract_strided_slice %174 {offsets = [36, 0], sizes = [2, 32], strides = [1, 1]} : vector<98x32xf32> to vector<2x32xf32>
    %194 = vector.extract_strided_slice %174 {offsets = [38, 0], sizes = [2, 32], strides = [1, 1]} : vector<98x32xf32> to vector<2x32xf32>
    %195 = vector.extract_strided_slice %174 {offsets = [40, 0], sizes = [2, 32], strides = [1, 1]} : vector<98x32xf32> to vector<2x32xf32>
    %196 = vector.extract_strided_slice %174 {offsets = [42, 0], sizes = [2, 32], strides = [1, 1]} : vector<98x32xf32> to vector<2x32xf32>
    %197 = vector.extract_strided_slice %174 {offsets = [44, 0], sizes = [2, 32], strides = [1, 1]} : vector<98x32xf32> to vector<2x32xf32>
    %198 = vector.extract_strided_slice %174 {offsets = [46, 0], sizes = [2, 32], strides = [1, 1]} : vector<98x32xf32> to vector<2x32xf32>
    %199 = vector.extract_strided_slice %174 {offsets = [48, 0], sizes = [2, 32], strides = [1, 1]} : vector<98x32xf32> to vector<2x32xf32>
    %200 = vector.extract_strided_slice %174 {offsets = [50, 0], sizes = [2, 32], strides = [1, 1]} : vector<98x32xf32> to vector<2x32xf32>
    %201 = vector.extract_strided_slice %174 {offsets = [52, 0], sizes = [2, 32], strides = [1, 1]} : vector<98x32xf32> to vector<2x32xf32>
    %202 = vector.extract_strided_slice %174 {offsets = [54, 0], sizes = [2, 32], strides = [1, 1]} : vector<98x32xf32> to vector<2x32xf32>
    %203 = vector.extract_strided_slice %174 {offsets = [56, 0], sizes = [2, 32], strides = [1, 1]} : vector<98x32xf32> to vector<2x32xf32>
    %204 = vector.extract_strided_slice %174 {offsets = [58, 0], sizes = [2, 32], strides = [1, 1]} : vector<98x32xf32> to vector<2x32xf32>
    %205 = vector.extract_strided_slice %174 {offsets = [60, 0], sizes = [2, 32], strides = [1, 1]} : vector<98x32xf32> to vector<2x32xf32>
    %206 = vector.extract_strided_slice %174 {offsets = [62, 0], sizes = [2, 32], strides = [1, 1]} : vector<98x32xf32> to vector<2x32xf32>
    %207 = vector.extract_strided_slice %174 {offsets = [64, 0], sizes = [2, 32], strides = [1, 1]} : vector<98x32xf32> to vector<2x32xf32>
    %208 = vector.extract_strided_slice %174 {offsets = [66, 0], sizes = [2, 32], strides = [1, 1]} : vector<98x32xf32> to vector<2x32xf32>
    %209 = vector.extract_strided_slice %174 {offsets = [68, 0], sizes = [2, 32], strides = [1, 1]} : vector<98x32xf32> to vector<2x32xf32>
    %210 = vector.extract_strided_slice %174 {offsets = [70, 0], sizes = [2, 32], strides = [1, 1]} : vector<98x32xf32> to vector<2x32xf32>
    %211 = vector.extract_strided_slice %174 {offsets = [72, 0], sizes = [2, 32], strides = [1, 1]} : vector<98x32xf32> to vector<2x32xf32>
    %212 = vector.extract_strided_slice %174 {offsets = [74, 0], sizes = [2, 32], strides = [1, 1]} : vector<98x32xf32> to vector<2x32xf32>
    %213 = vector.extract_strided_slice %174 {offsets = [76, 0], sizes = [2, 32], strides = [1, 1]} : vector<98x32xf32> to vector<2x32xf32>
    %214 = vector.extract_strided_slice %174 {offsets = [78, 0], sizes = [2, 32], strides = [1, 1]} : vector<98x32xf32> to vector<2x32xf32>
    %215 = vector.extract_strided_slice %174 {offsets = [80, 0], sizes = [2, 32], strides = [1, 1]} : vector<98x32xf32> to vector<2x32xf32>
    %216 = vector.extract_strided_slice %174 {offsets = [82, 0], sizes = [2, 32], strides = [1, 1]} : vector<98x32xf32> to vector<2x32xf32>
    %217 = vector.extract_strided_slice %174 {offsets = [84, 0], sizes = [2, 32], strides = [1, 1]} : vector<98x32xf32> to vector<2x32xf32>
    %218 = vector.extract_strided_slice %174 {offsets = [86, 0], sizes = [2, 32], strides = [1, 1]} : vector<98x32xf32> to vector<2x32xf32>
    %219 = vector.extract_strided_slice %174 {offsets = [88, 0], sizes = [2, 32], strides = [1, 1]} : vector<98x32xf32> to vector<2x32xf32>
    %220 = vector.extract_strided_slice %174 {offsets = [90, 0], sizes = [2, 32], strides = [1, 1]} : vector<98x32xf32> to vector<2x32xf32>
    %221 = vector.extract_strided_slice %174 {offsets = [92, 0], sizes = [2, 32], strides = [1, 1]} : vector<98x32xf32> to vector<2x32xf32>
    %222 = vector.extract_strided_slice %174 {offsets = [94, 0], sizes = [2, 32], strides = [1, 1]} : vector<98x32xf32> to vector<2x32xf32>
    %223 = vector.extract_strided_slice %174 {offsets = [96, 0], sizes = [2, 32], strides = [1, 1]} : vector<98x32xf32> to vector<2x32xf32>
    %224 = tpu.concatenate %175, %176, %177, %178, %179, %180, %181, %182, %183, %184, %185, %186, %187, %188, %189, %190 in 1 : vector<2x32xf32>, vector<2x32xf32>, vector<2x32xf32>, vector<2x32xf32>, vector<2x32xf32>, vector<2x32xf32>, vector<2x32xf32>, vector<2x32xf32>, vector<2x32xf32>, vector<2x32xf32>, vector<2x32xf32>, vector<2x32xf32>, vector<2x32xf32>, vector<2x32xf32>, vector<2x32xf32>, vector<2x32xf32> -> vector<2x512xf32>
    %225 = tpu.concatenate %191, %192, %193, %194, %195, %196, %197, %198, %199, %200, %201, %202, %203, %204, %205, %206 in 1 : vector<2x32xf32>, vector<2x32xf32>, vector<2x32xf32>, vector<2x32xf32>, vector<2x32xf32>, vector<2x32xf32>, vector<2x32xf32>, vector<2x32xf32>, vector<2x32xf32>, vector<2x32xf32>, vector<2x32xf32>, vector<2x32xf32>, vector<2x32xf32>, vector<2x32xf32>, vector<2x32xf32>, vector<2x32xf32> -> vector<2x512xf32>
    %226 = tpu.concatenate %207, %208, %209, %210, %211, %212, %213, %214, %215, %216, %217, %218, %219, %220, %221, %222 in 1 : vector<2x32xf32>, vector<2x32xf32>, vector<2x32xf32>, vector<2x32xf32>, vector<2x32xf32>, vector<2x32xf32>, vector<2x32xf32>, vector<2x32xf32>, vector<2x32xf32>, vector<2x32xf32>, vector<2x32xf32>, vector<2x32xf32>, vector<2x32xf32>, vector<2x32xf32>, vector<2x32xf32>, vector<2x32xf32> -> vector<2x512xf32>
    %227 = tpu.concatenate %224, %225, %226, %223 in 1 : vector<2x512xf32>, vector<2x512xf32>, vector<2x512xf32>, vector<2x32xf32> -> vector<2x1568xf32>
    %c0_53 = arith.constant 0 : index
    %c0_54 = arith.constant 0 : index
    %228 = vector.load %arg9[%c0_53, %c0_54] : memref<1568x10xf32, #tpu.memory_space<vmem>>, vector<1568x10xf32>
    %cst_55 = arith.constant dense<0.000000e+00> : vector<2x10xf32>
    %229 = tpu.matmul %227, %228, %cst_55 {dimension_numbers = #tpu.dot_dimension_numbers<[1], [0], [0], [1], [0, 0, 1, 1], [], []>} : vector<2x1568xf32>, vector<1568x10xf32>, vector<2x10xf32> -> vector<2x10xf32>
    %c0_56 = arith.constant 0 : index
    %c0_57 = arith.constant 0 : index
    %230 = vector.load %arg10[%c0_56, %c0_57] : memref<1x10xf32, #tpu.memory_space<vmem>>, vector<1x10xf32>
    %231 = vector.broadcast %230 : vector<1x10xf32> to vector<2x10xf32>
    %232 = arith.addf %229, %231 : vector<2x10xf32>
    %cst_58 = arith.constant dense<0xFF800000> : vector<10xf32>
    %233 = vector.multi_reduction <maximumf>, %232, %cst_58 [0] : vector<2x10xf32> to vector<10xf32>
    %234 = vector.shape_cast %233 : vector<10xf32> to vector<1x10xf32>
    %235 = vector.broadcast %234 : vector<1x10xf32> to vector<2x10xf32>
    %236 = arith.subf %232, %235 : vector<2x10xf32>
    %237 = math.exp %236 : vector<2x10xf32>
    %cst_59 = arith.constant dense<0.000000e+00> : vector<10xf32>
    %238 = vector.multi_reduction <add>, %237, %cst_59 [0] : vector<2x10xf32> to vector<10xf32>
    %239 = vector.shape_cast %238 : vector<10xf32> to vector<1x10xf32>
    %240 = vector.broadcast %239 : vector<1x10xf32> to vector<2x10xf32>
    %241 = arith.divf %237, %240 : vector<2x10xf32>
    %c0_60 = arith.constant 0 : index
    %c0_61 = arith.constant 0 : index
    %242 = vector.load %arg11[%c0_60, %c0_61] : memref<2x10xf32, #tpu.memory_space<vmem>>, vector<2x10xf32>
    tpu.vector_store %arg11[%c0_60, %c0_61], %241 {strides = array<i32>} : memref<2x10xf32, #tpu.memory_space<vmem>>, vector<2x10xf32>,
    return
  }
}

</mosaic_0001>

<bundles_post_ra>
// kernel: cnn_lrelu_forward.1
= control target key start
LH: loop header
LB: loop body
LE: loop exit
PB: predicated region body
PF: predicated region fallthrough
CT: control target
= control target key end

     0   :  { %vm826_vm0 = vcmask 1040384   ;;  %vm8372_vm1 = vmmov 1   ;;  %vm237_vm3 = vcmask 72704   ;;  %s14625_s0 = inlined_call_operand.vmem [shape: f32[1568,9], index: 0, kind: input, shape index: {}]   ;;  %s14626_s1 = inlined_call_operand.vmem [shape: f32[9,8], index: 1, kind: input, shape index: {}]   ;;  %s14627_s2 = inlined_call_operand.vmem [shape: f32[1,8], index: 2, kind: input, shape index: {}]   ;;  %s14628_s3 = inlined_call_operand.vmem [shape: f32[72,16], index: 3, kind: input, shape index: {}]   ;;  %s14629_s4 = inlined_call_operand.vmem [shape: f32[1,16], index: 4, kind: input, shape index: {}]   ;;  %s14630_s5 = inlined_call_operand.vmem [shape: f32[144,32], index: 5, kind: input, shape index: {}]   ;;  %s14631_s6 = inlined_call_operand.vmem [shape: f32[1,32], index: 6, kind: input, shape index: {}]   ;;  %s14632_s7 = inlined_call_operand.vmem [shape: f32[392,72], index: 7, kind: input, shape index: {}]   ;;  %s14633_s8 = inlined_call_operand.vmem [shape: f32[98,144], index: 8, kind: input, shape index: {}]   ;;  %s14634_s9 = inlined_call_operand.vmem [shape: f32[1568,10], index: 9, kind: input, shape index: {}]   ;;  %s14635_s10 = inlined_call_operand.vmem [shape: f32[1,10], index: 10, kind: input, shape index: {}]   ;;  %s14636_s11 = inlined_call_operand.hbm [shape: f32[2,10], index: 11, kind: output, shape index: {}]  }
   0x1   :  { %v235_v0 = vld [vmem:[%s14626_s1] sm:$0xff]  ;;  %v236_v1 = vld [vmem:[%s14626_s1 + $0x8] sm:$0x1]  ;;  %vm7994_vm2 = vmpackc.low %vm826_vm0, %vm8372_vm1 }
   0x2   :  { %v39_v2 = vld [vmem:[%s14625_s0] sm:$0xff]  ;;  %v7993_v3 = vpack.c.bf16 %v236_v1, %v235_v0  ;;  %v40_v4 = vld [vmem:[%s14625_s0 + $0x8] sm:$0xff]  ;;  %v41_v5 = vld [vmem:[%s14625_s0 + $0x10] sm:$0xff] }
   0x3   :  { %7523 = vmatprep.mubr.msk.f32.mxu0 %vm237_vm3, %v39_v2  ;;  %v42_v6 = vld [vmem:[%s14625_s0 + $0x18] sm:$0xff]  ;;  %v43_v7 = vld [vmem:[%s14625_s0 + $0x20] sm:$0xff]  ;;  %v44_v8 = vld [vmem:[%s14625_s0 + $0x28] sm:$0xff] }
   0x4   :  { %7995 = vmatprep.subr.msk.bf16.mxu0 %vm7994_vm2, %v7993_v3  ;;  %v45_v9 = vld [vmem:[%s14625_s0 + $0x30] sm:$0xff]  ;;  %v46_v10 = vld [vmem:[%s14625_s0 + $0x38] sm:$0xff]  ;;  %v47_v11 = vld [vmem:[%s14625_s0 + $0x40] sm:$0xff] }
   0x5   :  { %7998 = vmatpush3.bf16.msk.msra.mxu0 %vm7994_vm2, %v7993_v3  ;;  %v48_v12 = vld [vmem:[%s14625_s0 + $0x48] sm:$0xff]  ;;  %v49_v13 = vld [vmem:[%s14625_s0 + $0x50] sm:$0xff]  ;;  %v50_v14 = vld [vmem:[%s14625_s0 + $0x58] sm:$0xff] }
   0x6   :  { %v51_v15 = vld [vmem:[%s14625_s0 + $0x60] sm:$0xff] }
   0x8   :  { %7524 = vmatmul.mubr.msk.f32.vlgmr.msra.gmra.mrb[0].mxu0 %vm237_vm3, %v40_v4 }
   0x9   :  { %7526 = vmatprep.mubr.msk.f32.mxu0 %vm237_vm3, %v41_v5 }
   0xc   :  { %7527 = vmatmul.mubr.msk.f32.gmra.mrb[2].mxu0 %vm237_vm3, %v42_v6 }
   0xd   :  { %7529 = vmatprep.mubr.msk.f32.mxu0 %vm237_vm3, %v43_v7 }
  0x10   :  { %7530 = vmatmul.mubr.msk.f32.gmra.mrb[4].mxu0 %vm237_vm3, %v44_v8 }
  0x11   :  { %7532 = vmatprep.mubr.msk.f32.mxu0 %vm237_vm3, %v45_v9 }
  0x14   :  { %7533 = vmatmul.mubr.msk.f32.gmra.mrb[6].mxu0 %vm237_vm3, %v46_v10 }
  0x15   :  { %7535 = vmatprep.mubr.msk.f32.mxu0 %vm237_vm3, %v47_v11 }
  0x18   :  { %7536 = vmatmul.mubr.msk.f32.gmra.mrb[8].mxu0 %vm237_vm3, %v48_v12 }
  0x19   :  { %7538 = vmatprep.mubr.msk.f32.mxu0 %vm237_vm3, %v49_v13 }
  0x1a   :  { %16 = vsyncpa [#allocation3], 0  ;;  %v52_v16 = vld [vmem:[%s14625_s0 + $0x68] sm:$0xff]  ;;  %v53_v17 = vld [vmem:[%s14625_s0 + $0x70] sm:$0xff]  ;;  %s8374_s25 = smov 8   ;;  %s8375_s29 = smov 64  }
  0x1b   :  { %v54_v18 = vld [vmem:[%s14625_s0 + $0x78] sm:$0xff]  ;;  %v55_v19 = vld [vmem:[%s14625_s0 + $0x80] sm:$0xff]  ;;  %v56_v20 = vld [vmem:[%s14625_s0 + $0x88] sm:$0xff]  ;;  %s8376_s13 = smov 16   ;;  %s8377_s16 = smov 40   ;;  %vm2236_vm8 = vcmask 1041408  }
  0x1c   :  { %7539 = vmatmul.mubr.msk.f32.gmra.mrb[10].mxu0 %vm237_vm3, %v50_v14  ;;  %v57_v21 = vld [vmem:[%s14625_s0 + $0x90] sm:$0xff]  ;;  %v58_v22 = vld [vmem:[%s14625_s0 + $0x98] sm:$0xff]  ;;  %v59_v23 = vld [vmem:[%s14625_s0 + $0xa0] sm:$0xff]  ;;  %s8378_s18 = smov 32   ;;  %s8379_s19 = smov 24   ;;  %vm2313_vm10 = vcmask 1045504  }
  0x1d   :  { %7541 = vmatprep.mubr.msk.f32.mxu0 %vm237_vm3, %v51_v15  ;;  %v60_v24 = vld [vmem:[%s14625_s0 + $0xa8] sm:$0xff]  ;;  %v61_v25 = vld [vmem:[%s14625_s0 + $0xb0] sm:$0xff]  ;;  %v62_v26 = vld [vmem:[%s14625_s0 + $0xb8] sm:$0xff]  ;;  %s8380_s20 = smov 56   ;;  %s8381_s23 = smov 48  }
  0x1e   :  { %v63_v27 = vld [vmem:[%s14625_s0 + $0xc0] sm:$0xff]  ;;  %v64_v28 = vld [vmem:[%s14625_s0 + $0xc8] sm:$0xff]  ;;  %v65_v29 = vld [vmem:[%s14625_s0 + $0xd0] sm:$0xff]  ;;  %s8384_s26 = smov 80   ;;  %s8385_s1 = smov 96  }
  0x1f   :  { %v66_v30 = vld [vmem:[%s14625_s0 + $0xd8] sm:$0xff]  ;;  %v67_v31 = vld [vmem:[%s14625_s0 + $0xe0] sm:$0xff]  ;;  %v68_v32 = vld [vmem:[%s14625_s0 + $0xe8] sm:$0xff] }
  0x20   :  { %7542 = vmatmul.mubr.msk.f32.gmra.mrb[12].mxu0 %vm237_vm3, %v52_v16  ;;  %v69_v33 = vld [vmem:[%s14625_s0 + $0xf0] sm:$0xff]  ;;  %v70_v34 = vld [vmem:[%s14625_s0 + $0xf8] sm:$0xff]  ;;  %v71_v35 = vld [vmem:[%s14625_s0 + $0x100] sm:$0xff] }
  0x21   :  { %7544 = vmatprep.mubr.msk.f32.mxu0 %vm237_vm3, %v53_v17  ;;  %v72_v36 = vld [vmem:[%s14625_s0 + $0x108] sm:$0xff]  ;;  %v73_v37 = vld [vmem:[%s14625_s0 + $0x110] sm:$0xff]  ;;  %v74_v38 = vld [vmem:[%s14625_s0 + $0x118] sm:$0xff] }
  0x22   :  { %v75_v39 = vld [vmem:[%s14625_s0 + $0x120] sm:$0xff]  ;;  %v76_v40 = vld [vmem:[%s14625_s0 + $0x128] sm:$0xff]  ;;  %v77_v41 = vld [vmem:[%s14625_s0 + $0x130] sm:$0xff] }
  0x23   :  { %v78_v42 = vld [vmem:[%s14625_s0 + $0x138] sm:$0xff]  ;;  %v79_v43 = vld [vmem:[%s14625_s0 + $0x140] sm:$0xff]  ;;  %v80_v44 = vld [vmem:[%s14625_s0 + $0x148] sm:$0xff] }
  0x24   :  { %7545 = vmatmul.mubr.msk.f32.gmra.mrb[14].mxu0 %vm237_vm3, %v54_v18  ;;  %v81_v45 = vld [vmem:[%s14625_s0 + $0x150] sm:$0xff]  ;;  %v82_v46 = vld [vmem:[%s14625_s0 + $0x158] sm:$0xff]  ;;  %v83_v47 = vld [vmem:[%s14625_s0 + $0x160] sm:$0xff] }
  0x25   :  { %7547 = vmatprep.mubr.msk.f32.mxu0 %vm237_vm3, %v55_v19  ;;  %v84_v48 = vld [vmem:[%s14625_s0 + $0x168] sm:$0xff]  ;;  %v85_v49 = vld [vmem:[%s14625_s0 + $0x170] sm:$0xff]  ;;  %v86_v50 = vld [vmem:[%s14625_s0 + $0x178] sm:$0xff] }
  0x26   :  { %v87_v51 = vld [vmem:[%s14625_s0 + $0x180] sm:$0xff]  ;;  %v88_v52 = vld [vmem:[%s14625_s0 + $0x188] sm:$0xff]  ;;  %v89_v53 = vld [vmem:[%s14625_s0 + $0x190] sm:$0xff] }
  0x27   :  { %v90_v54 = vld [vmem:[%s14625_s0 + $0x198] sm:$0xff]  ;;  %v91_v55 = vld [vmem:[%s14625_s0 + $0x1a0] sm:$0xff]  ;;  %v92_v56 = vld [vmem:[%s14625_s0 + $0x1a8] sm:$0xff] }
  0x28   :  { %7548 = vmatmul.mubr.msk.f32.gmra.mrb[16].mxu0 %vm237_vm3, %v56_v20  ;;  %v93_v57 = vld [vmem:[%s14625_s0 + $0x1b0] sm:$0xff]  ;;  %v94_v58 = vld [vmem:[%s14625_s0 + $0x1b8] sm:$0xff]  ;;  %v95_v59 = vld [vmem:[%s14625_s0 + $0x1c0] sm:$0xff] }
  0x29   :  { %7550 = vmatprep.mubr.msk.f32.mxu0 %vm237_vm3, %v57_v21  ;;  %v96_v60 = vld [vmem:[%s14625_s0 + $0x1c8] sm:$0xff]  ;;  %v97_v61 = vld [vmem:[%s14625_s0 + $0x1d0] sm:$0xff]  ;;  %v98_v62 = vld [vmem:[%s14625_s0 + $0x1d8] sm:$0xff] }
  0x2a   :  { %v99_v63 = vld [vmem:[%s14625_s0 + $0x1e0] sm:$0xff]  ;;  %v100_v0 = vld [vmem:[%s14625_s0 + $0x1e8] sm:$0xff]  ;;  %v101_v1 = vld [vmem:[%s14625_s0 + $0x1f0] sm:$0xff] }
  0x2b   :  { %v102_v2 = vld [vmem:[%s14625_s0 + $0x1f8] sm:$0xff]  ;;  %v103_v3 = vld [vmem:[%s14625_s0 + $0x200] sm:$0xff]  ;;  %v104_v4 = vld [vmem:[%s14625_s0 + $0x208] sm:$0xff] }
  0x2c   :  { %7551 = vmatmul.mubr.msk.f32.gmra.mrb[18].mxu0 %vm237_vm3, %v58_v22  ;;  %v105_v5 = vld [vmem:[%s14625_s0 + $0x210] sm:$0xff]  ;;  %v106_v6 = vld [vmem:[%s14625_s0 + $0x218] sm:$0xff]  ;;  %v107_v7 = vld [vmem:[%s14625_s0 + $0x220] sm:$0xff] }
  0x2d   :  { %7553 = vmatprep.mubr.msk.f32.mxu0 %vm237_vm3, %v59_v23  ;;  %v108_v8 = vld [vmem:[%s14625_s0 + $0x228] sm:$0xff]  ;;  %v109_v9 = vld [vmem:[%s14625_s0 + $0x230] sm:$0xff]  ;;  %v110_v10 = vld [vmem:[%s14625_s0 + $0x238] sm:$0xff] }
  0x2e   :  { %v111_v11 = vld [vmem:[%s14625_s0 + $0x240] sm:$0xff]  ;;  %v112_v12 = vld [vmem:[%s14625_s0 + $0x248] sm:$0xff]  ;;  %v113_v13 = vld [vmem:[%s14625_s0 + $0x250] sm:$0xff] }
  0x2f   :  { %v114_v14 = vld [vmem:[%s14625_s0 + $0x258] sm:$0xff]  ;;  %v115_v15 = vld [vmem:[%s14625_s0 + $0x260] sm:$0xff]  ;;  %v116_v16 = vld [vmem:[%s14625_s0 + $0x268] sm:$0xff] }
  0x30   :  { %7554 = vmatmul.mubr.msk.f32.gmra.mrb[20].mxu0 %vm237_vm3, %v60_v24  ;;  %v117_v17 = vld [vmem:[%s14625_s0 + $0x270] sm:$0xff]  ;;  %v118_v18 = vld [vmem:[%s14625_s0 + $0x278] sm:$0xff]  ;;  %v119_v19 = vld [vmem:[%s14625_s0 + $0x280] sm:$0xff] }
  0x31   :  { %7556 = vmatprep.mubr.msk.f32.mxu0 %vm237_vm3, %v61_v25  ;;  %v120_v20 = vld [vmem:[%s14625_s0 + $0x288] sm:$0xff]  ;;  %v121_v21 = vld [vmem:[%s14625_s0 + $0x290] sm:$0xff]  ;;  %v122_v22 = vld [vmem:[%s14625_s0 + $0x298] sm:$0xff] }
  0x32   :  { %v123_v23 = vld [vmem:[%s14625_s0 + $0x2a0] sm:$0xff]  ;;  %v124_v24 = vld [vmem:[%s14625_s0 + $0x2a8] sm:$0xff]  ;;  %v125_v25 = vld [vmem:[%s14625_s0 + $0x2b0] sm:$0xff] }
  0x34   :  { %7557 = vmatmul.mubr.msk.f32.gmra.mrb[22].mxu0 %vm237_vm3, %v62_v26  ;;  %v126_v26 = vld [vmem:[%s14625_s0 + $0x2b8] sm:$0xff] }
  0x35   :  { %7559 = vmatprep.mubr.msk.f32.mxu0 %vm237_vm3, %v63_v27  ;;  %v127_v27 = vld [vmem:[%s14625_s0 + $0x2c0] sm:$0xff] }
  0x38   :  { %7560 = vmatmul.mubr.msk.f32.gmra.mrb[24].mxu0 %vm237_vm3, %v64_v28  ;;  %v128_v28 = vld [vmem:[%s14625_s0 + $0x2c8] sm:$0xff] }
  0x39   :  { %7562 = vmatprep.mubr.msk.f32.mxu0 %vm237_vm3, %v65_v29  ;;  %v129_v29 = vld [vmem:[%s14625_s0 + $0x2d0] sm:$0xff] }
  0x3c   :  { %7563 = vmatmul.mubr.msk.f32.gmra.mrb[26].mxu0 %vm237_vm3, %v66_v30  ;;  %v130_v30 = vld [vmem:[%s14625_s0 + $0x2d8] sm:$0xff] }
  0x3d   :  { %7565 = vmatprep.mubr.msk.f32.mxu0 %vm237_vm3, %v67_v31  ;;  %v131_v31 = vld [vmem:[%s14625_s0 + $0x2e0] sm:$0xff] }
  0x40   :  { %7566 = vmatmul.mubr.msk.f32.gmra.mrb[28].mxu0 %vm237_vm3, %v68_v32  ;;  %v132_v32 = vld [vmem:[%s14625_s0 + $0x2e8] sm:$0xff] }
  0x41   :  { %7568 = vmatprep.mubr.msk.f32.mxu0 %vm237_vm3, %v69_v33  ;;  %v133_v33 = vld [vmem:[%s14625_s0 + $0x2f0] sm:$0xff] }
  0x44   :  { %7569 = vmatmul.mubr.msk.f32.gmra.mrb[30].mxu0 %vm237_vm3, %v70_v34  ;;  %v134_v34 = vld [vmem:[%s14625_s0 + $0x2f8] sm:$0xff] }
  0x45   :  { %7571 = vmatprep.mubr.msk.f32.mxu0 %vm237_vm3, %v71_v35  ;;  %v135_v35 = vld [vmem:[%s14625_s0 + $0x300] sm:$0xff] }
  0x48   :  { %7572 = vmatmul.mubr.msk.f32.gmra.mrb[32].mxu0 %vm237_vm3, %v72_v36  ;;  %v136_v36 = vld [vmem:[%s14625_s0 + $0x308] sm:$0xff] }
  0x49   :  { %7574 = vmatprep.mubr.msk.f32.mxu0 %vm237_vm3, %v73_v37  ;;  %v137_v37 = vld [vmem:[%s14625_s0 + $0x310] sm:$0xff] }
  0x4c   :  { %7575 = vmatmul.mubr.msk.f32.gmra.mrb[34].mxu0 %vm237_vm3, %v74_v38  ;;  %v138_v38 = vld [vmem:[%s14625_s0 + $0x318] sm:$0xff] }
  0x4d   :  { %7577 = vmatprep.mubr.msk.f32.mxu0 %vm237_vm3, %v75_v39  ;;  %v139_v39 = vld [vmem:[%s14625_s0 + $0x320] sm:$0xff] }
  0x50   :  { %7578 = vmatmul.mubr.msk.f32.gmra.mrb[36].mxu0 %vm237_vm3, %v76_v40  ;;  %v140_v40 = vld [vmem:[%s14625_s0 + $0x328] sm:$0xff] }
  0x51   :  { %7580 = vmatprep.mubr.msk.f32.mxu0 %vm237_vm3, %v77_v41  ;;  %v141_v41 = vld [vmem:[%s14625_s0 + $0x330] sm:$0xff] }
  0x54   :  { %7581 = vmatmul.mubr.msk.f32.gmra.mrb[38].mxu0 %vm237_vm3, %v78_v42  ;;  %v142_v42 = vld [vmem:[%s14625_s0 + $0x338] sm:$0xff] }
  0x55   :  { %7583 = vmatprep.mubr.msk.f32.mxu0 %vm237_vm3, %v79_v43  ;;  %v143_v43 = vld [vmem:[%s14625_s0 + $0x340] sm:$0xff] }
  0x58   :  { %7584 = vmatmul.mubr.msk.f32.gmra.mrb[40].mxu0 %vm237_vm3, %v80_v44  ;;  %v144_v44 = vld [vmem:[%s14625_s0 + $0x348] sm:$0xff] }
  0x59   :  { %7586 = vmatprep.mubr.msk.f32.mxu0 %vm237_vm3, %v81_v45  ;;  %v145_v45 = vld [vmem:[%s14625_s0 + $0x350] sm:$0xff] }
  0x5c   :  { %7587 = vmatmul.mubr.msk.f32.gmra.mrb[42].mxu0 %vm237_vm3, %v82_v46  ;;  %v146_v46 = vld [vmem:[%s14625_s0 + $0x358] sm:$0xff] }
  0x5d   :  { %7589 = vmatprep.mubr.msk.f32.mxu0 %vm237_vm3, %v83_v47  ;;  %v147_v47 = vld [vmem:[%s14625_s0 + $0x360] sm:$0xff] }
  0x60   :  { %7590 = vmatmul.mubr.msk.f32.gmra.mrb[44].mxu0 %vm237_vm3, %v84_v48 }
  0x61   :  { %7592 = vmatprep.mubr.msk.f32.mxu0 %vm237_vm3, %v85_v49 }
  0x64   :  { %7593 = vmatmul.mubr.msk.f32.gmra.mrb[46].mxu0 %vm237_vm3, %v86_v50  ;;  %v148_v50 = vld [vmem:[%s14625_s0 + $0x368] sm:$0xff] }
  0x65   :  { %7595 = vmatprep.mubr.msk.f32.mxu0 %vm237_vm3, %v87_v51  ;;  %v149_v51 = vld [vmem:[%s14625_s0 + $0x370] sm:$0xff] }
  0x68   :  { %7596 = vmatmul.mubr.msk.f32.gmra.mrb[48].mxu0 %vm237_vm3, %v88_v52 }
  0x69   :  { %7598 = vmatprep.mubr.msk.f32.mxu0 %vm237_vm3, %v89_v53 }
  0x6c   :  { %7599 = vmatmul.mubr.msk.f32.gmra.mrb[50].mxu0 %vm237_vm3, %v90_v54  ;;  %v150_v54 = vld [vmem:[%s14625_s0 + $0x378] sm:$0xff] }
  0x6d   :  { %7601 = vmatprep.mubr.msk.f32.mxu0 %vm237_vm3, %v91_v55  ;;  %v151_v55 = vld [vmem:[%s14625_s0 + $0x380] sm:$0xff] }
  0x70   :  { %7602 = vmatmul.mubr.msk.f32.gmra.mrb[52].mxu0 %vm237_vm3, %v92_v56 }
  0x71   :  { %7604 = vmatprep.mubr.msk.f32.mxu0 %vm237_vm3, %v93_v57 }
  0x74   :  { %7605 = vmatmul.mubr.msk.f32.gmra.mrb[54].mxu0 %vm237_vm3, %v94_v58  ;;  %v152_v58 = vld [vmem:[%s14625_s0 + $0x388] sm:$0xff] }
  0x75   :  { %7607 = vmatprep.mubr.msk.f32.mxu0 %vm237_vm3, %v95_v59  ;;  %v153_v59 = vld [vmem:[%s14625_s0 + $0x390] sm:$0xff] }
  0x78   :  { %7608 = vmatmul.mubr.msk.f32.gmra.mrb[56].mxu0 %vm237_vm3, %v96_v60 }
  0x79   :  { %7610 = vmatprep.mubr.msk.f32.mxu0 %vm237_vm3, %v97_v61 }
  0x7c   :  { %7611 = vmatmul.mubr.msk.f32.gmra.mrb[58].mxu0 %vm237_vm3, %v98_v62  ;;  %v154_v62 = vld [vmem:[%s14625_s0 + $0x398] sm:$0xff] }
  0x7d   :  { %7613 = vmatprep.mubr.msk.f32.mxu0 %vm237_vm3, %v99_v63  ;;  %v155_v63 = vld [vmem:[%s14625_s0 + $0x3a0] sm:$0xff] }
  0x80   :  { %7614 = vmatmul.mubr.msk.f32.gmra.mrb[60].mxu0 %vm237_vm3, %v100_v0 }
  0x81   :  { %7616 = vmatprep.mubr.msk.f32.mxu0 %vm237_vm3, %v101_v1 }
  0x84   :  { %7617 = vmatmul.mubr.msk.f32.gmra.mrb[62].mxu0 %vm237_vm3, %v102_v2  ;;  %v156_v2 = vld [vmem:[%s14625_s0 + $0x3a8] sm:$0xff] }
  0x85   :  { %7619 = vmatprep.mubr.msk.f32.mxu0 %vm237_vm3, %v103_v3  ;;  %v157_v3 = vld [vmem:[%s14625_s0 + $0x3b0] sm:$0xff] }
  0x88   :  { %7620 = vmatmul.mubr.msk.f32.gmra.mrb[64].mxu0 %vm237_vm3, %v104_v4 }
  0x89   :  { %7622 = vmatprep.mubr.msk.f32.mxu0 %vm237_vm3, %v105_v5 }
  0x8c   :  { %7623 = vmatmul.mubr.msk.f32.gmra.mrb[66].mxu0 %vm237_vm3, %v106_v6  ;;  %v158_v6 = vld [vmem:[%s14625_s0 + $0x3b8] sm:$0xff] }
  0x8d   :  { %7625 = vmatprep.mubr.msk.f32.mxu0 %vm237_vm3, %v107_v7  ;;  %v159_v7 = vld [vmem:[%s14625_s0 + $0x3c0] sm:$0xff] }
  0x90   :  { %7626 = vmatmul.mubr.msk.f32.gmra.mrb[68].mxu0 %vm237_vm3, %v108_v8 }
  0x91   :  { %7628 = vmatprep.mubr.msk.f32.mxu0 %vm237_vm3, %v109_v9 }
  0x94   :  { %7629 = vmatmul.mubr.msk.f32.gmra.mrb[70].mxu0 %vm237_vm3, %v110_v10  ;;  %v160_v10 = vld [vmem:[%s14625_s0 + $0x3c8] sm:$0xff] }
  0x95   :  { %7631 = vmatprep.mubr.msk.f32.mxu0 %vm237_vm3, %v111_v11  ;;  %v161_v11 = vld [vmem:[%s14625_s0 + $0x3d0] sm:$0xff] }
  0x98   :  { %7632 = vmatmul.mubr.msk.f32.gmra.mrb[72].mxu0 %vm237_vm3, %v112_v12 }
  0x99   :  { %7634 = vmatprep.mubr.msk.f32.mxu0 %vm237_vm3, %v113_v13 }
  0x9c   :  { %7635 = vmatmul.mubr.msk.f32.gmra.mrb[74].mxu0 %vm237_vm3, %v114_v14  ;;  %v162_v14 = vld [vmem:[%s14625_s0 + $0x3d8] sm:$0xff] }
  0x9d   :  { %7637 = vmatprep.mubr.msk.f32.mxu0 %vm237_vm3, %v115_v15  ;;  %v163_v15 = vld [vmem:[%s14625_s0 + $0x3e0] sm:$0xff] }
  0xa0   :  { %7638 = vmatmul.mubr.msk.f32.gmra.mrb[76].mxu0 %vm237_vm3, %v116_v16 }
  0xa1   :  { %7640 = vmatprep.mubr.msk.f32.mxu0 %vm237_vm3, %v117_v17 }
  0xa4   :  { %7641 = vmatmul.mubr.msk.f32.gmra.mrb[78].mxu0 %vm237_vm3, %v118_v18  ;;  %v164_v18 = vld [vmem:[%s14625_s0 + $0x3e8] sm:$0xff] }
  0xa5   :  { %7643 = vmatprep.mubr.msk.f32.mxu0 %vm237_vm3, %v119_v19  ;;  %v165_v19 = vld [vmem:[%s14625_s0 + $0x3f0] sm:$0xff] }
  0xa8   :  { %7644 = vmatmul.mubr.msk.f32.gmra.mrb[80].mxu0 %vm237_vm3, %v120_v20 }
  0xa9   :  { %7646 = vmatprep.mubr.msk.f32.mxu0 %vm237_vm3, %v121_v21 }
  0xac   :  { %7647 = vmatmul.mubr.msk.f32.gmra.mrb[82].mxu0 %vm237_vm3, %v122_v22  ;;  %v166_v22 = vld [vmem:[%s14625_s0 + $0x3f8] sm:$0xff] }
  0xad   :  { %7649 = vmatprep.mubr.msk.f32.mxu0 %vm237_vm3, %v123_v23  ;;  %v167_v23 = vld [vmem:[%s14625_s0 + $0x400] sm:$0xff] }
  0xb0   :  { %7650 = vmatmul.mubr.msk.f32.gmra.mrb[84].mxu0 %vm237_vm3, %v124_v24 }
  0xb1   :  { %7652 = vmatprep.mubr.msk.f32.mxu0 %vm237_vm3, %v125_v25 }
  0xb4   :  { %7653 = vmatmul.mubr.msk.f32.gmra.mrb[86].mxu0 %vm237_vm3, %v126_v26  ;;  %v168_v26 = vld [vmem:[%s14625_s0 + $0x408] sm:$0xff] }
  0xb5   :  { %7655 = vmatprep.mubr.msk.f32.mxu0 %vm237_vm3, %v127_v27  ;;  %v169_v27 = vld [vmem:[%s14625_s0 + $0x410] sm:$0xff] }
  0xb8   :  { %7656 = vmatmul.mubr.msk.f32.gmra.mrb[88].mxu0 %vm237_vm3, %v128_v28 }
  0xb9   :  { %7658 = vmatprep.mubr.msk.f32.mxu0 %vm237_vm3, %v129_v29 }
  0xbc   :  { %7659 = vmatmul.mubr.msk.f32.gmra.mrb[90].mxu0 %vm237_vm3, %v130_v30  ;;  %v170_v30 = vld [vmem:[%s14625_s0 + $0x418] sm:$0xff] }
  0xbd   :  { %7661 = vmatprep.mubr.msk.f32.mxu0 %vm237_vm3, %v131_v31  ;;  %v171_v31 = vld [vmem:[%s14625_s0 + $0x420] sm:$0xff] }
  0xc0   :  { %7662 = vmatmul.mubr.msk.f32.gmra.mrb[92].mxu0 %vm237_vm3, %v132_v32 }
  0xc1   :  { %7664 = vmatprep.mubr.msk.f32.mxu0 %vm237_vm3, %v133_v33 }
  0xc4   :  { %7665 = vmatmul.mubr.msk.f32.gmra.mrb[94].mxu0 %vm237_vm3, %v134_v34  ;;  %v172_v34 = vld [vmem:[%s14625_s0 + $0x428] sm:$0xff] }
  0xc5   :  { %7667 = vmatprep.mubr.msk.f32.mxu0 %vm237_vm3, %v135_v35  ;;  %v173_v35 = vld [vmem:[%s14625_s0 + $0x430] sm:$0xff] }
  0xc8   :  { %7668 = vmatmul.mubr.msk.f32.gmra.mrb[96].mxu0 %vm237_vm3, %v136_v36 }
  0xc9   :  { %7670 = vmatprep.mubr.msk.f32.mxu0 %vm237_vm3, %v137_v37 }
  0xcc   :  { %7671 = vmatmul.mubr.msk.f32.gmra.mrb[98].mxu0 %vm237_vm3, %v138_v38  ;;  %v174_v38 = vld [vmem:[%s14625_s0 + $0x438] sm:$0xff] }
  0xcd   :  { %7673 = vmatprep.mubr.msk.f32.mxu0 %vm237_vm3, %v139_v39  ;;  %v175_v39 = vld [vmem:[%s14625_s0 + $0x440] sm:$0xff] }
  0xd0   :  { %7674 = vmatmul.mubr.msk.f32.gmra.mrb[100].mxu0 %vm237_vm3, %v140_v40 }
  0xd1   :  { %7676 = vmatprep.mubr.msk.f32.mxu0 %vm237_vm3, %v141_v41 }
  0xd4   :  { %7677 = vmatmul.mubr.msk.f32.gmra.mrb[102].mxu0 %vm237_vm3, %v142_v42  ;;  %v176_v42 = vld [vmem:[%s14625_s0 + $0x448] sm:$0xff] }
  0xd5   :  { %7679 = vmatprep.mubr.msk.f32.mxu0 %vm237_vm3, %v143_v43  ;;  %v177_v43 = vld [vmem:[%s14625_s0 + $0x450] sm:$0xff] }
  0xd8   :  { %7680 = vmatmul.mubr.msk.f32.gmra.mrb[104].mxu0 %vm237_vm3, %v144_v44 }
  0xd9   :  { %7682 = vmatprep.mubr.msk.f32.mxu0 %vm237_vm3, %v145_v45 }
  0xdb   :  { %v8888_v48 = vpop.f32.mrb[0].mxu0 }
  0xdc   :  { %v8890_v49 = vpop.f32.mrb[1].mxu0  ;;  %7683 = vmatmul.mubr.msk.f32.gmra.mrb[106].mxu0 %vm237_vm3, %v146_v46  ;;  %v178_v46 = vld [vmem:[%s14625_s0 + $0x458] sm:$0xff] }
  0xdd   :  { %7685 = vmatprep.mubr.msk.f32.mxu0 %vm237_vm3, %v147_v47  ;;  %v179_v47 = vld [vmem:[%s14625_s0 + $0x460] sm:$0xff] }
  0xdf   :  { %v8900_v52 = vpop.f32.mrb[2].mxu0 }
  0xe0   :  { %v8902_v53 = vpop.f32.mrb[3].mxu0  ;;  %7686 = vmatmul.mubr.msk.f32.gmra.mrb[108].mxu0 %vm237_vm3, %v148_v50 }
  0xe1   :  { %7688 = vmatprep.mubr.msk.f32.mxu0 %vm237_vm3, %v149_v51 }
  0xe3   :  { %v8912_v56 = vpop.f32.mrb[4].mxu0 }
  0xe4   :  { %v8914_v57 = vpop.f32.mrb[5].mxu0  ;;  %7689 = vmatmul.mubr.msk.f32.gmra.mrb[110].mxu0 %vm237_vm3, %v150_v54  ;;  %v180_v54 = vld [vmem:[%s14625_s0 + $0x468] sm:$0xff] }
  0xe5   :  { %7691 = vmatprep.mubr.msk.f32.mxu0 %vm237_vm3, %v151_v55  ;;  %v181_v55 = vld [vmem:[%s14625_s0 + $0x470] sm:$0xff] }
  0xe7   :  { %v8924_v60 = vpop.f32.mrb[6].mxu0 }
  0xe8   :  { %v8926_v61 = vpop.f32.mrb[7].mxu0  ;;  %7692 = vmatmul.mubr.msk.f32.gmra.mrb[112].mxu0 %vm237_vm3, %v152_v58 }
  0xe9   :  { %7694 = vmatprep.mubr.msk.f32.mxu0 %vm237_vm3, %v153_v59 }
  0xeb   :  { %v8936_v0 = vpop.f32.mrb[8].mxu0 }
  0xec   :  { %v8938_v1 = vpop.f32.mrb[9].mxu0  ;;  %7695 = vmatmul.mubr.msk.f32.gmra.mrb[114].mxu0 %vm237_vm3, %v154_v62  ;;  %v182_v62 = vld [vmem:[%s14625_s0 + $0x478] sm:$0xff] }
  0xed   :  { %7697 = vmatprep.mubr.msk.f32.mxu0 %vm237_vm3, %v155_v63  ;;  %v183_v63 = vld [vmem:[%s14625_s0 + $0x480] sm:$0xff] }
  0xef   :  { %v8948_v4 = vpop.f32.mrb[10].mxu0 }
  0xf0   :  { %v8950_v5 = vpop.f32.mrb[11].mxu0  ;;  %7698 = vmatmul.mubr.msk.f32.gmra.mrb[116].mxu0 %vm237_vm3, %v156_v2 }
  0xf1   :  { %7700 = vmatprep.mubr.msk.f32.mxu0 %vm237_vm3, %v157_v3 }
  0xf3   :  { %v8960_v8 = vpop.f32.mrb[12].mxu0 }
  0xf4   :  { %v8962_v9 = vpop.f32.mrb[13].mxu0  ;;  %7701 = vmatmul.mubr.msk.f32.gmra.mrb[118].mxu0 %vm237_vm3, %v158_v6  ;;  %v184_v6 = vld [vmem:[%s14625_s0 + $0x488] sm:$0xff] }
  0xf5   :  { %7703 = vmatprep.mubr.msk.f32.mxu0 %vm237_vm3, %v159_v7  ;;  %v185_v7 = vld [vmem:[%s14625_s0 + $0x490] sm:$0xff] }
  0xf7   :  { %v8972_v12 = vpop.f32.mrb[14].mxu0 }
  0xf8   :  { %v8974_v13 = vpop.f32.mrb[15].mxu0  ;;  %7704 = vmatmul.mubr.msk.f32.gmra.mrb[120].mxu0 %vm237_vm3, %v160_v10 }
  0xf9   :  { %7706 = vmatprep.mubr.msk.f32.mxu0 %vm237_vm3, %v161_v11 }
  0xfb   :  { %v8984_v16 = vpop.f32.mrb[16].mxu0 }
  0xfc   :  { %v8986_v17 = vpop.f32.mrb[17].mxu0  ;;  %7707 = vmatmul.mubr.msk.f32.gmra.mrb[122].mxu0 %vm237_vm3, %v162_v14  ;;  %v186_v14 = vld [vmem:[%s14625_s0 + $0x498] sm:$0xff] }
  0xfd   :  { %7709 = vmatprep.mubr.msk.f32.mxu0 %vm237_vm3, %v163_v15  ;;  %v187_v15 = vld [vmem:[%s14625_s0 + $0x4a0] sm:$0xff] }
  0xff   :  { %v8996_v20 = vpop.f32.mrb[18].mxu0 }
 0x100   :  { %v8998_v21 = vpop.f32.mrb[19].mxu0  ;;  %7710 = vmatmul.mubr.msk.f32.gmra.mrb[124].mxu0 %vm237_vm3, %v164_v18 }
 0x101   :  { %7712 = vmatprep.mubr.msk.f32.mxu0 %vm237_vm3, %v165_v19 }
 0x103   :  { %v9008_v24 = vpop.f32.mrb[20].mxu0 }
 0x104   :  { %14888 = vst [vmem:[#allocation5_spill] sm:$0xff] %v9008_v24  ;;  %v9010_v25 = vpop.f32.mrb[21].mxu0  ;;  %7713 = vmatmul.mubr.msk.f32.gmra.mrb[126].mxu0 %vm237_vm3, %v166_v22  ;;  %v188_v22 = vld [vmem:[%s14625_s0 + $0x4a8] sm:$0xff] }
 0x105   :  { %7715 = vmatprep.mubr.msk.f32.mxu0 %vm237_vm3, %v167_v23  ;;  %v189_v23 = vld [vmem:[%s14625_s0 + $0x4b0] sm:$0xff] }
 0x107   :  { %v9020_v28 = vpop.f32.mrb[22].mxu0 }
 0x108   :  { %14889 = vst [vmem:[#allocation6_spill] sm:$0xff] %v9020_v28  ;;  %v9022_v29 = vpop.f32.mrb[23].mxu0  ;;  %7716 = vmatmul.mubr.msk.f32.gmra.mrb[128].mxu0 %vm237_vm3, %v168_v26 }
 0x109   :  { %14890 = vst [vmem:[#allocation7_spill] sm:$0xff] %v9022_v29  ;;  %7718 = vmatprep.mubr.msk.f32.mxu0 %vm237_vm3, %v169_v27 }
 0x10b   :  { %v9032_v32 = vpop.f32.mrb[24].mxu0 }
 0x10c   :  { %14891 = vst [vmem:[#allocation8_spill] sm:$0xff] %v9032_v32  ;;  %v9034_v33 = vpop.f32.mrb[25].mxu0  ;;  %7719 = vmatmul.mubr.msk.f32.gmra.mrb[130].mxu0 %vm237_vm3, %v170_v30  ;;  %v190_v30 = vld [vmem:[%s14625_s0 + $0x4b8] sm:$0xff] }
 0x10d   :  { %14892 = vst [vmem:[#allocation9_spill] sm:$0xff] %v9034_v33  ;;  %7721 = vmatprep.mubr.msk.f32.mxu0 %vm237_vm3, %v171_v31  ;;  %v191_v31 = vld [vmem:[%s14625_s0 + $0x4c0] sm:$0xff] }
 0x10f   :  { %v9044_v36 = vpop.f32.mrb[26].mxu0 }
 0x110   :  { %14893 = vst [vmem:[#allocation10_spill] sm:$0xff] %v9044_v36  ;;  %v9046_v37 = vpop.f32.mrb[27].mxu0  ;;  %7722 = vmatmul.mubr.msk.f32.gmra.mrb[132].mxu0 %vm237_vm3, %v172_v34 }
 0x111   :  { %14894 = vst [vmem:[#allocation11_spill] sm:$0xff] %v9046_v37  ;;  %7724 = vmatprep.mubr.msk.f32.mxu0 %vm237_vm3, %v173_v35 }
 0x113   :  { %v9056_v40 = vpop.f32.mrb[28].mxu0 }
 0x114   :  { %14895 = vst [vmem:[#allocation12_spill] sm:$0xff] %v9056_v40  ;;  %v9058_v41 = vpop.f32.mrb[29].mxu0  ;;  %7725 = vmatmul.mubr.msk.f32.gmra.mrb[134].mxu0 %vm237_vm3, %v174_v38  ;;  %v192_v38 = vld [vmem:[%s14625_s0 + $0x4c8] sm:$0xff] }
 0x115   :  { %14896 = vst [vmem:[#allocation13_spill] sm:$0xff] %v9058_v41  ;;  %7727 = vmatprep.mubr.msk.f32.mxu0 %vm237_vm3, %v175_v39  ;;  %v193_v39 = vld [vmem:[%s14625_s0 + $0x4d0] sm:$0xff] }
 0x117   :  { %v9068_v44 = vpop.f32.mrb[30].mxu0 }
 0x118   :  { %14897 = vst [vmem:[#allocation14_spill] sm:$0xff] %v9068_v44  ;;  %v9070_v45 = vpop.f32.mrb[31].mxu0  ;;  %7728 = vmatmul.mubr.msk.f32.gmra.mrb[136].mxu0 %vm237_vm3, %v176_v42 }
 0x119   :  { %14898 = vst [vmem:[#allocation15_spill] sm:$0xff] %v9070_v45  ;;  %7730 = vmatprep.mubr.msk.f32.mxu0 %vm237_vm3, %v177_v43 }
 0x11b   :  { %v9080_v50 = vpop.f32.mrb[32].mxu0 }
 0x11c   :  { %14899 = vst [vmem:[#allocation16_spill] sm:$0xff] %v9080_v50  ;;  %v9082_v51 = vpop.f32.mrb[33].mxu0  ;;  %7731 = vmatmul.mubr.msk.f32.gmra.mrb[138].mxu0 %vm237_vm3, %v178_v46  ;;  %v194_v46 = vld [vmem:[%s14625_s0 + $0x4d8] sm:$0xff] }
 0x11d   :  { %14900 = vst [vmem:[#allocation17_spill] sm:$0xff] %v9082_v51  ;;  %7733 = vmatprep.mubr.msk.f32.mxu0 %vm237_vm3, %v179_v47  ;;  %v195_v47 = vld [vmem:[%s14625_s0 + $0x4e0] sm:$0xff] }
 0x11f   :  { %v9092_v58 = vpop.f32.mrb[34].mxu0 }
 0x120   :  { %14901 = vst [vmem:[#allocation18_spill] sm:$0xff] %v9092_v58  ;;  %v9094_v59 = vpop.f32.mrb[35].mxu0  ;;  %7734 = vmatmul.mubr.msk.f32.gmra.mrb[140].mxu0 %vm237_vm3, %v180_v54  ;;  %v234_v58 = vld [vmem:[%s14625_s0 + $0x618] sm:$0xff] }
 0x121   :  { %14902 = vst [vmem:[#allocation19_spill] sm:$0xff] %v9094_v59  ;;  %7736 = vmatprep.mubr.msk.f32.mxu0 %vm237_vm3, %v181_v55 }
 0x123   :  { %v9104_v2 = vpop.f32.mrb[36].mxu0 }
 0x124   :  { %14903 = vst [vmem:[#allocation20_spill] sm:$0xff] %v9104_v2  ;;  %v9106_v3 = vpop.f32.mrb[37].mxu0  ;;  %7737 = vmatmul.mubr.msk.f32.gmra.mrb[142].mxu0 %vm237_vm3, %v182_v62 }
 0x125   :  { %14904 = vst [vmem:[#allocation21_spill] sm:$0xff] %v9106_v3  ;;  %7739 = vmatprep.mubr.msk.f32.mxu0 %vm237_vm3, %v183_v63  ;;  %v196_v63 = vld [vmem:[%s14625_s0 + $0x4e8] sm:$0xff] }
 0x127   :  { %v9116_v10 = vpop.f32.mrb[38].mxu0 }
 0x128   :  { %14905 = vst [vmem:[#allocation22_spill] sm:$0xff] %v9116_v10  ;;  %v9118_v11 = vpop.f32.mrb[39].mxu0  ;;  %7740 = vmatmul.mubr.msk.f32.gmra.mrb[144].mxu0 %vm237_vm3, %v184_v6  ;;  %v197_v6 = vld [vmem:[%s14625_s0 + $0x4f0] sm:$0xff] }
 0x129   :  { %14906 = vst [vmem:[#allocation23_spill] sm:$0xff] %v9118_v11  ;;  %7742 = vmatprep.mubr.msk.f32.mxu0 %vm237_vm3, %v185_v7 }
 0x12b   :  { %v9128_v18 = vpop.f32.mrb[40].mxu0 }
 0x12c   :  { %14907 = vst [vmem:[#allocation24_spill] sm:$0xff] %v9128_v18  ;;  %v9130_v19 = vpop.f32.mrb[41].mxu0  ;;  %7743 = vmatmul.mubr.msk.f32.gmra.mrb[146].mxu0 %vm237_vm3, %v186_v14 }
 0x12d   :  { %14908 = vst [vmem:[#allocation25_spill] sm:$0xff] %v9130_v19  ;;  %7745 = vmatprep.mubr.msk.f32.mxu0 %vm237_vm3, %v187_v15 }
 0x12f   :  { %v9140_v26 = vpop.f32.mrb[42].mxu0 }
 0x130   :  { %14909 = vst [vmem:[#allocation26_spill] sm:$0xff] %v9140_v26  ;;  %v9142_v27 = vpop.f32.mrb[43].mxu0  ;;  %7746 = vmatmul.mubr.msk.f32.gmra.mrb[148].mxu0 %vm237_vm3, %v188_v22 }
 0x131   :  { %14910 = vst [vmem:[#allocation27_spill] sm:$0xff] %v9142_v27  ;;  %7748 = vmatprep.mubr.msk.f32.mxu0 %vm237_vm3, %v189_v23  ;;  %v198_v23 = vld [vmem:[%s14625_s0 + $0x4f8] sm:$0xff] }
 0x133   :  { %v9152_v34 = vpop.f32.mrb[44].mxu0 }
 0x134   :  { %14911 = vst [vmem:[#allocation28_spill] sm:$0xff] %v9152_v34  ;;  %v9154_v35 = vpop.f32.mrb[45].mxu0  ;;  %7749 = vmatmul.mubr.msk.f32.gmra.mrb[150].mxu0 %vm237_vm3, %v190_v30  ;;  %v199_v30 = vld [vmem:[%s14625_s0 + $0x500] sm:$0xff] }
 0x135   :  { %14912 = vst [vmem:[#allocation29_spill] sm:$0xff] %v9154_v35  ;;  %7751 = vmatprep.mubr.msk.f32.mxu0 %vm237_vm3, %v191_v31 }
 0x137   :  { %v9164_v42 = vpop.f32.mrb[46].mxu0 }
 0x138   :  { %14913 = vst [vmem:[#allocation30_spill] sm:$0xff] %v9164_v42  ;;  %v9166_v43 = vpop.f32.mrb[47].mxu0  ;;  %7752 = vmatmul.mubr.msk.f32.gmra.mrb[152].mxu0 %vm237_vm3, %v192_v38  ;;  %v231_v38 = vld [vmem:[%s14625_s0 + $0x600] sm:$0xff] }
 0x139   :  { %14914 = vst [vmem:[#allocation31_spill] sm:$0xff] %v9166_v43  ;;  %7754 = vmatprep.mubr.msk.f32.mxu0 %vm237_vm3, %v193_v39 }
 0x13b   :  { %v9176_v54 = vpop.f32.mrb[48].mxu0 }
 0x13c   :  { %v9180_v62 = vpop.f32.mrb[49].mxu0  ;;  %7755 = vmatmul.mubr.msk.f32.gmra.mrb[154].mxu0 %vm237_vm3, %v194_v46  ;;  %v203_v46 = vld [vmem:[%s14625_s0 + $0x520] sm:$0xff] }
 0x13d   :  { %14915 = vst [vmem:[#allocation32_spill] sm:$0xff] %v9180_v62  ;;  %7757 = vmatprep.mubr.msk.f32.mxu0 %vm237_vm3, %v195_v47  ;;  %v200_v47 = vld [vmem:[%s14625_s0 + $0x508] sm:$0xff] }
 0x13f   :  { %v9190_v7 = vpop.f32.mrb[50].mxu0 }
 0x140   :  { %v9194_v15 = vpop.f32.mrb[51].mxu0  ;;  %7758 = vmatmul.mubr.msk.f32.gmra.mrb[156].mxu0 %vm237_vm3, %v196_v63  ;;  %v201_v63 = vld [vmem:[%s14625_s0 + $0x510] sm:$0xff] }
 0x141   :  { %7760 = vmatprep.mubr.msk.f32.mxu0 %vm237_vm3, %v197_v6 }
 0x143   :  { %v9206_v31 = vpop.f32.mrb[52].mxu0 }
 0x144   :  { %v9210_v39 = vpop.f32.mrb[53].mxu0  ;;  %7761 = vmatmul.mubr.msk.f32.gmra.mrb[158].mxu0 %vm237_vm3, %v198_v23  ;;  %v205_v23 = vld [vmem:[%s14625_s0 + $0x530] sm:$0xff] }
 0x145   :  { %7763 = vmatprep.mubr.msk.f32.mxu0 %vm237_vm3, %v199_v30  ;;  %v202_v30 = vld [vmem:[%s14625_s0 + $0x518] sm:$0xff] }
 0x147   :  { %v9222_v6 = vpop.f32.mrb[54].mxu0 }
 0x148   :  { %v9226_v22 = vpop.f32.mrb[55].mxu0  ;;  %7764 = vmatmul.mubr.msk.f32.gmra.mrb[160].mxu0 %vm237_vm3, %v200_v47  ;;  %v207_v47 = vld [vmem:[%s14625_s0 + $0x540] sm:$0xff] }
 0x149   :  { %14916 = vst [vmem:[#allocation33_spill] sm:$0xff] %v9226_v22  ;;  %7766 = vmatprep.mubr.msk.f32.mxu0 %vm237_vm3, %v201_v63  ;;  %v204_v63 = vld [vmem:[%s14625_s0 + $0x528] sm:$0xff] }
 0x14b   :  { %v9238_v14 = vpop.f32.mrb[56].mxu0 }
 0x14c   :  { %14917 = vst [vmem:[#allocation34_spill] sm:$0xff] %v9238_v14  ;;  %v9242_v55 = vpop.f32.mrb[57].mxu0  ;;  %7767 = vmatmul.mubr.msk.f32.gmra.mrb[162].mxu0 %vm237_vm3, %v202_v30  ;;  %v206_v30 = vld [vmem:[%s14625_s0 + $0x538] sm:$0xff] }
 0x14d   :  { %14918 = vst [vmem:[#allocation35_spill] sm:$0xff] %v9242_v55  ;;  %7769 = vmatprep.mubr.msk.f32.mxu0 %vm237_vm3, %v203_v46  ;;  %v209_v46 = vld [vmem:[%s14625_s0 + $0x550] sm:$0xff] }
 0x14f   :  { %v9254_v22 = vpop.f32.mrb[58].mxu0 }
 0x150   :  { %14919 = vst [vmem:[#allocation36_spill] sm:$0xff] %v9254_v22  ;;  %v9258_v14 = vpop.f32.mrb[59].mxu0  ;;  %7770 = vmatmul.mubr.msk.f32.gmra.mrb[164].mxu0 %vm237_vm3, %v204_v63  ;;  %v208_v63 = vld [vmem:[%s14625_s0 + $0x548] sm:$0xff] }
 0x151   :  { %14920 = vst [vmem:[#allocation37_spill] sm:$0xff] %v9258_v14  ;;  %7772 = vmatprep.mubr.msk.f32.mxu0 %vm237_vm3, %v205_v23  ;;  %v211_v23 = vld [vmem:[%s14625_s0 + $0x560] sm:$0xff] }
 0x153   :  { %v9270_v55 = vpop.f32.mrb[60].mxu0 }
 0x154   :  { %14921 = vst [vmem:[#allocation38_spill] sm:$0xff] %v9270_v55  ;;  %v9274_v22 = vpop.f32.mrb[61].mxu0  ;;  %7773 = vmatmul.mubr.msk.f32.gmra.mrb[166].mxu0 %vm237_vm3, %v206_v30  ;;  %v210_v30 = vld [vmem:[%s14625_s0 + $0x558] sm:$0xff] }
 0x155   :  { %14922 = vst [vmem:[#allocation39_spill] sm:$0xff] %v9274_v22  ;;  %7775 = vmatprep.mubr.msk.f32.mxu0 %vm237_vm3, %v207_v47  ;;  %v213_v47 = vld [vmem:[%s14625_s0 + $0x570] sm:$0xff] }
 0x157   :  { %v9286_v14 = vpop.f32.mrb[62].mxu0 }
 0x158   :  { %14923 = vst [vmem:[#allocation40_spill] sm:$0xff] %v9286_v14  ;;  %v9290_v55 = vpop.f32.mrb[63].mxu0  ;;  %7776 = vmatmul.mubr.msk.f32.gmra.mrb[168].mxu0 %vm237_vm3, %v208_v63  ;;  %v212_v63 = vld [vmem:[%s14625_s0 + $0x568] sm:$0xff] }
 0x159   :  { %14924 = vst [vmem:[#allocation41_spill] sm:$0xff] %v9290_v55  ;;  %7778 = vmatprep.mubr.msk.f32.mxu0 %vm237_vm3, %v209_v46  ;;  %v215_v46 = vld [vmem:[%s14625_s0 + $0x580] sm:$0xff] }
 0x15b   :  { %v9302_v22 = vpop.f32.mrb[64].mxu0 }
 0x15c   :  { %14925 = vst [vmem:[#allocation42_spill] sm:$0xff] %v9302_v22  ;;  %v9306_v14 = vpop.f32.mrb[65].mxu0  ;;  %7779 = vmatmul.mubr.msk.f32.gmra.mrb[170].mxu0 %vm237_vm3, %v210_v30  ;;  %v214_v30 = vld [vmem:[%s14625_s0 + $0x578] sm:$0xff] }
 0x15d   :  { %14926 = vst [vmem:[#allocation43_spill] sm:$0xff] %v9306_v14  ;;  %7781 = vmatprep.mubr.msk.f32.mxu0 %vm237_vm3, %v211_v23  ;;  %v217_v23 = vld [vmem:[%s14625_s0 + $0x590] sm:$0xff] }
 0x15f   :  { %v9318_v55 = vpop.f32.mrb[66].mxu0 }
 0x160   :  { %14927 = vst [vmem:[#allocation44_spill] sm:$0xff] %v9318_v55  ;;  %v9322_v22 = vpop.f32.mrb[67].mxu0  ;;  %7782 = vmatmul.mubr.msk.f32.gmra.mrb[172].mxu0 %vm237_vm3, %v212_v63  ;;  %v216_v63 = vld [vmem:[%s14625_s0 + $0x588] sm:$0xff] }
 0x161   :  { %14928 = vst [vmem:[#allocation45_spill] sm:$0xff] %v9322_v22  ;;  %7784 = vmatprep.mubr.msk.f32.mxu0 %vm237_vm3, %v213_v47  ;;  %v219_v47 = vld [vmem:[%s14625_s0 + $0x5a0] sm:$0xff] }
 0x163   :  { %v9334_v14 = vpop.f32.mrb[68].mxu0 }
 0x164   :  { %14929 = vst [vmem:[#allocation46_spill] sm:$0xff] %v9334_v14  ;;  %v9338_v55 = vpop.f32.mrb[69].mxu0  ;;  %7785 = vmatmul.mubr.msk.f32.gmra.mrb[174].mxu0 %vm237_vm3, %v214_v30  ;;  %v218_v30 = vld [vmem:[%s14625_s0 + $0x598] sm:$0xff] }
 0x165   :  { %14930 = vst [vmem:[#allocation47_spill] sm:$0xff] %v9338_v55  ;;  %7787 = vmatprep.mubr.msk.f32.mxu0 %vm237_vm3, %v215_v46  ;;  %v221_v46 = vld [vmem:[%s14625_s0 + $0x5b0] sm:$0xff] }
 0x167   :  { %v9350_v22 = vpop.f32.mrb[70].mxu0 }
 0x168   :  { %14931 = vst [vmem:[#allocation48_spill] sm:$0xff] %v9350_v22  ;;  %v9354_v14 = vpop.f32.mrb[71].mxu0  ;;  %7788 = vmatmul.mubr.msk.f32.gmra.mrb[176].mxu0 %vm237_vm3, %v216_v63  ;;  %v220_v63 = vld [vmem:[%s14625_s0 + $0x5a8] sm:$0xff] }
 0x169   :  { %14932 = vst [vmem:[#allocation49_spill] sm:$0xff] %v9354_v14  ;;  %7790 = vmatprep.mubr.msk.f32.mxu0 %vm237_vm3, %v217_v23  ;;  %v223_v23 = vld [vmem:[%s14625_s0 + $0x5c0] sm:$0xff] }
 0x16b   :  { %v9366_v55 = vpop.f32.mrb[72].mxu0 }
 0x16c   :  { %14933 = vst [vmem:[#allocation50_spill] sm:$0xff] %v9366_v55  ;;  %v9370_v22 = vpop.f32.mrb[73].mxu0  ;;  %7791 = vmatmul.mubr.msk.f32.gmra.mrb[178].mxu0 %vm237_vm3, %v218_v30  ;;  %v222_v30 = vld [vmem:[%s14625_s0 + $0x5b8] sm:$0xff] }
 0x16d   :  { %14934 = vst [vmem:[#allocation51_spill] sm:$0xff] %v9370_v22  ;;  %7793 = vmatprep.mubr.msk.f32.mxu0 %vm237_vm3, %v219_v47  ;;  %v225_v47 = vld [vmem:[%s14625_s0 + $0x5d0] sm:$0xff] }
 0x16f   :  { %v9382_v14 = vpop.f32.mrb[74].mxu0 }
 0x170   :  { %14935 = vst [vmem:[#allocation52_spill] sm:$0xff] %v9382_v14  ;;  %v9386_v55 = vpop.f32.mrb[75].mxu0  ;;  %7794 = vmatmul.mubr.msk.f32.gmra.mrb[180].mxu0 %vm237_vm3, %v220_v63  ;;  %v224_v63 = vld [vmem:[%s14625_s0 + $0x5c8] sm:$0xff] }
 0x171   :  { %14936 = vst [vmem:[#allocation53_spill] sm:$0xff] %v9386_v55  ;;  %7796 = vmatprep.mubr.msk.f32.mxu0 %vm237_vm3, %v221_v46  ;;  %v227_v46 = vld [vmem:[%s14625_s0 + $0x5e0] sm:$0xff] }
 0x173   :  { %v9398_v22 = vpop.f32.mrb[76].mxu0 }
 0x174   :  { %14937 = vst [vmem:[#allocation54_spill] sm:$0xff] %v9398_v22  ;;  %v9402_v14 = vpop.f32.mrb[77].mxu0  ;;  %7797 = vmatmul.mubr.msk.f32.gmra.mrb[182].mxu0 %vm237_vm3, %v222_v30  ;;  %v226_v30 = vld [vmem:[%s14625_s0 + $0x5d8] sm:$0xff] }
 0x175   :  { %14938 = vst [vmem:[#allocation55_spill] sm:$0xff] %v9402_v14  ;;  %7799 = vmatprep.mubr.msk.f32.mxu0 %vm237_vm3, %v223_v23  ;;  %v229_v23 = vld [vmem:[%s14625_s0 + $0x5f0] sm:$0xff] }
 0x177   :  { %v9414_v55 = vpop.f32.mrb[78].mxu0 }
 0x178   :  { %14939 = vst [vmem:[#allocation56_spill] sm:$0xff] %v9414_v55  ;;  %v9418_v22 = vpop.f32.mrb[79].mxu0  ;;  %7800 = vmatmul.mubr.msk.f32.gmra.mrb[184].mxu0 %vm237_vm3, %v224_v63  ;;  %v228_v63 = vld [vmem:[%s14625_s0 + $0x5e8] sm:$0xff] }
 0x179   :  { %14940 = vst [vmem:[#allocation57_spill] sm:$0xff] %v9418_v22  ;;  %7802 = vmatprep.mubr.msk.f32.mxu0 %vm237_vm3, %v225_v47  ;;  %v14664_v47 = vmov 0.0  }
 0x17a   :  { %2349 = vrot.lane.b32.xlu0 %v14664_v47, %s8374_s25  ;;  %v232_v47 = vld [vmem:[%s14625_s0 + $0x608] sm:$0xff] }
 0x17b   :  { %v9430_v14 = vpop.f32.mrb[80].mxu0 }
 0x17c   :  { %14941 = vst [vmem:[#allocation58_spill] sm:$0xff] %v9430_v14  ;;  %v9434_v55 = vpop.f32.mrb[81].mxu0  ;;  %7803 = vmatmul.mubr.msk.f32.gmra.mrb[186].mxu0 %vm237_vm3, %v226_v30  ;;  %v230_v30 = vld [vmem:[%s14625_s0 + $0x5f8] sm:$0xff] }
 0x17d   :  { %14942 = vst [vmem:[#allocation59_spill] sm:$0xff] %v9434_v55  ;;  %7805 = vmatprep.mubr.msk.f32.mxu0 %vm237_vm3, %v227_v46 }
 0x17f   :  { %v9446_v22 = vpop.f32.mrb[82].mxu0 }
 0x180   :  { %14943 = vst [vmem:[#allocation60_spill] sm:$0xff] %v9446_v22  ;;  %v9450_v14 = vpop.f32.mrb[83].mxu0  ;;  %7806 = vmatmul.mubr.msk.f32.gmra.mrb[188].mxu0 %vm237_vm3, %v228_v63  ;;  %v233_v63 = vld [vmem:[%s14625_s0 + $0x610] sm:$0xff] }
 0x181   :  { %14944 = vst [vmem:[#allocation61_spill] sm:$0xff] %v9450_v14  ;;  %7808 = vmatprep.mubr.msk.f32.mxu0 %vm237_vm3, %v229_v23  ;;  %v14947_v14 = vmov 0.0  }
 0x182   :  { %3174 = vrot.lane.b32.xlu1 %v14947_v14, %s8375_s29  ;;  %2389 = vrot.lane.b32.xlu0 %v14947_v14, %s8376_s13 }
 0x183   :  { %v9464_v22 = vpop.f32.mrb[84].mxu0 }
 0x184   :  { %14945 = vst [vmem:[#allocation62_spill] sm:$0xff] %v9464_v22  ;;  %v9468_v46 = vpop.f32.mrb[85].mxu0  ;;  %7809 = vmatmul.mubr.msk.f32.gmra.mrb[190].mxu0 %vm237_vm3, %v230_v30 }
 0x185   :  { %14946 = vst [vmem:[#allocation63_spill] sm:$0xff] %v9468_v46  ;;  %7811 = vmatprep.mubr.msk.f32.mxu0 %vm237_vm3, %v231_v38 }
 0x186   :  { %3057 = vrot.lane.b32.xlu0 %v14947_v14, %s8377_s16 }
 0x187   :  { %v9484_v30 = vpop.f32.mrb[86].mxu0 }
 0x188   :  { %14948 = vst [vmem:[#allocation64_spill] sm:$0xff] %v9484_v30  ;;  %v9488_v23 = vpop.f32.mrb[87].mxu0  ;;  %7812 = vmatmul.mubr.msk.f32.gmra.mrb[192].mxu0 %vm237_vm3, %v232_v47 }
 0x189   :  { %14949 = vst [vmem:[#allocation65_spill] sm:$0xff] %v9488_v23  ;;  %7814 = vmatprep.mubr.msk.f32.mxu0 %vm237_vm3, %v233_v63 }
 0x18b   :  { %v9499_v22 = vpop.f32.mrb[88].mxu0 }
 0x18c   :  { %14950 = vst [vmem:[#allocation66_spill] sm:$0xff] %v9499_v22  ;;  %v9503_v30 = vpop.f32.mrb[89].mxu0  ;;  %7815 = vmatmul.mubr.msk.f32.gmra.mrb[194].mxu0 %vm237_vm3, %v234_v58 }
 0x18d   :  { %14951 = vst [vmem:[#allocation67_spill] sm:$0xff] %v9503_v30 }
 0x18f   :  { %v9508_v63 = vpop.f32.mrb[90].mxu0 }
 0x190   :  { %14952 = vst [vmem:[#allocation68_spill] sm:$0xff] %v9508_v63  ;;  %v9512_v23 = vpop.f32.mrb[91].mxu0 }
 0x191   :  { %14953 = vst [vmem:[#allocation69_spill] sm:$0xff] %v9512_v23 }
 0x193   :  { %v9516_v2 = vpop.f32.mrb[92].mxu0 }
 0x194   :  { %14954 = vst [vmem:[#allocation70_spill] sm:$0xff] %v9516_v2  ;;  %v9520_v22 = vpop.f32.mrb[93].mxu0 }
 0x195   :  { %14955 = vst [vmem:[#allocation71_spill] sm:$0xff] %v9520_v22 }
 0x197   :  { %v9524_v47 = vpop.f32.mrb[94].mxu0 }
 0x198   :  { %14956 = vst [vmem:[#allocation72_spill] sm:$0xff] %v9524_v47  ;;  %v9528_v63 = vpop.f32.mrb[95].mxu0 }
 0x199   :  { %14957 = vst [vmem:[#allocation73_spill] sm:$0xff] %v9528_v63 }
 0x19b   :  { %v9532_v23 = vpop.f32.mrb[96].mxu0 }
 0x19c   :  { %14958 = vst [vmem:[#allocation74_spill] sm:$0xff] %v9532_v23  ;;  %v9536_v2 = vpop.f32.mrb[97].mxu0 }
 0x19d   :  { %14959 = vst [vmem:[#allocation75_spill] sm:$0xff] %v9536_v2 }
 0x19f   :  { %v7672_v22 = vpop.f32.mrb[98].mxu0 }
 0x1a0   :  { %v1386_v26 = vpop.f32.mrb[99].mxu0 }
 0x1a3   :  { %v9540_v35 = vpop.f32.mrb[100].mxu0 }
 0x1a4   :  { %v1396_v46 = vpop.f32.mrb[101].mxu0 }
 0x1a7   :  { %v9542_v47 = vpop.f32.mrb[102].mxu0 }
 0x1a8   :  { %v9544_v43 = vpop.f32.mrb[103].mxu0 }
 0x1ab   :  { %v9546_v14 = vpop.f32.mrb[104].mxu0 }
 0x1ac   :  { %v9548_v63 = vpop.f32.mrb[105].mxu0 }
 0x1af   :  { %v9550_v34 = vpop.f32.mrb[106].mxu0 }
 0x1b0   :  { %v9552_v38 = vpop.f32.mrb[107].mxu0 }
 0x1b3   :  { %v9554_v23 = vpop.f32.mrb[108].mxu0 }
 0x1b4   :  { %v9556_v58 = vpop.f32.mrb[109].mxu0 }
 0x1b7   :  { %v9558_v2 = vpop.f32.mrb[110].mxu0 }
 0x1b8   :  { %v9560_v42 = vpop.f32.mrb[111].mxu0 }
 0x1bb   :  { %v9562_v62 = vpop.f32.mrb[112].mxu0 }
 0x1bc   :  { %v9564_v18 = vpop.f32.mrb[113].mxu0 }
 0x1bf   :  { %v9566_v27 = vpop.f32.mrb[114].mxu0 }
 0x1c0   :  { %v9568_v30 = vpop.f32.mrb[115].mxu0 }
 0x1c3   :  { %v9570_v10 = vpop.f32.mrb[116].mxu0 }
 0x1c4   :  { %v9572_v19 = vpop.f32.mrb[117].mxu0 }
 0x1c7   :  { %v9574_v11 = vpop.f32.mrb[118].mxu0 }
 0x1c8   :  { %v9576_v3 = vpop.f32.mrb[119].mxu0 }
 0x1cb   :  { %v9578_v50 = vpop.f32.mrb[120].mxu0 }
 0x1cc   :  { %14960 = vst [vmem:[#allocation76_spill] sm:$0xff] %v9578_v50  ;;  %v9580_v59 = vpop.f32.mrb[121].mxu0 }
 0x1cf   :  { %v9582_v55 = vpop.f32.mrb[122].mxu0 }
 0x1d0   :  { %14961 = vst [vmem:[#allocation77_spill] sm:$0xff] %v9582_v55  ;;  %v9584_v44 = vpop.f32.mrb[123].mxu0 }
 0x1d1   :  { %14962 = vst [vmem:[#allocation78_spill] sm:$0xff] %v9584_v44 }
 0x1d3   :  { %v9586_v51 = vpop.f32.mrb[124].mxu0 }
 0x1d4   :  { %14963 = vst [vmem:[#allocation79_spill] sm:$0xff] %v9586_v51  ;;  %v9588_v40 = vpop.f32.mrb[125].mxu0 }
 0x1d5   :  { %14964 = vst [vmem:[#allocation80_spill] sm:$0xff] %v9588_v40 }
 0x1d7   :  { %v9590_v45 = vpop.f32.mrb[126].mxu0 }
 0x1d8   :  { %14965 = vst [vmem:[#allocation81_spill] sm:$0xff] %v9590_v45  ;;  %v9592_v36 = vpop.f32.mrb[127].mxu0 }
 0x1d9   :  { %14966 = vst [vmem:[#allocation82_spill] sm:$0xff] %v9592_v36 }
 0x1db   :  { %v9594_v41 = vpop.f32.mrb[128].mxu0 }
 0x1dc   :  { %14967 = vst [vmem:[#allocation83_spill] sm:$0xff] %v9594_v41  ;;  %v9596_v32 = vpop.f32.mrb[129].mxu0 }
 0x1dd   :  { %14968 = vst [vmem:[#allocation84_spill] sm:$0xff] %v9596_v32 }
 0x1df   :  { %v9598_v37 = vpop.f32.mrb[130].mxu0 }
 0x1e0   :  { %14969 = vst [vmem:[#allocation85_spill] sm:$0xff] %v9598_v37  ;;  %v9600_v28 = vpop.f32.mrb[131].mxu0 }
 0x1e1   :  { %14970 = vst [vmem:[#allocation86_spill] sm:$0xff] %v9600_v28 }
 0x1e3   :  { %v9602_v33 = vpop.f32.mrb[132].mxu0 }
 0x1e4   :  { %14971 = vst [vmem:[#allocation87_spill] sm:$0xff] %v9602_v33  ;;  %v9604_v55 = vpop.f32.mrb[133].mxu0 }
 0x1e5   :  { %14972 = vst [vmem:[#allocation88_spill] sm:$0xff] %v9604_v55 }
 0x1e7   :  { %v9606_v50 = vpop.f32.mrb[134].mxu0 }
 0x1e8   :  { %14973 = vst [vmem:[#allocation89_spill] sm:$0xff] %v9606_v50  ;;  %v9608_v51 = vpop.f32.mrb[135].mxu0 }
 0x1e9   :  { %14974 = vst [vmem:[#allocation90_spill] sm:$0xff] %v9608_v51 }
 0x1eb   :  { %v9610_v40 = vpop.f32.mrb[136].mxu0 }
 0x1ec   :  { %14975 = vst [vmem:[#allocation91_spill] sm:$0xff] %v9610_v40  ;;  %v9612_v45 = vpop.f32.mrb[137].mxu0 }
 0x1ed   :  { %14976 = vst [vmem:[#allocation92_spill] sm:$0xff] %v9612_v45 }
 0x1ef   :  { %v9614_v36 = vpop.f32.mrb[138].mxu0 }
 0x1f0   :  { %14977 = vst [vmem:[#allocation93_spill] sm:$0xff] %v9614_v36  ;;  %v9616_v41 = vpop.f32.mrb[139].mxu0  ;;  %v9635_v36 = vld [vmem:[%s14627_s2] ss:$0 sm:$0xff] }
 0x1f1   :  { %14978 = vst [vmem:[#allocation94_spill] sm:$0xff] %v9616_v41 }
 0x1f3   :  { %v9618_v32 = vpop.f32.mrb[140].mxu0 }
 0x1f4   :  { %14979 = vst [vmem:[#allocation95_spill] sm:$0xff] %v9618_v32  ;;  %v9620_v37 = vpop.f32.mrb[141].mxu0  ;;  %v14986_v32 = vmax.f32 %v8890_v49, %v9176_v54 }
 0x1f5   :  { %14980 = vst [vmem:[#allocation96_spill] sm:$0xff] %v9620_v37 }
 0x1f7   :  { %v9622_v28 = vpop.f32.mrb[142].mxu0 }
 0x1f8   :  { %14981 = vst [vmem:[#allocation97_spill] sm:$0xff] %v9622_v28  ;;  %v9624_v33 = vpop.f32.mrb[143].mxu0 }
 0x1f9   :  { %14982 = vst [vmem:[#allocation98_spill] sm:$0xff] %v9624_v33 }
 0x1fb   :  { %v9626_v55 = vpop.f32.mrb[144].mxu0 }
 0x1fc   :  { %14983 = vst [vmem:[#allocation99_spill] sm:$0xff] %v9626_v55  ;;  %v9628_v50 = vpop.f32.mrb[145].mxu0 }
 0x1fd   :  { %14984 = vst [vmem:[#allocation100_spill] sm:$0xff] %v9628_v50 }
 0x1ff   :  { %v7744_v51 = vpop.f32.mrb[146].mxu0 }
 0x200   :  { %v1924_v40 = vmax.f32 %v1386_v26, %v7744_v51  ;;  %v9630_v44 = vpop.f32.mrb[147].mxu0  ;;  %v14987_v51 = vmax.f32 %v8902_v53, %v9190_v7  ;;  %v14994_v7 = vld [vmem:[#allocation33_spill] sm:$0xff] }
 0x201   :  { %14985 = vst [vmem:[#allocation101_spill] sm:$0xff] %v9630_v44  ;;  %v14988_v44 = vmax.f32 %v8888_v48, %v9194_v15  ;;  %v14990_v48 = vmax.f32 %v8914_v57, %v9206_v31  ;;  %v14995_v15 = vmax.f32 %v8912_v56, %v14994_v7  ;;  %v14997_v56 = vld [vmem:[#allocation34_spill] sm:$0xff] }
 0x202   :  { %v1973_v37 = vmax.f32 %v14986_v32, %v1924_v40 }
 0x203   :  { %v7747_v28 = vpop.f32.mrb[148].mxu0 }
 0x204   :  { %v2029_v33 = vadd.f32 %v9635_v36, %v1973_v37  ;;  %v1926_v41 = vmax.f32 %v1396_v46, %v7747_v28  ;;  %v1636_v55 = vpop.f32.mrb[149].mxu0 }
 0x205   :  { %v1925_v45 = vmax.f32 %v7672_v22, %v1636_v55 }
 0x206   :  { %v2127_v50 = vmul.f32 0.01, %v2029_v33  ;;  %v1975_v26 = vmax.f32 %v14987_v51, %v1926_v41  ;;  %vm2078_vm4 = vcmp.gt.f32.partialorder %v2029_v33, 0.0 }
 0x207   :  { %v1974_v24 = vmax.f32 %v14988_v44, %v1925_v45  ;;  %v7750_v29 = vpop.f32.mrb[150].mxu0 }
 0x208   :  { %v2031_v49 = vadd.f32 %v9635_v36, %v1975_v26  ;;  %v1928_v32 = vmax.f32 %v9544_v43, %v7750_v29  ;;  %v1646_v40 = vpop.f32.mrb[151].mxu0  ;;  %v9649_v37 = vsel %vm2078_vm4, %v2029_v33, %v2127_v50  ;;  %v14991_v29 = vmax.f32 %v8900_v52, %v9210_v39 }
 0x209   :  { %14989 = vst [vmem:[#allocation102_spill] sm:$0xff] %v9649_v37  ;;  %v2030_v28 = vadd.f32 %v9635_v36, %v1974_v24  ;;  %v1927_v54 = vmax.f32 %v9540_v35, %v1646_v40  ;;  %2492 = vrot.lane.b32.xlu1 %v9649_v37, %s8378_s18  ;;  %v14993_v52 = vmax.f32 %v8926_v61, %v9222_v6 }
 0x20a   :  { %vm2080_vm5 = vcmp.gt.f32.partialorder %v2031_v49, 0.0  ;;  %v2129_v53 = vmul.f32 0.01, %v2031_v49  ;;  %v1977_v41 = vmax.f32 %v14990_v48, %v1928_v32  ;;  %v14998_v6 = vmax.f32 %v8938_v1, %v14997_v56 }
 0x20b   :  { %v1976_v44 = vmax.f32 %v14991_v29, %v1927_v54  ;;  %v7753_v33 = vpop.f32.mrb[152].mxu0  ;;  %v2128_v35 = vmul.f32 0.01, %v2030_v28  ;;  %vm2079_vm6 = vcmp.gt.f32.partialorder %v2030_v28, 0.0 }
 0x20c   :  { %v9661_v45 = vsel %vm2080_vm5, %v2031_v49, %v2129_v53  ;;  %v1930_v24 = vmax.f32 %v9548_v63, %v7753_v33  ;;  %v1656_v50 = vpop.f32.mrb[153].mxu0 }
 0x20d   :  { %14992 = vst [vmem:[#allocation103_spill] sm:$0xff] %v9661_v45  ;;  %v2032_v43 = vadd.f32 %v9635_v36, %v1976_v44  ;;  %v1929_v55 = vmax.f32 %v9542_v47, %v1656_v50  ;;  %2955 = vrot.lane.b32.xlu1 %v9649_v37, %s8379_s19  ;;  %2496 = vrot.lane.b32.xlu0 %v9661_v45, %s8378_s18  ;;  %v15004_v44 = vld [vmem:[#allocation37_spill] sm:$0xff] }
 0x20e   :  { %v1979_v57 = vmax.f32 %v14993_v52, %v1930_v24  ;;  %v2033_v47 = vadd.f32 %v9635_v36, %v1977_v41  ;;  %v9683_v61 = vsel %vm2079_vm6, %v2030_v28, %v2128_v35  ;;  %v3316_v28 = vrot.slane %v9661_v45, 6 }
 0x20f   :  { %v1978_v22 = vmax.f32 %v14995_v15, %v1929_v55  ;;  %v7756_v31 = vpop.f32.mrb[154].mxu0  ;;  %v2130_v63 = vmul.f32 0.01, %v2032_v43  ;;  %14996 = vst [vmem:[#allocation33_spill] sm:$0xff] %v9683_v61  ;;  %vm2081_vm7 = vcmp.gt.f32.partialorder %v2032_v43, 0.0  ;;  %v3315_v53 = vrot.slane %v9683_v61, 6 }
 0x210   :  { %v1932_v39 = vmax.f32 %v9552_v38, %v7756_v31  ;;  %v1666_v46 = vpop.f32.mrb[155].mxu0  ;;  %v14999_v38 = vld [vmem:[#allocation35_spill] sm:$0xff]  ;;  %v2131_v48 = vmul.f32 0.01, %v2033_v47  ;;  %vm2082_vm9 = vcmp.gt.f32.partialorder %v2033_v47, 0.0  ;;  %v15005_v33 = vmax.f32 %v8936_v0, %v15004_v44  ;;  %v15008_v0 = vld [vmem:[#allocation38_spill] sm:$0xff] }
 0x211   :  { %v1931_v51 = vmax.f32 %v9546_v14, %v1666_v46  ;;  %3341 = vrot.lane.b32.xlu1 %v9649_v37, %s8374_s25  ;;  %2959 = vrot.lane.b32.xlu0 %v9661_v45, %s8379_s19  ;;  %v15000_v49 = vmax.f32 %v8924_v60, %v14999_v38  ;;  %v9698_v41 = vsel %vm2081_vm7, %v2032_v43, %v2130_v63  ;;  %v15002_v60 = vld [vmem:[#allocation36_spill] sm:$0xff]  ;;  %v2858_v15 = vrot.slane %v9661_v45, 2  ;;  %v15010_v31 = vld [vmem:[#allocation39_spill] sm:$0xff] }
 0x212   :  { %v9688_v26 = vmax.f32 %v14998_v6, %v1932_v39  ;;  %15001 = vst [vmem:[#allocation34_spill] sm:$0xff] %v9698_v41  ;;  %v9717_v43 = vsel %vm2236_vm8, %v3315_v53, %v3316_v28  ;;  %v2860_v55 = vrot.slane %v9698_v41, 2  ;;  %v9720_v52 = vsel %vm2082_vm9, %v2033_v47, %v2131_v48 }
 0x213   :  { %v9693_v32 = vmax.f32 %v15000_v49, %v1931_v51  ;;  %v7759_v14 = vpop.f32.mrb[156].mxu0  ;;  %15006 = vst [vmem:[#allocation35_spill] sm:$0xff] %v9717_v43  ;;  %15007 = vst [vmem:[#allocation36_spill] sm:$0xff] %v9720_v52  ;;  %v15011_v39 = vmax.f32 %v8948_v4, %v15010_v31  ;;  %v2862_v56 = vrot.slane %v9720_v52, 2  ;;  %v15013_v4 = vld [vmem:[#allocation40_spill] sm:$0xff]  ;;  %v15015_v49 = vld [vmem:[#allocation41_spill] sm:$0xff] }
 0x214   :  { %v1934_v40 = vmax.f32 %v9556_v58, %v7759_v14  ;;  %v1676_v54 = vpop.f32.mrb[157].mxu0  ;;  %v15003_v58 = vmax.f32 %v8950_v5, %v15002_v60  ;;  %v9740_v51 = vsel %vm2313_vm10, %v2858_v15, %v2860_v55  ;;  %v15014_v38 = vmax.f32 %v8974_v13, %v15013_v4 }
 0x215   :  { %v1933_v1 = vmax.f32 %v9550_v34, %v1676_v54  ;;  %3345 = vrot.lane.b32.xlu0 %v9661_v45, %s8374_s25  ;;  %2957 = vrot.lane.b32.xlu1 %v9683_v61, %s8379_s19  ;;  %15012 = vst [vmem:[#allocation37_spill] sm:$0xff] %v9740_v51  ;;  %v15016_v14 = vmax.f32 %v8960_v8, %v15015_v49  ;;  %v2856_v48 = vrot.slane %v9683_v61, 2  ;;  %v15018_v8 = vld [vmem:[#allocation42_spill] sm:$0xff]  ;;  %vm2319_vm7 = vcmask 1043456  }
 0x216   :  { %v9708_v29 = vmax.f32 %v15003_v58, %v1934_v40  ;;  %v9761_v53 = vsel %vm2313_vm10, %v2860_v55, %v2862_v56  ;;  %v2035_v13 = vadd.f32 %v9635_v36, %v1979_v57 }
 0x217   :  { %v9713_v24 = vmax.f32 %v15005_v33, %v1933_v1  ;;  %v7762_v50 = vpop.f32.mrb[158].mxu0  ;;  %15017 = vst [vmem:[#allocation38_spill] sm:$0xff] %v9761_v53  ;;  %v3318_v1 = vrot.slane %v9698_v41, 6  ;;  %v2855_v33 = vrot.slane %v9649_v37, 2  ;;  %v9809_v4 = vsel %vm2313_vm10, %v2856_v48, %v2858_v15  ;;  %v15092_v37 = vld [vmem:[#allocation88_spill] sm:$0xff] }
 0x218   :  { %v1936_v34 = vmax.f32 %v9560_v42, %v7762_v50  ;;  %v1686_v35 = vpop.f32.mrb[159].mxu0  ;;  %v15009_v42 = vmax.f32 %v8962_v9, %v15008_v0  ;;  %v2034_v9 = vadd.f32 %v9635_v36, %v1978_v22  ;;  %v15020_v50 = vld [vmem:[#allocation43_spill] sm:$0xff]  ;;  %vm2084_vm12 = vcmp.gt.f32.partialorder %v2035_v13, 0.0  ;;  %15029 = vst [vmem:[#allocation42_spill] sm:$0xff] %v9809_v4 }
 0x219   :  { %v1935_v5 = vmax.f32 %v9554_v23, %v1686_v35  ;;  %2494 = vrot.lane.b32.xlu0 %v9683_v61, %s8378_s18  ;;  %3574 = vrot.lane.b32.xlu1 %v9717_v43, %s8380_s20  ;;  %v15021_v57 = vmax.f32 %v8972_v12, %v15020_v50  ;;  %v9787_v0 = vsel %vm2236_vm8, %v3316_v28, %v3318_v1  ;;  %v15025_v12 = vld [vmem:[#allocation44_spill] sm:$0xff]  ;;  %v15027_v28 = vld [vmem:[#allocation45_spill] sm:$0xff] }
 0x21a   :  { %v9730_v7 = vmax.f32 %v15009_v42, %v1936_v34  ;;  %v2132_v60 = vmul.f32 0.01, %v2034_v9  ;;  %vm2083_vm11 = vcmp.gt.f32.partialorder %v2034_v9, 0.0  ;;  %15023 = vst [vmem:[#allocation40_spill] sm:$0xff] %v9787_v0  ;;  %v2133_v42 = vmul.f32 0.01, %v2035_v13 }
 0x21b   :  { %v9736_v46 = vmax.f32 %v15011_v39, %v1935_v5  ;;  %v7765_v23 = vpop.f32.mrb[160].mxu0  ;;  %v9784_v5 = vsel %vm2313_vm10, %v2855_v33, %v2856_v48  ;;  %v15041_v33 = vld [vmem:[#allocation49_spill] sm:$0xff] }
 0x21c   :  { %v1938_v47 = vmax.f32 %v9564_v18, %v7765_v23  ;;  %v1696_v63 = vpop.f32.mrb[161].mxu0  ;;  %15022 = vst [vmem:[#allocation39_spill] sm:$0xff] %v9784_v5  ;;  %v9790_v31 = vsel %vm2083_vm11, %v2034_v9, %v2132_v60 }
 0x21d   :  { %v1937_v6 = vmax.f32 %v9558_v2, %v1696_v63  ;;  %3343 = vrot.lane.b32.xlu0 %v9683_v61, %s8374_s25  ;;  %3037 = vrot.lane.b32.xlu1 %v9740_v51, %s8377_s16  ;;  %15024 = vst [vmem:[#allocation41_spill] sm:$0xff] %v9790_v31  ;;  %v2864_v49 = vrot.slane %v9790_v31, 2 }
 0x21e   :  { %v9752_v18 = vmax.f32 %v15014_v38, %v1938_v47  ;;  %v15028_v47 = vmax.f32 %v8984_v16, %v15027_v28  ;;  %v15032_v16 = vld [vmem:[#allocation46_spill] sm:$0xff] }
 0x21f   :  { %v9757_v40 = vmax.f32 %v15016_v14, %v1937_v6  ;;  %v7768_v54 = vpop.f32.mrb[162].mxu0 }
 0x220   :  { %v1940_v22 = vmax.f32 %v9568_v30, %v7768_v54  ;;  %v1706_v2 = vpop.f32.mrb[163].mxu0  ;;  %v15019_v30 = vmax.f32 %v8986_v17, %v15018_v8  ;;  %v3320_v17 = vrot.slane %v9720_v52, 6  ;;  %v15034_v54 = vld [vmem:[#allocation47_spill] sm:$0xff]  ;;  %v15038_v8 = vld [vmem:[#allocation48_spill] sm:$0xff] }
 0x221   :  { %v1939_v58 = vmax.f32 %v9562_v62, %v1706_v2  ;;  %2500 = vrot.lane.b32.xlu0 %v9720_v52, %s8378_s18  ;;  %3039 = vrot.lane.b32.xlu1 %v9761_v53, %s8377_s16 }
 0x222   :  { %v9774_v44 = vmax.f32 %v15019_v30, %v1940_v22  ;;  %v9812_v38 = vsel %vm2236_vm8, %v3318_v1, %v3320_v17  ;;  %v15035_v22 = vmax.f32 %v8996_v20, %v15034_v54  ;;  %v15037_v20 = vld [vmem:[#allocation7_spill] sm:$0xff]  ;;  %v15053_v54 = vld [vmem:[#allocation80_spill] sm:$0xff] }
 0x223   :  { %v9780_v34 = vmax.f32 %v15021_v57, %v1939_v58  ;;  %v7771_v62 = vpop.f32.mrb[164].mxu0  ;;  %15030 = vst [vmem:[#allocation43_spill] sm:$0xff] %v9812_v38  ;;  %v2036_v58 = vadd.f32 %v9635_v36, %v9693_v32  ;;  %v15043_v32 = vld [vmem:[#allocation78_spill] sm:$0xff] }
 0x224   :  { %v1942_v35 = vmax.f32 %v9572_v19, %v7771_v62  ;;  %v1716_v55 = vpop.f32.mrb[165].mxu0  ;;  %v15026_v19 = vmax.f32 %v8998_v21, %v15025_v12  ;;  %v9815_v21 = vsel %vm2084_vm12, %v2035_v13, %v2133_v42  ;;  %v9834_v13 = vsel %vm2313_vm10, %v2862_v56, %v2864_v49  ;;  %v15040_v56 = vld [vmem:[#allocation5_spill] sm:$0xff] }
 0x225   :  { %v1941_v39 = vmax.f32 %v9566_v27, %v1716_v55  ;;  %3033 = vrot.lane.b32.xlu0 %v9784_v5, %s8377_s16  ;;  %3576 = vrot.lane.b32.xlu1 %v9787_v0, %s8380_s20  ;;  %15031 = vst [vmem:[#allocation44_spill] sm:$0xff] %v9815_v21  ;;  %15036 = vst [vmem:[#allocation45_spill] sm:$0xff] %v9834_v13  ;;  %v2866_v60 = vrot.slane %v9815_v21, 2  ;;  %v15042_v50 = vmax.f32 %v15040_v56, %v15041_v33  ;;  %v15057_v56 = vld [vmem:[#allocation11_spill] sm:$0xff]  ;;  %v15058_v33 = vld [vmem:[#allocation52_spill] sm:$0xff] }
 0x226   :  { %v9800_v23 = vmax.f32 %v15026_v19, %v1942_v35  ;;  %v3322_v42 = vrot.slane %v9790_v31, 6  ;;  %v2134_v12 = vmul.f32 0.01, %v2036_v58  ;;  %v15045_v19 = vld [vmem:[#allocation76_spill] sm:$0xff]  ;;  %vm2085_vm13 = vcmp.gt.f32.partialorder %v2036_v58, 0.0  ;;  %v15151_v5 = vld [vmem:[#allocation98_spill] sm:$0xff] }
 0x227   :  { %v9805_v63 = vmax.f32 %v15028_v47, %v1941_v39  ;;  %v7774_v9 = vpop.f32.mrb[166].mxu0  ;;  %v9856_v55 = vsel %vm2313_vm10, %v2864_v49, %v2866_v60  ;;  %v2037_v39 = vadd.f32 %v9635_v36, %v9688_v26  ;;  %v15046_v47 = vld [vmem:[#allocation9_spill] sm:$0xff]  ;;  %v15049_v49 = vld [vmem:[#allocation6_spill] sm:$0xff] }
 0x228   :  { %v1944_v27 = vmax.f32 %v9576_v3, %v7774_v9  ;;  %v1726_v6 = vpop.f32.mrb[167].mxu0  ;;  %v15033_v3 = vmax.f32 %v9010_v25, %v15032_v16  ;;  %15044 = vst [vmem:[#allocation46_spill] sm:$0xff] %v9856_v55  ;;  %v15047_v9 = vld [vmem:[#allocation50_spill] sm:$0xff] }
 0x229   :  { %v1943_v14 = vmax.f32 %v9570_v10, %v1726_v6  ;;  %3035 = vrot.lane.b32.xlu0 %v9809_v4, %s8377_s16  ;;  %3578 = vrot.lane.b32.xlu1 %v9812_v38, %s8380_s20  ;;  %vm2086_vm14 = vcmp.gt.f32.partialorder %v2037_v39, 0.0 }
 0x22a   :  { %v9825_v15 = vmax.f32 %v15033_v3, %v1944_v27  ;;  %v15048_v27 = vmax.f32 %v15046_v47, %v15047_v9 }
 0x22b   :  { %v9830_v2 = vmax.f32 %v15035_v22, %v1943_v14  ;;  %v7777_v48 = vpop.f32.mrb[168].mxu0  ;;  %v15050_v14 = vld [vmem:[#allocation51_spill] sm:$0xff] }
 0x22c   :  { %v1946_v1 = vmax.f32 %v9580_v59, %v7777_v48  ;;  %v1736_v10 = vpop.f32.mrb[169].mxu0  ;;  %v15039_v59 = vmax.f32 %v15037_v20, %v15038_v8  ;;  %v15051_v16 = vmax.f32 %v15049_v49, %v15050_v14  ;;  %v9881_v20 = vsel %vm2085_vm13, %v2036_v58, %v2134_v12  ;;  %v15056_v8 = vld [vmem:[#allocation77_spill] sm:$0xff]  ;;  %v15063_v12 = vld [vmem:[#allocation82_spill] sm:$0xff]  ;;  %v15066_v49 = vld [vmem:[#allocation79_spill] sm:$0xff] }
 0x22d   :  { %v1945_v25 = vmax.f32 %v9574_v11, %v1736_v10  ;;  %2963 = vrot.lane.b32.xlu0 %v9720_v52, %s8379_s19  ;;  %3041 = vrot.lane.b32.xlu1 %v9834_v13, %s8377_s16  ;;  %v3324_v10 = vrot.slane %v9815_v21, 6  ;;  %15055 = vst [vmem:[#allocation48_spill] sm:$0xff] %v9881_v20  ;;  %v2868_v9 = vrot.slane %v9881_v20, 2  ;;  %v15129_v13 = vld [vmem:[#allocation65_spill] sm:$0xff] }
 0x22e   :  { %v9847_v30 = vmax.f32 %v15039_v59, %v1946_v1  ;;  %v9878_v1 = vsel %vm2236_vm8, %v3320_v17, %v3322_v42  ;;  %v15060_v17 = vld [vmem:[#allocation8_spill] sm:$0xff] }
 0x22f   :  { %v9852_v57 = vmax.f32 %v15042_v50, %v1945_v25  ;;  %v7780_v62 = vpop.f32.mrb[170].mxu0  ;;  %15054 = vst [vmem:[#allocation7_spill] sm:$0xff] %v9878_v1  ;;  %v2135_v25 = vmul.f32 0.01, %v2037_v39  ;;  %v15059_v50 = vmax.f32 %v15057_v56, %v15058_v33  ;;  %v9900_v47 = vsel %vm2236_vm8, %v3322_v42, %v3324_v10  ;;  %v15073_v33 = vld [vmem:[#allocation84_spill] sm:$0xff] }
 0x230   :  { %v1948_v35 = vmax.f32 %v15043_v32, %v7780_v62  ;;  %v1746_v11 = vpop.f32.mrb[171].mxu0  ;;  %v15061_v32 = vld [vmem:[#allocation53_spill] sm:$0xff]  ;;  %15064 = vst [vmem:[#allocation5_spill] sm:$0xff] %v9900_v47  ;;  %v2039_v42 = vadd.f32 %v9635_v36, %v9708_v29  ;;  %v2038_v56 = vadd.f32 %v9635_v36, %v9713_v24  ;;  %v2041_v29 = vadd.f32 %v9635_v36, %v9730_v7 }
 0x231   :  { %v1947_v28 = vmax.f32 %v15045_v19, %v1746_v11  ;;  %3349 = vrot.lane.b32.xlu0 %v9720_v52, %s8374_s25  ;;  %3043 = vrot.lane.b32.xlu1 %v9856_v55, %s8377_s16  ;;  %v2040_v24 = vadd.f32 %v9635_v36, %v9736_v46  ;;  %v15080_v7 = vld [vmem:[#allocation57_spill] sm:$0xff] }
 0x232   :  { %v9869_v6 = vmax.f32 %v15048_v27, %v1948_v35  ;;  %v15062_v35 = vmax.f32 %v15060_v17, %v15061_v32  ;;  %v9903_v27 = vsel %vm2086_vm14, %v2037_v39, %v2135_v25  ;;  %v9926_v32 = vsel %vm2313_vm10, %v2866_v60, %v2868_v9 }
 0x233   :  { %v9874_v3 = vmax.f32 %v15051_v16, %v1947_v28  ;;  %v7783_v26 = vpop.f32.mrb[172].mxu0  ;;  %15065 = vst [vmem:[#allocation49_spill] sm:$0xff] %v9903_v27  ;;  %v15067_v16 = vld [vmem:[#allocation13_spill] sm:$0xff]  ;;  %15074 = vst [vmem:[#allocation78_spill] sm:$0xff] %v9926_v32  ;;  %vm2088_vm15 = vcmp.gt.f32.partialorder %v2039_v42, 0.0  ;;  %vm2087_vm0 = vcmp.gt.f32.partialorder %v2038_v56, 0.0 }
 0x234   :  { %v1950_v22 = vmax.f32 %v15053_v54, %v7783_v26  ;;  %v1756_v48 = vpop.f32.mrb[173].mxu0  ;;  %v15068_v26 = vld [vmem:[#allocation54_spill] sm:$0xff]  ;;  %vm2090_vm1 = vcmp.gt.f32.partialorder %v2041_v29, 0.0  ;;  %vm2089_vm2 = vcmp.gt.f32.partialorder %v2040_v24, 0.0 }
 0x235   :  { %15052 = vst [vmem:[#allocation47_spill] sm:$0xff] %v9874_v3  ;;  %v1949_v59 = vmax.f32 %v15056_v8, %v1756_v48  ;;  %2498 = vrot.lane.b32.xlu0 %v9698_v41, %s8378_s18  ;;  %3580 = vrot.lane.b32.xlu1 %v9878_v1, %s8380_s20  ;;  %v15069_v54 = vmax.f32 %v15067_v16, %v15068_v26  ;;  %v15070_v48 = vld [vmem:[#allocation10_spill] sm:$0xff]  ;;  %v15071_v8 = vld [vmem:[#allocation55_spill] sm:$0xff]  ;;  %v15079_v16 = vld [vmem:[#allocation12_spill] sm:$0xff] }
 0x236   :  { %v9891_v62 = vmax.f32 %v15059_v50, %v1950_v22  ;;  %v15072_v39 = vmax.f32 %v15070_v48, %v15071_v8  ;;  %v15081_v26 = vmax.f32 %v15079_v16, %v15080_v7  ;;  %v2136_v8 = vmul.f32 0.01, %v2038_v56  ;;  %v15086_v16 = vld [vmem:[#allocation58_spill] sm:$0xff] }
 0x237   :  { %v9896_v11 = vmax.f32 %v15062_v35, %v1949_v59  ;;  %v7786_v58 = vpop.f32.mrb[174].mxu0  ;;  %v14711_v35 = vrot.slane %v9903_v27, 2 }
 0x238   :  { %v1952_v19 = vmax.f32 %v15063_v12, %v7786_v58  ;;  %v1766_v28 = vpop.f32.mrb[175].mxu0  ;;  %v15075_v58 = vld [vmem:[#allocation81_spill] sm:$0xff]  ;;  %v9974_v61 = vsel %vm2087_vm0, %v2038_v56, %v2136_v8  ;;  %v15098_v56 = vld [vmem:[#allocation19_spill] sm:$0xff] }
 0x239   :  { %v1951_v14 = vmax.f32 %v15066_v49, %v1766_v28  ;;  %2961 = vrot.lane.b32.xlu0 %v9698_v41, %s8379_s19  ;;  %3582 = vrot.lane.b32.xlu1 %v9900_v47, %s8380_s20  ;;  %v15077_v28 = vld [vmem:[#allocation56_spill] sm:$0xff]  ;;  %v9952_v46 = vsel %vm2313_vm10, %v2868_v9, %v14711_v35  ;;  %v2042_v9 = vadd.f32 %v9635_v36, %v9757_v40  ;;  %v3328_v40 = vrot.slane %v9903_v27, 6 }
 0x23a   :  { %v9913_v22 = vmax.f32 %v15069_v54, %v1952_v19  ;;  %v15076_v19 = vld [vmem:[#allocation15_spill] sm:$0xff]  ;;  %15083 = vst [vmem:[#allocation76_spill] sm:$0xff] %v9952_v46  ;;  %15091 = vst [vmem:[#allocation9_spill] sm:$0xff] %v9974_v61 }
 0x23b   :  { %v9920_v25 = vmax.f32 %v15072_v39, %v1951_v14  ;;  %v7789_v59 = vpop.f32.mrb[176].mxu0  ;;  %v15078_v60 = vmax.f32 %v15076_v19, %v15077_v28  ;;  %v2137_v14 = vmul.f32 0.01, %v2039_v42  ;;  %v15082_v39 = vld [vmem:[#allocation86_spill] sm:$0xff]  ;;  %v2043_v28 = vadd.f32 %v9635_v36, %v9752_v18 }
 0x23c   :  { %v1954_v50 = vmax.f32 %v15073_v33, %v7789_v59  ;;  %v1776_v17 = vpop.f32.mrb[177].mxu0  ;;  %vm2091_vm4 = vcmp.gt.f32.partialorder %v2042_v9, 0.0 }
 0x23d   :  { %v1953_v12 = vmax.f32 %v15075_v58, %v1776_v17  ;;  %3347 = vrot.lane.b32.xlu0 %v9698_v41, %s8374_s25  ;;  %3045 = vrot.lane.b32.xlu1 %v9926_v32, %s8377_s16  ;;  %v2139_v17 = vmul.f32 0.01, %v2041_v29  ;;  %v15084_v58 = vld [vmem:[#allocation83_spill] sm:$0xff]  ;;  %vm2092_vm3 = vcmp.gt.f32.partialorder %v2043_v28, 0.0 }
 0x23e   :  { %v9941_v49 = vmax.f32 %v15078_v60, %v1954_v50  ;;  %v3326_v50 = vrot.slane %v9881_v20, 6  ;;  %v15085_v60 = vld [vmem:[#allocation17_spill] sm:$0xff]  ;;  %v15140_v41 = vld [vmem:[#allocation67_spill] sm:$0xff] }
 0x23f   :  { %v9946_v54 = vmax.f32 %v15081_v26, %v1953_v12  ;;  %v7792_v48 = vpop.f32.mrb[178].mxu0  ;;  %v2138_v12 = vmul.f32 0.01, %v2040_v24  ;;  %v15087_v7 = vmax.f32 %v15085_v60, %v15086_v16  ;;  %v9985_v60 = vsel %vm2090_vm1, %v2041_v29, %v2139_v17  ;;  %v15096_v16 = vld [vmem:[#allocation85_spill] sm:$0xff]  ;;  %v15101_v29 = vld [vmem:[#allocation16_spill] sm:$0xff] }
 0x240   :  { %v1956_v59 = vmax.f32 %v15082_v39, %v7792_v48  ;;  %v1786_v33 = vpop.f32.mrb[179].mxu0  ;;  %v15088_v48 = vld [vmem:[#allocation14_spill] sm:$0xff]  ;;  %v15089_v39 = vld [vmem:[#allocation59_spill] sm:$0xff]  ;;  %v9978_v32 = vsel %vm2236_vm8, %v3324_v10, %v3326_v50  ;;  %15095 = vst [vmem:[#allocation51_spill] sm:$0xff] %v9985_v60  ;;  %v2140_v10 = vmul.f32 0.01, %v2042_v9 }
 0x241   :  { %v1955_v19 = vmax.f32 %v15084_v58, %v1786_v33  ;;  %2504 = vrot.lane.b32.xlu0 %v9815_v21, %s8378_s18  ;;  %3047 = vrot.lane.b32.xlu1 %v9952_v46, %s8377_s16  ;;  %v15090_v33 = vmax.f32 %v15088_v48, %v15089_v39  ;;  %15093 = vst [vmem:[#allocation50_spill] sm:$0xff] %v9978_v32  ;;  %v15102_v17 = vld [vmem:[#allocation61_spill] sm:$0xff]  ;;  %v14728_v53 = vrot.slane %v9985_v60, 2 }
 0x242   :  { %v9967_v26 = vmax.f32 %v15087_v7, %v1956_v59  ;;  %v9982_v59 = vsel %vm2088_vm15, %v2039_v42, %v2137_v14  ;;  %v2141_v14 = vmul.f32 0.01, %v2043_v28  ;;  %v15103_v7 = vmax.f32 %v15101_v29, %v15102_v17 }
 0x243   :  { %v9972_v58 = vmax.f32 %v15090_v33, %v1955_v19  ;;  %v7795_v35 = vpop.f32.mrb[180].mxu0  ;;  %15094 = vst [vmem:[#allocation6_spill] sm:$0xff] %v9982_v59  ;;  %v2872_v33 = vrot.slane %v9974_v61, 2  ;;  %v3332_v29 = vrot.slane %v9982_v59, 6  ;;  %v10022_v17 = vsel %vm2091_vm4, %v2042_v9, %v2140_v10 }
 0x244   :  { %v1958_v46 = vmax.f32 %v15092_v37, %v7795_v35  ;;  %v1796_v18 = vpop.f32.mrb[181].mxu0  ;;  %v9992_v37 = vsel %vm2089_vm2, %v2040_v24, %v2138_v12  ;;  %v15099_v35 = vld [vmem:[#allocation60_spill] sm:$0xff]  ;;  %15107 = vst [vmem:[#allocation11_spill] sm:$0xff] %v10022_v17  ;;  %v15114_v10 = vrot.slane %v9903_v27, 2 }
 0x245   :  { %v1957_v19 = vmax.f32 %v15096_v16, %v1796_v18  ;;  %2967 = vrot.lane.b32.xlu0 %v9815_v21, %s8379_s19  ;;  %3584 = vrot.lane.b32.xlu1 %v9978_v32, %s8380_s20  ;;  %15097 = vst [vmem:[#allocation80_spill] sm:$0xff] %v9992_v37  ;;  %v15100_v8 = vmax.f32 %v15098_v56, %v15099_v35  ;;  %v15104_v18 = vld [vmem:[#allocation90_spill] sm:$0xff]  ;;  %v2874_v56 = vrot.slane %v9982_v59, 2 }
 0x246   :  { %v10007_v16 = vsel %vm2236_vm8, %v3326_v50, %v3328_v40  ;;  %v10013_v35 = vadd.f32 %v9635_v36, %v9774_v44  ;;  %v15108_v44 = vld [vmem:[#allocation21_spill] sm:$0xff]  ;;  %v15111_v32 = vld [vmem:[#allocation18_spill] sm:$0xff] }
 0x247   :  { %v9997_v42 = vmax.f32 %v15100_v8, %v1958_v46  ;;  %v10002_v48 = vmax.f32 %v15103_v7, %v1957_v19  ;;  %v7798_v39 = vpop.f32.mrb[182].mxu0  ;;  %15105 = vst [vmem:[#allocation77_spill] sm:$0xff] %v10007_v16  ;;  %v3330_v46 = vrot.slane %v9974_v61, 6  ;;  %v15106_v8 = vld [vmem:[#allocation87_spill] sm:$0xff]  ;;  %v10026_v7 = vadd.f32 %v9635_v36, %v9780_v34 }
 0x248   :  { %v1960_v24 = vmax.f32 %v15104_v18, %v7798_v39  ;;  %v1806_v12 = vpop.f32.mrb[183].mxu0  ;;  %v15109_v39 = vld [vmem:[#allocation62_spill] sm:$0xff]  ;;  %v10044_v34 = vsel %vm2313_vm10, %v15114_v10, %v2872_v33  ;;  %v10051_v55 = vsel %vm2313_vm10, %v2872_v33, %v2874_v56  ;;  %v15125_v10 = vld [vmem:[#allocation64_spill] sm:$0xff] }
 0x249   :  { %v1959_v19 = vmax.f32 %v15106_v8, %v1806_v12  ;;  %3353 = vrot.lane.b32.xlu0 %v9815_v21, %s8374_s25  ;;  %3586 = vrot.lane.b32.xlu1 %v10007_v16, %s8380_s20  ;;  %v15110_v18 = vmax.f32 %v15108_v44, %v15109_v39  ;;  %v3334_v8 = vrot.slane %v9992_v37, 6  ;;  %v2055_v16 = vadd.f32 %v9635_v36, %v9891_v62  ;;  %v15112_v21 = vld [vmem:[#allocation63_spill] sm:$0xff] }
 0x24a   :  { %v15113_v47 = vmax.f32 %v15111_v32, %v15112_v21  ;;  %15115 = vst [vmem:[#allocation52_spill] sm:$0xff] %v10044_v34  ;;  %v10047_v44 = vsel %vm2092_vm3, %v2043_v28, %v2141_v14  ;;  %15118 = vst [vmem:[#allocation53_spill] sm:$0xff] %v10051_v55  ;;  %v10054_v62 = vsel %vm2236_vm8, %v3328_v40, %v3330_v46  ;;  %v3336_v21 = vrot.slane %v9985_v60, 6 }
 0x24b   :  { %v10031_v12 = vmax.f32 %v15110_v18, %v1960_v24  ;;  %v7801_v9 = vpop.f32.mrb[184].mxu0  ;;  %15116 = vst [vmem:[#allocation8_spill] sm:$0xff] %v10047_v44  ;;  %v15117_v24 = vld [vmem:[#allocation92_spill] sm:$0xff]  ;;  %15119 = vst [vmem:[#allocation82_spill] sm:$0xff] %v10054_v62  ;;  %v10063_v28 = vsel %vm2236_vm8, %v3330_v46, %v3332_v29  ;;  %v15122_v14 = vrot.slane %v9992_v37, 2  ;;  %v2532_v40 = vrot.slane %v10022_v17, 2 }
 0x24c   :  { %v10039_v50 = vmax.f32 %v15113_v47, %v1959_v19  ;;  %v1962_v39 = vmax.f32 %v15117_v24, %v7801_v9  ;;  %v1816_v18 = vpop.f32.mrb[185].mxu0  ;;  %v15120_v47 = vld [vmem:[#allocation89_spill] sm:$0xff]  ;;  %15121 = vst [vmem:[#allocation79_spill] sm:$0xff] %v10063_v28  ;;  %v2054_v19 = vadd.f32 %v9635_v36, %v9896_v11  ;;  %v15124_v9 = vld [vmem:[#allocation23_spill] sm:$0xff]  ;;  %v2153_v1 = vmul.f32 0.01, %v2055_v16 }
 0x24d   :  { %v1961_v32 = vmax.f32 %v15120_v47, %v1816_v18  ;;  %2502 = vrot.lane.b32.xlu0 %v9790_v31, %s8378_s18  ;;  %2516 = vrot.lane.b32.xlu1 %v9985_v60, %s8378_s18  ;;  %v10068_v33 = vsel %vm2313_vm10, %v2874_v56, %v15122_v14  ;;  %v15126_v24 = vmax.f32 %v15124_v9, %v15125_v10  ;;  %v15128_v14 = vld [vmem:[#allocation20_spill] sm:$0xff]  ;;  %vm2104_vm5 = vcmp.gt.f32.partialorder %v2055_v16, 0.0  ;;  %v15132_v46 = vld [vmem:[#allocation91_spill] sm:$0xff] }
 0x24e   :  { %15123 = vst [vmem:[#allocation13_spill] sm:$0xff] %v10068_v33  ;;  %v10079_v47 = vsel %vm2236_vm8, %v3332_v29, %v3334_v8  ;;  %v2057_v56 = vadd.f32 %v9635_v36, %v9913_v22  ;;  %v15130_v52 = vmax.f32 %v15128_v14, %v15129_v13  ;;  %v15131_v29 = vld [vmem:[#allocation94_spill] sm:$0xff]  ;;  %v2059_v22 = vadd.f32 %v9635_v36, %v9941_v49  ;;  %v15134_v49 = vld [vmem:[#allocation25_spill] sm:$0xff] }
 0x24f   :  { %v10076_v18 = vmax.f32 %v15126_v24, %v1962_v39  ;;  %15127 = vst [vmem:[#allocation54_spill] sm:$0xff] %v10079_v47  ;;  %v7804_v11 = vpop.f32.mrb[186].mxu0  ;;  %v2056_v39 = vadd.f32 %v9635_v36, %v9920_v25  ;;  %v10094_v24 = vsel %vm2236_vm8, %v3334_v8, %v3336_v21  ;;  %v10110_v25 = vsel %vm2313_vm10, %v14728_v53, %v2532_v40  ;;  %v15135_v21 = vld [vmem:[#allocation66_spill] sm:$0xff] }
 0x250   :  { %v10087_v38 = vmax.f32 %v15130_v52, %v1961_v32  ;;  %v1964_v9 = vmax.f32 %v15131_v29, %v7804_v11  ;;  %v1826_v10 = vpop.f32.mrb[187].mxu0  ;;  %v10105_v52 = vsel %vm2236_vm8, 0.0, %v9985_v60  ;;  %vm2103_vm6 = vcmp.gt.f32.partialorder %v2054_v19, 0.0 }
 0x251   :  { %v1963_v13 = vmax.f32 %v15132_v46, %v1826_v10  ;;  %2965 = vrot.lane.b32.xlu0 %v9790_v31, %s8379_s19  ;;  %3049 = vrot.lane.b32.xlu1 %v10044_v34, %s8377_s16  ;;  %15133 = vst [vmem:[#allocation10_spill] sm:$0xff] %v10105_v52  ;;  %v2152_v8 = vmul.f32 0.01, %v2054_v19  ;;  %v15136_v32 = vmax.f32 %v15134_v49, %v15135_v21  ;;  %v15137_v14 = vrot.slane %v10047_v44, 2  ;;  %v15139_v34 = vld [vmem:[#allocation22_spill] sm:$0xff]  ;;  %v15142_v21 = vld [vmem:[#allocation96_spill] sm:$0xff] }
 0x252   :  { %v10121_v29 = vsel %vm2104_vm5, %v2055_v16, %v2153_v1  ;;  %v2155_v10 = vmul.f32 0.01, %v2057_v56  ;;  %v2058_v53 = vadd.f32 %v9635_v36, %v9946_v54  ;;  %v15141_v0 = vmax.f32 %v15139_v34, %v15140_v41 }
 0x253   :  { %v2013_v46 = vmax.f32 %v15136_v32, %v1964_v9  ;;  %v10118_v11 = vsel %vm2313_vm10, %v2532_v40, %v15137_v14  ;;  %v7807_v45 = vpop.f32.mrb[188].mxu0  ;;  %vm2106_vm9 = vcmp.gt.f32.partialorder %v2057_v56, 0.0  ;;  %v2154_v9 = vmul.f32 0.01, %v2056_v39  ;;  %v15143_v14 = vld [vmem:[#allocation93_spill] sm:$0xff] }
 0x254   :  { %15138 = vst [vmem:[#allocation55_spill] sm:$0xff] %v10118_v11  ;;  %v2012_v51 = vmax.f32 %v15141_v0, %v1963_v13  ;;  %v2061_v49 = vadd.f32 %v9635_v36, %v9967_v26  ;;  %v1966_v40 = vmax.f32 %v15142_v21, %v7807_v45  ;;  %v1836_v32 = vpop.f32.mrb[189].mxu0  ;;  %vm2105_vm11 = vcmp.gt.f32.partialorder %v2056_v39, 0.0  ;;  %v15144_v0 = vld [vmem:[#allocation27_spill] sm:$0xff]  ;;  %v15145_v26 = vld [vmem:[#allocation68_spill] sm:$0xff] }
 0x255   :  { %v2157_v1 = vmul.f32 0.01, %v2059_v22  ;;  %v2060_v16 = vadd.f32 %v9635_v36, %v9972_v58  ;;  %v1965_v54 = vmax.f32 %v15143_v14, %v1836_v32  ;;  %3351 = vrot.lane.b32.xlu0 %v9790_v31, %s8374_s25  ;;  %3051 = vrot.lane.b32.xlu1 %v10051_v55, %s8377_s16  ;;  %vm2108_vm12 = vcmp.gt.f32.partialorder %v2059_v22, 0.0  ;;  %v15147_v14 = vld [vmem:[#allocation24_spill] sm:$0xff]  ;;  %v15148_v55 = vld [vmem:[#allocation69_spill] sm:$0xff] }
 0x256   :  { %v2063_v41 = vadd.f32 %v9635_v36, %v9997_v42  ;;  %v2062_v45 = vadd.f32 %v9635_v36, %v10002_v48  ;;  %v15146_v34 = vmax.f32 %v15144_v0, %v15145_v26  ;;  %v10146_v58 = vsel %vm2103_vm6, %v2054_v19, %v2152_v8  ;;  %v15153_v8 = vld [vmem:[#allocation95_spill] sm:$0xff] }
 0x257   :  { %v10149_v21 = vsel %vm2106_vm9, %v2057_v56, %v2155_v10  ;;  %v2156_v32 = vmul.f32 0.01, %v2058_v53  ;;  %v15149_v31 = vmax.f32 %v15147_v14, %v15148_v55  ;;  %v7810_v4 = vpop.f32.mrb[190].mxu0  ;;  %v10154_v42 = vsel %vm2105_vm11, %v2056_v39, %v2154_v9  ;;  %v15154_v39 = vld [vmem:[#allocation29_spill] sm:$0xff]  ;;  %v15155_v10 = vld [vmem:[#allocation70_spill] sm:$0xff] }
 0x258   :  { %v2015_v13 = vmax.f32 %v15146_v34, %v1966_v40  ;;  %15150 = vst [vmem:[#allocation84_spill] sm:$0xff] %v10154_v42  ;;  %vm2107_vm13 = vcmp.gt.f32.partialorder %v2058_v53, 0.0  ;;  %v2159_v48 = vmul.f32 0.01, %v2061_v49  ;;  %v1968_v3 = vmax.f32 %v15151_v5, %v7810_v4  ;;  %v1846_v0 = vpop.f32.mrb[191].mxu0 }
 0x259   :  { %v2014_v43 = vmax.f32 %v15149_v31, %v1965_v54  ;;  %v10157_v40 = vsel %vm2108_vm12, %v2059_v22, %v2157_v1  ;;  %vm2110_vm14 = vcmp.gt.f32.partialorder %v2061_v49, 0.0  ;;  %v2158_v19 = vmul.f32 0.01, %v2060_v16  ;;  %2508 = vrot.lane.b32.xlu0 %v9903_v27, %s8378_s18  ;;  %3588 = vrot.lane.b32.xlu1 %v10054_v62, %s8380_s20  ;;  %v15158_v22 = vld [vmem:[#allocation26_spill] sm:$0xff]  ;;  %v15159_v1 = vld [vmem:[#allocation71_spill] sm:$0xff] }
 0x25a   :  { %15152 = vst [vmem:[#allocation81_spill] sm:$0xff] %v10157_v40  ;;  %v1967_v56 = vmax.f32 %v15153_v8, %v1846_v0  ;;  %vm2109_vm15 = vcmp.gt.f32.partialorder %v2060_v16, 0.0  ;;  %v2161_v31 = vmul.f32 0.01, %v2063_v41  ;;  %v2160_v55 = vmul.f32 0.01, %v2062_v45 }
 0x25b   :  { %v15156_v9 = vmax.f32 %v15154_v39, %v15155_v10  ;;  %v10167_v4 = vsel %vm2107_vm13, %v2058_v53, %v2156_v32  ;;  %vm2112_vm0 = vcmp.gt.f32.partialorder %v2063_v41, 0.0  ;;  %vm2111_vm1 = vcmp.gt.f32.partialorder %v2062_v45, 0.0  ;;  %v7813_v34 = vpop.f32.mrb[192].mxu0  ;;  %v15162_v39 = vld [vmem:[#allocation100_spill] sm:$0xff] }
 0x25c   :  { %15157 = vst [vmem:[#allocation15_spill] sm:$0xff] %v10167_v4  ;;  %v15160_v54 = vmax.f32 %v15158_v22, %v15159_v1  ;;  %v10172_v14 = vsel %vm2110_vm14, %v2061_v49, %v2159_v48  ;;  %v10176_v0 = vadd.f32 %v9635_v36, %v10031_v12  ;;  %v2067_v8 = vadd.f32 %v9635_v36, %v10076_v18  ;;  %v1856_v53 = vpop.f32.mrb[193].mxu0  ;;  %v15168_v48 = vld [vmem:[#allocation31_spill] sm:$0xff] }
 0x25d   :  { %v2017_v5 = vmax.f32 %v15156_v9, %v1968_v3  ;;  %15161 = vst [vmem:[#allocation56_spill] sm:$0xff] %v10172_v14  ;;  %v1970_v3 = vmax.f32 %v15162_v39, %v7813_v34  ;;  %v10181_v32 = vsel %vm2109_vm15, %v2060_v16, %v2158_v19  ;;  %v2069_v10 = vadd.f32 %v9635_v36, %v2013_v46  ;;  %v15164_v9 = vld [vmem:[#allocation97_spill] sm:$0xff]  ;;  %v15169_v46 = vld [vmem:[#allocation72_spill] sm:$0xff] }
 0x25e   :  { %v2016_v26 = vmax.f32 %v15160_v54, %v1967_v56  ;;  %15163 = vst [vmem:[#allocation12_spill] sm:$0xff] %v10181_v32  ;;  %v1969_v22 = vmax.f32 %v15164_v9, %v1856_v53  ;;  %2971 = vrot.lane.b32.xlu0 %v9903_v27, %s8379_s19  ;;  %3590 = vrot.lane.b32.xlu1 %v10063_v28, %s8380_s20  ;;  %v10191_v12 = vsel %vm2319_vm7, %v10094_v24, 0.0  ;;  %v15171_v39 = vld [vmem:[#allocation28_spill] sm:$0xff]  ;;  %v15172_v53 = vld [vmem:[#allocation73_spill] sm:$0xff]  ;;  %vm2116_vm2 = vcmp.gt.f32.partialorder %v2067_v8, 0.0  ;;  %v15179_v28 = vld [vmem:[#allocation30_spill] sm:$0xff] }
 0x25f   :  { %15165 = vst [vmem:[#allocation57_spill] sm:$0xff] %v10191_v12  ;;  %v10193_v18 = vsel %vm2112_vm0, %v2063_v41, %v2161_v31  ;;  %v10195_v49 = vsel %vm2111_vm1, %v2062_v45, %v2160_v55  ;;  %v2068_v16 = vadd.f32 %v9635_v36, %v2012_v51  ;;  %v15170_v19 = vmax.f32 %v15168_v48, %v15169_v46  ;;  %v7816_v41 = vpop.f32.mrb[194].mxu0  ;;  %v15174_v31 = vld [vmem:[#allocation101_spill] sm:$0xff]  ;;  %v15176_v46 = vld [vmem:[#allocation32_spill] sm:$0xff] }
 0x260   :  { %15166 = vst [vmem:[#allocation86_spill] sm:$0xff] %v10193_v18  ;;  %15167 = vst [vmem:[#allocation83_spill] sm:$0xff] %v10195_v49  ;;  %v2071_v1 = vadd.f32 %v9635_v36, %v2015_v13  ;;  %v2070_v54 = vadd.f32 %v9635_v36, %v2014_v43  ;;  %v2073_v34 = vadd.f32 %v9635_v36, %v2017_v5  ;;  %v10208_v45 = vmul.f32 0.01, %v10176_v0  ;;  %v1866_v13 = vpop.f32.mrb[195].mxu0  ;;  %v15175_v5 = vld [vmem:[#allocation99_spill] sm:$0xff] }
 0x261   :  { %v2019_v56 = vmax.f32 %v15170_v19, %v1970_v3  ;;  %v15173_v24 = vmax.f32 %v15171_v39, %v15172_v53  ;;  %v10212_v51 = vadd.f32 %v9635_v36, %v10039_v50  ;;  %v1972_v55 = vmax.f32 %v15174_v31, %v7816_v41  ;;  %v15177_v19 = vld [vmem:[#allocation74_spill] sm:$0xff] }
 0x262   :  { %v2165_v3 = vmul.f32 0.01, %v2067_v8  ;;  %vm2118_vm3 = vcmp.gt.f32.partialorder %v2069_v10, 0.0  ;;  %v2072_v43 = vadd.f32 %v9635_v36, %v2016_v26  ;;  %v1971_v48 = vmax.f32 %v15175_v5, %v1866_v13  ;;  %3357 = vrot.lane.b32.xlu0 %v9903_v27, %s8374_s25  ;;  %2440 = vrot.lane.b32.xlu1 %v10105_v52, %s8379_s19  ;;  %v15180_v26 = vld [vmem:[#allocation75_spill] sm:$0xff] }
 0x263   :  { %v2018_v9 = vmax.f32 %v15173_v24, %v1969_v22  ;;  %v2167_v22 = vmul.f32 0.01, %v2069_v10  ;;  %vm2117_vm4 = vcmp.gt.f32.partialorder %v2068_v16, 0.0  ;;  %v2166_v50 = vmul.f32 0.01, %v2068_v16 }
 0x264   :  { %v15178_v39 = vmax.f32 %v15176_v46, %v15177_v19  ;;  %v2169_v24 = vmul.f32 0.01, %v2071_v1  ;;  %v2168_v41 = vmul.f32 0.01, %v2070_v54  ;;  %v2171_v31 = vmul.f32 0.01, %v2073_v34 }
 0x265   :  { %v15181_v62 = vmax.f32 %v15179_v28, %v15180_v26  ;;  %v10231_v5 = vadd.f32 %v9635_v36, %v10087_v38  ;;  %vm2120_vm5 = vcmp.gt.f32.partialorder %v2071_v1, 0.0  ;;  %vm2119_vm6 = vcmp.gt.f32.partialorder %v2070_v54, 0.0 }
 0x266   :  { %v2021_v53 = vmax.f32 %v15178_v39, %v1972_v55  ;;  %vm2122_vm9 = vcmp.gt.f32.partialorder %v2073_v34, 0.0  ;;  %v10234_v27 = vsel %vm2116_vm2, %v2067_v8, %v2165_v3  ;;  %v2170_v46 = vmul.f32 0.01, %v2072_v43  ;;  %2506 = vrot.lane.b32.xlu0 %v9881_v20, %s8378_s18  ;;  %2514 = vrot.lane.b32.xlu1 %v9992_v37, %s8378_s18 }
 0x267   :  { %v10227_v13 = vmax.f32 %v15181_v62, %v1971_v48  ;;  %15182 = vst [vmem:[#allocation17_spill] sm:$0xff] %v10234_v27  ;;  %v10237_v55 = vadd.f32 %v9635_v36, %v2019_v56  ;;  %v14746_v62 = vrot.slane %v10146_v58, 4  ;;  %v10245_v38 = vsel %vm2118_vm3, %v2069_v10, %v2167_v22 }
 0x268   :  { %v10248_v28 = vsel %vm2117_vm4, %v2068_v16, %v2166_v50  ;;  %vm2121_vm11 = vcmp.gt.f32.partialorder %v2072_v43, 0.0  ;;  %v2639_v8 = vrot.slane %v10121_v29, 4  ;;  %v10251_v3 = vsel %vm2120_vm5, %v2071_v1, %v2169_v24 }
 0x269   :  { %15183 = vst [vmem:[#allocation58_spill] sm:$0xff] %v10248_v28  ;;  %v10253_v56 = vsel %vm2119_vm6, %v2070_v54, %v2168_v41  ;;  %v10255_v48 = vsel %vm2122_vm9, %v2073_v34, %v2171_v31  ;;  %v14747_v19 = vrot.slane %v10146_v58, 6  ;;  %v10259_v39 = vadd.f32 %v9635_v36, %v2018_v9 }
 0x26a   :  { %15184 = vst [vmem:[#allocation14_spill] sm:$0xff] %v10253_v56  ;;  %v10264_v10 = vsel %vm2319_vm7, %v14746_v62, %v2639_v8  ;;  %v2283_v16 = vrot.slane %v10121_v29, 6  ;;  %v2641_v22 = vrot.slane %v10154_v42, 4  ;;  %v10268_v1 = vsel %vm2121_vm11, %v2072_v43, %v2170_v46  ;;  %2969 = vrot.lane.b32.xlu0 %v9881_v20, %s8379_s19  ;;  %3053 = vrot.lane.b32.xlu1 %v10068_v33, %s8377_s16 }
 0x26b   :  { %15185 = vst [vmem:[#allocation59_spill] sm:$0xff] %v10268_v1  ;;  %v10271_v54 = vmul.f32 0.01, %v10237_v55  ;;  %v2643_v34 = vrot.slane %v10149_v21, 4  ;;  %v2285_v9 = vrot.slane %v10154_v42, 6  ;;  %v2287_v24 = vrot.slane %v10149_v21, 6 }
 0x26c   :  { %v10282_v50 = vsel %vm2236_vm8, %v14747_v19, %v2283_v16  ;;  %v10285_v43 = vsel %vm2319_vm7, %v2639_v8, %v2641_v22  ;;  %v2645_v41 = vrot.slane %v10167_v4, 4  ;;  %v2647_v46 = vrot.slane %v10157_v40, 4 }
 0x26d   :  { %15186 = vst [vmem:[#allocation88_spill] sm:$0xff] %v10282_v50  ;;  %15187 = vst [vmem:[#allocation85_spill] sm:$0xff] %v10285_v43  ;;  %v10290_v31 = vsel %vm2319_vm7, %v2641_v22, %v2643_v34  ;;  %v10293_v26 = vsel %vm2236_vm8, %v2283_v16, %v2285_v9  ;;  %v2289_v62 = vrot.slane %v10167_v4, 6  ;;  %vm2124_vm12 = vcmp.gt.f32.partialorder %v10237_v55, 0.0  ;;  %v10310_v16 = vpop.permute.xlu0 %2349 }
 0x26e   :  { %15188 = vst [vmem:[#allocation19_spill] sm:$0xff] %v10290_v31  ;;  %15189 = vst [vmem:[#allocation60_spill] sm:$0xff] %v10293_v26  ;;  %vm2123_vm13 = vcmp.gt.f32.partialorder %v10259_v39, 0.0  ;;  %v2077_v8 = vadd.f32 %v9635_v36, %v2021_v53  ;;  %v10301_v19 = vsel %vm2236_vm8, %v2285_v9, %v2287_v24  ;;  %v10304_v33 = vsel %vm2319_vm7, %v2643_v34, %v2645_v41 }
 0x26f   :  { %15190 = vst [vmem:[#allocation16_spill] sm:$0xff] %v10301_v19  ;;  %15191 = vst [vmem:[#allocation61_spill] sm:$0xff] %v10304_v33  ;;  %3355 = vrot.lane.b32.xlu0 %v9881_v20, %s8374_s25  ;;  %3611 = vrot.lane.b32.xlu1 %v10047_v44, %s8375_s29  ;;  %v10313_v22 = vsel %vm2319_vm7, %v2645_v41, %v2647_v46  ;;  %v10316_v52 = vsel %vm2236_vm8, %v2287_v24, %v2289_v62  ;;  %v2291_v53 = vrot.slane %v10157_v40, 6 }
 0x270   :  { %15192 = vst [vmem:[#allocation90_spill] sm:$0xff] %v10310_v16  ;;  %15193 = vst [vmem:[#allocation87_spill] sm:$0xff] %v10313_v22  ;;  %v2649_v9 = vrot.slane %v10181_v32, 4  ;;  %v2651_v34 = vrot.slane %v10172_v14, 4  ;;  %v2293_v4 = vrot.slane %v10181_v32, 6  ;;  %v2295_v20 = vrot.slane %v10172_v14, 6 }
 0x271   :  { %15194 = vst [vmem:[#allocation21_spill] sm:$0xff] %v10316_v52  ;;  %v2653_v42 = vrot.slane %v10195_v49, 4  ;;  %v10325_v16 = vsel %vm2236_vm8, %v2289_v62, %v2291_v53  ;;  %v2655_v24 = vrot.slane %v10193_v18, 4  ;;  %v14760_v40 = vrot.slane %v10195_v49, 6 }
 0x272   :  { %15195 = vst [vmem:[#allocation62_spill] sm:$0xff] %v10325_v16  ;;  %v10328_v41 = vsel %vm2319_vm7, %v2647_v46, %v2649_v9  ;;  %v10333_v52 = vsel %vm2319_vm7, %v2649_v9, %v2651_v34  ;;  %v10336_v22 = vsel %vm2236_vm8, %v2291_v53, %v2293_v4  ;;  %v10339_v32 = vsel %vm2236_vm8, %v2293_v4, %v2295_v20 }
 0x273   :  { %15196 = vst [vmem:[#allocation18_spill] sm:$0xff] %v10328_v41  ;;  %15197 = vst [vmem:[#allocation63_spill] sm:$0xff] %v10333_v52  ;;  %v10342_v14 = vsel %vm2319_vm7, %v2651_v34, %v2653_v42  ;;  %v2172_v62 = vmul.f32 0.01, %v10259_v39  ;;  %2512 = vrot.lane.b32.xlu0 %v9982_v59, %s8378_s18  ;;  %3592 = vrot.lane.b32.xlu1 %v10079_v47, %s8380_s20  ;;  %v10350_v46 = vsel %vm2319_vm7, %v2653_v42, %v2655_v24  ;;  %v10365_v34 = vpop.permute.xlu0 %2389 }
 0x274   :  { %15198 = vst [vmem:[#allocation92_spill] sm:$0xff] %v10336_v22  ;;  %15199 = vst [vmem:[#allocation89_spill] sm:$0xff] %v10339_v32  ;;  %v10355_v53 = vsel %vm2236_vm8, %v2295_v20, %v14760_v40  ;;  %vm2114_vm14 = vcmp.gt.f32.partialorder %v10176_v0, 0.0  ;;  %vm2113_vm15 = vcmp.gt.f32.partialorder %v10212_v51, 0.0  ;;  %v2162_v9 = vmul.f32 0.01, %v10212_v51 }
 0x275   :  { %15200 = vst [vmem:[#allocation23_spill] sm:$0xff] %v10342_v14  ;;  %15201 = vst [vmem:[#allocation64_spill] sm:$0xff] %v10350_v46  ;;  %v10360_v4 = vsel %vm2114_vm14, %v10176_v0, %v10208_v45  ;;  %vm2115_vm0 = vcmp.gt.f32.partialorder %v10231_v5, 0.0  ;;  %vm2126_vm1 = vcmp.gt.f32.partialorder %v2077_v8, 0.0  ;;  %v2175_v42 = vmul.f32 0.01, %v2077_v8 }
 0x276   :  { %15202 = vst [vmem:[#allocation20_spill] sm:$0xff] %v10355_v53  ;;  %15203 = vst [vmem:[#allocation65_spill] sm:$0xff] %v10360_v4  ;;  %v2237_v47 = vrot.slane %v10360_v4, 6  ;;  %v2164_v20 = vmul.f32 0.01, %v10231_v5  ;;  %v10370_v40 = vsel %vm2113_vm15, %v10212_v51, %v2162_v9  ;;  %v2323_v0 = vrot.slane %v10234_v27, 4 }
 0x277   :  { %15204 = vst [vmem:[#allocation94_spill] sm:$0xff] %v10365_v34  ;;  %v2240_v45 = vrot.slane %v10234_v27, 6  ;;  %v2242_v49 = vrot.slane %v10248_v28, 6  ;;  %2975 = vrot.lane.b32.xlu0 %v9982_v59, %s8379_s19  ;;  %3594 = vrot.lane.b32.xlu1 %v10191_v12, %s8380_s20  ;;  %v10379_v34 = vpop.permute.xlu1 %3174  ;;  %v14776_v18 = vrot.slane %v10370_v40, 6  ;;  %v2325_v9 = vrot.slane %v10248_v28, 4 }
 0x278   :  { %15205 = vst [vmem:[#allocation91_spill] sm:$0xff] %v10379_v34  ;;  %v10384_v51 = vsel %vm2115_vm0, %v10231_v5, %v2164_v20  ;;  %v2244_v12 = vrot.slane %v10245_v38, 6  ;;  %v10397_v4 = vsel %vm2124_vm12, %v10237_v55, %v10271_v54  ;;  %v10402_v5 = vsel %vm2123_vm13, %v10259_v39, %v2172_v62 }
 0x279   :  { %v2238_v27 = vrot.slane %v10384_v51, 6  ;;  %v10390_v46 = vsel %vm2236_vm8, %v2240_v45, %v2242_v49  ;;  %15206 = vst [vmem:[#allocation25_spill] sm:$0xff] %v10397_v4  ;;  %v15207_v20 = vrot.slane %v10370_v40, 4  ;;  %v10412_v34 = vsel %vm2236_vm8, %v14776_v18, %v2237_v47 }
 0x27a   :  { %15209 = vst [vmem:[#allocation22_spill] sm:$0xff] %v10412_v34  ;;  %v2076_v28 = vadd.f32 %v9635_v36, %v10227_v13  ;;  %v15210_v54 = vrot.slane %v10384_v51, 4  ;;  %v10434_v36 = vpop.permute.xlu0 %3057  ;;  %v10440_v13 = vsel %vm2236_vm8, %v2242_v49, %v2244_v12  ;;  %v2252_v49 = vrot.slane %v10255_v48, 6 }
 0x27b   :  { %v10407_v53 = vsel %vm2319_vm7, %v2655_v24, %v15207_v20  ;;  %v10417_v55 = vsel %vm2236_vm8, %v2237_v47, %v2238_v27  ;;  %v10425_v62 = vsel %vm2236_vm8, %v2238_v27, %v2240_v45  ;;  %v10428_v24 = vsel %vm2126_vm1, %v2077_v8, %v2175_v42  ;;  %3361 = vrot.lane.b32.xlu0 %v9982_v59, %s8374_s25 }
 0x27c   :  { %15208 = vst [vmem:[#allocation66_spill] sm:$0xff] %v10407_v53  ;;  %v10422_v39 = vsel %vm2319_vm7, %v15210_v54, %v2323_v0  ;;  %15211 = vst [vmem:[#allocation67_spill] sm:$0xff] %v10428_v24  ;;  %2556 = vrot.lane.b32.xlu1 %v10110_v25, %s8377_s16  ;;  %v10437_v47 = vsel %vm2319_vm7, %v2323_v0, %v2325_v9  ;;  %v2327_v27 = vrot.slane %v10245_v38, 4  ;;  %v2246_v45 = vrot.slane %v10253_v56, 6  ;;  %v10447_v54 = vpop.permute.xlu1 %2492 }
 0x27d   :  { %15212 = vst [vmem:[#allocation96_spill] sm:$0xff] %v10434_v36  ;;  %15213 = vst [vmem:[#allocation93_spill] sm:$0xff] %v10440_v13  ;;  %v2248_v8 = vrot.slane %v10251_v3, 6  ;;  %v2329_v42 = vrot.slane %v10253_v56, 4  ;;  %v2331_v20 = vrot.slane %v10251_v3, 4  ;;  %v2250_v0 = vrot.slane %v10268_v1, 6 }
 0x27e   :  { %15214 = vst [vmem:[#allocation27_spill] sm:$0xff] %v10447_v54  ;;  %v10450_v18 = vsel %vm2319_vm7, %v2325_v9, %v2327_v27  ;;  %v2333_v59 = vrot.slane %v10268_v1, 4  ;;  %v10456_v36 = vsel %vm2236_vm8, %v2244_v12, %v2246_v45  ;;  %v2337_v1 = vrot.slane %v10402_v5, 4 }
 0x27f   :  { %v10459_v13 = vsel %vm2236_vm8, %v2246_v45, %v2248_v8  ;;  %v10462_v56 = vsel %vm2319_vm7, %v2327_v27, %v2329_v42  ;;  %v10465_v54 = vsel %vm2319_vm7, %v2329_v42, %v2331_v20  ;;  %2510 = vrot.lane.b32.xlu0 %v9974_v61, %s8378_s18  ;;  %v10472_v9 = vsel %vm2236_vm8, %v2248_v8, %v2250_v0  ;;  %v10487_v8 = vpop.permute.xlu0 %2496 }
 0x280   :  { %15215 = vst [vmem:[#allocation68_spill] sm:$0xff] %v10459_v13  ;;  %15216 = vst [vmem:[#allocation24_spill] sm:$0xff] %v10465_v54  ;;  %2558 = vrot.lane.b32.xlu1 %v10118_v11, %s8377_s16  ;;  %v10475_v12 = vsel %vm2236_vm8, %v2250_v0, %v2252_v49  ;;  %v10478_v45 = vsel %vm2319_vm7, %v2331_v20, %v2333_v59  ;;  %v2335_v27 = vrot.slane %v10255_v48, 4  ;;  %v14792_v42 = vrot.slane %v10402_v5, 6  ;;  %v10485_v54 = vpop.permute.xlu1 %2955 }
 0x281   :  { %15217 = vst [vmem:[#allocation69_spill] sm:$0xff] %v10472_v9  ;;  %15218 = vst [vmem:[#allocation98_spill] sm:$0xff] %v10475_v12  ;;  %v2339_v13 = vrot.slane %v10397_v4, 4  ;;  %vm2094_vm2 = vcmp.gt.f32.partialorder %v10013_v35, 0.0  ;;  %vm2125_vm3 = vcmp.gt.f32.partialorder %v2076_v28, 0.0  ;;  %v10499_v4 = vrot.slane %v10428_v24, 4 }
 0x282   :  { %15219 = vst [vmem:[#allocation95_spill] sm:$0xff] %v10478_v45  ;;  %15220 = vst [vmem:[#allocation29_spill] sm:$0xff] %v10485_v54  ;;  %v2174_v0 = vmul.f32 0.01, %v2076_v28  ;;  %v2143_v12 = vmul.f32 0.01, %v10013_v35  ;;  %v10491_v20 = vsel %vm2319_vm7, %v2333_v59, %v2335_v27  ;;  %v10496_v9 = vsel %vm2236_vm8, %v2252_v49, %v14792_v42 }
 0x283   :  { %15221 = vst [vmem:[#allocation70_spill] sm:$0xff] %v10487_v8  ;;  %15222 = vst [vmem:[#allocation26_spill] sm:$0xff] %v10496_v9  ;;  %v2142_v45 = vmul.f32 0.01, %v10026_v7  ;;  %2973 = vrot.lane.b32.xlu0 %v9974_v61, %s8379_s19  ;;  %v10507_v54 = vsel %vm2319_vm7, %v2335_v27, %v2337_v1  ;;  %v10510_v59 = vsel %vm2319_vm7, %v2337_v1, %v2339_v13  ;;  %vm2093_vm4 = vcmp.gt.f32.partialorder %v10026_v7, 0.0  ;;  %v10518_v24 = vpop.permute.xlu0 %2959 }
 0x284   :  { %15223 = vst [vmem:[#allocation71_spill] sm:$0xff] %v10499_v4  ;;  %3382 = vrot.lane.b32.xlu1 %v10118_v11, %s8376_s13  ;;  %15224 = vst [vmem:[#allocation100_spill] sm:$0xff] %v10510_v59  ;;  %v10512_v8 = vsel %vm2125_vm3, %v2076_v28, %v2174_v0  ;;  %v10516_v42 = vpop.permute.xlu1 %3341  ;;  %v10523_v9 = vsel %vm2094_vm2, %v10013_v35, %v2143_v12  ;;  %vm8383_vm0 = vmmov 0   ;;  %vm2742_vm1 = vcmask 64512  }
 0x285   :  { %15225 = vst [vmem:[#allocation97_spill] sm:$0xff] %v10512_v8  ;;  %v2341_v49 = vrot.slane %v10512_v8, 4  ;;  %15226 = vst [vmem:[#allocation31_spill] sm:$0xff] %v10516_v42  ;;  %v10537_v1 = vsel %vm2093_vm4, %v10026_v7, %v2142_v45  ;;  %v2538_v45 = vrot.slane %v10523_v9, 2  ;;  %vm2756_vm2 = vcmask 130048  }
 0x286   :  { %15227 = vst [vmem:[#allocation72_spill] sm:$0xff] %v10518_v24  ;;  %15228 = vst [vmem:[#allocation28_spill] sm:$0xff] %v10523_v9  ;;  %v2536_v12 = vrot.slane %v10537_v1, 2  ;;  %vm2770_vm3 = vcmask 195584   ;;  %vm2784_vm4 = vcmask 261120  }
 0x287   :  { %v10527_v27 = vsel %vm2319_vm7, %v2341_v49, %v10499_v4  ;;  %v10530_v28 = vsel %vm2319_vm7, %v2339_v13, %v2341_v49  ;;  %3359 = vrot.lane.b32.xlu0 %v9974_v61, %s8374_s25  ;;  %15231 = vst [vmem:[#allocation99_spill] sm:$0xff] %v10537_v1  ;;  %v10539_v0 = vpop.permute.xlu0 %3345  ;;  %v15235_v61 = vrot.slane %v10047_v44, 2 }
 0x288   :  { %15229 = vst [vmem:[#allocation73_spill] sm:$0xff] %v10527_v27  ;;  %15230 = vst [vmem:[#allocation101_spill] sm:$0xff] %v10530_v28  ;;  %3615 = vrot.lane.b32.xlu1 %v10523_v9, %s8375_s29  ;;  %v10541_v35 = vpop.permute.xlu1 %2957  ;;  %v10567_v24 = vsel %vm2313_vm10, %v2536_v12, %v2538_v45  ;;  %v3296_v28 = vrot.slane %v10523_v9, 6 }
 0x289   :  { %15232 = vst [vmem:[#allocation32_spill] sm:$0xff] %v10539_v0  ;;  %15233 = vst [vmem:[#allocation74_spill] sm:$0xff] %v10541_v35  ;;  %v10555_v7 = vsel %vm2313_vm10, %v15235_v61, %v2536_v12  ;;  %v14803_v61 = vrot.slane %v10047_v44, 6 }
 0x28a   :  { %15236 = vst [vmem:[#allocation75_spill] sm:$0xff] %v10555_v7  ;;  %15239 = vst [vmem:[#allocation106_spill] sm:$0xff] %v10567_v24 }
 0x28b   :  { %2979 = vrot.lane.b32.xlu0 %v9985_v60, %s8379_s19  ;;  %v10548_v13 = vpop.permute.xlu0 %2494 }
 0x28c   :  { %3613 = vrot.lane.b32.xlu1 %v10537_v1, %s8375_s29  ;;  %v10550_v49 = vpop.permute.xlu1 %3574 }
 0x28d   :  { %15234 = vst [vmem:[#allocation30_spill] sm:$0xff] %v10550_v49  ;;  %v3294_v49 = vrot.slane %v10537_v1, 6 }
 0x28f   :  { %3365 = vrot.lane.b32.xlu0 %v9985_v60, %s8374_s25  ;;  %v10562_v0 = vpop.permute.xlu0 %3343  ;;  %v3297_v8 = vsel %vm2236_vm8, %v3294_v49, %v3296_v28 }
 0x290   :  { %2560 = vrot.lane.b32.xlu1 %v10555_v7, %s8377_s16  ;;  %15237 = vst [vmem:[#allocation104_spill] sm:$0xff] %v10562_v0  ;;  %v10564_v42 = vpop.permute.xlu1 %3037  ;;  %v10582_v0 = vld [vmem:[%s14627_s2] ss:$0 sm:$0xff] }
 0x291   :  { %15238 = vst [vmem:[#allocation105_spill] sm:$0xff] %v10564_v42  ;;  %v2047_v12 = vadd.f32 %v10582_v0, %v9800_v23  ;;  %v3295_v42 = vsel %vm2236_vm8, %v14803_v61, %v3294_v49  ;;  %v2046_v4 = vadd.f32 %v10582_v0, %v9805_v63 }
 0x293   :  { %2977 = vrot.lane.b32.xlu0 %v9992_v37, %s8379_s19  ;;  %v10575_v35 = vpop.permute.xlu0 %2500  ;;  %v2145_v23 = vmul.f32 0.01, %v2047_v12  ;;  %vm2096_vm5 = vcmp.gt.f32.partialorder %v2047_v12, 0.0  ;;  %v2144_v61 = vmul.f32 0.01, %v2046_v4  ;;  %vm2095_vm6 = vcmp.gt.f32.partialorder %v2046_v4, 0.0 }
 0x294   :  { %2562 = vrot.lane.b32.xlu1 %v10567_v24, %s8377_s16  ;;  %15240 = vst [vmem:[#allocation107_spill] sm:$0xff] %v10575_v35  ;;  %v10577_v27 = vpop.permute.xlu1 %3039 }
 0x295   :  { %15241 = vst [vmem:[#allocation108_spill] sm:$0xff] %v10577_v27  ;;  %v10614_v49 = vsel %vm2096_vm5, %v2047_v12, %v2145_v23  ;;  %vm2798_vm5 = vcmask 326656  }
 0x296   :  { %15249 = vst [vmem:[#allocation114_spill] sm:$0xff] %v10614_v49 }
 0x297   :  { %3363 = vrot.lane.b32.xlu0 %v9992_v37, %s8374_s25  ;;  %v10595_v27 = vpop.permute.xlu0 %3033 }
 0x298   :  { %3539 = vrot.lane.b32.xlu1 %v3295_v42, %s8381_s23  ;;  %15242 = vst [vmem:[#allocation109_spill] sm:$0xff] %v10595_v27  ;;  %v10597_v35 = vpop.permute.xlu1 %3576  ;;  %v15246_v42 = vrot.slane %v9985_v60, 2  ;;  %v15247_v27 = vrot.slane %v9992_v37, 2 }
 0x299   :  { %15243 = vst [vmem:[#allocation110_spill] sm:$0xff] %v10597_v35 }
 0x29a   :  { %v10612_v35 = vsel %vm2313_vm10, %v15247_v27, %v15246_v42 }
 0x29b   :  { %2444 = vrot.lane.b32.xlu0 %v10047_v44, %s8379_s19  ;;  %v10603_v63 = vpop.permute.xlu0 %3035  ;;  %15248 = vst [vmem:[#allocation113_spill] sm:$0xff] %v10612_v35 }
 0x29c   :  { %3541 = vrot.lane.b32.xlu1 %v3297_v8, %s8381_s23  ;;  %15244 = vst [vmem:[#allocation111_spill] sm:$0xff] %v10603_v63  ;;  %v10605_v59 = vpop.permute.xlu1 %3578  ;;  %v10620_v8 = vsel %vm2095_vm6, %v2046_v4, %v2144_v61  ;;  %v2542_v4 = vrot.slane %v10614_v49, 2  ;;  %vm2812_vm6 = vcmask 392192  }
 0x29d   :  { %15245 = vst [vmem:[#allocation112_spill] sm:$0xff] %v10605_v59  ;;  %15250 = vst [vmem:[#allocation115_spill] sm:$0xff] %v10620_v8  ;;  %v2540_v60 = vrot.slane %v10620_v8, 2  ;;  %v3298_v37 = vrot.slane %v10620_v8, 6 }
 0x29f   :  { %3055 = vrot.lane.b32.xlu0 %v10612_v35, %s8377_s16  ;;  %v10622_v63 = vpop.permute.xlu0 %2963  ;;  %v10636_v23 = vsel %vm2313_vm10, %v2538_v45, %v2540_v60  ;;  %v10648_v35 = vsel %vm2313_vm10, %v2540_v60, %v2542_v4  ;;  %v3300_v60 = vrot.slane %v10614_v49, 6 }
 0x2a0   :  { %3619 = vrot.lane.b32.xlu1 %v10614_v49, %s8375_s29  ;;  %15251 = vst [vmem:[#allocation116_spill] sm:$0xff] %v10622_v63  ;;  %v10624_v59 = vpop.permute.xlu1 %3041  ;;  %15255 = vst [vmem:[#allocation120_spill] sm:$0xff] %v10636_v23 }
 0x2a1   :  { %15252 = vst [vmem:[#allocation117_spill] sm:$0xff] %v10624_v59  ;;  %15257 = vst [vmem:[#allocation122_spill] sm:$0xff] %v10648_v35  ;;  %v2048_v59 = vadd.f32 %v10582_v0, %v9830_v2 }
 0x2a3   :  { %2442 = vrot.lane.b32.xlu0 %v10022_v17, %s8379_s19  ;;  %v10631_v27 = vpop.permute.xlu0 %3349  ;;  %vm2097_vm11 = vcmp.gt.f32.partialorder %v2048_v59, 0.0 }
 0x2a4   :  { %3617 = vrot.lane.b32.xlu1 %v10620_v8, %s8375_s29  ;;  %15253 = vst [vmem:[#allocation118_spill] sm:$0xff] %v10631_v27  ;;  %v10633_v12 = vpop.permute.xlu1 %3043 }
 0x2a5   :  { %15254 = vst [vmem:[#allocation119_spill] sm:$0xff] %v10633_v12  ;;  %v2049_v12 = vadd.f32 %v10582_v0, %v9825_v15  ;;  %v3291_v15 = vrot.slane %v10022_v17, 6 }
 0x2a7   :  { %2448 = vrot.lane.b32.xlu0 %v10523_v9, %s8379_s19  ;;  %v10643_v61 = vpop.permute.xlu0 %2498  ;;  %v3301_v9 = vsel %vm2236_vm8, %v3298_v37, %v3300_v60  ;;  %vm2098_vm9 = vcmp.gt.f32.partialorder %v2049_v12, 0.0 }
 0x2a8   :  { %2564 = vrot.lane.b32.xlu1 %v10636_v23, %s8377_s16  ;;  %v10645_v42 = vpop.permute.xlu1 %3580 }
 0x2a9   :  { %15256 = vst [vmem:[#allocation121_spill] sm:$0xff] %v10645_v42  ;;  %v3299_v42 = vsel %vm2236_vm8, %v3296_v28, %v3298_v37  ;;  %v2146_v28 = vmul.f32 0.01, %v2048_v59 }
 0x2ab   :  { %2994 = vrot.lane.b32.xlu0 %v10110_v25, %s8378_s18  ;;  %v10655_v45 = vpop.permute.xlu0 %2961  ;;  %v10689_v37 = vsel %vm2097_vm11, %v2048_v59, %v2146_v28  ;;  %vm2840_vm11 = vcmask 523264  }
 0x2ac   :  { %2566 = vrot.lane.b32.xlu1 %v10648_v35, %s8377_s16  ;;  %15258 = vst [vmem:[#allocation123_spill] sm:$0xff] %v10655_v45  ;;  %v10657_v27 = vpop.permute.xlu1 %3582  ;;  %15266 = vst [vmem:[#allocation130_spill] sm:$0xff] %v10689_v37 }
 0x2ad   :  { %15259 = vst [vmem:[#allocation124_spill] sm:$0xff] %v10657_v27  ;;  %v2147_v27 = vmul.f32 0.01, %v2049_v12 }
 0x2af   :  { %2996 = vrot.lane.b32.xlu0 %v10118_v11, %s8378_s18  ;;  %v10668_v63 = vpop.permute.xlu0 %3347  ;;  %v10684_v11 = vsel %vm2098_vm9, %v2049_v12, %v2147_v27  ;;  %vm2826_vm9 = vcmask 457728  }
 0x2b0   :  { %3543 = vrot.lane.b32.xlu1 %v3299_v42, %s8381_s23  ;;  %15260 = vst [vmem:[#allocation125_spill] sm:$0xff] %v10668_v63  ;;  %v10670_v45 = vpop.permute.xlu1 %3045  ;;  %v15264_v63 = vrot.slane %v10047_v44, 6  ;;  %15265 = vst [vmem:[#allocation129_spill] sm:$0xff] %v10684_v11  ;;  %v2546_v59 = vrot.slane %v10684_v11, 2  ;;  %v15410_v44 = vrot.slane %v10370_v40, 6 }
 0x2b1   :  { %15261 = vst [vmem:[#allocation126_spill] sm:$0xff] %v10670_v45 }
 0x2b2   :  { %v3293_v45 = vsel %vm2236_vm8, %v3291_v15, %v15264_v63 }
 0x2b3   :  { %3380 = vrot.lane.b32.xlu0 %v10110_v25, %s8376_s13  ;;  %v10677_v2 = vpop.permute.xlu0 %2504 }
 0x2b4   :  { %3545 = vrot.lane.b32.xlu1 %v3301_v9, %s8381_s23  ;;  %15262 = vst [vmem:[#allocation127_spill] sm:$0xff] %v10677_v2  ;;  %v10679_v42 = vpop.permute.xlu1 %3047  ;;  %v2544_v2 = vrot.slane %v10689_v37, 2 }
 0x2b5   :  { %15263 = vst [vmem:[#allocation128_spill] sm:$0xff] %v10679_v42 }
 0x2b6   :  { %v10705_v12 = vsel %vm2313_vm10, %v2542_v4, %v2544_v2  ;;  %v10717_v28 = vsel %vm2313_vm10, %v2544_v2, %v2546_v59  ;;  %v3304_v2 = vrot.slane %v10684_v11, 6 }
 0x2b7   :  { %3537 = vrot.lane.b32.xlu0 %v3293_v45, %s8381_s23  ;;  %v10691_v17 = vpop.permute.xlu0 %2967  ;;  %15271 = vst [vmem:[#allocation135_spill] sm:$0xff] %v10705_v12  ;;  %15273 = vst [vmem:[#allocation137_spill] sm:$0xff] %v10717_v28 }
 0x2b8   :  { %3623 = vrot.lane.b32.xlu1 %v10684_v11, %s8375_s29  ;;  %15267 = vst [vmem:[#allocation131_spill] sm:$0xff] %v10691_v17  ;;  %v10693_v9 = vpop.permute.xlu1 %3584  ;;  %v2050_v17 = vadd.f32 %v10582_v0, %v9852_v57 }
 0x2b9   :  { %15268 = vst [vmem:[#allocation132_spill] sm:$0xff] %v10693_v9 }
 0x2ba   :  { %vm2099_vm13 = vcmp.gt.f32.partialorder %v2050_v17, 0.0 }
 0x2bb   :  { %2446 = vrot.lane.b32.xlu0 %v10537_v1, %s8379_s19  ;;  %v10700_v63 = vpop.permute.xlu0 %3353 }
 0x2bc   :  { %3621 = vrot.lane.b32.xlu1 %v10689_v37, %s8375_s29  ;;  %15269 = vst [vmem:[#allocation133_spill] sm:$0xff] %v10700_v63  ;;  %v10702_v27 = vpop.permute.xlu1 %3586  ;;  %v2051_v63 = vadd.f32 %v10582_v0, %v9847_v30  ;;  %v2148_v30 = vmul.f32 0.01, %v2050_v17 }
 0x2bd   :  { %15270 = vst [vmem:[#allocation134_spill] sm:$0xff] %v10702_v27  ;;  %v3302_v27 = vrot.slane %v10689_v37, 6 }
 0x2be   :  { %vm2100_vm12 = vcmp.gt.f32.partialorder %v2051_v63, 0.0 }
 0x2bf   :  { %2452 = vrot.lane.b32.xlu0 %v10614_v49, %s8379_s19  ;;  %v10712_v45 = vpop.permute.xlu0 %2502  ;;  %v3303_v42 = vsel %vm2236_vm8, %v3300_v60, %v3302_v27 }
 0x2c0   :  { %2568 = vrot.lane.b32.xlu1 %v10705_v12, %s8377_s16  ;;  %v10714_v15 = vpop.permute.xlu1 %2516 }
 0x2c1   :  { %15272 = vst [vmem:[#allocation136_spill] sm:$0xff] %v10714_v15  ;;  %v3305_v15 = vsel %vm2236_vm8, %v3302_v27, %v3304_v2  ;;  %v10755_v27 = vsel %vm2099_vm13, %v2050_v17, %v2148_v30  ;;  %v2053_v17 = vadd.f32 %v10582_v0, %v9869_v6 }
 0x2c2   :  { %15281 = vst [vmem:[#allocation145_spill] sm:$0xff] %v10755_v27 }
 0x2c3   :  { %2998 = vrot.lane.b32.xlu0 %v10555_v7, %s8378_s18  ;;  %v10724_v4 = vpop.permute.xlu0 %2965  ;;  %vm2102_vm14 = vcmp.gt.f32.partialorder %v2053_v17, 0.0 }
 0x2c4   :  { %2570 = vrot.lane.b32.xlu1 %v10717_v28, %s8377_s16  ;;  %15274 = vst [vmem:[#allocation138_spill] sm:$0xff] %v10724_v4  ;;  %v10726_v9 = vpop.permute.xlu1 %3049 }
 0x2c5   :  { %15275 = vst [vmem:[#allocation139_spill] sm:$0xff] %v10726_v9  ;;  %v2149_v9 = vmul.f32 0.01, %v2051_v63 }
 0x2c7   :  { %3000 = vrot.lane.b32.xlu0 %v10567_v24, %s8378_s18  ;;  %v10737_v49 = vpop.permute.xlu0 %3351 }
 0x2c8   :  { %3547 = vrot.lane.b32.xlu1 %v3303_v42, %s8381_s23  ;;  %15276 = vst [vmem:[#allocation140_spill] sm:$0xff] %v10737_v49  ;;  %v10739_v4 = vpop.permute.xlu1 %3051  ;;  %v10749_v42 = vsel %vm2100_vm12, %v2051_v63, %v2149_v9  ;;  %vm4405_vm12 = vcmask 588800  }
 0x2c9   :  { %15277 = vst [vmem:[#allocation141_spill] sm:$0xff] %v10739_v4  ;;  %15280 = vst [vmem:[#allocation144_spill] sm:$0xff] %v10749_v42 }
 0x2cb   :  { %3384 = vrot.lane.b32.xlu0 %v10555_v7, %s8376_s13  ;;  %v10745_v57 = vpop.permute.xlu0 %2508  ;;  %v15404_v7 = vmov 0.0  }
 0x2cc   :  { %3549 = vrot.lane.b32.xlu1 %v3305_v15, %s8381_s23  ;;  %15278 = vst [vmem:[#allocation142_spill] sm:$0xff] %v10745_v57  ;;  %v10747_v60 = vpop.permute.xlu1 %3588  ;;  %v2548_v15 = vrot.slane %v10755_v27, 2  ;;  %v3306_v57 = vrot.slane %v10755_v27, 6  ;;  %7835 = vmatprep.mubr.msk.f32.mxu1 %vm8383_vm0, %v15404_v7 }
 0x2cd   :  { %15279 = vst [vmem:[#allocation143_spill] sm:$0xff] %v10747_v60 }
 0x2ce   :  { %v10773_v30 = vsel %vm2313_vm10, %v2546_v59, %v2548_v15 }
 0x2cf   :  { %3386 = vrot.lane.b32.xlu0 %v10567_v24, %s8376_s13  ;;  %15285 = vst [vmem:[#allocation149_spill] sm:$0xff] %v10773_v30  ;;  %v3307_v24 = vsel %vm2236_vm8, %v3304_v2, %v3306_v57 }
 0x2d0   :  { %3627 = vrot.lane.b32.xlu1 %v10749_v42, %s8375_s29  ;;  %v10757_v49 = vpop.permute.xlu0 %2971  ;;  %v10759_v4 = vpop.permute.xlu1 %3590 }
 0x2d1   :  { %15282 = vst [vmem:[#allocation146_spill] sm:$0xff] %v10757_v49  ;;  %15283 = vst [vmem:[#allocation147_spill] sm:$0xff] %v10759_v4  ;;  %v2550_v4 = vrot.slane %v10749_v42, 2 }
 0x2d3   :  { %2450 = vrot.lane.b32.xlu0 %v10620_v8, %s8379_s19  ;;  %v10785_v8 = vsel %vm2313_vm10, %v2548_v15, %v2550_v4 }
 0x2d4   :  { %3625 = vrot.lane.b32.xlu1 %v10755_v27, %s8375_s29  ;;  %v10766_v9 = vpop.permute.xlu0 %3357  ;;  %v10768_v63 = vpop.permute.xlu1 %2440  ;;  %15287 = vst [vmem:[#allocation151_spill] sm:$0xff] %v10785_v8 }
 0x2d5   :  { %15284 = vst [vmem:[#allocation148_spill] sm:$0xff] %v10766_v9  ;;  %v2151_v9 = vmul.f32 0.01, %v2053_v17 }
 0x2d7   :  { %2456 = vrot.lane.b32.xlu0 %v10684_v11, %s8379_s19  ;;  %v10795_v11 = vsel %vm2102_vm14, %v2053_v17, %v2151_v9 }
 0x2d8   :  { %2572 = vrot.lane.b32.xlu1 %v10773_v30, %s8377_s16  ;;  %v10780_v60 = vpop.permute.xlu0 %2506  ;;  %v10782_v49 = vpop.permute.xlu1 %2514  ;;  %15290 = vst [vmem:[#allocation154_spill] sm:$0xff] %v10795_v11 }
 0x2d9   :  { %15286 = vst [vmem:[#allocation150_spill] sm:$0xff] %v10782_v49 }
 0x2db   :  { %3002 = vrot.lane.b32.xlu0 %v10636_v23, %s8378_s18 }
 0x2dc   :  { %2574 = vrot.lane.b32.xlu1 %v10785_v8, %s8377_s16  ;;  %v10791_v6 = vpop.permute.xlu0 %2969  ;;  %v10793_v59 = vpop.permute.xlu1 %3053 }
 0x2dd   :  { %15288 = vst [vmem:[#allocation152_spill] sm:$0xff] %v10791_v6  ;;  %15289 = vst [vmem:[#allocation153_spill] sm:$0xff] %v10793_v59  ;;  %v3308_v6 = vrot.slane %v10749_v42, 6  ;;  %v15295_v59 = vld [vmem:[#allocation47_spill] sm:$0xff] }
 0x2de   :  { %v2052_v1 = vadd.f32 %v10582_v0, %v15295_v59 }
 0x2df   :  { %3004 = vrot.lane.b32.xlu0 %v10648_v35, %s8378_s18 }
 0x2e0   :  { %2464 = vrot.lane.b32.xlu1 %v10795_v11, %s8379_s19  ;;  %vm2101_vm15 = vcmp.gt.f32.partialorder %v2052_v1, 0.0 }
 0x2e1   :  { %v10802_v15 = vpop.permute.xlu0 %3355  ;;  %v10804_v49 = vpop.permute.xlu1 %3611 }
 0x2e2   :  { %15291 = vst [vmem:[#allocation155_spill] sm:$0xff] %v10802_v15  ;;  %15292 = vst [vmem:[#allocation156_spill] sm:$0xff] %v10804_v49  ;;  %v3309_v15 = vsel %vm2236_vm8, %v3306_v57, %v3308_v6 }
 0x2e3   :  { %3388 = vrot.lane.b32.xlu0 %v10636_v23, %s8376_s13  ;;  %v2150_v23 = vmul.f32 0.01, %v2052_v1 }
 0x2e4   :  { %3551 = vrot.lane.b32.xlu1 %v3307_v24, %s8381_s23  ;;  %v2854_v24 = vsel %vm2319_vm7, 0.0, %v10795_v11 }
 0x2e5   :  { %v10811_v9 = vpop.permute.xlu0 %2512  ;;  %v10813_v17 = vpop.permute.xlu1 %3592  ;;  %v10834_v59 = vsel %vm2101_vm15, %v2052_v1, %v2150_v23 }
 0x2e6   :  { %15293 = vst [vmem:[#allocation157_spill] sm:$0xff] %v10811_v9  ;;  %15294 = vst [vmem:[#allocation158_spill] sm:$0xff] %v10813_v17  ;;  %v10845_v17 = vrot.slane %v10795_v11, 2 }
 0x2e7   :  { %3390 = vrot.lane.b32.xlu0 %v10648_v35, %s8376_s13  ;;  %15299 = vst [vmem:[#allocation161_spill] sm:$0xff] %v10834_v59 }
 0x2e8   :  { %3553 = vrot.lane.b32.xlu1 %v3309_v15, %s8381_s23  ;;  %15301 = vst [vmem:[#allocation163_spill] sm:$0xff] %v10845_v17 }
 0x2e9   :  { %v10821_v2 = vpop.permute.xlu0 %2975  ;;  %v10823_v49 = vpop.permute.xlu1 %3594 }
 0x2ea   :  { %15296 = vst [vmem:[#allocation47_spill] sm:$0xff] %v10821_v2  ;;  %15297 = vst [vmem:[#allocation159_spill] sm:$0xff] %v10823_v49 }
 0x2eb   :  { %2454 = vrot.lane.b32.xlu0 %v10689_v37, %s8379_s19 }
 0x2ec   :  { %2919 = vrot.lane.b32.xlu1 %v2854_v24, %s8376_s13  ;;  %v2552_v24 = vrot.slane %v10834_v59, 2 }
 0x2ed   :  { %v10830_v0 = vpop.permute.xlu0 %3361 }
 0x2ee   :  { %15298 = vst [vmem:[#allocation160_spill] sm:$0xff] %v10830_v0  ;;  %v10832_v57 = vpop.permute.xlu1 %2556  ;;  %v10865_v2 = vsel %vm2313_vm10, %v2550_v4, %v2552_v24  ;;  %v10877_v37 = vsel %vm2313_vm10, %v2552_v24, %v10845_v17  ;;  %v2280_v24 = vrot.slane %v10795_v11, 6 }
 0x2ef   :  { %2460 = vrot.lane.b32.xlu0 %v10749_v42, %s8379_s19  ;;  %15306 = vst [vmem:[#allocation168_spill] sm:$0xff] %v10865_v2  ;;  %15309 = vst [vmem:[#allocation171_spill] sm:$0xff] %v10877_v37 }
 0x2f0   :  { %3629 = vrot.lane.b32.xlu1 %v10834_v59, %s8375_s29 }
 0x2f1   :  { %v10840_v15 = vpop.permute.xlu0 %2510 }
 0x2f2   :  { %15300 = vst [vmem:[#allocation162_spill] sm:$0xff] %v10840_v15  ;;  %v10842_v49 = vpop.permute.xlu1 %2558 }
 0x2f3   :  { %3006 = vrot.lane.b32.xlu0 %v10705_v12, %s8378_s18 }
 0x2f4   :  { %2580 = vrot.lane.b32.xlu1 %v10845_v17, %s8377_s16 }
 0x2f5   :  { %v10851_v1 = vpop.permute.xlu0 %2973 }
 0x2f6   :  { %15302 = vst [vmem:[#allocation164_spill] sm:$0xff] %v10851_v1  ;;  %v10853_v23 = vpop.permute.xlu1 %3382 }
 0x2f7   :  { %15303 = vst [vmem:[#allocation165_spill] sm:$0xff] %v10853_v23  ;;  %3008 = vrot.lane.b32.xlu0 %v10717_v28, %s8378_s18 }
 0x2f8   :  { %3018 = vrot.lane.b32.xlu1 %v10845_v17, %s8378_s18 }
 0x2f9   :  { %v10860_v0 = vpop.permute.xlu0 %3359 }
 0x2fa   :  { %15304 = vst [vmem:[#allocation166_spill] sm:$0xff] %v10860_v0  ;;  %v10862_v42 = vpop.permute.xlu1 %3615 }
 0x2fb   :  { %15305 = vst [vmem:[#allocation167_spill] sm:$0xff] %v10862_v42  ;;  %3392 = vrot.lane.b32.xlu0 %v10705_v12, %s8376_s13  ;;  %v3310_v42 = vrot.slane %v10834_v59, 6 }
 0x2fc   :  { %2576 = vrot.lane.b32.xlu1 %v10865_v2, %s8377_s16 }
 0x2fd   :  { %v10871_v23 = vpop.permute.xlu0 %2979 }
 0x2fe   :  { %15307 = vst [vmem:[#allocation169_spill] sm:$0xff] %v10871_v23  ;;  %v10873_v1 = vpop.permute.xlu1 %3613 }
 0x2ff   :  { %15308 = vst [vmem:[#allocation170_spill] sm:$0xff] %v10873_v1  ;;  %3394 = vrot.lane.b32.xlu0 %v10717_v28, %s8376_s13  ;;  %v3311_v28 = vsel %vm2236_vm8, %v3308_v6, %v3310_v42  ;;  %v2636_v6 = vrot.slane %v10795_v11, 4 }
 0x300   :  { %2578 = vrot.lane.b32.xlu1 %v10877_v37, %s8377_s16 }
 0x301   :  { %v10883_v4 = vpop.permute.xlu0 %3365 }
 0x302   :  { %15310 = vst [vmem:[#allocation172_spill] sm:$0xff] %v10883_v4  ;;  %v10885_v0 = vpop.permute.xlu1 %2560  ;;  %v3312_v4 = vsel %vm2236_vm8, %v3310_v42, %v2280_v24 }
 0x303   :  { %2458 = vrot.lane.b32.xlu0 %v10755_v27, %s8379_s19  ;;  %v3314_v9 = vsel %vm2313_vm10, %v3312_v4, 0.0 }
 0x304   :  { %3016 = vrot.lane.b32.xlu1 %v10877_v37, %s8378_s18 }
 0x305   :  { %v10893_v1 = vpop.permute.xlu0 %2977 }
 0x306   :  { %15311 = vst [vmem:[#allocation173_spill] sm:$0xff] %v10893_v1  ;;  %v10895_v23 = vpop.permute.xlu1 %2562 }
 0x307   :  { %3010 = vrot.lane.b32.xlu0 %v10773_v30, %s8378_s18 }
 0x308   :  { %3555 = vrot.lane.b32.xlu1 %v3311_v28, %s8381_s23  ;;  %v15315_v28 = vrot.slane %v10146_v58, 4 }
 0x309   :  { %v10902_v12 = vpop.permute.xlu0 %3363 }
 0x30a   :  { %15312 = vst [vmem:[#allocation174_spill] sm:$0xff] %v10902_v12  ;;  %v10904_v27 = vpop.permute.xlu1 %3539  ;;  %v10918_v42 = vsel %vm2319_vm7, %v2636_v6, %v15315_v28  ;;  %v15319_v28 = vrot.slane %v10146_v58, 6 }
 0x30b   :  { %15313 = vst [vmem:[#allocation175_spill] sm:$0xff] %v10904_v27  ;;  %3012 = vrot.lane.b32.xlu0 %v10785_v8, %s8378_s18  ;;  %v10950_v27 = vsel %vm2313_vm10, 0.0, %v2280_v24 }
 0x30c   :  { %3557 = vrot.lane.b32.xlu1 %v3314_v9, %s8381_s23  ;;  %15320 = vst [vmem:[#allocation180_spill] sm:$0xff] %v10950_v27 }
 0x30d   :  { %v10911_v1 = vpop.permute.xlu0 %2444 }
 0x30e   :  { %v10913_v35 = vpop.permute.xlu1 %3541 }
 0x30f   :  { %15314 = vst [vmem:[#allocation176_spill] sm:$0xff] %v10913_v35  ;;  %3396 = vrot.lane.b32.xlu0 %v10773_v30, %s8376_s13  ;;  %v10939_v35 = vsel %vm2236_vm8, %v2280_v24, %v15319_v28 }
 0x310   :  { %2660 = vrot.lane.b32.xlu1 %v10918_v42, %s8380_s20 }
 0x311   :  { %v10924_v4 = vpop.permute.xlu0 %3055 }
 0x312   :  { %15316 = vst [vmem:[#allocation177_spill] sm:$0xff] %v10924_v4  ;;  %v10926_v9 = vpop.permute.xlu1 %3619 }
 0x313   :  { %15317 = vst [vmem:[#allocation178_spill] sm:$0xff] %v10926_v9  ;;  %3398 = vrot.lane.b32.xlu0 %v10785_v8, %s8376_s13 }
 0x314   :  { %2662 = vrot.lane.b32.xlu1 %v10264_v10, %s8380_s20 }
 0x315   :  { %v10932_v12 = vpop.permute.xlu0 %2442 }
 0x316   :  { %v10934_v6 = vpop.permute.xlu1 %3617 }
 0x317   :  { %15318 = vst [vmem:[#allocation179_spill] sm:$0xff] %v10934_v6  ;;  %2462 = vrot.lane.b32.xlu0 %v10834_v59, %s8379_s19 }
 0x318   :  { %3150 = vrot.lane.b32.xlu1 %v10939_v35, %s8375_s29 }
 0x319   :  { %v10945_v9 = vpop.permute.xlu0 %2448 }
 0x31a   :  { %v10947_v8 = vpop.permute.xlu1 %2564 }
 0x31b   :  { %2351 = vrot.lane.b32.xlu0 %v10950_v27, %s8374_s25 }
 0x31c   :  { %3074 = vrot.lane.b32.xlu1 %v10264_v10, %s8381_s23 }
 0x31d   :  { %v10956_v28 = vpop.permute.xlu0 %2994 }
 0x31e   :  { %15321 = vst [vmem:[#allocation181_spill] sm:$0xff] %v10956_v28  ;;  %v10958_v6 = vpop.permute.xlu1 %2566  ;;  %v15335_v28 = vld [vmem:[#allocation87_spill] sm:$0xff] }
 0x31f   :  { %2923 = vrot.lane.b32.xlu0 %v10121_v29, %s8376_s13 }
 0x320   :  { %3152 = vrot.lane.b32.xlu1 %v10282_v50, %s8375_s29 }
 0x321   :  { %v10964_v59 = vpop.permute.xlu0 %2996 }
 0x322   :  { %15322 = vst [vmem:[#allocation182_spill] sm:$0xff] %v10964_v59  ;;  %v10966_v24 = vpop.permute.xlu1 %3543 }
 0x323   :  { %15323 = vst [vmem:[#allocation183_spill] sm:$0xff] %v10966_v24  ;;  %3014 = vrot.lane.b32.xlu0 %v10865_v2, %s8378_s18 }
 0x324   :  { %2664 = vrot.lane.b32.xlu1 %v10285_v43, %s8380_s20 }
 0x325   :  { %v10972_v30 = vpop.permute.xlu0 %3380 }
 0x326   :  { %15324 = vst [vmem:[#allocation184_spill] sm:$0xff] %v10972_v30  ;;  %v10974_v4 = vpop.permute.xlu1 %3545 }
 0x327   :  { %15325 = vst [vmem:[#allocation185_spill] sm:$0xff] %v10974_v4  ;;  %3400 = vrot.lane.b32.xlu0 %v10865_v2, %s8376_s13 }
 0x328   :  { %2666 = vrot.lane.b32.xlu1 %v10290_v31, %s8380_s20 }
 0x329   :  { %v10980_v29 = vpop.permute.xlu0 %3537 }
 0x32a   :  { %15326 = vst [vmem:[#allocation186_spill] sm:$0xff] %v10980_v29  ;;  %v10982_v59 = vpop.permute.xlu1 %3623 }
 0x32b   :  { %15327 = vst [vmem:[#allocation187_spill] sm:$0xff] %v10982_v59  ;;  %3402 = vrot.lane.b32.xlu0 %v10877_v37, %s8376_s13 }
 0x32c   :  { %3076 = vrot.lane.b32.xlu1 %v10285_v43, %s8381_s23 }
 0x32d   :  { %v10988_v24 = vpop.permute.xlu0 %2446 }
 0x32e   :  { %v10990_v30 = vpop.permute.xlu1 %3621 }
 0x32f   :  { %15328 = vst [vmem:[#allocation188_spill] sm:$0xff] %v10990_v30  ;;  %2921 = vrot.lane.b32.xlu0 %v10146_v58, %s8376_s13 }
 0x330   :  { %3154 = vrot.lane.b32.xlu1 %v10293_v26, %s8375_s29 }
 0x331   :  { %v10996_v2 = vpop.permute.xlu0 %2452 }
 0x332   :  { %v10998_v4 = vpop.permute.xlu1 %2568 }
 0x333   :  { %2353 = vrot.lane.b32.xlu0 %v10939_v35, %s8374_s25 }
 0x334   :  { %3078 = vrot.lane.b32.xlu1 %v10290_v31, %s8381_s23 }
 0x335   :  { %v11004_v37 = vpop.permute.xlu0 %2998 }
 0x336   :  { %15329 = vst [vmem:[#allocation189_spill] sm:$0xff] %v11004_v37  ;;  %v11006_v59 = vpop.permute.xlu1 %2570 }
 0x337   :  { %15330 = vst [vmem:[#allocation190_spill] sm:$0xff] %v11006_v59  ;;  %2355 = vrot.lane.b32.xlu0 %v10282_v50, %s8374_s25 }
 0x338   :  { %3156 = vrot.lane.b32.xlu1 %v10301_v19, %s8375_s29 }
 0x339   :  { %v11012_v58 = vpop.permute.xlu0 %3000 }
 0x33a   :  { %15331 = vst [vmem:[#allocation191_spill] sm:$0xff] %v11012_v58  ;;  %v11014_v30 = vpop.permute.xlu1 %3547 }
 0x33b   :  { %15332 = vst [vmem:[#allocation192_spill] sm:$0xff] %v11014_v30  ;;  %3072 = vrot.lane.b32.xlu0 %v10918_v42, %s8381_s23 }
 0x33c   :  { %2668 = vrot.lane.b32.xlu1 %v10304_v33, %s8380_s20 }
 0x33d   :  { %v11020_v29 = vpop.permute.xlu0 %3384 }
 0x33e   :  { %15333 = vst [vmem:[#allocation193_spill] sm:$0xff] %v11020_v29  ;;  %v11022_v37 = vpop.permute.xlu1 %3549 }
 0x33f   :  { %15334 = vst [vmem:[#allocation194_spill] sm:$0xff] %v11022_v37  ;;  %2927 = vrot.lane.b32.xlu0 %v10149_v21, %s8376_s13  ;;  %v15339_v21 = vld [vmem:[#allocation21_spill] sm:$0xff] }
 0x340   :  { %2670 = vrot.lane.b32.xlu1 %v15335_v28, %s8380_s20 }
 0x341   :  { %v11028_v27 = vpop.permute.xlu0 %3386 }
 0x342   :  { %15336 = vst [vmem:[#allocation195_spill] sm:$0xff] %v11028_v27  ;;  %v11030_v58 = vpop.permute.xlu1 %3627 }
 0x343   :  { %15337 = vst [vmem:[#allocation196_spill] sm:$0xff] %v11030_v58  ;;  %3458 = vrot.lane.b32.xlu0 %v10918_v42, %s8378_s18  ;;  %v15342_v58 = vld [vmem:[#allocation84_spill] sm:$0xff] }
 0x344   :  { %3080 = vrot.lane.b32.xlu1 %v10304_v33, %s8381_s23 }
 0x345   :  { %v11036_v30 = vpop.permute.xlu0 %2450 }
 0x346   :  { %v11038_v29 = vpop.permute.xlu1 %3625 }
 0x347   :  { %15338 = vst [vmem:[#allocation197_spill] sm:$0xff] %v11038_v29  ;;  %3460 = vrot.lane.b32.xlu0 %v10264_v10, %s8378_s18 }
 0x348   :  { %3158 = vrot.lane.b32.xlu1 %v15339_v21, %s8375_s29 }
 0x349   :  { %v11044_v37 = vpop.permute.xlu0 %2456 }
 0x34a   :  { %15340 = vst [vmem:[#allocation198_spill] sm:$0xff] %v11044_v37  ;;  %v11046_v27 = vpop.permute.xlu1 %2572 }
 0x34b   :  { %15341 = vst [vmem:[#allocation199_spill] sm:$0xff] %v11046_v27  ;;  %2925 = vrot.lane.b32.xlu0 %v15342_v58, %s8376_s13 }
 0x34c   :  { %3082 = vrot.lane.b32.xlu1 %v15335_v28, %s8381_s23 }
 0x34d   :  { %v11052_v15 = vpop.permute.xlu0 %3002 }
 0x34e   :  { %15343 = vst [vmem:[#allocation84_spill] sm:$0xff] %v11052_v15  ;;  %v11054_v50 = vpop.permute.xlu1 %2574 }
 0x34f   :  { %15344 = vst [vmem:[#allocation200_spill] sm:$0xff] %v11054_v50  ;;  %2357 = vrot.lane.b32.xlu0 %v10293_v26, %s8374_s25  ;;  %v15349_v50 = vld [vmem:[#allocation81_spill] sm:$0xff] }
 0x350   :  { %3160 = vrot.lane.b32.xlu1 %v10325_v16, %s8375_s29  ;;  %v15380_v26 = vld [vmem:[#allocation65_spill] sm:$0xff] }
 0x351   :  { %v11060_v29 = vpop.permute.xlu0 %3004 }
 0x352   :  { %15345 = vst [vmem:[#allocation201_spill] sm:$0xff] %v11060_v29  ;;  %v11062_v37 = vpop.permute.xlu1 %2464 }
 0x353   :  { %15346 = vst [vmem:[#allocation202_spill] sm:$0xff] %v11062_v37  ;;  %2359 = vrot.lane.b32.xlu0 %v10301_v19, %s8374_s25 }
 0x354   :  { %2672 = vrot.lane.b32.xlu1 %v10328_v41, %s8380_s20 }
 0x355   :  { %v11068_v58 = vpop.permute.xlu0 %3388 }
 0x356   :  { %15347 = vst [vmem:[#allocation203_spill] sm:$0xff] %v11068_v58  ;;  %v11070_v15 = vpop.permute.xlu1 %3551 }
 0x357   :  { %15348 = vst [vmem:[#allocation204_spill] sm:$0xff] %v11070_v15  ;;  %2931 = vrot.lane.b32.xlu0 %v15349_v50, %s8376_s13 }
 0x358   :  { %2674 = vrot.lane.b32.xlu1 %v10333_v52, %s8380_s20 }
 0x359   :  { %v11076_v27 = vpop.permute.xlu0 %3390 }
 0x35a   :  { %15350 = vst [vmem:[#allocation81_spill] sm:$0xff] %v11076_v27  ;;  %v11078_v29 = vpop.permute.xlu1 %3553 }
 0x35b   :  { %15351 = vst [vmem:[#allocation205_spill] sm:$0xff] %v11078_v29  ;;  %3462 = vrot.lane.b32.xlu0 %v10285_v43, %s8378_s18  ;;  %v15355_v29 = vld [vmem:[#allocation15_spill] sm:$0xff] }
 0x35c   :  { %3084 = vrot.lane.b32.xlu1 %v10328_v41, %s8381_s23 }
 0x35d   :  { %v11084_v37 = vpop.permute.xlu0 %2454 }
 0x35e   :  { %v11086_v58 = vpop.permute.xlu1 %2919 }
 0x35f   :  { %15352 = vst [vmem:[#allocation206_spill] sm:$0xff] %v11086_v58  ;;  %3464 = vrot.lane.b32.xlu0 %v10290_v31, %s8378_s18 }
 0x360   :  { %3162 = vrot.lane.b32.xlu1 %v10336_v22, %s8375_s29 }
 0x361   :  { %v11092_v50 = vpop.permute.xlu0 %2460 }
 0x362   :  { %15353 = vst [vmem:[#allocation207_spill] sm:$0xff] %v11092_v50  ;;  %v11094_v15 = vpop.permute.xlu1 %3629 }
 0x363   :  { %15354 = vst [vmem:[#allocation208_spill] sm:$0xff] %v11094_v15  ;;  %2929 = vrot.lane.b32.xlu0 %v15355_v29, %s8376_s13 }
 0x364   :  { %3086 = vrot.lane.b32.xlu1 %v10333_v52, %s8381_s23 }
 0x365   :  { %v11100_v27 = vpop.permute.xlu0 %3006 }
 0x366   :  { %15356 = vst [vmem:[#allocation15_spill] sm:$0xff] %v11100_v27  ;;  %v11102_v19 = vpop.permute.xlu1 %2580  ;;  %v15362_v27 = vld [vmem:[#allocation56_spill] sm:$0xff] }
 0x367   :  { %15357 = vst [vmem:[#allocation209_spill] sm:$0xff] %v11102_v19  ;;  %2361 = vrot.lane.b32.xlu0 %v15339_v21, %s8374_s25  ;;  %v15363_v19 = vld [vmem:[#allocation64_spill] sm:$0xff] }
 0x368   :  { %3164 = vrot.lane.b32.xlu1 %v10339_v32, %s8375_s29 }
 0x369   :  { %v11108_v58 = vpop.permute.xlu0 %3008 }
 0x36a   :  { %15358 = vst [vmem:[#allocation210_spill] sm:$0xff] %v11108_v58  ;;  %v11110_v50 = vpop.permute.xlu1 %3018 }
 0x36b   :  { %15359 = vst [vmem:[#allocation211_spill] sm:$0xff] %v11110_v50  ;;  %2363 = vrot.lane.b32.xlu0 %v10325_v16, %s8374_s25 }
 0x36c   :  { %2676 = vrot.lane.b32.xlu1 %v10342_v14, %s8380_s20 }
 0x36d   :  { %v11116_v29 = vpop.permute.xlu0 %3392 }
 0x36e   :  { %15360 = vst [vmem:[#allocation212_spill] sm:$0xff] %v11116_v29  ;;  %v11118_v15 = vpop.permute.xlu1 %2576 }
 0x36f   :  { %15361 = vst [vmem:[#allocation213_spill] sm:$0xff] %v11118_v15  ;;  %2935 = vrot.lane.b32.xlu0 %v15362_v27, %s8376_s13  ;;  %v15368_v27 = vld [vmem:[#allocation20_spill] sm:$0xff] }
 0x370   :  { %2678 = vrot.lane.b32.xlu1 %v15363_v19, %s8380_s20 }
 0x371   :  { %v11124_v21 = vpop.permute.xlu0 %3394 }
 0x372   :  { %15364 = vst [vmem:[#allocation56_spill] sm:$0xff] %v11124_v21  ;;  %v11126_v58 = vpop.permute.xlu1 %2578 }
 0x373   :  { %15365 = vst [vmem:[#allocation214_spill] sm:$0xff] %v11126_v58  ;;  %3466 = vrot.lane.b32.xlu0 %v10304_v33, %s8378_s18  ;;  %v15371_v58 = vld [vmem:[#allocation86_spill] sm:$0xff]  ;;  %v15373_v33 = vld [vmem:[#allocation12_spill] sm:$0xff] }
 0x374   :  { %3088 = vrot.lane.b32.xlu1 %v10342_v14, %s8381_s23  ;;  %v11145_v15 = vrot.slane %v15371_v58, 6 }
 0x375   :  { %v11132_v50 = vpop.permute.xlu0 %2458 }
 0x376   :  { %15366 = vst [vmem:[#allocation215_spill] sm:$0xff] %v11132_v50  ;;  %v11134_v29 = vpop.permute.xlu1 %3016  ;;  %15372 = vst [vmem:[#allocation86_spill] sm:$0xff] %v11145_v15 }
 0x377   :  { %15367 = vst [vmem:[#allocation216_spill] sm:$0xff] %v11134_v29  ;;  %3468 = vrot.lane.b32.xlu0 %v15335_v28, %s8378_s18  ;;  %v15376_v28 = vld [vmem:[#allocation83_spill] sm:$0xff] }
 0x378   :  { %3166 = vrot.lane.b32.xlu1 %v15368_v27, %s8375_s29  ;;  %v15377_v50 = vrot.slane %v15376_v28, 6 }
 0x379   :  { %v11140_v16 = vpop.permute.xlu0 %3010 }
 0x37a   :  { %15369 = vst [vmem:[#allocation217_spill] sm:$0xff] %v11140_v16  ;;  %v11142_v21 = vpop.permute.xlu1 %3555  ;;  %v11159_v16 = vsel %vm2236_vm8, %v15377_v50, %v11145_v15 }
 0x37b   :  { %15370 = vst [vmem:[#allocation218_spill] sm:$0xff] %v11142_v21  ;;  %2933 = vrot.lane.b32.xlu0 %v15373_v33, %s8376_s13  ;;  %15378 = vst [vmem:[#allocation83_spill] sm:$0xff] %v11159_v16 }
 0x37c   :  { %3090 = vrot.lane.b32.xlu1 %v15363_v19, %s8381_s23 }
 0x37d   :  { %v11151_v29 = vpop.permute.xlu0 %3012 }
 0x37e   :  { %15374 = vst [vmem:[#allocation12_spill] sm:$0xff] %v11151_v29  ;;  %v11153_v31 = vpop.permute.xlu1 %3557  ;;  %v2315_v29 = vsel %vm2313_vm10, 0.0, %v15380_v26 }
 0x37f   :  { %15375 = vst [vmem:[#allocation219_spill] sm:$0xff] %v11153_v31  ;;  %2365 = vrot.lane.b32.xlu0 %v10336_v22, %s8374_s25 }
 0x380   :  { %3168 = vrot.lane.b32.xlu1 %v11159_v16, %s8375_s29 }
 0x381   :  { %v11165_v33 = vpop.permute.xlu0 %3396 }
 0x382   :  { %15379 = vst [vmem:[#allocation220_spill] sm:$0xff] %v11165_v33  ;;  %v11167_v21 = vpop.permute.xlu1 %2660  ;;  %v11183_v33 = vrot.slane %v15380_v26, 4 }
 0x383   :  { %2367 = vrot.lane.b32.xlu0 %v10339_v32, %s8374_s25 }
 0x384   :  { %2882 = vrot.lane.b32.xlu1 %v2315_v29, %s8374_s25  ;;  %15382 = vst [vmem:[#allocation221_spill] sm:$0xff] %v11183_v33 }
 0x385   :  { %v11174_v50 = vpop.permute.xlu0 %3398 }
 0x386   :  { %15381 = vst [vmem:[#allocation65_spill] sm:$0xff] %v11174_v50  ;;  %v11176_v31 = vpop.permute.xlu1 %2662 }
 0x387   :  { %2939 = vrot.lane.b32.xlu0 %v15371_v58, %s8376_s13 }
 0x388   :  { %2941 = vrot.lane.b32.xlu1 %v10370_v40, %s8376_s13 }
 0x389   :  { %v11185_v22 = vpop.permute.xlu0 %2462 }
 0x38a   :  { %15383 = vst [vmem:[#allocation222_spill] sm:$0xff] %v11185_v22  ;;  %v11187_v43 = vpop.permute.xlu1 %3150 }
 0x38b   :  { %15384 = vst [vmem:[#allocation223_spill] sm:$0xff] %v11187_v43  ;;  %3470 = vrot.lane.b32.xlu0 %v10328_v41, %s8378_s18 }
 0x38c   :  { %3096 = vrot.lane.b32.xlu1 %v11183_v33, %s8381_s23 }
 0x38d   :  { %v11193_v50 = vpop.permute.xlu0 %2351 }
 0x38e   :  { %v11195_v32 = vpop.permute.xlu1 %3074 }
 0x38f   :  { %15385 = vst [vmem:[#allocation224_spill] sm:$0xff] %v11195_v32  ;;  %3472 = vrot.lane.b32.xlu0 %v10333_v52, %s8378_s18  ;;  %v15389_v52 = vrot.slane %v10370_v40, 4 }
 0x390   :  { %2680 = vrot.lane.b32.xlu1 %v10407_v53, %s8380_s20 }
 0x391   :  { %v11201_v26 = vpop.permute.xlu0 %2923  ;;  %v11217_v32 = vsel %vm2319_vm7, %v15389_v52, %v11183_v33 }
 0x392   :  { %15386 = vst [vmem:[#allocation225_spill] sm:$0xff] %v11201_v26  ;;  %v11203_v58 = vpop.permute.xlu1 %3152  ;;  %15390 = vst [vmem:[#allocation228_spill] sm:$0xff] %v11217_v32 }
 0x393   :  { %15387 = vst [vmem:[#allocation226_spill] sm:$0xff] %v11203_v58  ;;  %2937 = vrot.lane.b32.xlu0 %v15376_v28, %s8376_s13 }
 0x394   :  { %3092 = vrot.lane.b32.xlu1 %v10407_v53, %s8381_s23 }
 0x395   :  { %v11209_v41 = vpop.permute.xlu0 %3014 }
 0x396   :  { %15388 = vst [vmem:[#allocation227_spill] sm:$0xff] %v11209_v41  ;;  %v11211_v43 = vpop.permute.xlu1 %2664 }
 0x397   :  { %2373 = vrot.lane.b32.xlu0 %v11145_v15, %s8374_s25 }
 0x398   :  { %3094 = vrot.lane.b32.xlu1 %v11217_v32, %s8381_s23 }
 0x399   :  { %v11223_v28 = vpop.permute.xlu0 %3400 }
 0x39a   :  { %15391 = vst [vmem:[#allocation229_spill] sm:$0xff] %v11223_v28  ;;  %v11225_v58 = vpop.permute.xlu1 %2666 }
 0x39b   :  { %2369 = vrot.lane.b32.xlu0 %v15368_v27, %s8374_s25  ;;  %v4397_v27 = vld [vmem:[%s14628_s3 + $0x8] sm:$0xff] }
 0x39c   :  { %3172 = vrot.lane.b32.xlu1 %v10412_v34, %s8375_s29 }
 0x39d   :  { %v11231_v41 = vpop.permute.xlu0 %3402 }
 0x39e   :  { %15392 = vst [vmem:[#allocation230_spill] sm:$0xff] %v11231_v41  ;;  %v11233_v52 = vpop.permute.xlu1 %3076 }
 0x39f   :  { %15393 = vst [vmem:[#allocation231_spill] sm:$0xff] %v11233_v52  ;;  %2371 = vrot.lane.b32.xlu0 %v11159_v16, %s8374_s25  ;;  %v4396_v16 = vld [vmem:[%s14628_s3] sm:$0xff]  ;;  %v14864_v52 = vmov 0.0|0.0  }
 0x3a0   :  { %2884 = vrot.lane.b32.xlu1 %v10384_v51, %s8374_s25  ;;  %7999 = vmatprep.subr.bf16.mxu1 %v14864_v52 }
 0x3a1   :  { %v11239_v26 = vpop.permute.xlu0 %2921 }
 0x3a2   :  { %15394 = vst [vmem:[#allocation232_spill] sm:$0xff] %v11239_v26  ;;  %v11241_v28 = vpop.permute.xlu1 %3154 }
 0x3a3   :  { %15395 = vst [vmem:[#allocation233_spill] sm:$0xff] %v11241_v28  ;;  %3474 = vrot.lane.b32.xlu0 %v10342_v14, %s8378_s18  ;;  %v8000_v28 = vpack.c.bf16 %v4397_v27, %v4396_v16  ;;  %v4398_v14 = vld [vmem:[%s14628_s3 + $0x10] sm:$0xff]  ;;  %v15398_v16 = vmov 0.0|0.0   ;;  %v4400_v27 = vld [vmem:[%s14628_s3 + $0x20] sm:$0xff] }
 0x3a4   :  { %2703 = vrot.lane.b32.xlu1 %v10417_v55, %s8375_s29 }
 0x3a5   :  { %v11247_v34 = vpop.permute.xlu0 %2353  ;;  %8001 = vmatpush3.bf16.msra.mxu1 %v8000_v28 }
 0x3a6   :  { %v11249_v41 = vpop.permute.xlu1 %3078  ;;  %8002 = vmatprep.subr.bf16.mxu1 %v15398_v16 }
 0x3a7   :  { %15396 = vst [vmem:[#allocation234_spill] sm:$0xff] %v11249_v41  ;;  %3476 = vrot.lane.b32.xlu0 %v15363_v19, %s8378_s18  ;;  %v4399_v41 = vld [vmem:[%s14628_s3 + $0x18] sm:$0xff]  ;;  %v4401_v19 = vld [vmem:[%s14628_s3 + $0x28] sm:$0xff] }
 0x3a8   :  { %2598 = vrot.lane.b32.xlu1 %v10422_v39, %s8381_s23  ;;  %v8003_v22 = vpack.c.bf16 %v4399_v41, %v4398_v14  ;;  %v8006_v14 = vpack.c.bf16 %v4401_v19, %v4400_v27  ;;  %v4402_v19 = vld [vmem:[%s14628_s3 + $0x30] sm:$0xff] }
 0x3a9   :  { %v11268_v26 = vpop.permute.xlu0 %2355 }
 0x3aa   :  { %v11270_v52 = vpop.permute.xlu1 %3156  ;;  %8004 = vmatpush3.bf16.msra.mxu1 %v8003_v22  ;;  %v4403_v22 = vld [vmem:[%s14628_s3 + $0x38] sm:$0xff] }
 0x3ab   :  { %15397 = vst [vmem:[#allocation235_spill] sm:$0xff] %v11270_v52  ;;  %2391 = vrot.lane.b32.xlu0 %v2315_v29, %s8376_s13  ;;  %8005 = vmatprep.subr.bf16.mxu1 %v15398_v16  ;;  %v8009_v27 = vpack.c.bf16 %v4403_v22, %v4402_v19  ;;  %v15405_v19 = vrot.slane %v10384_v51, 4 }
 0x3ac   :  { %2705 = vrot.lane.b32.xlu1 %v10425_v62, %s8375_s29 }
 0x3ad   :  { %v11282_v41 = vpop.permute.xlu0 %3072  ;;  %v2322_v22 = vsel %vm2319_vm7, %v11183_v33, %v15405_v19 }
 0x3ae   :  { %15399 = vst [vmem:[#allocation236_spill] sm:$0xff] %v11282_v41  ;;  %v11284_v28 = vpop.permute.xlu1 %2668  ;;  %8007 = vmatpush3.bf16.msra.mxu1 %v8006_v14  ;;  %v15401_v41 = vld [vmem:[#allocation17_spill] sm:$0xff]  ;;  %v2346_v59 = vsel %vm2236_vm8, 0.0, %v2322_v22 }
 0x3af   :  { %2684 = vrot.lane.b32.xlu0 %v11183_v33, %s8380_s20  ;;  %8008 = vmatprep.subr.bf16.mxu1 %v15398_v16 }
 0x3b0   :  { %3113 = vrot.lane.b32.xlu1 %v10425_v62, %s8380_s20 }
 0x3b1   :  { %v11291_v52 = vpop.permute.xlu0 %2927 }
 0x3b2   :  { %15400 = vst [vmem:[#allocation237_spill] sm:$0xff] %v11291_v52  ;;  %v11293_v29 = vpop.permute.xlu1 %2670  ;;  %8010 = vmatpush3.bf16.msra.mxu1 %v8009_v27  ;;  %v4404_v27 = vld [vmem:[%s14628_s3 + $0x40] sm:$0xff]  ;;  %s8386_s3 = smov 112  }
 0x3b3   :  { %2395 = vrot.lane.b32.xlu0 %v15401_v41, %s8376_s13  ;;  %7833 = vmatprep.subr.mxu1 %v15404_v7 }
 0x3b4   :  { %3497 = vrot.lane.b32.xlu1 %v10417_v55, %s8377_s16 }
 0x3b5   :  { %v11306_v14 = vpop.permute.xlu0 %3458 }
 0x3b6   :  { %15402 = vst [vmem:[#allocation17_spill] sm:$0xff] %v11306_v14  ;;  %v11308_v52 = vpop.permute.xlu1 %3080  ;;  %7834 = vmatpush3.msra.mxu1 %v4404_v27 }
 0x3b7   :  { %15403 = vst [vmem:[#allocation238_spill] sm:$0xff] %v11308_v52  ;;  %2682 = vrot.lane.b32.xlu0 %v11217_v32, %s8380_s20  ;;  %8011 = vmatprep.subr.bf16.mxu1 %v15398_v16 }
 0x3b8   :  { %3499 = vrot.lane.b32.xlu1 %v10425_v62, %s8377_s16 }
 0x3b9   :  { %v11324_v14 = vpop.permute.xlu0 %3460 }
 0x3ba   :  { %15406 = vst [vmem:[#allocation239_spill] sm:$0xff] %v11324_v14  ;;  %v11326_v52 = vpop.permute.xlu1 %3158  ;;  %v11341_v14 = vsel %vm2236_vm8, %v11145_v15, %v15410_v44 }
 0x3bb   :  { %15407 = vst [vmem:[#allocation240_spill] sm:$0xff] %v11326_v52  ;;  %2886 = vrot.lane.b32.xlu0 %v15401_v41, %s8374_s25  ;;  %15411 = vst [vmem:[#allocation243_spill] sm:$0xff] %v11341_v14 }
 0x3bc   :  { %2596 = vrot.lane.b32.xlu1 %v2346_v59, %s8381_s23 }
 0x3bd   :  { %v11333_v19 = vpop.permute.xlu0 %2925 }
 0x3be   :  { %15408 = vst [vmem:[#allocation241_spill] sm:$0xff] %v11333_v19  ;;  %v11335_v27 = vpop.permute.xlu1 %3082 }
 0x3bf   :  { %15409 = vst [vmem:[#allocation242_spill] sm:$0xff] %v11335_v27  ;;  %3170 = vrot.lane.b32.xlu0 %v11341_v14, %s8375_s29 }
 0x3c0   :  { %3419 = vrot.lane.b32.xlu1 %v2346_v59, %s8379_s19 }
 0x3c1   :  { %v11346_v22 = vpop.permute.xlu0 %2357 }
 0x3c2   :  { %v11348_v41 = vpop.permute.xlu1 %3160 }
 0x3c3   :  { %15412 = vst [vmem:[#allocation244_spill] sm:$0xff] %v11348_v41  ;;  %3478 = vrot.lane.b32.xlu0 %v10407_v53, %s8378_s18 }
 0x3c4   :  { %2600 = vrot.lane.b32.xlu1 %v10437_v47, %s8381_s23 }
 0x3c5   :  { %v11354_v40 = vpop.permute.xlu0 %2359 }
 0x3c6   :  { %v11356_v16 = vpop.permute.xlu1 %2672 }
 0x3c7   :  { %2393 = vrot.lane.b32.xlu0 %v10384_v51, %s8376_s13  ;;  %v15416_v51 = vld [vmem:[#allocation93_spill] sm:$0xff] }
 0x3c8   :  { %2707 = vrot.lane.b32.xlu1 %v10390_v46, %s8375_s29 }
 0x3c9   :  { %v11362_v44 = vpop.permute.xlu0 %2931 }
 0x3ca   :  { %15413 = vst [vmem:[#allocation245_spill] sm:$0xff] %v11362_v44  ;;  %v11364_v59 = vpop.permute.xlu1 %2674 }
 0x3cb   :  { %2399 = vrot.lane.b32.xlu0 %v10245_v38, %s8376_s13 }
 0x3cc   :  { %2602 = vrot.lane.b32.xlu1 %v10450_v18, %s8381_s23 }
 0x3cd   :  { %v11370_v14 = vpop.permute.xlu0 %3462 }
 0x3ce   :  { %15414 = vst [vmem:[#allocation246_spill] sm:$0xff] %v11370_v14  ;;  %v11372_v53 = vpop.permute.xlu1 %3084 }
 0x3cf   :  { %15415 = vst [vmem:[#allocation247_spill] sm:$0xff] %v11372_v53  ;;  %3111 = vrot.lane.b32.xlu0 %v10417_v55, %s8380_s20 }
 0x3d0   :  { %2709 = vrot.lane.b32.xlu1 %v15416_v51, %s8375_s29 }
 0x3d1   :  { %v11378_v15 = vpop.permute.xlu0 %3464 }
 0x3d2   :  { %15417 = vst [vmem:[#allocation93_spill] sm:$0xff] %v11378_v15  ;;  %v11380_v41 = vpop.permute.xlu1 %3162 }
 0x3d3   :  { %15418 = vst [vmem:[#allocation248_spill] sm:$0xff] %v11380_v41  ;;  %2890 = vrot.lane.b32.xlu0 %v10245_v38, %s8374_s25  ;;  %v15422_v41 = vld [vmem:[#allocation58_spill] sm:$0xff] }
 0x3d4   :  { %3115 = vrot.lane.b32.xlu1 %v10390_v46, %s8380_s20 }
 0x3d5   :  { %v11386_v52 = vpop.permute.xlu0 %2929 }
 0x3d6   :  { %15419 = vst [vmem:[#allocation249_spill] sm:$0xff] %v11386_v52  ;;  %v11388_v14 = vpop.permute.xlu1 %3086  ;;  %v15430_v52 = vld [vmem:[#allocation24_spill] sm:$0xff] }
 0x3d7   :  { %15420 = vst [vmem:[#allocation250_spill] sm:$0xff] %v11388_v14  ;;  %3421 = vrot.lane.b32.xlu0 %v10422_v39, %s8379_s19 }
 0x3d8   :  { %3117 = vrot.lane.b32.xlu1 %v15416_v51, %s8380_s20 }
 0x3d9   :  { %v11394_v53 = vpop.permute.xlu0 %2361 }
 0x3da   :  { %v11396_v15 = vpop.permute.xlu1 %3164 }
 0x3db   :  { %15421 = vst [vmem:[#allocation251_spill] sm:$0xff] %v11396_v15  ;;  %2397 = vrot.lane.b32.xlu0 %v15422_v41, %s8376_s13 }
 0x3dc   :  { %3501 = vrot.lane.b32.xlu1 %v10390_v46, %s8377_s16 }
 0x3dd   :  { %v11402_v38 = vpop.permute.xlu0 %2363 }
 0x3de   :  { %v11404_v27 = vpop.permute.xlu1 %2676 }
 0x3df   :  { %15423 = vst [vmem:[#allocation58_spill] sm:$0xff] %v11404_v27  ;;  %2888 = vrot.lane.b32.xlu0 %v15422_v41, %s8374_s25 }
 0x3e0   :  { %3503 = vrot.lane.b32.xlu1 %v15416_v51, %s8377_s16 }
 0x3e1   :  { %v11410_v39 = vpop.permute.xlu0 %2935 }
 0x3e2   :  { %15424 = vst [vmem:[#allocation252_spill] sm:$0xff] %v11410_v39  ;;  %v11412_v14 = vpop.permute.xlu1 %2678 }
 0x3e3   :  { %15425 = vst [vmem:[#allocation253_spill] sm:$0xff] %v11412_v14  ;;  %2403 = vrot.lane.b32.xlu0 %v10251_v3, %s8376_s13 }
 0x3e4   :  { %2604 = vrot.lane.b32.xlu1 %v10462_v56, %s8381_s23 }
 0x3e5   :  { %v11418_v15 = vpop.permute.xlu0 %3466 }
 0x3e6   :  { %15426 = vst [vmem:[#allocation254_spill] sm:$0xff] %v11418_v15  ;;  %v11420_v44 = vpop.permute.xlu1 %3088 }
 0x3e7   :  { %15427 = vst [vmem:[#allocation255_spill] sm:$0xff] %v11420_v44  ;;  %2894 = vrot.lane.b32.xlu0 %v10251_v3, %s8374_s25  ;;  %v15433_v3 = vld [vmem:[#allocation68_spill] sm:$0xff] }
 0x3e8   :  { %2711 = vrot.lane.b32.xlu1 %v10456_v36, %s8375_s29 }
 0x3e9   :  { %v11426_v41 = vpop.permute.xlu0 %3468 }
 0x3ea   :  { %15428 = vst [vmem:[#allocation256_spill] sm:$0xff] %v11426_v41  ;;  %v11428_v39 = vpop.permute.xlu1 %3166 }
 0x3eb   :  { %15429 = vst [vmem:[#allocation257_spill] sm:$0xff] %v11428_v39  ;;  %3423 = vrot.lane.b32.xlu0 %v10437_v47, %s8379_s19  ;;  %v15435_v39 = vld [vmem:[#allocation14_spill] sm:$0xff] }
 0x3ec   :  { %2606 = vrot.lane.b32.xlu1 %v15430_v52, %s8381_s23 }
 0x3ed   :  { %v11434_v19 = vpop.permute.xlu0 %2933 }
 0x3ee   :  { %15431 = vst [vmem:[#allocation24_spill] sm:$0xff] %v11434_v19  ;;  %v11436_v15 = vpop.permute.xlu1 %3090 }
 0x3ef   :  { %15432 = vst [vmem:[#allocation258_spill] sm:$0xff] %v11436_v15  ;;  %3425 = vrot.lane.b32.xlu0 %v10450_v18, %s8379_s19 }
 0x3f0   :  { %2713 = vrot.lane.b32.xlu1 %v15433_v3, %s8375_s29 }
 0x3f1   :  { %v11442_v44 = vpop.permute.xlu0 %2365 }
 0x3f2   :  { %v11444_v41 = vpop.permute.xlu1 %3168 }
 0x3f3   :  { %15434 = vst [vmem:[#allocation68_spill] sm:$0xff] %v11444_v41  ;;  %2401 = vrot.lane.b32.xlu0 %v15435_v39, %s8376_s13 }
 0x3f4   :  { %3119 = vrot.lane.b32.xlu1 %v10456_v36, %s8380_s20 }
 0x3f5   :  { %v11450_v47 = vpop.permute.xlu0 %2367 }
 0x3f6   :  { %15436 = vst [vmem:[#allocation14_spill] sm:$0xff] %v11450_v47  ;;  %v11452_v19 = vpop.permute.xlu1 %2882 }
 0x3f7   :  { %15437 = vst [vmem:[#allocation259_spill] sm:$0xff] %v11452_v19  ;;  %2892 = vrot.lane.b32.xlu0 %v15435_v39, %s8374_s25 }
 0x3f8   :  { %3121 = vrot.lane.b32.xlu1 %v15433_v3, %s8380_s20 }
 0x3f9   :  { %v11458_v18 = vpop.permute.xlu0 %2939 }
 0x3fa   :  { %15438 = vst [vmem:[#allocation260_spill] sm:$0xff] %v11458_v18  ;;  %v11460_v15 = vpop.permute.xlu1 %2941 }
 0x3fb   :  { %15439 = vst [vmem:[#allocation261_spill] sm:$0xff] %v11460_v15  ;;  %2407 = vrot.lane.b32.xlu0 %v10255_v48, %s8376_s13  ;;  %v15444_v15 = vld [vmem:[#allocation95_spill] sm:$0xff] }
 0x3fc   :  { %3505 = vrot.lane.b32.xlu1 %v10456_v36, %s8377_s16 }
 0x3fd   :  { %v11466_v41 = vpop.permute.xlu0 %3470 }
 0x3fe   :  { %15440 = vst [vmem:[#allocation262_spill] sm:$0xff] %v11466_v41  ;;  %v11468_v14 = vpop.permute.xlu1 %3096 }
 0x3ff   :  { %15441 = vst [vmem:[#allocation263_spill] sm:$0xff] %v11468_v14  ;;  %2898 = vrot.lane.b32.xlu0 %v10255_v48, %s8374_s25  ;;  %v15447_v14 = vld [vmem:[#allocation69_spill] sm:$0xff] }
 0x400   :  { %3507 = vrot.lane.b32.xlu1 %v15433_v3, %s8377_s16 }
 0x401   :  { %v11474_v39 = vpop.permute.xlu0 %3472 }
 0x402   :  { %15442 = vst [vmem:[#allocation264_spill] sm:$0xff] %v11474_v39  ;;  %v11476_v18 = vpop.permute.xlu1 %2680 }
 0x403   :  { %15443 = vst [vmem:[#allocation265_spill] sm:$0xff] %v11476_v18  ;;  %3427 = vrot.lane.b32.xlu0 %v10462_v56, %s8379_s19  ;;  %v15450_v18 = vld [vmem:[#allocation59_spill] sm:$0xff] }
 0x404   :  { %2608 = vrot.lane.b32.xlu1 %v15444_v15, %s8381_s23 }
 0x405   :  { %v11482_v19 = vpop.permute.xlu0 %2937 }
 0x406   :  { %15445 = vst [vmem:[#allocation95_spill] sm:$0xff] %v11482_v19  ;;  %v11484_v41 = vpop.permute.xlu1 %3092 }
 0x407   :  { %15446 = vst [vmem:[#allocation266_spill] sm:$0xff] %v11484_v41  ;;  %3429 = vrot.lane.b32.xlu0 %v15430_v52, %s8379_s19  ;;  %v15453_v52 = vld [vmem:[#allocation98_spill] sm:$0xff] }
 0x408   :  { %2715 = vrot.lane.b32.xlu1 %v15447_v14, %s8375_s29 }
 0x409   :  { %v11490_v48 = vpop.permute.xlu0 %2373 }
 0x40a   :  { %15448 = vst [vmem:[#allocation267_spill] sm:$0xff] %v11490_v48  ;;  %v11492_v39 = vpop.permute.xlu1 %3094 }
 0x40b   :  { %15449 = vst [vmem:[#allocation268_spill] sm:$0xff] %v11492_v39  ;;  %2405 = vrot.lane.b32.xlu0 %v15450_v18, %s8376_s13  ;;  %v15456_v39 = vld [vmem:[#allocation25_spill] sm:$0xff] }
 0x40c   :  { %2610 = vrot.lane.b32.xlu1 %v10491_v20, %s8381_s23 }
 0x40d   :  { %v11498_v56 = vpop.permute.xlu0 %2369 }
 0x40e   :  { %15451 = vst [vmem:[#allocation59_spill] sm:$0xff] %v11498_v56  ;;  %v11500_v19 = vpop.permute.xlu1 %3172 }
 0x40f   :  { %15452 = vst [vmem:[#allocation269_spill] sm:$0xff] %v11500_v19  ;;  %2896 = vrot.lane.b32.xlu0 %v15450_v18, %s8374_s25 }
 0x410   :  { %2717 = vrot.lane.b32.xlu1 %v15453_v52, %s8375_s29 }
 0x411   :  { %v11506_v41 = vpop.permute.xlu0 %2371 }
 0x412   :  { %15454 = vst [vmem:[#allocation270_spill] sm:$0xff] %v11506_v41  ;;  %v11508_v48 = vpop.permute.xlu1 %2884 }
 0x413   :  { %15455 = vst [vmem:[#allocation271_spill] sm:$0xff] %v11508_v48  ;;  %2411 = vrot.lane.b32.xlu0 %v15456_v39, %s8376_s13 }
 0x414   :  { %3123 = vrot.lane.b32.xlu1 %v15447_v14, %s8380_s20 }
 0x415   :  { %v11514_v27 = vpop.permute.xlu0 %3474 }
 0x416   :  { %15457 = vst [vmem:[#allocation25_spill] sm:$0xff] %v11514_v27  ;;  %v2704_v56 = vpop.permute.xlu1 %2703  ;;  %v2744_v27 = vsel %vm2742_vm1, 0.0, %v11193_v50  ;;  %v15461_v50 = vld [vmem:[#allocation90_spill] sm:$0xff] }
 0x417   :  { %2902 = vrot.lane.b32.xlu0 %v15456_v39, %s8374_s25 }
 0x418   :  { %3125 = vrot.lane.b32.xlu1 %v15453_v52, %s8380_s20 }
 0x419   :  { %v11520_v18 = vpop.permute.xlu0 %3476 }
 0x41a   :  { %15458 = vst [vmem:[#allocation272_spill] sm:$0xff] %v11520_v18  ;;  %v2599_v19 = vpop.permute.xlu1 %2598 }
 0x41b   :  { %3431 = vrot.lane.b32.xlu0 %v15444_v15, %s8379_s19 }
 0x41c   :  { %3509 = vrot.lane.b32.xlu1 %v15447_v14, %s8377_s16 }
 0x41d   :  { %v2392_v41 = vpop.permute.xlu0 %2391 }
 0x41e   :  { %v2706_v48 = vpop.permute.xlu1 %2705  ;;  %v2758_v18 = vsel %vm2756_vm2, %v2744_v27, %v2392_v41 }
 0x41f   :  { %3433 = vrot.lane.b32.xlu0 %v10491_v20, %s8379_s19  ;;  %v2772_v15 = vsel %vm2770_vm3, %v2758_v18, %v10932_v12  ;;  %v15463_v12 = vld [vmem:[#allocation26_spill] sm:$0xff] }
 0x420   :  { %3511 = vrot.lane.b32.xlu1 %v15453_v52, %s8377_s16  ;;  %v2743_v52 = vsel %vm2742_vm1, 0.0, %v15461_v50  ;;  %v2786_v41 = vsel %vm2784_vm4, %v2772_v15, %v10548_v13  ;;  %v15464_v18 = vld [vmem:[#allocation94_spill] sm:$0xff]  ;;  %v11567_v15 = vrot.slane %v15456_v39, 6 }
 0x421   :  { %v11533_v47 = vpop.permute.xlu0 %2684 }
 0x422   :  { %15459 = vst [vmem:[#allocation273_spill] sm:$0xff] %v11533_v47  ;;  %v11535_v14 = vpop.permute.xlu1 %3113  ;;  %v11555_v47 = vsel %vm2756_vm2, %v2743_v52, %v15464_v18  ;;  %v15468_v52 = vld [vmem:[#allocation100_spill] sm:$0xff]  ;;  %v15469_v18 = vld [vmem:[#allocation27_spill] sm:$0xff] }
 0x423   :  { %15460 = vst [vmem:[#allocation274_spill] sm:$0xff] %v11535_v14  ;;  %2409 = vrot.lane.b32.xlu0 %v10402_v5, %s8376_s13  ;;  %15465 = vst [vmem:[#allocation26_spill] sm:$0xff] %v11555_v47  ;;  %v2771_v50 = vsel %vm2770_vm3, %v11555_v47, %v10768_v63 }
 0x424   :  { %2612 = vrot.lane.b32.xlu1 %v10507_v54, %s8381_s23  ;;  %v2785_v63 = vsel %vm2784_vm4, %v2771_v50, %v15469_v18 }
 0x425   :  { %v2396_v20 = vpop.permute.xlu0 %2395 }
 0x426   :  { %v11545_v27 = vpop.permute.xlu1 %3497 }
 0x427   :  { %15462 = vst [vmem:[#allocation90_spill] sm:$0xff] %v11545_v27  ;;  %2900 = vrot.lane.b32.xlu0 %v10402_v5, %s8374_s25  ;;  %v2800_v27 = vsel %vm2798_vm5, %v2786_v41, %v10842_v49  ;;  %v2799_v49 = vsel %vm2798_vm5, %v2785_v63, %v10832_v57 }
 0x428   :  { %2719 = vrot.lane.b32.xlu1 %v15463_v12, %s8375_s29  ;;  %v2814_v47 = vsel %vm2812_vm6, %v2800_v27, %v2599_v19 }
 0x429   :  { %v11562_v14 = vpop.permute.xlu0 %2682  ;;  %v2828_v19 = vsel %vm2826_vm9, %v2814_v47, %v11176_v31  ;;  %v4299_v31 = vld [vmem:[%s14632_s7 + $0x8] sm:$0xff]  ;;  %v2746_v47 = vsel %vm2742_vm1, %v10425_v62, %v11268_v26 }
 0x42a   :  { %15466 = vst [vmem:[#allocation275_spill] sm:$0xff] %v11562_v14  ;;  %v11564_v13 = vpop.permute.xlu1 %3499  ;;  %v4298_v14 = vld [vmem:[%s14632_s7] sm:$0xff] }
 0x42b   :  { %15467 = vst [vmem:[#allocation276_spill] sm:$0xff] %v11564_v13  ;;  %3435 = vrot.lane.b32.xlu0 %v10507_v54, %s8379_s19  ;;  %v15470_v13 = vrot.slane %v10402_v5, 6 }
 0x42c   :  { %2614 = vrot.lane.b32.xlu1 %v15468_v52, %s8381_s23 }
 0x42d   :  { %v11578_v41 = vpop.permute.xlu0 %2886  ;;  %v11584_v54 = vsel %vm2236_vm8, %v15470_v13, %v11567_v15 }
 0x42e   :  { %v2597_v39 = vpop.permute.xlu1 %2596  ;;  %15471 = vst [vmem:[#allocation100_spill] sm:$0xff] %v11584_v54 }
 0x42f   :  { %v2813_v18 = vsel %vm2812_vm6, %v2799_v49, %v2597_v39  ;;  %3437 = vrot.lane.b32.xlu0 %v15468_v52, %s8379_s19 }
 0x430   :  { %v2827_v57 = vsel %vm2826_vm9, %v2813_v18, %v11167_v21  ;;  %2721 = vrot.lane.b32.xlu1 %v11584_v54, %s8375_s29  ;;  %v2842_v21 = vsel %vm2840_vm11, %v2828_v19, %v2706_v48  ;;  %v15474_v18 = vld [vmem:[#allocation67_spill] sm:$0xff] }
 0x431   :  { %v2841_v5 = vsel %vm2840_vm11, %v2827_v57, %v2704_v56  ;;  %v11599_v50 = vpop.permute.xlu0 %3170  ;;  %v15472_v56 = vld [vmem:[#allocation97_spill] sm:$0xff]  ;;  %v4348_v52 = vmul.f32 %v4299_v31, %v2842_v21  ;;  %v11633_v19 = vrot.slane %v15474_v18, 6 }
 0x432   :  { %v4347_v27 = vmul.f32 %v4298_v14, %v2841_v5  ;;  %v11601_v13 = vpop.permute.xlu1 %3419  ;;  %v2760_v14 = vsel %vm2756_vm2, %v2746_v47, %v2396_v20  ;;  %v2745_v20 = vsel %vm2742_vm1, %v10417_v55, %v11247_v34 }
 0x433   :  { %2413 = vrot.lane.b32.xlu0 %v15472_v56, %s8376_s13  ;;  %v2774_v26 = vsel %vm2770_vm3, %v2760_v14, %v10988_v24  ;;  %15475 = vst [vmem:[#allocation97_spill] sm:$0xff] %v11633_v19 }
 0x434   :  { %7836 = vmatmul.mubr.msk.f32.vlgmr.msra.gmra.mrb[0].mxu1 %vm4405_vm12, %v4347_v27  ;;  %3127 = vrot.lane.b32.xlu1 %v15463_v12, %s8380_s20  ;;  %v2788_v57 = vsel %vm2784_vm4, %v2774_v26, %v10643_v61  ;;  %v15476_v27 = vld [vmem:[#allocation70_spill] sm:$0xff] }
 0x435   :  { %7838 = vmatprep.mubr.msk.f32.mxu1 %vm8383_vm0, %v15404_v7  ;;  %v11618_v63 = vpop.permute.xlu0 %3478  ;;  %v2802_v47 = vsel %vm2798_vm5, %v2788_v57, %v10895_v23  ;;  %v2699_v57 = vrot.slane %v15472_v56, 6 }
 0x436   :  { %15473 = vst [vmem:[#allocation27_spill] sm:$0xff] %v11618_v63  ;;  %v2601_v48 = vpop.permute.xlu1 %2600  ;;  %v15535_v63 = vld [vmem:[#allocation271_spill] sm:$0xff] }
 0x437   :  { %2904 = vrot.lane.b32.xlu0 %v15472_v56, %s8374_s25  ;;  %v11691_v56 = vsel %vm2236_vm8, %v11567_v15, %v2699_v57 }
 0x438   :  { %7839 = vmatmul.mubr.msk.f32.gmra.mrb[2].mxu1 %vm4405_vm12, %v4348_v52  ;;  %3129 = vrot.lane.b32.xlu1 %v11584_v54, %s8380_s20  ;;  %15479 = vst [vmem:[#allocation70_spill] sm:$0xff] %v11691_v56 }
 0x439   :  { %7841 = vmatprep.mubr.msk.f32.mxu1 %vm8383_vm0, %v15404_v7  ;;  %v2394_v49 = vpop.permute.xlu0 %2393 }
 0x43a   :  { %v2708_v39 = vpop.permute.xlu1 %2707  ;;  %v2759_v24 = vsel %vm2756_vm2, %v2745_v20, %v2394_v49 }
 0x43b   :  { %v2773_v5 = vsel %vm2770_vm3, %v2759_v24, %v10911_v1  ;;  %3135 = vrot.lane.b32.xlu0 %v11633_v19, %s8380_s20  ;;  %v4300_v1 = vld [vmem:[%s14632_s7 + $0x10] sm:$0xff] }
 0x43c   :  { %3513 = vrot.lane.b32.xlu1 %v15463_v12, %s8377_s16  ;;  %v2787_v31 = vsel %vm2784_vm4, %v2773_v5, %v15476_v27 }
 0x43d   :  { %v2801_v34 = vsel %vm2798_vm5, %v2787_v31, %v10885_v0  ;;  %v2400_v21 = vpop.permute.xlu0 %2399  ;;  %v11661_v0 = vsel %vm2319_vm7, %v10795_v11, 0.0  ;;  %v3190_v11 = vsel %vm2742_vm1, %v10939_v35, %v15535_v63  ;;  %v15543_v63 = vld [vmem:[#allocation232_spill] sm:$0xff] }
 0x43e   :  { %v2603_v61 = vpop.permute.xlu1 %2602  ;;  %v2815_v14 = vsel %vm2812_vm6, %v2801_v34, %v2601_v48  ;;  %15477 = vst [vmem:[#allocation67_spill] sm:$0xff] %v11661_v0 }
 0x43f   :  { %v2816_v52 = vsel %vm2812_vm6, %v2802_v47, %v2603_v61  ;;  %v2829_v26 = vsel %vm2826_vm9, %v2815_v14, %v11211_v43  ;;  %3631 = vrot.lane.b32.xlu0 %v11661_v0, %s8375_s29  ;;  %v4301_v43 = vld [vmem:[%s14632_s7 + $0x18] sm:$0xff]  ;;  %v15480_v47 = vld [vmem:[#allocation101_spill] sm:$0xff]  ;;  %v2747_v14 = vsel %vm2742_vm1, %v10390_v46, %v11346_v22 }
 0x440   :  { %3515 = vrot.lane.b32.xlu1 %v11584_v54, %s8377_s16  ;;  %v2843_v23 = vsel %vm2840_vm11, %v2829_v26, %v2708_v39  ;;  %v2830_v49 = vsel %vm2826_vm9, %v2816_v52, %v11225_v58  ;;  %v15478_v39 = vld [vmem:[#allocation71_spill] sm:$0xff]  ;;  %v15481_v61 = vld [vmem:[#allocation73_spill] sm:$0xff]  ;;  %v15520_v0 = vld [vmem:[#allocation200_spill] sm:$0xff] }
 0x441   :  { %v4349_v48 = vmul.f32 %v4300_v1, %v2843_v23  ;;  %v11666_v20 = vpop.permute.xlu0 %3111 }
 0x442   :  { %v2710_v18 = vpop.permute.xlu1 %2709 }
 0x443   :  { %v2844_v24 = vsel %vm2840_vm11, %v2830_v49, %v2710_v18  ;;  %7842 = vmatmul.mubr.msk.f32.gmra.mrb[4].mxu1 %vm4405_vm12, %v4349_v48  ;;  %3443 = vrot.lane.b32.xlu0 %v15478_v39, %s8379_s19  ;;  %v11715_v48 = vsel %vm2236_vm8, %v2699_v57, %v11633_v19  ;;  %v15483_v18 = vld [vmem:[#allocation107_spill] sm:$0xff] }
 0x444   :  { %2620 = vrot.lane.b32.xlu1 %v15478_v39, %s8381_s23  ;;  %7844 = vmatprep.mubr.msk.f32.mxu1 %vm8383_vm0, %v15404_v7  ;;  %v4350_v58 = vmul.f32 %v4301_v43, %v2844_v24  ;;  %15482 = vst [vmem:[#allocation71_spill] sm:$0xff] %v11715_v48  ;;  %v15484_v57 = vld [vmem:[#allocation39_spill] sm:$0xff] }
 0x445   :  { %v11682_v5 = vpop.permute.xlu0 %2890 }
 0x446   :  { %v11684_v27 = vpop.permute.xlu1 %3115 }
 0x447   :  { %7845 = vmatmul.mubr.msk.f32.gmra.mrb[6].mxu1 %vm4405_vm12, %v4350_v58  ;;  %2723 = vrot.lane.b32.xlu0 %v11691_v56, %s8375_s29 }
 0x448   :  { %2727 = vrot.lane.b32.xlu1 %v11633_v19, %s8375_s29  ;;  %7847 = vmatprep.mubr.msk.f32.mxu1 %vm8383_vm0, %v15404_v7 }
 0x449   :  { %v11697_v31 = vpop.permute.xlu0 %3421 }
 0x44a   :  { %v11699_v34 = vpop.permute.xlu1 %3117 }
 0x44b   :  { %2618 = vrot.lane.b32.xlu0 %v15481_v61, %s8381_s23 }
 0x44c   :  { %2616 = vrot.lane.b32.xlu1 %v15480_v47, %s8381_s23 }
 0x44d   :  { %v2398_v1 = vpop.permute.xlu0 %2397 }
 0x44e   :  { %v11708_v52 = vpop.permute.xlu1 %3501  ;;  %v2761_v26 = vsel %vm2756_vm2, %v2747_v14, %v2398_v1 }
 0x44f   :  { %v2775_v23 = vsel %vm2770_vm3, %v2761_v26, %v10945_v9  ;;  %2725 = vrot.lane.b32.xlu0 %v11715_v48, %s8375_s29  ;;  %v2748_v9 = vsel %vm2742_vm1, %v15416_v51, %v11354_v40  ;;  %v4302_v40 = vld [vmem:[%s14632_s7 + $0x20] sm:$0xff] }
 0x450   :  { %3480 = vrot.lane.b32.xlu1 %v11217_v32, %s8378_s18  ;;  %v2789_v43 = vsel %vm2784_vm4, %v2775_v23, %v15483_v18  ;;  %v2762_v24 = vsel %vm2756_vm2, %v2748_v9, %v2400_v21  ;;  %v15533_v32 = vld [vmem:[#allocation180_spill] sm:$0xff] }
 0x451   :  { %v11721_v49 = vpop.permute.xlu0 %2888  ;;  %v2803_v58 = vsel %vm2798_vm5, %v2789_v43, %v10947_v8  ;;  %v2776_v26 = vsel %vm2770_vm3, %v2762_v24, %v11036_v30 }
 0x452   :  { %v11723_v22 = vpop.permute.xlu1 %3503  ;;  %v2790_v30 = vsel %vm2784_vm4, %v2776_v26, %v10712_v45  ;;  %v15485_v45 = vld [vmem:[#allocation55_spill] sm:$0xff] }
 0x453   :  { %3788 = vrot.lane.b32.xlu0 %v15484_v57, %s8376_s13  ;;  %v4303_v57 = vld [vmem:[%s14632_s7 + $0x28] sm:$0xff] }
 0x454   :  { %3404 = vrot.lane.b32.xlu1 %v10845_v17, %s8376_s13 }
 0x455   :  { %v2404_v39 = vpop.permute.xlu0 %2403 }
 0x456   :  { %v2605_v14 = vpop.permute.xlu1 %2604 }
 0x457   :  { %v2817_v1 = vsel %vm2812_vm6, %v2803_v58, %v2605_v14  ;;  %3596 = vrot.lane.b32.xlu0 %v15404_v7, %s8380_s20 }
 0x458   :  { %3749 = vrot.lane.b32.xlu1 %v10110_v25, %s8374_s25  ;;  %v2831_v8 = vsel %vm2826_vm9, %v2817_v1, %v11284_v28  ;;  %v2804_v28 = vsel %vm2798_vm5, %v2790_v30, %v10958_v6 }
 0x459   :  { %v11747_v21 = vpop.permute.xlu0 %2894 }
 0x45a   :  { %v2712_v23 = vpop.permute.xlu1 %2711 }
 0x45b   :  { %v2845_v18 = vsel %vm2840_vm11, %v2831_v8, %v2712_v23  ;;  %3521 = vrot.lane.b32.xlu0 %v11633_v19, %s8377_s16  ;;  %v2749_v23 = vsel %vm2742_vm1, %v10456_v36, %v11394_v53  ;;  %v15510_v19 = vld [vmem:[#allocation60_spill] sm:$0xff] }
 0x45c   :  { %v4351_v43 = vmul.f32 %v4302_v40, %v2845_v18  ;;  %3559 = vrot.lane.b32.xlu1 %v15404_v7, %s8381_s23 }
 0x45d   :  { %v11758_v25 = vpop.permute.xlu0 %3423 }
 0x45e   :  { %7848 = vmatmul.mubr.msk.f32.gmra.mrb[8].mxu1 %vm4405_vm12, %v4351_v43  ;;  %v2607_v9 = vpop.permute.xlu1 %2606 }
 0x45f   :  { %v2818_v24 = vsel %vm2812_vm6, %v2804_v28, %v2607_v9  ;;  %7850 = vmatprep.mubr.msk.f32.mxu1 %vm8383_vm0, %v15404_v7  ;;  %3751 = vrot.lane.b32.xlu0 %v15485_v45, %s8374_s25  ;;  %v15487_v28 = vld [vmem:[#allocation127_spill] sm:$0xff]  ;;  %v2750_v9 = vsel %vm2742_vm1, %v15433_v3, %v11402_v38 }
 0x460   :  { %3482 = vrot.lane.b32.xlu1 %v11183_v33, %s8378_s18  ;;  %v2832_v6 = vsel %vm2826_vm9, %v2818_v24, %v11293_v29  ;;  %v15488_v24 = vld [vmem:[#allocation42_spill] sm:$0xff]  ;;  %v15489_v38 = vld [vmem:[#allocation35_spill] sm:$0xff] }
 0x461   :  { %v11773_v58 = vpop.permute.xlu0 %3425  ;;  %v15512_v33 = vld [vmem:[#allocation199_spill] sm:$0xff] }
 0x462   :  { %v2714_v14 = vpop.permute.xlu1 %2713 }
 0x463   :  { %v2846_v1 = vsel %vm2840_vm11, %v2832_v6, %v2714_v14  ;;  %3133 = vrot.lane.b32.xlu0 %v11715_v48, %s8380_s20 }
 0x464   :  { %v4352_v26 = vmul.f32 %v4303_v57, %v2846_v1  ;;  %3824 = vrot.lane.b32.xlu1 %v10918_v42, %s8379_s19 }
 0x465   :  { %v2402_v40 = vpop.permute.xlu0 %2401 }
 0x466   :  { %7851 = vmatmul.mubr.msk.f32.gmra.mrb[10].mxu1 %vm4405_vm12, %v4352_v26  ;;  %v11783_v8 = vpop.permute.xlu1 %3119  ;;  %v2763_v18 = vsel %vm2756_vm2, %v2749_v23, %v2402_v40 }
 0x467   :  { %7853 = vmatprep.mubr.msk.f32.mxu1 %vm8383_vm0, %v15404_v7  ;;  %3439 = vrot.lane.b32.xlu0 %v15480_v47, %s8379_s19  ;;  %v2777_v47 = vsel %vm2770_vm3, %v2763_v18, %v10996_v2  ;;  %v2764_v2 = vsel %vm2756_vm2, %v2750_v9, %v2404_v39  ;;  %v4304_v39 = vld [vmem:[%s14632_s7 + $0x30] sm:$0xff] }
 0x468   :  { %3863 = vrot.lane.b32.xlu1 %v10417_v55, %s8378_s18  ;;  %v2778_v1 = vsel %vm2770_vm3, %v2764_v2, %v11084_v37  ;;  %v15493_v2 = vld [vmem:[#allocation75_spill] sm:$0xff] }
 0x469   :  { %v11791_v29 = vpop.permute.xlu0 %2892  ;;  %v2792_v37 = vsel %vm2784_vm4, %v2778_v1, %v10780_v60  ;;  %v15492_v60 = vld [vmem:[#allocation103_spill] sm:$0xff] }
 0x46a   :  { %v11793_v42 = vpop.permute.xlu1 %3121 }
 0x46b   :  { %3441 = vrot.lane.b32.xlu0 %v15481_v61, %s8379_s19  ;;  %v2791_v61 = vsel %vm2784_vm4, %v2777_v47, %v15487_v28  ;;  %v15490_v47 = vld [vmem:[#allocation8_spill] sm:$0xff]  ;;  %v15491_v28 = vld [vmem:[#allocation190_spill] sm:$0xff] }
 0x46c   :  { %3902 = vrot.lane.b32.xlu1 %v10939_v35, %s8377_s16  ;;  %v2805_v57 = vsel %vm2798_vm5, %v2791_v61, %v10998_v4  ;;  %v2806_v61 = vsel %vm2798_vm5, %v2792_v37, %v15491_v28  ;;  %v15498_v28 = vld [vmem:[#allocation69_spill] sm:$0xff] }
 0x46d   :  { %v11805_v30 = vpop.permute.xlu0 %2407 }
 0x46e   :  { %v11803_v55 = vpop.permute.xlu1 %3505 }
 0x46f   :  { %3519 = vrot.lane.b32.xlu0 %v11715_v48, %s8377_s16  ;;  %v15515_v48 = vld [vmem:[#allocation19_spill] sm:$0xff] }
 0x470   :  { %3131 = vrot.lane.b32.xlu1 %v11691_v56, %s8380_s20 }
 0x471   :  { %v11815_v43 = vpop.permute.xlu0 %2898 }
 0x472   :  { %v11813_v53 = vpop.permute.xlu1 %3507 }
 0x473   :  { %15486 = vst [vmem:[#allocation101_spill] sm:$0xff] %v11813_v53  ;;  %3790 = vrot.lane.b32.xlu0 %v15488_v24, %s8376_s13  ;;  %v15545_v53 = vld [vmem:[#allocation74_spill] sm:$0xff] }
 0x474   :  { %3517 = vrot.lane.b32.xlu1 %v11691_v56, %s8377_s16  ;;  %v15534_v56 = vld [vmem:[#allocation122_spill] sm:$0xff] }
 0x475   :  { %v11827_v45 = vpop.permute.xlu0 %3427 }
 0x476   :  { %v2609_v6 = vpop.permute.xlu1 %2608 }
 0x477   :  { %v2819_v14 = vsel %vm2812_vm6, %v2805_v57, %v2609_v6  ;;  %3826 = vrot.lane.b32.xlu0 %v10264_v10, %s8379_s19 }
 0x478   :  { %3938 = vrot.lane.b32.xlu1 %v15489_v38, %s8381_s23  ;;  %v2833_v4 = vsel %vm2826_vm9, %v2819_v14, %v11356_v16  ;;  %v15494_v38 = vld [vmem:[#allocation88_spill] sm:$0xff] }
 0x479   :  { %v11841_v26 = vpop.permute.xlu0 %3429 }
 0x47a   :  { %v2716_v40 = vpop.permute.xlu1 %2715 }
 0x47b   :  { %v2847_v23 = vsel %vm2840_vm11, %v2833_v4, %v2716_v40  ;;  %3865 = vrot.lane.b32.xlu0 %v10425_v62, %s8378_s18  ;;  %v4305_v62 = vld [vmem:[%s14632_s7 + $0x38] sm:$0xff] }
 0x47c   :  { %v4353_v18 = vmul.f32 %v4304_v39, %v2847_v23  ;;  %3971 = vrot.lane.b32.xlu1 %v15490_v47, %s8380_s20  ;;  %v15495_v39 = vld [vmem:[#allocation37_spill] sm:$0xff] }
 0x47d   :  { %v2406_v10 = vpop.permute.xlu0 %2405  ;;  %v15497_v23 = vld [vmem:[#allocation85_spill] sm:$0xff] }
 0x47e   :  { %7854 = vmatmul.mubr.msk.f32.gmra.mrb[12].mxu1 %vm4405_vm12, %v4353_v18  ;;  %v2611_v16 = vpop.permute.xlu1 %2610 }
 0x47f   :  { %v2820_v9 = vsel %vm2812_vm6, %v2806_v61, %v2611_v16  ;;  %7856 = vmatprep.mubr.msk.f32.mxu1 %vm8383_vm0, %v15404_v7  ;;  %3753 = vrot.lane.b32.xlu0 %v15493_v2, %s8374_s25  ;;  %v2751_v61 = vsel %vm2742_vm1, %v15498_v28, %v11442_v44  ;;  %v15499_v16 = vld [vmem:[#allocation99_spill] sm:$0xff]  ;;  %v15504_v44 = vld [vmem:[#allocation106_spill] sm:$0xff] }
 0x480   :  { %4005 = vrot.lane.b32.xlu1 %v15492_v60, %s8375_s29  ;;  %v2834_v57 = vsel %vm2826_vm9, %v2820_v9, %v11364_v59  ;;  %v15496_v59 = vld [vmem:[#allocation40_spill] sm:$0xff]  ;;  %v2765_v9 = vsel %vm2756_vm2, %v2751_v61, %v2406_v10  ;;  %v15507_v10 = vld [vmem:[#allocation142_spill] sm:$0xff] }
 0x481   :  { %v11865_v24 = vpop.permute.xlu0 %2896 }
 0x482   :  { %v2718_v6 = vpop.permute.xlu1 %2717 }
 0x483   :  { %v2848_v14 = vsel %vm2840_vm11, %v2834_v57, %v2718_v6  ;;  %3792 = vrot.lane.b32.xlu0 %v15495_v39, %s8376_s13  ;;  %v15502_v57 = vld [vmem:[#allocation198_spill] sm:$0xff] }
 0x484   :  { %v4354_v1 = vmul.f32 %v4305_v62, %v2848_v14  ;;  %3904 = vrot.lane.b32.xlu1 %v15494_v38, %s8377_s16  ;;  %v2779_v6 = vsel %vm2770_vm3, %v2765_v9, %v15502_v57  ;;  %v15503_v14 = vld [vmem:[#allocation34_spill] sm:$0xff] }
 0x485   :  { %v11877_v40 = vpop.permute.xlu0 %2411  ;;  %v15511_v57 = vld [vmem:[#allocation38_spill] sm:$0xff] }
 0x486   :  { %7857 = vmatmul.mubr.msk.f32.gmra.mrb[14].mxu1 %vm4405_vm12, %v4354_v1  ;;  %v11875_v4 = vpop.permute.xlu1 %3123 }
 0x487   :  { %7859 = vmatprep.mubr.msk.f32.mxu1 %vm8383_vm0, %v15404_v7  ;;  %3828 = vrot.lane.b32.xlu0 %v15497_v23, %s8379_s19  ;;  %v15509_v23 = vld [vmem:[#allocation98_spill] sm:$0xff] }
 0x488   :  { %3940 = vrot.lane.b32.xlu1 %v15496_v59, %s8381_s23  ;;  %v15508_v59 = vld [vmem:[#allocation14_spill] sm:$0xff] }
 0x489   :  { %v11887_v18 = vpop.permute.xlu0 %2902  ;;  %v2752_v61 = vsel %vm2742_vm1, %v15509_v23, %v15508_v59  ;;  %v15514_v59 = vld [vmem:[#allocation43_spill] sm:$0xff] }
 0x48a   :  { %v11885_v37 = vpop.permute.xlu1 %3125  ;;  %v2766_v9 = vsel %vm2756_vm2, %v2752_v61, %v11805_v30  ;;  %v4306_v30 = vld [vmem:[%s14632_s7 + $0x40] sm:$0xff] }
 0x48b   :  { %3867 = vrot.lane.b32.xlu0 %v10390_v46, %s8378_s18  ;;  %v2793_v46 = vsel %vm2784_vm4, %v2779_v6, %v15507_v10  ;;  %v15513_v10 = vld [vmem:[#allocation215_spill] sm:$0xff] }
 0x48c   :  { %3973 = vrot.lane.b32.xlu1 %v15499_v16, %s8380_s20  ;;  %v2780_v60 = vsel %vm2770_vm3, %v2766_v9, %v15513_v10 }
 0x48d   :  { %v11899_v62 = vpop.permute.xlu0 %3431 }
 0x48e   :  { %v11897_v2 = vpop.permute.xlu1 %3509  ;;  %15501 = vst [vmem:[#allocation107_spill] sm:$0xff] %v11899_v62  ;;  %v15562_v62 = vld [vmem:[#allocation114_spill] sm:$0xff] }
 0x48f   :  { %15500 = vst [vmem:[#allocation73_spill] sm:$0xff] %v11897_v2  ;;  %3755 = vrot.lane.b32.xlu0 %v15504_v44, %s8374_s25  ;;  %v15542_v2 = vld [vmem:[#allocation270_spill] sm:$0xff] }
 0x490   :  { %4007 = vrot.lane.b32.xlu1 %v15503_v14, %s8375_s29  ;;  %v2807_v14 = vsel %vm2798_vm5, %v2793_v46, %v15512_v33  ;;  %v2754_v35 = vsel %vm2742_vm1, %v11584_v54, %v15542_v2  ;;  %v15547_v2 = vld [vmem:[#allocation29_spill] sm:$0xff]  ;;  %v15548_v54 = vld [vmem:[#allocation26_spill] sm:$0xff] }
 0x491   :  { %v11909_v39 = vpop.permute.xlu0 %3433 }
 0x492   :  { %v11907_v1 = vpop.permute.xlu1 %3511  ;;  %15506 = vst [vmem:[#allocation55_spill] sm:$0xff] %v11909_v39 }
 0x493   :  { %15505 = vst [vmem:[#allocation39_spill] sm:$0xff] %v11907_v1  ;;  %3794 = vrot.lane.b32.xlu0 %v15511_v57, %s8376_s13  ;;  %v15516_v57 = vld [vmem:[#allocation58_spill] sm:$0xff]  ;;  %v15539_v1 = vld [vmem:[#allocation59_spill] sm:$0xff] }
 0x494   :  { %3906 = vrot.lane.b32.xlu1 %v15510_v19, %s8377_s16 }
 0x495   :  { %v2410_v44 = vpop.permute.xlu0 %2409 }
 0x496   :  { %v2613_v17 = vpop.permute.xlu1 %2612 }
 0x497   :  { %v2821_v6 = vsel %vm2812_vm6, %v2807_v14, %v2613_v17  ;;  %3830 = vrot.lane.b32.xlu0 %v15515_v48, %s8379_s19  ;;  %v15517_v14 = vld [vmem:[#allocation162_spill] sm:$0xff] }
 0x498   :  { %3942 = vrot.lane.b32.xlu1 %v15514_v59, %s8381_s23  ;;  %v2835_v33 = vsel %vm2826_vm9, %v2821_v6, %v15516_v57  ;;  %v2794_v9 = vsel %vm2784_vm4, %v2780_v60, %v15517_v14  ;;  %v15518_v59 = vld [vmem:[#allocation28_spill] sm:$0xff] }
 0x499   :  { %v11934_v61 = vpop.permute.xlu0 %2900  ;;  %v2808_v6 = vsel %vm2798_vm5, %v2794_v9, %v15520_v0  ;;  %v15521_v60 = vld [vmem:[#allocation36_spill] sm:$0xff] }
 0x49a   :  { %v2720_v46 = vpop.permute.xlu1 %2719 }
 0x49b   :  { %v2849_v17 = vsel %vm2840_vm11, %v2835_v33, %v2720_v46  ;;  %3869 = vrot.lane.b32.xlu0 %v15416_v51, %s8378_s18  ;;  %v4307_v51 = vld [vmem:[%s14632_s7 + $0x48] sm:$0xff] }
 0x49c   :  { %v4355_v10 = vmul.f32 %v4306_v30, %v2849_v17  ;;  %3975 = vrot.lane.b32.xlu1 %v15518_v59, %s8380_s20  ;;  %v15522_v30 = vld [vmem:[#allocation120_spill] sm:$0xff]  ;;  %v15524_v17 = vld [vmem:[#allocation253_spill] sm:$0xff] }
 0x49d   :  { %v11945_v48 = vpop.permute.xlu0 %3435 }
 0x49e   :  { %15519 = vst [vmem:[#allocation127_spill] sm:$0xff] %v11945_v48  ;;  %7860 = vmatmul.mubr.msk.f32.gmra.mrb[16].mxu1 %vm4405_vm12, %v4355_v10  ;;  %v2615_v57 = vpop.permute.xlu1 %2614 }
 0x49f   :  { %v2822_v33 = vsel %vm2812_vm6, %v2808_v6, %v2615_v57  ;;  %7862 = vmatprep.mubr.msk.f32.mxu1 %vm8383_vm0, %v15404_v7  ;;  %3757 = vrot.lane.b32.xlu0 %v15522_v30, %s8374_s25  ;;  %v15525_v6 = vld [vmem:[#allocation16_spill] sm:$0xff]  ;;  %v15526_v57 = vld [vmem:[#allocation45_spill] sm:$0xff] }
 0x4a0   :  { %4009 = vrot.lane.b32.xlu1 %v15521_v60, %s8375_s29  ;;  %v2836_v0 = vsel %vm2826_vm9, %v2822_v33, %v15524_v17  ;;  %v15527_v33 = vld [vmem:[#allocation7_spill] sm:$0xff]  ;;  %v15528_v17 = vld [vmem:[#allocation61_spill] sm:$0xff] }
 0x4a1   :  { %v11960_v46 = vpop.permute.xlu0 %3437 }
 0x4a2   :  { %15523 = vst [vmem:[#allocation42_spill] sm:$0xff] %v11960_v46  ;;  %v2722_v14 = vpop.permute.xlu1 %2721 }
 0x4a3   :  { %v2850_v9 = vsel %vm2840_vm11, %v2836_v0, %v2722_v14  ;;  %3796 = vrot.lane.b32.xlu0 %v15526_v57, %s8376_s13  ;;  %v15529_v14 = vld [vmem:[#allocation115_spill] sm:$0xff]  ;;  %v15531_v57 = vld [vmem:[#allocation41_spill] sm:$0xff] }
 0x4a4   :  { %v4356_v10 = vmul.f32 %v4307_v51, %v2850_v9  ;;  %3908 = vrot.lane.b32.xlu1 %v15525_v6, %s8377_s16 }
 0x4a5   :  { %v2414_v60 = vpop.permute.xlu0 %2413 }
 0x4a6   :  { %7863 = vmatmul.mubr.msk.f32.gmra.mrb[18].mxu1 %vm4405_vm12, %v4356_v10  ;;  %v11970_v30 = vpop.permute.xlu1 %3127 }
 0x4a7   :  { %7865 = vmatprep.mubr.msk.f32.mxu1 %vm8383_vm0, %v15404_v7  ;;  %3832 = vrot.lane.b32.xlu0 %v15528_v17, %s8379_s19 }
 0x4a8   :  { %3944 = vrot.lane.b32.xlu1 %v15527_v33, %s8381_s23  ;;  %v15532_v33 = vld [vmem:[#allocation259_spill] sm:$0xff] }
 0x4a9   :  { %v11980_v0 = vpop.permute.xlu0 %2904  ;;  %v3189_v17 = vsel %vm2742_vm1, %v15533_v32, %v15532_v33  ;;  %v15540_v32 = vld [vmem:[#allocation21_spill] sm:$0xff]  ;;  %v15541_v33 = vld [vmem:[#allocation267_spill] sm:$0xff] }
 0x4aa   :  { %v11978_v51 = vpop.permute.xlu1 %3129 }
 0x4ab   :  { %3871 = vrot.lane.b32.xlu0 %v10456_v36, %s8378_s18 }
 0x4ac   :  { %3977 = vrot.lane.b32.xlu1 %v15529_v14, %s8380_s20 }
 0x4ad   :  { %v11988_v10 = vpop.permute.xlu0 %3135 }
 0x4ae   :  { %v11986_v9 = vpop.permute.xlu1 %3513 }
 0x4af   :  { %15530 = vst [vmem:[#allocation35_spill] sm:$0xff] %v11986_v9  ;;  %3759 = vrot.lane.b32.xlu0 %v15534_v56, %s8374_s25  ;;  %v15538_v9 = vld [vmem:[#allocation206_spill] sm:$0xff]  ;;  %v2755_v56 = vsel %vm2742_vm1, %v11567_v15, %v15541_v33 }
 0x4b0   :  { %4011 = vrot.lane.b32.xlu1 %v15531_v57, %s8375_s29  ;;  %v3201_v48 = vsel %vm2756_vm2, %v3189_v17, %v15538_v9  ;;  %v2753_v57 = vsel %vm2742_vm1, %v15463_v12, %v15539_v1  ;;  %v15544_v17 = vld [vmem:[#allocation46_spill] sm:$0xff]  ;;  %v2768_v1 = vsel %vm2756_vm2, %v2754_v35, %v11877_v40  ;;  %v15550_v40 = vld [vmem:[#allocation207_spill] sm:$0xff] }
 0x4b1   :  { %v12002_v36 = vpop.permute.xlu0 %3631  ;;  %v2767_v9 = vsel %vm2756_vm2, %v2753_v57, %v2410_v44  ;;  %v3214_v15 = vsel %vm2770_vm3, %v3201_v48, %v15545_v53  ;;  %v3191_v57 = vsel %vm2742_vm1, %v15494_v38, %v11578_v41  ;;  %v15552_v53 = vld [vmem:[#allocation181_spill] sm:$0xff]  ;;  %v15553_v35 = vld [vmem:[#allocation222_spill] sm:$0xff] }
 0x4b2   :  { %v12000_v46 = vpop.permute.xlu1 %3515  ;;  %15537 = vst [vmem:[#allocation190_spill] sm:$0xff] %v12002_v36  ;;  %v3202_v36 = vsel %vm2756_vm2, %v3190_v11, %v15543_v63  ;;  %v3213_v11 = vsel %vm2770_vm3, %v15548_v54, %v15547_v2  ;;  %v15549_v63 = vld [vmem:[#allocation72_spill] sm:$0xff]  ;;  %v15554_v54 = vld [vmem:[#allocation202_spill] sm:$0xff] }
 0x4b3   :  { %15536 = vst [vmem:[#allocation8_spill] sm:$0xff] %v12000_v46  ;;  %3798 = vrot.lane.b32.xlu0 %v15544_v17, %s8376_s13  ;;  %v2769_v46 = vsel %vm2756_vm2, %v2755_v56, %v2414_v60  ;;  %v3215_v44 = vsel %vm2770_vm3, %v3202_v36, %v15549_v63  ;;  %v2781_v60 = vsel %vm2770_vm3, %v2767_v9, %v15550_v40  ;;  %v15551_v56 = vld [vmem:[#allocation5_spill] sm:$0xff]  ;;  %v15555_v36 = vld [vmem:[#allocation87_spill] sm:$0xff]  ;;  %v15556_v63 = vld [vmem:[#allocation182_spill] sm:$0xff] }
 0x4b4   :  { %3910 = vrot.lane.b32.xlu1 %v15540_v32, %s8377_s16  ;;  %v3226_v48 = vsel %vm2784_vm4, %v3213_v11, %v15552_v53  ;;  %v2782_v17 = vsel %vm2770_vm3, %v2768_v1, %v15553_v35  ;;  %v2783_v2 = vsel %vm2770_vm3, %v2769_v46, %v15554_v54  ;;  %v3227_v41 = vsel %vm2784_vm4, %v3214_v15, %v15556_v63  ;;  %v15557_v9 = vld [vmem:[#allocation225_spill] sm:$0xff]  ;;  %v15561_v54 = vld [vmem:[#allocation136_spill] sm:$0xff]  ;;  %v15563_v15 = vld [vmem:[#allocation150_spill] sm:$0xff] }
 0x4b5   :  { %v12027_v33 = vpop.permute.xlu0 %3443  ;;  %v3203_v40 = vsel %vm2756_vm2, %v3191_v57, %v15557_v9  ;;  %v15559_v53 = vld [vmem:[#allocation157_spill] sm:$0xff]  ;;  %v2796_v63 = vsel %vm2784_vm4, %v2782_v17, %v15563_v15  ;;  %v15564_v57 = vld [vmem:[#allocation236_spill] sm:$0xff]  ;;  %v15570_v15 = vld [vmem:[#allocation214_spill] sm:$0xff] }
 0x4b6   :  { %v2621_v39 = vpop.permute.xlu1 %2620  ;;  %15546 = vst [vmem:[#allocation75_spill] sm:$0xff] %v12027_v33  ;;  %v2795_v1 = vsel %vm2784_vm4, %v2781_v60, %v15559_v53  ;;  %v15560_v35 = vld [vmem:[#allocation109_spill] sm:$0xff]  ;;  %v3192_v60 = vsel %vm2742_vm1, %v15510_v19, %v11721_v49  ;;  %v3193_v19 = vsel %vm2742_vm1, %v15525_v6, %v11682_v5 }
 0x4b7   :  { %3834 = vrot.lane.b32.xlu0 %v15555_v36, %s8379_s19  ;;  %v3239_v46 = vsel %vm2798_vm5, %v3226_v48, %v15560_v35  ;;  %v2797_v36 = vsel %vm2784_vm4, %v2783_v2, %v15561_v54  ;;  %v15566_v48 = vld [vmem:[#allocation123_spill] sm:$0xff]  ;;  %v15567_v17 = vld [vmem:[#allocation105_spill] sm:$0xff] }
 0x4b8   :  { %3946 = vrot.lane.b32.xlu1 %v15551_v56, %s8381_s23  ;;  %v15558_v56 = vld [vmem:[#allocation189_spill] sm:$0xff]  ;;  %v3252_v9 = vsel %vm2812_vm6, %v3239_v46, %v15564_v57  ;;  %v3216_v2 = vsel %vm2770_vm3, %v3203_v40, %v15566_v48  ;;  %v2810_v40 = vsel %vm2798_vm5, %v2796_v63, %v15570_v15  ;;  %v15573_v48 = vld [vmem:[#allocation44_spill] sm:$0xff] }
 0x4b9   :  { %v3228_v33 = vsel %vm2784_vm4, %v3215_v44, %v15558_v56  ;;  %v2724_v11 = vpop.permute.xlu0 %2723  ;;  %v15565_v44 = vld [vmem:[#allocation111_spill] sm:$0xff]  ;;  %v3265_v53 = vsel %vm2826_vm9, %v3252_v9, %v11666_v20  ;;  %v15568_v46 = vld [vmem:[#allocation213_spill] sm:$0xff]  ;;  %v15574_v63 = vld [vmem:[#allocation224_spill] sm:$0xff] }
 0x4ba   :  { %v2728_v38 = vpop.permute.xlu1 %2727  ;;  %v3240_v56 = vsel %vm2798_vm5, %v3227_v41, %v15565_v44  ;;  %v3241_v35 = vsel %vm2798_vm5, %v3228_v33, %v15567_v17  ;;  %v2809_v54 = vsel %vm2798_vm5, %v2795_v1, %v15568_v46  ;;  %v15569_v49 = vld [vmem:[#allocation209_spill] sm:$0xff]  ;;  %v4308_v20 = vld [vmem:[%s14632_s7 + $0x50] sm:$0xff] }
 0x4bb   :  { %3873 = vrot.lane.b32.xlu0 %v15433_v3, %s8378_s18  ;;  %v2811_v3 = vsel %vm2798_vm5, %v2797_v36, %v15569_v49  ;;  %v15571_v9 = vld [vmem:[#allocation241_spill] sm:$0xff]  ;;  %v3253_v17 = vsel %vm2812_vm6, %v3240_v56, %v15574_v63  ;;  %v15575_v46 = vld [vmem:[#allocation191_spill] sm:$0xff]  ;;  %v15580_v56 = vld [vmem:[#allocation274_spill] sm:$0xff] }
 0x4bc   :  { %3979 = vrot.lane.b32.xlu1 %v15562_v62, %s8380_s20  ;;  %v3204_v1 = vsel %vm2756_vm2, %v3192_v60, %v15571_v9  ;;  %v2825_v44 = vsel %vm2812_vm6, %v2811_v3, %v2621_v39  ;;  %v15572_v6 = vld [vmem:[#allocation265_spill] sm:$0xff]  ;;  %v3229_v49 = vsel %vm2784_vm4, %v3216_v2, %v15575_v46  ;;  %v15576_v60 = vld [vmem:[#allocation62_spill] sm:$0xff]  ;;  %v15577_v39 = vld [vmem:[#allocation223_spill] sm:$0xff]  ;;  %v3266_v2 = vsel %vm2826_vm9, %v3253_v17, %v15580_v56 }
 0x4bd   :  { %v2619_v57 = vpop.permute.xlu0 %2618  ;;  %v15578_v3 = vld [vmem:[#allocation237_spill] sm:$0xff]  ;;  %v15583_v46 = vld [vmem:[#allocation275_spill] sm:$0xff]  ;;  %v15588_v56 = vld [vmem:[#allocation226_spill] sm:$0xff] }
 0x4be   :  { %v2617_v41 = vpop.permute.xlu1 %2616  ;;  %v2824_v5 = vsel %vm2812_vm6, %v2810_v40, %v2619_v57  ;;  %v3205_v15 = vsel %vm2756_vm2, %v3193_v19, %v15578_v3  ;;  %v15579_v40 = vld [vmem:[#allocation231_spill] sm:$0xff]  ;;  %v15586_v3 = vld [vmem:[#allocation138_spill] sm:$0xff] }
 0x4bf   :  { %v2823_v33 = vsel %vm2812_vm6, %v2809_v54, %v2617_v41  ;;  %3912 = vrot.lane.b32.xlu0 %v15576_v60, %s8377_s16  ;;  %v3278_v41 = vsel %vm2840_vm11, %v3265_v53, %v15577_v39  ;;  %v3254_v57 = vsel %vm2812_vm6, %v3241_v35, %v15579_v40  ;;  %v2838_v53 = vsel %vm2826_vm9, %v2824_v5, %v15583_v46  ;;  %v4309_v19 = vld [vmem:[%s14632_s7 + $0x58] sm:$0xff]  ;;  %v15591_v46 = vld [vmem:[#allocation233_spill] sm:$0xff] }
 0x4c0   :  { %v2837_v36 = vsel %vm2826_vm9, %v2823_v33, %v15572_v6  ;;  %4013 = vrot.lane.b32.xlu1 %v15573_v48, %s8375_s29  ;;  %v15581_v6 = vld [vmem:[#allocation116_spill] sm:$0xff]  ;;  %v3218_v5 = vsel %vm2770_vm3, %v3205_v15, %v15586_v3  ;;  %v3267_v40 = vsel %vm2826_vm9, %v3254_v57, %v11684_v27  ;;  %v15590_v27 = vld [vmem:[#allocation234_spill] sm:$0xff] }
 0x4c1   :  { %v2851_v54 = vsel %vm2840_vm11, %v2837_v36, %v2724_v11  ;;  %v3217_v11 = vsel %vm2770_vm3, %v3204_v1, %v15581_v6  ;;  %v15582_v36 = vld [vmem:[#allocation273_spill] sm:$0xff]  ;;  %v2726_v35 = vpop.permute.xlu0 %2725  ;;  %v15585_v1 = vld [vmem:[#allocation50_spill] sm:$0xff] }
 0x4c2   :  { %v4357_v33 = vmul.f32 %v4308_v20, %v2851_v54  ;;  %v12114_v9 = vpop.permute.xlu1 %3480  ;;  %v2839_v63 = vsel %vm2826_vm9, %v2825_v44, %v15582_v36  ;;  %v15584_v20 = vld [vmem:[#allocation108_spill] sm:$0xff]  ;;  %v2852_v17 = vsel %vm2840_vm11, %v2838_v53, %v2726_v35  ;;  %v4155_v44 = vrot.slane %v3278_v41, 6  ;;  %v15592_v53 = vld [vmem:[#allocation249_spill] sm:$0xff] }
 0x4c3   :  { %v3242_v54 = vsel %vm2798_vm5, %v3229_v49, %v15584_v20  ;;  %v2853_v39 = vsel %vm2840_vm11, %v2839_v63, %v2728_v38  ;;  %v3194_v49 = vsel %vm2742_vm1, %v15540_v32, %v11791_v29  ;;  %v15587_v38 = vld [vmem:[#allocation130_spill] sm:$0xff]  ;;  %v15589_v41 = vld [vmem:[#allocation84_spill] sm:$0xff]  ;;  %v4358_v15 = vmul.f32 %v4309_v19, %v2852_v17  ;;  %v15593_v19 = vld [vmem:[#allocation201_spill] sm:$0xff] }
 0x4c4   :  { %3948 = vrot.lane.b32.xlu1 %v15585_v1, %s8381_s23  ;;  %7866 = vmatmul.mubr.msk.f32.gmra.mrb[20].mxu1 %vm4405_vm12, %v4357_v33  ;;  %v3279_v33 = vsel %vm2840_vm11, %v3266_v2, %v15588_v56  ;;  %v3230_v6 = vsel %vm2784_vm4, %v3217_v11, %v15589_v41  ;;  %v3255_v57 = vsel %vm2812_vm6, %v3242_v54, %v15590_v27  ;;  %v4310_v29 = vld [vmem:[%s14632_s7 + $0x60] sm:$0xff]  ;;  %v15598_v41 = vld [vmem:[#allocation119_spill] sm:$0xff] }
 0x4c5   :  { %3981 = vrot.lane.b32.xlu0 %v15587_v38, %s8380_s20  ;;  %7868 = vmatprep.mubr.msk.f32.mxu1 %vm8383_vm0, %v15404_v7  ;;  %v4295_v32 = vsel %vm2236_vm8, %v2853_v39, %v4155_v44  ;;  %v12157_v63 = vpop.permute.xlu0 %3788  ;;  %v3280_v2 = vsel %vm2840_vm11, %v3267_v40, %v15591_v46  ;;  %v3206_v11 = vsel %vm2756_vm2, %v3194_v49, %v15592_v53  ;;  %v15594_v20 = vld [vmem:[#allocation48_spill] sm:$0xff]  ;;  %v4156_v54 = vrot.slane %v3279_v33, 6  ;;  %v15595_v1 = vld [vmem:[#allocation117_spill] sm:$0xff]  ;;  %v15596_v40 = vld [vmem:[#allocation135_spill] sm:$0xff] }
 0x4c6   :  { %v12149_v36 = vpop.permute.xlu1 %3404  ;;  %v3231_v35 = vsel %vm2784_vm4, %v3218_v5, %v15593_v19  ;;  %v3268_v39 = vsel %vm2826_vm9, %v3255_v57, %v11699_v34  ;;  %v3195_v17 = vsel %vm2742_vm1, %v15576_v60, %v11747_v21  ;;  %v3243_v3 = vsel %vm2798_vm5, %v3230_v6, %v15595_v1  ;;  %v15597_v33 = vld [vmem:[#allocation131_spill] sm:$0xff]  ;;  %v4311_v6 = vld [vmem:[%s14632_s7 + $0x68] sm:$0xff] }
 0x4c7   :  { %v4359_v5 = vmul.f32 %v4310_v29, %v4295_v32  ;;  %v4158_v56 = vrot.slane %v3280_v2, 6  ;;  %v3219_v34 = vsel %vm2770_vm3, %v3206_v11, %v15597_v33  ;;  %v4157_v60 = vsel %vm2236_vm8, %v4155_v44, %v4156_v54  ;;  %v15599_v27 = vld [vmem:[#allocation235_spill] sm:$0xff]  ;;  %v15600_v29 = vld [vmem:[#allocation245_spill] sm:$0xff]  ;;  %v15601_v46 = vld [vmem:[#allocation238_spill] sm:$0xff] }
 0x4c8   :  { %4015 = vrot.lane.b32.xlu1 %v15594_v20, %s8375_s29  ;;  %7869 = vmatmul.mubr.msk.f32.gmra.mrb[22].mxu1 %vm4405_vm12, %v4358_v15  ;;  %v3244_v15 = vsel %vm2798_vm5, %v3231_v35, %v15598_v41  ;;  %v3281_v57 = vsel %vm2840_vm11, %v3268_v39, %v15599_v27  ;;  %v3207_v32 = vsel %vm2756_vm2, %v3195_v17, %v15600_v29  ;;  %v15602_v53 = vld [vmem:[#allocation78_spill] sm:$0xff]  ;;  %v15603_v11 = vld [vmem:[#allocation92_spill] sm:$0xff]  ;;  %v15605_v39 = vld [vmem:[#allocation15_spill] sm:$0xff] }
 0x4c9   :  { %3761 = vrot.lane.b32.xlu0 %v15596_v40, %s8374_s25  ;;  %7871 = vmatprep.mubr.msk.f32.mxu1 %vm8383_vm0, %v15404_v7  ;;  %v12185_v21 = vpop.permute.xlu0 %3596  ;;  %v3256_v2 = vsel %vm2812_vm6, %v3243_v3, %v15601_v46  ;;  %v3196_v19 = vsel %vm2742_vm1, %v15603_v11, %v11865_v24  ;;  %v15604_v35 = vld [vmem:[#allocation18_spill] sm:$0xff]  ;;  %v3232_v17 = vsel %vm2784_vm4, %v3219_v34, %v15605_v39  ;;  %v4160_v40 = vrot.slane %v3281_v57, 6  ;;  %v15608_v46 = vld [vmem:[#allocation240_spill] sm:$0xff] }
 0x4ca   :  { %v12179_v49 = vpop.permute.xlu1 %3749  ;;  %v3269_v44 = vsel %vm2826_vm9, %v3256_v2, %v11783_v8  ;;  %v4360_v3 = vmul.f32 %v4311_v6, %v4157_v60  ;;  %v15607_v33 = vld [vmem:[#allocation242_spill] sm:$0xff]  ;;  %v4159_v27 = vsel %vm2236_vm8, %v4156_v54, %v4158_v56  ;;  %v15609_v60 = vld [vmem:[#allocation89_spill] sm:$0xff]  ;;  %v15610_v57 = vld [vmem:[#allocation24_spill] sm:$0xff] }
 0x4cb   :  { %v3257_v41 = vsel %vm2812_vm6, %v3244_v15, %v15607_v33  ;;  %v4312_v29 = vld [vmem:[%s14632_s7 + $0x70] sm:$0xff]  ;;  %v3282_v34 = vsel %vm2840_vm11, %v3269_v44, %v15608_v46  ;;  %v3197_v6 = vsel %vm2742_vm1, %v15609_v60, %v11815_v43  ;;  %v15614_v39 = vld [vmem:[#allocation252_spill] sm:$0xff]  ;;  %v4161_v33 = vsel %vm2236_vm8, %v4158_v56, %v4160_v40 }
 0x4cc   :  { %3800 = vrot.lane.b32.xlu1 %v15602_v53, %s8376_s13  ;;  %7872 = vmatmul.mubr.msk.f32.gmra.mrb[24].mxu1 %vm4405_vm12, %v4359_v5  ;;  %v15606_v5 = vld [vmem:[#allocation152_spill] sm:$0xff]  ;;  %v3270_v54 = vsel %vm2826_vm9, %v3257_v41, %v11793_v42  ;;  %v15611_v15 = vld [vmem:[#allocation126_spill] sm:$0xff]  ;;  %v15612_v53 = vld [vmem:[#allocation137_spill] sm:$0xff] }
 0x4cd   :  { %3836 = vrot.lane.b32.xlu0 %v15604_v35, %s8379_s19  ;;  %7874 = vmatprep.mubr.msk.f32.mxu1 %vm8383_vm0, %v15404_v7  ;;  %v3220_v8 = vsel %vm2770_vm3, %v3207_v32, %v15606_v5  ;;  %v12217_v24 = vpop.permute.xlu0 %3521  ;;  %v3208_v32 = vsel %vm2756_vm2, %v3196_v19, %v15610_v57  ;;  %v3245_v2 = vsel %vm2798_vm5, %v3232_v17, %v15611_v15  ;;  %v15613_v43 = vld [vmem:[#allocation210_spill] sm:$0xff]  ;;  %v4162_v35 = vrot.slane %v3282_v34, 6  ;;  %v4313_v41 = vld [vmem:[%s14632_s7 + $0x78] sm:$0xff] }
 0x4ce   :  { %v12211_v1 = vpop.permute.xlu1 %3559  ;;  %v3233_v44 = vsel %vm2784_vm4, %v3220_v8, %v15613_v43  ;;  %v15615_v42 = vld [vmem:[#allocation146_spill] sm:$0xff]  ;;  %v15616_v46 = vld [vmem:[#allocation244_spill] sm:$0xff]  ;;  %v15617_v57 = vld [vmem:[#allocation247_spill] sm:$0xff]  ;;  %v4362_v43 = vmul.f32 %v4313_v41, %v4161_v33 }
 0x4cf   :  { %v3221_v5 = vsel %vm2770_vm3, %v3208_v32, %v15615_v42  ;;  %v3283_v8 = vsel %vm2840_vm11, %v3270_v54, %v15616_v46  ;;  %v15618_v34 = vld [vmem:[#allocation128_spill] sm:$0xff]  ;;  %v15626_v33 = vld [vmem:[#allocation77_spill] sm:$0xff]  ;;  %v15627_v41 = vld [vmem:[#allocation139_spill] sm:$0xff] }
 0x4d0   :  { %3875 = vrot.lane.b32.xlu1 %v15498_v28, %s8378_s18  ;;  %7875 = vmatmul.mubr.msk.f32.gmra.mrb[26].mxu1 %vm4405_vm12, %v4360_v3  ;;  %v4361_v28 = vmul.f32 %v4312_v29, %v4159_v27  ;;  %v3209_v3 = vsel %vm2756_vm2, %v3197_v6, %v15614_v39  ;;  %v3258_v27 = vsel %vm2812_vm6, %v3245_v2, %v15617_v57  ;;  %v15619_v6 = vld [vmem:[#allocation20_spill] sm:$0xff]  ;;  %v15622_v2 = vld [vmem:[#allocation217_spill] sm:$0xff]  ;;  %v15624_v57 = vld [vmem:[#allocation250_spill] sm:$0xff] }
 0x4d1   :  { %3763 = vrot.lane.b32.xlu0 %v15612_v53, %s8374_s25  ;;  %7877 = vmatprep.mubr.msk.f32.mxu1 %vm8383_vm0, %v15404_v7  ;;  %v12249_v17 = vpop.permute.xlu0 %3751  ;;  %v3271_v29 = vsel %vm2826_vm9, %v3258_v27, %v11875_v4  ;;  %v3246_v56 = vsel %vm2798_vm5, %v3233_v44, %v15618_v34  ;;  %v3198_v32 = vsel %vm2742_vm1, %v15619_v6, %v11934_v61  ;;  %v15620_v54 = vld [vmem:[#allocation76_spill] sm:$0xff]  ;;  %v4164_v44 = vrot.slane %v3283_v8, 6  ;;  %v15625_v27 = vld [vmem:[#allocation95_spill] sm:$0xff] }
 0x4d2   :  { %v12243_v19 = vpop.permute.xlu1 %3482  ;;  %v15621_v15 = vld [vmem:[#allocation164_spill] sm:$0xff]  ;;  %v3234_v53 = vsel %vm2784_vm4, %v3221_v5, %v15622_v2  ;;  %v4163_v61 = vsel %vm2236_vm8, %v4160_v40, %v4162_v35  ;;  %v3210_v5 = vsel %vm2756_vm2, %v3198_v32, %v15625_v27  ;;  %v4315_v27 = vld [vmem:[%s14632_s7 + $0x88] sm:$0xff] }
 0x4d3   :  { %v4314_v39 = vld [vmem:[%s14632_s7 + $0x80] sm:$0xff]  ;;  %v3247_v8 = vsel %vm2798_vm5, %v3234_v53, %v15627_v41  ;;  %v15634_v41 = vld [vmem:[#allocation255_spill] sm:$0xff] }
 0x4d4   :  { %3914 = vrot.lane.b32.xlu1 %v15603_v11, %s8377_s16  ;;  %7878 = vmatmul.mubr.msk.f32.gmra.mrb[28].mxu1 %vm4405_vm12, %v4361_v28  ;;  %v3222_v11 = vsel %vm2770_vm3, %v3209_v3, %v15621_v15  ;;  %v15623_v42 = vld [vmem:[#allocation248_spill] sm:$0xff]  ;;  %v3259_v3 = vsel %vm2812_vm6, %v3246_v56, %v15624_v57  ;;  %v15630_v56 = vld [vmem:[#allocation83_spill] sm:$0xff]  ;;  %v15631_v15 = vld [vmem:[#allocation86_spill] sm:$0xff]  ;;  %v4363_v53 = vmul.f32 %v4314_v39, %v4163_v61 }
 0x4d5   :  { %3802 = vrot.lane.b32.xlu0 %v15620_v54, %s8376_s13  ;;  %7880 = vmatprep.mubr.msk.f32.mxu1 %vm8383_vm0, %v15404_v7  ;;  %v12279_v28 = vpop.permute.xlu0 %3133  ;;  %v3284_v46 = vsel %vm2840_vm11, %v3271_v29, %v15623_v42  ;;  %v3272_v40 = vsel %vm2826_vm9, %v3259_v3, %v11885_v37  ;;  %v15628_v34 = vld [vmem:[#allocation12_spill] sm:$0xff]  ;;  %v15629_v54 = vld [vmem:[#allocation63_spill] sm:$0xff]  ;;  %v3199_v32 = vsel %vm2742_vm1, %v15630_v56, %v11887_v18  ;;  %v15636_v39 = vld [vmem:[#allocation129_spill] sm:$0xff] }
 0x4d6   :  { %v12277_v4 = vpop.permute.xlu1 %3824  ;;  %v3235_v29 = vsel %vm2784_vm4, %v3222_v11, %v15628_v34  ;;  %v3200_v37 = vsel %vm2742_vm1, %v15631_v15, %v11980_v0  ;;  %v15632_v42 = vld [vmem:[#allocation47_spill] sm:$0xff]  ;;  %v4165_v3 = vsel %vm2236_vm8, %v4162_v35, %v4164_v44  ;;  %v3260_v0 = vsel %vm2812_vm6, %v3247_v8, %v15634_v41  ;;  %v15635_v34 = vld [vmem:[#allocation141_spill] sm:$0xff]  ;;  %v15642_v41 = vld [vmem:[#allocation258_spill] sm:$0xff] }
 0x4d7   :  { %v3223_v11 = vsel %vm2770_vm3, %v3210_v5, %v15632_v42  ;;  %v15633_v18 = vld [vmem:[#allocation251_spill] sm:$0xff]  ;;  %v3248_v61 = vsel %vm2798_vm5, %v3235_v29, %v15635_v34  ;;  %v3273_v5 = vsel %vm2826_vm9, %v3260_v0, %v11970_v30  ;;  %v4364_v29 = vmul.f32 %v4315_v27, %v4165_v3  ;;  %v15643_v3 = vld [vmem:[#allocation173_spill] sm:$0xff] }
 0x4d8   :  { %3950 = vrot.lane.b32.xlu1 %v15626_v33, %s8381_s23  ;;  %7881 = vmatmul.mubr.msk.f32.gmra.mrb[30].mxu1 %vm4405_vm12, %v4362_v43  ;;  %v4166_v43 = vrot.slane %v3284_v46, 6  ;;  %v3285_v33 = vsel %vm2840_vm11, %v3272_v40, %v15633_v18  ;;  %v15637_v46 = vld [vmem:[#allocation260_spill] sm:$0xff]  ;;  %v15639_v15 = vld [vmem:[#allocation227_spill] sm:$0xff] }
 0x4d9   :  { %3838 = vrot.lane.b32.xlu0 %v15629_v54, %s8379_s19  ;;  %7883 = vmatprep.mubr.msk.f32.mxu1 %vm8383_vm0, %v15404_v7  ;;  %v12314_v57 = vpop.permute.xlu0 %3439  ;;  %v3211_v35 = vsel %vm2756_vm2, %v3199_v32, %v15637_v46  ;;  %v15638_v54 = vld [vmem:[#allocation261_spill] sm:$0xff]  ;;  %v15640_v42 = vld [vmem:[#allocation31_spill] sm:$0xff]  ;;  %v15641_v32 = vld [vmem:[#allocation10_spill] sm:$0xff]  ;;  %v4168_v30 = vrot.slane %v3285_v33, 6 }
 0x4da   :  { %v12310_v2 = vpop.permute.xlu1 %3863  ;;  %v3212_v40 = vsel %vm2756_vm2, %v3200_v37, %v15638_v54  ;;  %v3644_v18 = vsel %vm2742_vm1, %v15641_v32, %v15640_v42  ;;  %v3261_v37 = vsel %vm2812_vm6, %v3248_v61, %v15642_v41  ;;  %v4316_v34 = vld [vmem:[%s14632_s7 + $0x90] sm:$0xff]  ;;  %v3224_v27 = vsel %vm2770_vm3, %v3211_v35, %v15643_v3  ;;  %v15645_v54 = vld [vmem:[#allocation169_spill] sm:$0xff]  ;;  %v15647_v61 = vld [vmem:[#allocation184_spill] sm:$0xff] }
 0x4db   :  { %v3225_v33 = vsel %vm2770_vm3, %v3212_v40, %v15645_v54  ;;  %v3274_v42 = vsel %vm2826_vm9, %v3261_v37, %v11978_v51  ;;  %v15648_v35 = vld [vmem:[#allocation153_spill] sm:$0xff]  ;;  %v15649_v40 = vld [vmem:[#allocation104_spill] sm:$0xff]  ;;  %v15650_v32 = vld [vmem:[#allocation11_spill] sm:$0xff] }
 0x4dc   :  { %3983 = vrot.lane.b32.xlu1 %v15636_v39, %s8380_s20  ;;  %7884 = vmatmul.mubr.msk.f32.gmra.mrb[32].mxu1 %vm4405_vm12, %v4363_v53  ;;  %v3236_v53 = vsel %vm2784_vm4, %v3223_v11, %v15639_v15  ;;  %v15644_v11 = vld [vmem:[#allocation257_spill] sm:$0xff]  ;;  %v3645_v41 = vsel %vm2742_vm1, %v15650_v32, %v15649_v40  ;;  %v15651_v51 = vld [vmem:[#allocation211_spill] sm:$0xff] }
 0x4dd   :  { %3877 = vrot.lane.b32.xlu0 %v15509_v23, %s8378_s18  ;;  %7886 = vmatprep.mubr.msk.f32.mxu1 %vm8383_vm0, %v15404_v7  ;;  %v12348_v0 = vpop.permute.xlu0 %3441  ;;  %v4167_v23 = vsel %vm2236_vm8, %v4164_v44, %v4166_v43  ;;  %v3286_v46 = vsel %vm2840_vm11, %v3273_v5, %v15644_v11  ;;  %v15646_v15 = vld [vmem:[#allocation49_spill] sm:$0xff]  ;;  %v3657_v44 = vsel %vm2756_vm2, %v3644_v18, %v15647_v61 }
 0x4de   :  { %v12339_v8 = vpop.permute.xlu1 %3902  ;;  %v3249_v5 = vsel %vm2798_vm5, %v3236_v53, %v15648_v35  ;;  %v4365_v3 = vmul.f32 %v4316_v34, %v4167_v23  ;;  %v4170_v11 = vrot.slane %v3286_v46, 6  ;;  %v3238_v37 = vsel %vm2784_vm4, %v3225_v33, %v15651_v51  ;;  %v4317_v35 = vld [vmem:[%s14632_s7 + $0x98] sm:$0xff]  ;;  %v15653_v40 = vld [vmem:[#allocation165_spill] sm:$0xff]  ;;  %v15655_v34 = vld [vmem:[#allocation266_spill] sm:$0xff] }
 0x4df   :  { %v4169_v61 = vsel %vm2236_vm8, %v4166_v43, %v4168_v30  ;;  %v3262_v46 = vsel %vm2812_vm6, %v3249_v5, %v15655_v34  ;;  %v15656_v33 = vld [vmem:[#allocation82_spill] sm:$0xff] }
 0x4e0   :  { %4017 = vrot.lane.b32.xlu1 %v15646_v15, %s8375_s29  ;;  %7887 = vmatmul.mubr.msk.f32.gmra.mrb[34].mxu1 %vm4405_vm12, %v4364_v29  ;;  %v3670_v29 = vsel %vm2770_vm3, %v3657_v44, %v11601_v13  ;;  %v3658_v13 = vsel %vm2756_vm2, %v3645_v41, %v15653_v40  ;;  %v15654_v44 = vld [vmem:[#allocation68_spill] sm:$0xff]  ;;  %v15658_v41 = vld [vmem:[#allocation145_spill] sm:$0xff] }
 0x4e1   :  { %3916 = vrot.lane.b32.xlu0 %v15609_v60, %s8377_s16  ;;  %7889 = vmatprep.mubr.msk.f32.mxu1 %vm8383_vm0, %v15404_v7  ;;  %v15652_v60 = vld [vmem:[#allocation216_spill] sm:$0xff]  ;;  %v12382_v53 = vpop.permute.xlu0 %3519  ;;  %v3287_v23 = vsel %vm2840_vm11, %v3274_v42, %v15654_v44  ;;  %v3671_v32 = vsel %vm2770_vm3, %v3658_v13, %v11697_v31  ;;  %v15661_v40 = vld [vmem:[#allocation177_spill] sm:$0xff]  ;;  %v4366_v31 = vmul.f32 %v4317_v35, %v4169_v61 }
 0x4e2   :  { %v3132_v18 = vpop.permute.xlu1 %3131  ;;  %v3237_v54 = vsel %vm2784_vm4, %v3224_v27, %v15652_v60  ;;  %v15657_v27 = vld [vmem:[#allocation17_spill] sm:$0xff]  ;;  %v15659_v42 = vld [vmem:[#allocation32_spill] sm:$0xff]  ;;  %v4172_v34 = vrot.slane %v3287_v23, 6  ;;  %v15666_v23 = vld [vmem:[#allocation263_spill] sm:$0xff] }
 0x4e3   :  { %v3683_v43 = vsel %vm2784_vm4, %v3670_v29, %v15657_v27  ;;  %v3275_v51 = vsel %vm2826_vm9, %v3262_v46, %v3132_v18  ;;  %v3646_v5 = vsel %vm2742_vm1, %v15490_v47, %v15659_v42  ;;  %v15660_v60 = vld [vmem:[#allocation96_spill] sm:$0xff]  ;;  %v3250_v29 = vsel %vm2798_vm5, %v3237_v54, %v15661_v40  ;;  %v15662_v18 = vld [vmem:[#allocation193_spill] sm:$0xff]  ;;  %v15663_v27 = vld [vmem:[#allocation90_spill] sm:$0xff] }
 0x4e4   :  { %3952 = vrot.lane.b32.xlu1 %v15656_v33, %s8381_s23  ;;  %7890 = vmatmul.mubr.msk.f32.gmra.mrb[36].mxu1 %vm4405_vm12, %v4365_v3  ;;  %v3251_v3 = vsel %vm2798_vm5, %v3238_v37, %v15660_v60  ;;  %v3659_v13 = vsel %vm2756_vm2, %v3646_v5, %v15662_v18  ;;  %v4171_v33 = vsel %vm2236_vm8, %v4168_v30, %v4170_v11  ;;  %v4318_v47 = vld [vmem:[%s14632_s7 + $0xa0] sm:$0xff]  ;;  %v15664_v42 = vld [vmem:[#allocation239_spill] sm:$0xff]  ;;  %v15755_v60 = vld [vmem:[#allocation158_spill] sm:$0xff] }
 0x4e5   :  { %3985 = vrot.lane.b32.xlu0 %v15658_v41, %s8380_s20  ;;  %7892 = vmatprep.mubr.msk.f32.mxu1 %vm8383_vm0, %v15404_v7  ;;  %v12417_v46 = vpop.permute.xlu0 %3790  ;;  %v3696_v37 = vsel %vm2798_vm5, %v3683_v43, %v15663_v27  ;;  %v3684_v54 = vsel %vm2784_vm4, %v3671_v32, %v15664_v42  ;;  %v3288_v61 = vsel %vm2840_vm11, %v3275_v51, %v11599_v50  ;;  %v15665_v35 = vld [vmem:[#allocation9_spill] sm:$0xff]  ;;  %v15667_v40 = vld [vmem:[#allocation268_spill] sm:$0xff] }
 0x4e6   :  { %v12413_v44 = vpop.permute.xlu1 %3517  ;;  %v3672_v30 = vsel %vm2770_vm3, %v3659_v13, %v11758_v25  ;;  %v3264_v5 = vsel %vm2812_vm6, %v3251_v3, %v15666_v23  ;;  %v3263_v43 = vsel %vm2812_vm6, %v3250_v29, %v15667_v40  ;;  %v15668_v18 = vld [vmem:[#allocation149_spill] sm:$0xff]  ;;  %v15670_v3 = vld [vmem:[#allocation195_spill] sm:$0xff]  ;;  %v15671_v29 = vld [vmem:[#allocation276_spill] sm:$0xff]  ;;  %v4174_v42 = vrot.slane %v3288_v61, 6 }
 0x4e7   :  { %v15669_v50 = vld [vmem:[#allocation125_spill] sm:$0xff]  ;;  %v3276_v51 = vsel %vm2826_vm9, %v3263_v43, %v12279_v28  ;;  %v3697_v27 = vsel %vm2798_vm5, %v3684_v54, %v15671_v29  ;;  %v4173_v40 = vsel %vm2236_vm8, %v4170_v11, %v4172_v34  ;;  %v15673_v43 = vld [vmem:[#allocation246_spill] sm:$0xff]  ;;  %v15674_v54 = vld [vmem:[#allocation52_spill] sm:$0xff] }
 0x4e8   :  { %4019 = vrot.lane.b32.xlu1 %v15665_v35, %s8375_s29  ;;  %7893 = vmatmul.mubr.msk.f32.gmra.mrb[38].mxu1 %vm4405_vm12, %v4366_v31  ;;  %v3647_v32 = vsel %vm2742_vm1, %v15499_v16, %v15669_v50  ;;  %v4367_v31 = vmul.f32 %v4318_v47, %v4171_v33  ;;  %v4319_v16 = vld [vmem:[%s14632_s7 + $0xa8] sm:$0xff]  ;;  %v3685_v33 = vsel %vm2784_vm4, %v3672_v30, %v15673_v43  ;;  %v15678_v30 = vld [vmem:[#allocation175_spill] sm:$0xff] }
 0x4e9   :  { %3765 = vrot.lane.b32.xlu0 %v15668_v18, %s8374_s25  ;;  %7895 = vmatprep.mubr.msk.f32.mxu1 %vm8383_vm0, %v15404_v7  ;;  %v3660_v13 = vsel %vm2756_vm2, %v3647_v32, %v15670_v3  ;;  %v12453_v23 = vpop.permute.xlu0 %3826  ;;  %v15672_v18 = vld [vmem:[#allocation186_spill] sm:$0xff]  ;;  %v3277_v47 = vsel %vm2826_vm9, %v3264_v5, %v11988_v10  ;;  %v15675_v61 = vld [vmem:[#allocation269_spill] sm:$0xff]  ;;  %v15676_v32 = vld [vmem:[#allocation23_spill] sm:$0xff]  ;;  %v3710_v5 = vsel %vm2812_vm6, %v3697_v27, %v15678_v30 }
 0x4ea   :  { %v12447_v25 = vpop.permute.xlu1 %3938  ;;  %v3709_v28 = vsel %vm2812_vm6, %v3696_v37, %v15672_v18  ;;  %v3673_v11 = vsel %vm2770_vm3, %v3660_v13, %v11773_v58  ;;  %v3289_v50 = vsel %vm2840_vm11, %v3276_v51, %v15675_v61  ;;  %v15677_v37 = vld [vmem:[#allocation118_spill] sm:$0xff]  ;;  %v4368_v3 = vmul.f32 %v4319_v16, %v4173_v40  ;;  %v15680_v29 = vld [vmem:[#allocation91_spill] sm:$0xff]  ;;  %v15682_v16 = vld [vmem:[#allocation93_spill] sm:$0xff] }
 0x4eb   :  { %v3648_v10 = vsel %vm2742_vm1, %v15518_v59, %v15677_v37  ;;  %v15679_v58 = vld [vmem:[#allocation30_spill] sm:$0xff]  ;;  %v3698_v51 = vsel %vm2798_vm5, %v3685_v33, %v11708_v52  ;;  %v3290_v18 = vsel %vm2840_vm11, %v3277_v47, %v15680_v29  ;;  %v15681_v27 = vld [vmem:[#allocation203_spill] sm:$0xff]  ;;  %v4176_v61 = vrot.slane %v3289_v50, 6  ;;  %v15683_v52 = vld [vmem:[#allocation140_spill] sm:$0xff] }
 0x4ec   :  { %3804 = vrot.lane.b32.xlu1 %v15674_v54, %s8376_s13  ;;  %7896 = vmatmul.mubr.msk.f32.gmra.mrb[40].mxu1 %vm4405_vm12, %v4367_v31  ;;  %v3722_v13 = vsel %vm2826_vm9, %v3709_v28, %v15679_v58  ;;  %v4175_v54 = vsel %vm2236_vm8, %v4172_v34, %v4174_v42  ;;  %v4320_v59 = vld [vmem:[%s14632_s7 + $0xb0] sm:$0xff]  ;;  %v3661_v40 = vsel %vm2756_vm2, %v3648_v10, %v15681_v27  ;;  %v15687_v50 = vld [vmem:[#allocation176_spill] sm:$0xff]  ;;  %v4178_v30 = vrot.slane %v3290_v18, 6 }
 0x4ed   :  { %3840 = vrot.lane.b32.xlu0 %v15676_v32, %s8379_s19  ;;  %7898 = vmatprep.mubr.msk.f32.mxu1 %vm8383_vm0, %v15404_v7  ;;  %v12489_v43 = vpop.permute.xlu0 %3865  ;;  %v3686_v28 = vsel %vm2784_vm4, %v3673_v11, %v15682_v16  ;;  %v3649_v34 = vsel %vm2742_vm1, %v15529_v14, %v15683_v52  ;;  %v15684_v33 = vld [vmem:[#allocation110_spill] sm:$0xff]  ;;  %v3674_v32 = vsel %vm2770_vm3, %v3661_v40, %v11827_v45  ;;  %v15685_v37 = vld [vmem:[#allocation151_spill] sm:$0xff]  ;;  %v15686_v11 = vld [vmem:[#allocation156_spill] sm:$0xff] }
 0x4ee   :  { %v12481_v31 = vpop.permute.xlu1 %3971  ;;  %v3723_v47 = vsel %vm2826_vm9, %v3710_v5, %v15684_v33  ;;  %v3711_v10 = vsel %vm2812_vm6, %v3698_v51, %v15687_v50  ;;  %v15688_v5 = vld [vmem:[#allocation81_spill] sm:$0xff]  ;;  %v3699_v45 = vsel %vm2798_vm5, %v3686_v28, %v11723_v22  ;;  %v4177_v40 = vsel %vm2236_vm8, %v4174_v42, %v4176_v61  ;;  %v15689_v16 = vld [vmem:[#allocation170_spill] sm:$0xff]  ;;  %v15691_v22 = vld [vmem:[#allocation112_spill] sm:$0xff] }
 0x4ef   :  { %v3662_v58 = vsel %vm2756_vm2, %v3649_v34, %v15688_v5  ;;  %v3736_v51 = vsel %vm2840_vm11, %v3723_v47, %v15689_v16  ;;  %v15690_v18 = vld [vmem:[#allocation254_spill] sm:$0xff]  ;;  %v3724_v42 = vsel %vm2826_vm9, %v3711_v10, %v15691_v22  ;;  %v15692_v52 = vld [vmem:[#allocation53_spill] sm:$0xff]  ;;  %v15693_v33 = vld [vmem:[#allocation183_spill] sm:$0xff] }
 0x4f0   :  { %3879 = vrot.lane.b32.xlu1 %v15463_v12, %s8378_s18  ;;  %7899 = vmatmul.mubr.msk.f32.gmra.mrb[42].mxu1 %vm4405_vm12, %v4368_v3  ;;  %v3735_v12 = vsel %vm2840_vm11, %v3722_v13, %v15686_v11  ;;  %v4369_v3 = vmul.f32 %v4320_v59, %v4175_v54  ;;  %v4321_v13 = vld [vmem:[%s14632_s7 + $0xb8] sm:$0xff]  ;;  %v3687_v54 = vsel %vm2784_vm4, %v3674_v32, %v15690_v18  ;;  %v15694_v32 = vld [vmem:[#allocation133_spill] sm:$0xff]  ;;  %v4207_v10 = vrot.slane %v3736_v51, 4 }
 0x4f1   :  { %3767 = vrot.lane.b32.xlu0 %v15685_v37, %s8374_s25  ;;  %7901 = vmatprep.mubr.msk.f32.mxu1 %vm8383_vm0, %v15404_v7  ;;  %v12523_v27 = vpop.permute.xlu0 %3753  ;;  %v4179_v59 = vsel %vm2236_vm8, %v4176_v61, %v4178_v30  ;;  %v3675_v28 = vsel %vm2770_vm3, %v3662_v58, %v11841_v26  ;;  %v4206_v34 = vrot.slane %v3735_v12, 4  ;;  %v3712_v61 = vsel %vm2812_vm6, %v3699_v45, %v15693_v33  ;;  %v4322_v12 = vld [vmem:[%s14632_s7 + $0xc0] sm:$0xff]  ;;  %v15696_v5 = vld [vmem:[#allocation167_spill] sm:$0xff] }
 0x4f2   :  { %v12517_v14 = vpop.permute.xlu1 %4005  ;;  %v3650_v37 = vsel %vm2742_vm1, %v15562_v62, %v15694_v32  ;;  %v3700_v26 = vsel %vm2798_vm5, %v3687_v54, %v11803_v55  ;;  %v15695_v30 = vld [vmem:[#allocation212_spill] sm:$0xff]  ;;  %v3737_v58 = vsel %vm2840_vm11, %v3724_v42, %v15696_v5  ;;  %v15698_v55 = vld [vmem:[#allocation79_spill] sm:$0xff]  ;;  %v15702_v54 = vld [vmem:[#allocation185_spill] sm:$0xff] }
 0x4f3   :  { %v4296_v50 = vsel %vm2319_vm7, %v4179_v59, %v4206_v34  ;;  %v15697_v45 = vld [vmem:[#allocation256_spill] sm:$0xff]  ;;  %v15700_v16 = vld [vmem:[#allocation107_spill] sm:$0xff]  ;;  %v3713_v59 = vsel %vm2812_vm6, %v3700_v26, %v15702_v54  ;;  %v15704_v33 = vld [vmem:[#allocation101_spill] sm:$0xff]  ;;  %v4208_v32 = vsel %vm2319_vm7, %v4206_v34, %v4207_v10 }
 0x4f4   :  { %3918 = vrot.lane.b32.xlu1 %v15619_v6, %s8377_s16  ;;  %7902 = vmatmul.mubr.msk.f32.gmra.mrb[44].mxu1 %vm4405_vm12, %v4369_v3  ;;  %v4370_v6 = vmul.f32 %v4321_v13, %v4177_v40  ;;  %v3663_v3 = vsel %vm2756_vm2, %v3650_v37, %v15695_v30  ;;  %v3688_v62 = vsel %vm2784_vm4, %v3675_v28, %v15697_v45  ;;  %v15699_v40 = vld [vmem:[#allocation121_spill] sm:$0xff]  ;;  %v15701_v18 = vld [vmem:[#allocation64_spill] sm:$0xff]  ;;  %v15703_v28 = vld [vmem:[#allocation155_spill] sm:$0xff]  ;;  %v4209_v30 = vrot.slane %v3737_v58, 4 }
 0x4f5   :  { %3806 = vrot.lane.b32.xlu0 %v15692_v52, %s8376_s13  ;;  %7904 = vmatprep.mubr.msk.f32.mxu1 %vm8383_vm0, %v15404_v7  ;;  %v12554_v11 = vpop.permute.xlu0 %3792  ;;  %v3725_v13 = vsel %vm2826_vm9, %v3712_v61, %v15699_v40  ;;  %v3676_v51 = vsel %vm2770_vm3, %v3663_v3, %v15700_v16  ;;  %v4371_v42 = vmul.f32 %v4322_v12, %v4296_v50  ;;  %v4323_v37 = vld [vmem:[%s14632_s7 + $0xc8] sm:$0xff]  ;;  %v15705_v26 = vld [vmem:[#allocation56_spill] sm:$0xff]  ;;  %v15706_v50 = vld [vmem:[#allocation179_spill] sm:$0xff] }
 0x4f6   :  { %v12547_v47 = vpop.permute.xlu1 %3904  ;;  %v3651_v52 = vsel %vm2742_vm1, %v15587_v38, %v15703_v28  ;;  %v3701_v61 = vsel %vm2798_vm5, %v3688_v62, %v15704_v33  ;;  %v3738_v12 = vsel %vm2840_vm11, %v3725_v13, %v15706_v50  ;;  %v15707_v5 = vld [vmem:[#allocation262_spill] sm:$0xff]  ;;  %v15708_v45 = vld [vmem:[#allocation144_spill] sm:$0xff]  ;;  %v15713_v54 = vld [vmem:[#allocation73_spill] sm:$0xff] }
 0x4f7   :  { %v3664_v3 = vsel %vm2756_vm2, %v3651_v52, %v15705_v26  ;;  %v3689_v38 = vsel %vm2784_vm4, %v3676_v51, %v15707_v5  ;;  %v15709_v34 = vld [vmem:[#allocation124_spill] sm:$0xff]  ;;  %v4324_v52 = vld [vmem:[%s14632_s7 + $0xd0] sm:$0xff]  ;;  %v4211_v33 = vrot.slane %v3738_v12, 4 }
 0x4f8   :  { %3954 = vrot.lane.b32.xlu1 %v15698_v55, %s8381_s23  ;;  %7905 = vmatmul.mubr.msk.f32.gmra.mrb[46].mxu1 %vm4405_vm12, %v4370_v6  ;;  %v3726_v62 = vsel %vm2826_vm9, %v3713_v59, %v15709_v34  ;;  %v15710_v55 = vld [vmem:[#allocation55_spill] sm:$0xff]  ;;  %v15711_v40 = vld [vmem:[#allocation100_spill] sm:$0xff]  ;;  %v4210_v59 = vsel %vm2319_vm7, %v4207_v10, %v4209_v30  ;;  %v15714_v26 = vld [vmem:[#allocation178_spill] sm:$0xff] }
 0x4f9   :  { %3842 = vrot.lane.b32.xlu0 %v15701_v18, %s8379_s19  ;;  %7907 = vmatprep.mubr.msk.f32.mxu1 %vm8383_vm0, %v15404_v7  ;;  %v12586_v6 = vpop.permute.xlu0 %3828  ;;  %v3677_v58 = vsel %vm2770_vm3, %v3664_v3, %v15710_v55  ;;  %v15712_v13 = vld [vmem:[#allocation192_spill] sm:$0xff]  ;;  %v4372_v18 = vmul.f32 %v4323_v37, %v4208_v32  ;;  %v3739_v3 = vsel %vm2840_vm11, %v3726_v62, %v15714_v26  ;;  %v15716_v32 = vld [vmem:[#allocation6_spill] sm:$0xff] }
 0x4fa   :  { %v12579_v22 = vpop.permute.xlu1 %3940  ;;  %v3714_v16 = vsel %vm2812_vm6, %v3701_v61, %v15712_v13  ;;  %v15715_v50 = vld [vmem:[#allocation264_spill] sm:$0xff]  ;;  %v15720_v62 = vld [vmem:[#allocation194_spill] sm:$0xff]  ;;  %v15721_v13 = vld [vmem:[#allocation39_spill] sm:$0xff] }
 0x4fb   :  { %v3690_v61 = vsel %vm2784_vm4, %v3677_v58, %v15715_v50  ;;  %v15717_v37 = vld [vmem:[#allocation148_spill] sm:$0xff]  ;;  %v4213_v50 = vrot.slane %v3739_v3, 4  ;;  %v15728_v3 = vld [vmem:[#allocation161_spill] sm:$0xff] }
 0x4fc   :  { %3987 = vrot.lane.b32.xlu1 %v15708_v45, %s8380_s20  ;;  %7908 = vmatmul.mubr.msk.f32.gmra.mrb[48].mxu1 %vm4405_vm12, %v4371_v42  ;;  %v3702_v42 = vsel %vm2798_vm5, %v3689_v38, %v15713_v54  ;;  %v3652_v10 = vsel %vm2742_vm1, %v15636_v39, %v15717_v37  ;;  %v15718_v5 = vld [vmem:[#allocation132_spill] sm:$0xff]  ;;  %v3703_v39 = vsel %vm2798_vm5, %v3690_v61, %v15721_v13  ;;  %v15723_v37 = vld [vmem:[#allocation166_spill] sm:$0xff]  ;;  %v15731_v13 = vld [vmem:[#allocation25_spill] sm:$0xff] }
 0x4fd   :  { %3881 = vrot.lane.b32.xlu0 %v15711_v40, %s8378_s18  ;;  %7910 = vmatprep.mubr.msk.f32.mxu1 %vm8383_vm0, %v15404_v7  ;;  %v12615_v28 = vpop.permute.xlu0 %3867  ;;  %v3727_v38 = vsel %vm2826_vm9, %v3714_v16, %v15718_v5  ;;  %v15719_v12 = vld [vmem:[#allocation220_spill] sm:$0xff]  ;;  %v3715_v55 = vsel %vm2812_vm6, %v3702_v42, %v15720_v62  ;;  %v4373_v40 = vmul.f32 %v4324_v52, %v4210_v59  ;;  %v15725_v61 = vld [vmem:[#allocation54_spill] sm:$0xff] }
 0x4fe   :  { %v12611_v51 = vpop.permute.xlu1 %3973  ;;  %v3665_v34 = vsel %vm2756_vm2, %v3652_v10, %v15719_v12  ;;  %v4325_v26 = vld [vmem:[%s14632_s7 + $0xd8] sm:$0xff]  ;;  %v3653_v42 = vsel %vm2742_vm1, %v15658_v41, %v15723_v37  ;;  %v15726_v10 = vld [vmem:[#allocation65_spill] sm:$0xff]  ;;  %v15727_v5 = vld [vmem:[#allocation134_spill] sm:$0xff] }
 0x4ff   :  { %v15724_v59 = vld [vmem:[#allocation188_spill] sm:$0xff]  ;;  %v3728_v12 = vsel %vm2826_vm9, %v3715_v55, %v15727_v5  ;;  %v15734_v5 = vld [vmem:[#allocation187_spill] sm:$0xff] }
 0x500   :  { %4021 = vrot.lane.b32.xlu1 %v15716_v32, %s8375_s29  ;;  %7911 = vmatmul.mubr.msk.f32.gmra.mrb[50].mxu1 %vm4405_vm12, %v4372_v18  ;;  %v15722_v18 = vld [vmem:[#allocation127_spill] sm:$0xff]  ;;  %v3740_v52 = vsel %vm2840_vm11, %v3727_v38, %v15724_v59  ;;  %v15729_v41 = vld [vmem:[#allocation204_spill] sm:$0xff] }
 0x501   :  { %3920 = vrot.lane.b32.xlu0 %v15630_v56, %s8377_s16  ;;  %7913 = vmatprep.mubr.msk.f32.mxu1 %vm8383_vm0, %v15404_v7  ;;  %v3678_v16 = vsel %vm2770_vm3, %v3665_v34, %v15722_v18  ;;  %v12647_v54 = vpop.permute.xlu0 %3755  ;;  %v4212_v56 = vsel %vm2319_vm7, %v4209_v30, %v4211_v33  ;;  %v3666_v30 = vsel %vm2756_vm2, %v3653_v42, %v15726_v10  ;;  %v15730_v34 = vld [vmem:[#allocation42_spill] sm:$0xff]  ;;  %v15732_v42 = vld [vmem:[#allocation35_spill] sm:$0xff] }
 0x502   :  { %v12641_v58 = vpop.permute.xlu1 %4007  ;;  %v3716_v38 = vsel %vm2812_vm6, %v3703_v39, %v15729_v41  ;;  %v3679_v62 = vsel %vm2770_vm3, %v3666_v30, %v15730_v34  ;;  %v4374_v37 = vmul.f32 %v4325_v26, %v4212_v56  ;;  %v4214_v10 = vsel %vm2319_vm7, %v4211_v33, %v4213_v50  ;;  %v4326_v39 = vld [vmem:[%s14632_s7 + $0xe0] sm:$0xff] }
 0x503   :  { %v4215_v30 = vrot.slane %v3740_v52, 4  ;;  %v15735_v56 = vld [vmem:[#allocation80_spill] sm:$0xff] }
 0x504   :  { %3956 = vrot.lane.b32.xlu1 %v15725_v61, %s8381_s23  ;;  %7914 = vmatmul.mubr.msk.f32.gmra.mrb[52].mxu1 %vm4405_vm12, %v4373_v40  ;;  %v3691_v40 = vsel %vm2784_vm4, %v3678_v16, %v15731_v13  ;;  %v3741_v16 = vsel %vm2840_vm11, %v3728_v12, %v15734_v5  ;;  %v15736_v26 = vld [vmem:[#allocation160_spill] sm:$0xff]  ;;  %v15737_v13 = vld [vmem:[#allocation143_spill] sm:$0xff]  ;;  %v15740_v12 = vld [vmem:[#allocation229_spill] sm:$0xff] }
 0x505   :  { %3989 = vrot.lane.b32.xlu0 %v15728_v3, %s8380_s20  ;;  %7916 = vmatprep.mubr.msk.f32.mxu1 %vm8383_vm0, %v15404_v7  ;;  %v3704_v55 = vsel %vm2798_vm5, %v3691_v40, %v15732_v42  ;;  %v12679_v59 = vpop.permute.xlu0 %3794  ;;  %v3654_v34 = vsel %vm2742_vm1, %v15708_v45, %v15736_v26  ;;  %v3729_v33 = vsel %vm2826_vm9, %v3716_v38, %v15737_v13  ;;  %v15738_v40 = vld [vmem:[#allocation272_spill] sm:$0xff] }
 0x506   :  { %v12675_v18 = vpop.permute.xlu1 %3906  ;;  %v3692_v42 = vsel %vm2784_vm4, %v3679_v62, %v15738_v40  ;;  %v15739_v52 = vld [vmem:[#allocation168_spill] sm:$0xff]  ;;  %v3667_v5 = vsel %vm2756_vm2, %v3654_v34, %v15740_v12  ;;  %v4375_v38 = vmul.f32 %v4326_v39, %v4214_v10  ;;  %v4327_v34 = vld [vmem:[%s14632_s7 + $0xe8] sm:$0xff] }
 0x507   :  { %v12681_v61 = vpop.f32.mrb[0].mxu1  ;;  %v3680_v62 = vsel %vm2770_vm3, %v3667_v5, %v12314_v57  ;;  %v15744_v12 = vld [vmem:[#allocation197_spill] sm:$0xff]  ;;  %v15746_v57 = vld [vmem:[#allocation147_spill] sm:$0xff]  ;;  %v15747_v5 = vld [vmem:[#allocation218_spill] sm:$0xff] }
 0x508   :  { %15733 = vst [vmem:[#allocation88_spill] sm:$0xff] %v12681_v61  ;;  %v7837_v41 = vpop.f32.mrb[1].mxu1  ;;  %4023 = vrot.lane.b32.xlu1 %v15735_v56, %s8375_s29  ;;  %7917 = vmatmul.mubr.msk.f32.gmra.mrb[54].mxu1 %vm4405_vm12, %v4374_v37  ;;  %v15741_v37 = vld [vmem:[#allocation205_spill] sm:$0xff]  ;;  %v15742_v61 = vld [vmem:[#allocation8_spill] sm:$0xff] }
 0x509   :  { %3769 = vrot.lane.b32.xlu0 %v15739_v52, %s8374_s25  ;;  %7919 = vmatprep.mubr.msk.f32.mxu1 %vm8383_vm0, %v15404_v7  ;;  %v3717_v41 = vsel %vm2812_vm6, %v3704_v55, %v15741_v37  ;;  %v3705_v45 = vsel %vm2798_vm5, %v3692_v42, %v15742_v61  ;;  %v12713_v13 = vpop.permute.xlu0 %3830  ;;  %v4216_v52 = vsel %vm2319_vm7, %v4213_v50, %v4215_v30  ;;  %v4217_v55 = vrot.slane %v3741_v16, 4  ;;  %v15745_v10 = vld [vmem:[#allocation13_spill] sm:$0xff]  ;;  %v15748_v37 = vld [vmem:[#allocation66_spill] sm:$0xff]  ;;  %v15749_v16 = vld [vmem:[#allocation172_spill] sm:$0xff] }
 0x50a   :  { %v12709_v26 = vpop.permute.xlu1 %3942  ;;  %v3742_v61 = vsel %vm2840_vm11, %v3729_v33, %v15744_v12  ;;  %v3730_v39 = vsel %vm2826_vm9, %v3717_v41, %v15746_v57  ;;  %v3718_v50 = vsel %vm2812_vm6, %v3705_v45, %v15747_v5  ;;  %v15750_v33 = vld [vmem:[#allocation154_spill] sm:$0xff] }
 0x50b   :  { %v12715_v40 = vpop.f32.mrb[2].mxu1  ;;  %v3656_v12 = vsel %vm2742_vm1, %v15750_v33, %v15749_v16  ;;  %v15752_v41 = vld [vmem:[#allocation174_spill] sm:$0xff]  ;;  %v4219_v33 = vrot.slane %v3742_v61, 4 }
 0x50c   :  { %15743 = vst [vmem:[#allocation37_spill] sm:$0xff] %v12715_v40  ;;  %v7840_v42 = vpop.f32.mrb[3].mxu1  ;;  %3808 = vrot.lane.b32.xlu1 %v15745_v10, %s8376_s13  ;;  %7920 = vmatmul.mubr.msk.f32.gmra.mrb[56].mxu1 %vm4405_vm12, %v4375_v38  ;;  %v4376_v40 = vmul.f32 %v4327_v34, %v4216_v52  ;;  %v3655_v45 = vsel %vm2742_vm1, %v15728_v3, %v15752_v41  ;;  %v4328_v16 = vld [vmem:[%s14632_s7 + $0xf0] sm:$0xff]  ;;  %v15754_v52 = vld [vmem:[#allocation196_spill] sm:$0xff] }
 0x50d   :  { %3844 = vrot.lane.b32.xlu0 %v15748_v37, %s8379_s19  ;;  %7922 = vmatprep.mubr.msk.f32.mxu1 %vm8383_vm0, %v15404_v7  ;;  %v15751_v42 = vld [vmem:[#allocation27_spill] sm:$0xff]  ;;  %v12746_v5 = vpop.permute.xlu0 %3869  ;;  %v4218_v37 = vsel %vm2319_vm7, %v4215_v30, %v4217_v55  ;;  %v3743_v34 = vsel %vm2840_vm11, %v3730_v39, %v15754_v52  ;;  %v3731_v3 = vsel %vm2826_vm9, %v3718_v50, %v15755_v60 }
 0x50e   :  { %v3693_v10 = vsel %vm2784_vm4, %v3680_v62, %v15751_v42  ;;  %v12739_v38 = vpop.permute.xlu1 %3975  ;;  %v15753_v62 = vld [vmem:[#allocation230_spill] sm:$0xff]  ;;  %v3669_v30 = vsel %vm2756_vm2, %v3656_v12, %v12149_v36  ;;  %v15758_v39 = vld [vmem:[#allocation219_spill] sm:$0xff]  ;;  %v4377_v41 = vmul.f32 %v4328_v16, %v4218_v37 }
 0x50f   :  { %v3706_v57 = vsel %vm2798_vm5, %v3693_v10, %v12413_v44  ;;  %v3668_v42 = vsel %vm2756_vm2, %v3655_v45, %v15753_v62  ;;  %v15756_v44 = vld [vmem:[#allocation70_spill] sm:$0xff]  ;;  %v15757_v10 = vld [vmem:[#allocation171_spill] sm:$0xff]  ;;  %v4221_v45 = vrot.slane %v3743_v34, 4 }
 0x510   :  { %3883 = vrot.lane.b32.xlu1 %v15756_v44, %s8378_s18  ;;  %7923 = vmatmul.mubr.msk.f32.gmra.mrb[58].mxu1 %vm4405_vm12, %v4376_v40  ;;  %v3681_v61 = vsel %vm2770_vm3, %v3668_v42, %v12348_v0  ;;  %v3719_v60 = vsel %vm2812_vm6, %v3706_v57, %v15758_v39  ;;  %v15759_v40 = vld [vmem:[#allocation208_spill] sm:$0xff]  ;;  %v4220_v0 = vsel %vm2319_vm7, %v4217_v55, %v4219_v33  ;;  %v15760_v42 = vld [vmem:[#allocation75_spill] sm:$0xff]  ;;  %v15763_v44 = vld [vmem:[#allocation113_spill] sm:$0xff] }
 0x511   :  { %3771 = vrot.lane.b32.xlu0 %v15757_v10, %s8374_s25  ;;  %7925 = vmatprep.mubr.msk.f32.mxu1 %vm8383_vm0, %v15404_v7  ;;  %v3744_v62 = vsel %vm2840_vm11, %v3731_v3, %v15759_v40  ;;  %v12775_v36 = vpop.permute.xlu0 %3757  ;;  %v4329_v12 = vld [vmem:[%s14632_s7 + $0xf8] sm:$0xff]  ;;  %v3682_v52 = vsel %vm2770_vm3, %v3669_v30, %v15760_v42  ;;  %v3694_v57 = vsel %vm2784_vm4, %v3681_v61, %v12114_v9  ;;  %v15764_v10 = vld [vmem:[#allocation102_spill] sm:$0xff]  ;;  %v15766_v42 = vld [vmem:[#allocation57_spill] sm:$0xff] }
 0x512   :  { %v12771_v50 = vpop.permute.xlu1 %4009  ;;  %v15761_v37 = vld [vmem:[#allocation243_spill] sm:$0xff]  ;;  %v3695_v16 = vsel %vm2784_vm4, %v3682_v52, %v12243_v19  ;;  %v3707_v55 = vsel %vm2798_vm5, %v3694_v57, %v12382_v53  ;;  %v4223_v9 = vrot.slane %v3744_v62, 4  ;;  %v4378_v61 = vmul.f32 %v4329_v12, %v4220_v0  ;;  %v15765_v0 = vld [vmem:[#allocation190_spill] sm:$0xff] }
 0x513   :  { %v15762_v34 = vld [vmem:[#allocation159_spill] sm:$0xff]  ;;  %v4038_v19 = vsel %vm2742_vm1, %v15764_v10, %v12179_v49  ;;  %v3708_v40 = vsel %vm2798_vm5, %v3695_v16, %v12217_v24  ;;  %v3720_v62 = vsel %vm2812_vm6, %v3707_v55, %v12211_v1  ;;  %v4331_v16 = vld [vmem:[%s14632_s7 + $0x108] sm:$0xff] }
 0x514   :  { %3922 = vrot.lane.b32.xlu1 %v15761_v37, %s8377_s16  ;;  %7926 = vmatmul.mubr.msk.f32.gmra.mrb[60].mxu1 %vm4405_vm12, %v4377_v41  ;;  %v3732_v3 = vsel %vm2826_vm9, %v3719_v60, %v15762_v34  ;;  %v4222_v60 = vsel %vm2319_vm7, %v4219_v33, %v4221_v45  ;;  %v4330_v41 = vld [vmem:[%s14632_s7 + $0x100] sm:$0xff]  ;;  %v4051_v24 = vsel %vm2756_vm2, %v4038_v19, %v12157_v63  ;;  %v15768_v19 = vld [vmem:[#allocation67_spill] sm:$0xff] }
 0x515   :  { %3810 = vrot.lane.b32.xlu0 %v15763_v44, %s8376_s13  ;;  %7928 = vmatprep.mubr.msk.f32.mxu1 %vm8383_vm0, %v15404_v7  ;;  %v12803_v39 = vpop.permute.xlu0 %3796  ;;  %v3745_v12 = vsel %vm2840_vm11, %v3732_v3, %v15765_v0  ;;  %v15767_v33 = vld [vmem:[#allocation228_spill] sm:$0xff]  ;;  %v4379_v57 = vmul.f32 %v4330_v41, %v4222_v60  ;;  %v4224_v37 = vsel %vm2319_vm7, %v4221_v45, %v4223_v9  ;;  %v15769_v60 = vld [vmem:[#allocation33_spill] sm:$0xff] }
 0x516   :  { %v12798_v30 = vpop.permute.xlu1 %3908  ;;  %v12805_v53 = vpop.f32.mrb[4].mxu1  ;;  %v3721_v55 = vsel %vm2812_vm6, %v3708_v40, %v12211_v1  ;;  %v4064_v34 = vsel %vm2770_vm3, %v4051_v24, %v12277_v4  ;;  %v3733_v3 = vsel %vm2826_vm9, %v3720_v62, %v12185_v21  ;;  %v4225_v44 = vrot.slane %v3745_v12, 4  ;;  %v15770_v40 = vld [vmem:[#allocation71_spill] sm:$0xff] }
 0x517   :  { %v7843_v49 = vpop.f32.mrb[5].mxu1  ;;  %v4077_v45 = vsel %vm2784_vm4, %v4064_v34, %v12310_v2  ;;  %v4039_v4 = vsel %vm2742_vm1, %v15769_v60, %v12249_v17  ;;  %v4380_v2 = vmul.f32 %v4331_v16, %v4224_v37  ;;  %v3734_v62 = vsel %vm2826_vm9, %v3721_v55, %v12185_v21  ;;  %v15771_v24 = vld [vmem:[#allocation51_spill] sm:$0xff] }
 0x518   :  { %3958 = vrot.lane.b32.xlu1 %v15766_v42, %s8381_s23  ;;  %7929 = vmatmul.mubr.msk.f32.gmra.mrb[62].mxu1 %vm4405_vm12, %v4378_v61  ;;  %v4090_v41 = vsel %vm2798_vm5, %v4077_v45, %v12339_v8  ;;  %v3746_v0 = vsel %vm2840_vm11, %v3733_v3, %v15680_v29  ;;  %v4052_v12 = vsel %vm2756_vm2, %v4039_v4, %v12417_v46  ;;  %v4332_v46 = vld [vmem:[%s14632_s7 + $0x110] sm:$0xff] }
 0x519   :  { %3846 = vrot.lane.b32.xlu0 %v15767_v33, %s8379_s19  ;;  %7931 = vmatprep.mubr.msk.f32.mxu1 %vm8383_vm0, %v15404_v7  ;;  %v12838_v63 = vpop.permute.xlu0 %3832  ;;  %v4103_v17 = vsel %vm2812_vm6, %v4090_v41, %v12447_v25  ;;  %v4065_v49 = vsel %vm2770_vm3, %v4052_v12, %v12453_v23  ;;  %v4226_v37 = vsel %vm2319_vm7, %v4223_v9, %v4225_v44  ;;  %v4227_v16 = vrot.slane %v3746_v0, 4  ;;  %v15772_v9 = vld [vmem:[#allocation103_spill] sm:$0xff] }
 0x51a   :  { %v12826_v52 = vpop.permute.xlu1 %3944  ;;  %v12840_v61 = vpop.f32.mrb[6].mxu1  ;;  %v4116_v42 = vsel %vm2826_vm9, %v4103_v17, %v12481_v31  ;;  %v4078_v25 = vsel %vm2784_vm4, %v4065_v49, %v12489_v43  ;;  %v3747_v31 = vsel %vm2840_vm11, %v3734_v62, %v15680_v29  ;;  %v4040_v55 = vsel %vm2742_vm1, %v15772_v9, %v12523_v27  ;;  %v15773_v43 = vld [vmem:[#allocation22_spill] sm:$0xff]  ;;  %v4333_v41 = vld [vmem:[%s14632_s7 + $0x118] sm:$0xff]  ;;  %v15776_v62 = vld [vmem:[#allocation221_spill] sm:$0xff] }
 0x51b   :  { %v7846_v10 = vpop.f32.mrb[7].mxu1  ;;  %v4129_v23 = vsel %vm2840_vm11, %v4116_v42, %v12517_v14  ;;  %v4091_v34 = vsel %vm2798_vm5, %v4078_v25, %v12547_v47  ;;  %v4053_v14 = vsel %vm2756_vm2, %v4040_v55, %v12554_v11  ;;  %v4228_v4 = vsel %vm2319_vm7, %v4225_v44, %v4227_v16  ;;  %v15778_v9 = vld [vmem:[#allocation36_spill] sm:$0xff] }
 0x51c   :  { %3991 = vrot.lane.b32.xlu1 %v15768_v19, %s8380_s20  ;;  %7932 = vmatmul.mubr.msk.f32.gmra.mrb[64].mxu1 %vm4405_vm12, %v4379_v57  ;;  %v3748_v57 = vsel %vm2236_vm8, %v15771_v24, 0.0  ;;  %v4104_v3 = vsel %vm2812_vm6, %v4091_v34, %v12579_v22  ;;  %v4381_v10 = vmul.f32 %v4332_v46, %v4226_v37  ;;  %v4257_v19 = vrot.slane %v4129_v23, 2  ;;  %v4334_v37 = vld [vmem:[%s14632_s7 + $0x120] sm:$0xff] }
 0x51d   :  { %3885 = vrot.lane.b32.xlu0 %v15770_v40, %s8378_s18  ;;  %7934 = vmatprep.mubr.msk.f32.mxu1 %vm8383_vm0, %v15404_v7  ;;  %v12868_v33 = vpop.permute.xlu0 %3871  ;;  %v4066_v27 = vsel %vm2770_vm3, %v4053_v14, %v12586_v6  ;;  %v4117_v47 = vsel %vm2826_vm9, %v4104_v3, %v12611_v51  ;;  %v4229_v11 = vrot.slane %v3747_v31, 4  ;;  %v15775_v6 = vld [vmem:[#allocation34_spill] sm:$0xff]  ;;  %v4382_v17 = vmul.f32 %v4333_v41, %v4228_v4  ;;  %v15777_v46 = vld [vmem:[#allocation97_spill] sm:$0xff] }
 0x51e   :  { %v3978_v8 = vpop.permute.xlu1 %3977  ;;  %v4079_v22 = vsel %vm2784_vm4, %v4066_v27, %v12615_v28  ;;  %v4130_v40 = vsel %vm2840_vm11, %v4117_v47, %v12641_v58  ;;  %v4041_v51 = vsel %vm2742_vm1, %v15775_v6, %v12647_v54  ;;  %v4042_v55 = vsel %vm2742_vm1, %v15778_v9, %v12775_v36  ;;  %v15779_v47 = vld [vmem:[#allocation41_spill] sm:$0xff] }
 0x51f   :  { %v4092_v44 = vsel %vm2798_vm5, %v4079_v22, %v12675_v18  ;;  %v4230_v28 = vsel %vm2319_vm7, %v4227_v16, %v4229_v11  ;;  %v4054_v58 = vsel %vm2756_vm2, %v4041_v51, %v12679_v59  ;;  %v4258_v49 = vrot.slane %v4130_v40, 2 }
 0x520   :  { %4025 = vrot.lane.b32.xlu1 %v3748_v57, %s8375_s29  ;;  %7935 = vmatmul.mubr.msk.f32.gmra.mrb[66].mxu1 %vm4405_vm12, %v4380_v2  ;;  %v15774_v2 = vld [vmem:[#allocation163_spill] sm:$0xff]  ;;  %v4105_v0 = vsel %vm2812_vm6, %v4092_v44, %v12709_v26  ;;  %v4297_v54 = vsel %vm2313_vm10, %v4230_v28, %v4257_v19  ;;  %v4067_v18 = vsel %vm2770_vm3, %v4054_v58, %v12713_v13 }
 0x521   :  { %3924 = vrot.lane.b32.xlu0 %v15773_v43, %s8377_s16  ;;  %7937 = vmatprep.mubr.msk.f32.mxu1 %vm8383_vm0, %v15404_v7  ;;  %v3760_v60 = vpop.permute.xlu0 %3759  ;;  %v4118_v42 = vsel %vm2826_vm9, %v4105_v0, %v12739_v38  ;;  %v4080_v59 = vsel %vm2784_vm4, %v4067_v18, %v12746_v5  ;;  %v4383_v25 = vmul.f32 %v4334_v37, %v4297_v54  ;;  %v4337_v44 = vld [vmem:[%s14632_s7 + $0x138] sm:$0xff]  ;;  %v4338_v18 = vld [vmem:[%s14632_s7 + $0x140] sm:$0xff] }
 0x522   :  { %v4012_v45 = vpop.permute.xlu1 %4011  ;;  %v4131_v26 = vsel %vm2840_vm11, %v4118_v42, %v12771_v50  ;;  %v4093_v13 = vsel %vm2798_vm5, %v4080_v59, %v12798_v30  ;;  %v4259_v50 = vsel %vm2313_vm10, %v4257_v19, %v4258_v49  ;;  %v4335_v30 = vld [vmem:[%s14632_s7 + $0x128] sm:$0xff]  ;;  %v4336_v19 = vld [vmem:[%s14632_s7 + $0x130] sm:$0xff] }
 0x523   :  { %v4106_v38 = vsel %vm2812_vm6, %v4093_v13, %v12826_v52  ;;  %v4260_v23 = vrot.slane %v4131_v26, 2  ;;  %v4055_v52 = vsel %vm2756_vm2, %v4042_v55, %v12803_v39  ;;  %v4384_v14 = vmul.f32 %v4335_v30, %v4259_v50 }
 0x524   :  { %3773 = vrot.lane.b32.xlu1 %v15774_v2, %s8374_s25  ;;  %7938 = vmatmul.mubr.msk.f32.gmra.mrb[68].mxu1 %vm4405_vm12, %v4381_v10  ;;  %v4119_v31 = vsel %vm2826_vm9, %v4106_v38, %v3978_v8  ;;  %v4068_v8 = vsel %vm2770_vm3, %v4055_v52, %v12838_v63 }
 0x525   :  { %3848 = vrot.lane.b32.xlu0 %v15776_v62, %s8379_s19  ;;  %7940 = vmatprep.mubr.msk.f32.mxu1 %vm8383_vm0, %v15404_v7  ;;  %v3799_v57 = vpop.permute.xlu0 %3798  ;;  %v4132_v34 = vsel %vm2840_vm11, %v4119_v31, %v4012_v45  ;;  %v4261_v3 = vsel %vm2313_vm10, %v4258_v49, %v4260_v23  ;;  %v4081_v36 = vsel %vm2784_vm4, %v4068_v8, %v12868_v33 }
 0x526   :  { %v3911_v12 = vpop.permute.xlu1 %3910  ;;  %v4262_v10 = vrot.slane %v4132_v34, 2  ;;  %v4043_v33 = vsel %vm2742_vm1, %v15779_v47, %v3760_v60  ;;  %v4385_v22 = vmul.f32 %v4336_v19, %v4261_v3 }
 0x527   :  { %v4094_v39 = vsel %vm2798_vm5, %v4081_v36, %v3911_v12  ;;  %v4056_v2 = vsel %vm2756_vm2, %v4043_v33, %v3799_v57 }
 0x528   :  { %3887 = vrot.lane.b32.xlu1 %v15777_v46, %s8378_s18  ;;  %7941 = vmatmul.mubr.msk.f32.gmra.mrb[70].mxu1 %vm4405_vm12, %v4382_v17  ;;  %v4263_v40 = vsel %vm2313_vm10, %v4260_v23, %v4262_v10 }
 0x529   :  { %5251 = vrot.lane.b32.xlu0 %v15404_v7, %s8378_s18  ;;  %7943 = vmatprep.mubr.msk.f32.mxu1 %vm8383_vm0, %v15404_v7  ;;  %v3835_v16 = vpop.permute.xlu0 %3834  ;;  %v4386_v12 = vmul.f32 %v4337_v44, %v4263_v40 }
 0x52a   :  { %v3947_v5 = vpop.permute.xlu1 %3946  ;;  %v4069_v62 = vsel %vm2770_vm3, %v4056_v2, %v3835_v16  ;;  %v4340_v2 = vld [vmem:[%s14632_s7 + $0x150] sm:$0xff] }
 0x52b   :  { %v4107_v27 = vsel %vm2812_vm6, %v4094_v39, %v3947_v5  ;;  %v4339_v5 = vld [vmem:[%s14632_s7 + $0x148] sm:$0xff] }
 0x52c   :  { %7944 = vmatmul.mubr.msk.f32.gmra.mrb[72].mxu1 %vm4405_vm12, %v4383_v25 }
 0x52d   :  { %7946 = vmatprep.mubr.msk.f32.mxu1 %vm8383_vm0, %v15404_v7  ;;  %v3874_v45 = vpop.permute.xlu0 %3873 }
 0x52e   :  { %v3980_v43 = vpop.permute.xlu1 %3979  ;;  %v4082_v60 = vsel %vm2784_vm4, %v4069_v62, %v3874_v45 }
 0x52f   :  { %v4120_v4 = vsel %vm2826_vm9, %v4107_v27, %v3980_v43 }
 0x530   :  { %7947 = vmatmul.mubr.msk.f32.gmra.mrb[74].mxu1 %vm4405_vm12, %v4384_v14 }
 0x531   :  { %v12974_v63 = vpop.f32.mrb[8].mxu1  ;;  %7949 = vmatprep.mubr.msk.f32.mxu1 %vm8383_vm0, %v15404_v7  ;;  %v3913_v6 = vpop.permute.xlu0 %3912 }
 0x532   :  { %v7849_v41 = vpop.f32.mrb[9].mxu1  ;;  %v4014_v11 = vpop.permute.xlu1 %4013  ;;  %v4095_v58 = vsel %vm2798_vm5, %v4082_v60, %v3913_v6 }
 0x533   :  { %v4133_v51 = vsel %vm2840_vm11, %v4120_v4, %v4014_v11 }
 0x534   :  { %v4264_v28 = vrot.slane %v4133_v51, 2  ;;  %7950 = vmatmul.mubr.msk.f32.gmra.mrb[76].mxu1 %vm4405_vm12, %v4385_v22 }
 0x535   :  { %7952 = vmatprep.mubr.msk.f32.mxu1 %vm8383_vm0, %v15404_v7 }
 0x536   :  { %v3949_v0 = vpop.permute.xlu1 %3948  ;;  %v4265_v17 = vsel %vm2313_vm10, %v4262_v10, %v4264_v28 }
 0x537   :  { %v3982_v54 = vpop.permute.xlu0 %3981  ;;  %v4108_v49 = vsel %vm2812_vm6, %v4095_v58, %v3949_v0  ;;  %v4387_v26 = vmul.f32 %v4338_v18, %v4265_v17 }
 0x538   :  { %7953 = vmatmul.mubr.msk.f32.gmra.mrb[78].mxu1 %vm4405_vm12, %v4386_v12  ;;  %v4121_v37 = vsel %vm2826_vm9, %v4108_v49, %v3982_v54 }
 0x539   :  { %v12999_v42 = vpop.f32.mrb[10].mxu1  ;;  %7955 = vmatprep.mubr.msk.f32.mxu1 %vm8383_vm0, %v15404_v7 }
 0x53a   :  { %v7852_v57 = vpop.f32.mrb[11].mxu1  ;;  %v4016_v59 = vpop.permute.xlu1 %4015 }
 0x53b   :  { %v3762_v46 = vpop.permute.xlu0 %3761  ;;  %v4134_v13 = vsel %vm2840_vm11, %v4121_v37, %v4016_v59  ;;  %v4341_v57 = vld [vmem:[%s14632_s7 + $0x158] sm:$0xff] }
 0x53c   :  { %v4266_v38 = vrot.slane %v4134_v13, 2  ;;  %7956 = vmatmul.mubr.msk.f32.gmra.mrb[80].mxu1 %vm4405_vm12, %v4387_v26  ;;  %v4044_v34 = vsel %vm2742_vm1, %v15573_v48, %v3762_v46 }
 0x53d   :  { %7958 = vmatprep.mubr.msk.f32.mxu1 %vm8383_vm0, %v15404_v7 }
 0x53e   :  { %v4267_v25 = vsel %vm2313_vm10, %v4264_v28, %v4266_v38  ;;  %v3801_v50 = vpop.permute.xlu1 %3800 }
 0x53f   :  { %v3837_v23 = vpop.permute.xlu0 %3836  ;;  %v4388_v31 = vmul.f32 %v4339_v5, %v4267_v25  ;;  %v4057_v8 = vsel %vm2756_vm2, %v4044_v34, %v3801_v50  ;;  %v5628_v50 = vld [vmem:[%s14630_s5] sm:$0xff]  ;;  %v15780_v34 = vmov 0.0|0.0  }
 0x540   :  { %v4070_v14 = vsel %vm2770_vm3, %v4057_v8, %v3837_v23  ;;  %v5629_v23 = vld [vmem:[%s14630_s5 + $0x8] sm:$0xff] }
 0x541   :  { %7959 = vmatmul.mubr.msk.f32.gmra.mrb[82].mxu1 %vm4405_vm12, %v4388_v31  ;;  %v8012_v31 = vpack.c.bf16 %v5629_v23, %v5628_v50 }
 0x542   :  { %v3876_v16 = vpop.permute.xlu1 %3875  ;;  %7961 = vmatprep.mubr.msk.f32.mxu1 %vm8383_vm0, %v15404_v7 }
 0x543   :  { %v3764_v30 = vpop.permute.xlu0 %3763  ;;  %v4083_v36 = vsel %vm2784_vm4, %v4070_v14, %v3876_v16  ;;  %8013 = vmatpush1.bf16.msra.mxu1 %v8012_v31 }
 0x544   :  { %v4045_v27 = vsel %vm2742_vm1, %v15594_v20, %v3764_v30  ;;  %8014 = vmatprep.subr.bf16.mxu1 %v15780_v34 }
 0x546   :  { %v3915_v9 = vpop.permute.xlu1 %3914 }
 0x547   :  { %v3803_v55 = vpop.permute.xlu0 %3802  ;;  %v4096_v45 = vsel %vm2798_vm5, %v4083_v36, %v3915_v9 }
 0x548   :  { %v4058_v4 = vsel %vm2756_vm2, %v4045_v27, %v3803_v55 }
 0x54a   :  { %v3951_v52 = vpop.permute.xlu1 %3950 }
 0x54b   :  { %v3839_v43 = vpop.permute.xlu0 %3838  ;;  %v4109_v19 = vsel %vm2812_vm6, %v4096_v45, %v3951_v52 }
 0x54c   :  { %v4071_v22 = vsel %vm2770_vm3, %v4058_v4, %v3839_v43 }
 0x54e   :  { %v3984_v3 = vpop.permute.xlu1 %3983 }
 0x54f   :  { %v3878_v10 = vpop.permute.xlu0 %3877  ;;  %v4122_v48 = vsel %vm2826_vm9, %v4109_v19, %v3984_v3 }
 0x550   :  { %v4084_v6 = vsel %vm2784_vm4, %v4071_v22, %v3878_v10 }
 0x551   :  { %v13022_v39 = vpop.f32.mrb[12].mxu1 }
 0x552   :  { %v7855_v47 = vpop.f32.mrb[13].mxu1  ;;  %v4018_v33 = vpop.permute.xlu1 %4017 }
 0x553   :  { %v3917_v41 = vpop.permute.xlu0 %3916  ;;  %v4135_v11 = vsel %vm2840_vm11, %v4122_v48, %v4018_v33 }
 0x554   :  { %v4268_v40 = vrot.slane %v4135_v11, 2  ;;  %v4097_v20 = vsel %vm2798_vm5, %v4084_v6, %v3917_v41  ;;  %v4342_v11 = vld [vmem:[%s14632_s7 + $0x160] sm:$0xff] }
 0x556   :  { %v4269_v51 = vsel %vm2313_vm10, %v4266_v38, %v4268_v40  ;;  %v3953_v44 = vpop.permute.xlu1 %3952 }
 0x557   :  { %v3986_v62 = vpop.permute.xlu0 %3985  ;;  %v4110_v28 = vsel %vm2812_vm6, %v4097_v20, %v3953_v44  ;;  %v4389_v60 = vmul.f32 %v4340_v2, %v4269_v51 }
 0x558   :  { %v4123_v12 = vsel %vm2826_vm9, %v4110_v28, %v3986_v62 }
 0x559   :  { %v13037_v58 = vpop.f32.mrb[14].mxu1  ;;  %7962 = vmatmul.mubr.msk.f32.gmra.mrb[84].mxu1 %vm4405_vm12, %v4389_v60 }
 0x55a   :  { %v7858_v0 = vpop.f32.mrb[15].mxu1  ;;  %v4020_v17 = vpop.permute.xlu1 %4019  ;;  %7964 = vmatprep.mubr.msk.f32.mxu1 %vm8383_vm0, %v15404_v7 }
 0x55b   :  { %v3766_v54 = vpop.permute.xlu0 %3765  ;;  %v4136_v49 = vsel %vm2840_vm11, %v4123_v12, %v4020_v17 }
 0x55c   :  { %v4270_v18 = vrot.slane %v4136_v49, 2  ;;  %v4046_v16 = vsel %vm2742_vm1, %v15646_v15, %v3766_v54  ;;  %v4343_v54 = vld [vmem:[%s14632_s7 + $0x168] sm:$0xff]  ;;  %v5630_v49 = vld [vmem:[%s14630_s5 + $0x10] sm:$0xff] }
 0x55e   :  { %v4271_v37 = vsel %vm2313_vm10, %v4268_v40, %v4270_v18  ;;  %v3805_v59 = vpop.permute.xlu1 %3804 }
 0x55f   :  { %v3841_v26 = vpop.permute.xlu0 %3840  ;;  %v4390_v46 = vmul.f32 %v4341_v57, %v4271_v37  ;;  %v4059_v9 = vsel %vm2756_vm2, %v4046_v16, %v3805_v59 }
 0x560   :  { %v4072_v52 = vsel %vm2770_vm3, %v4059_v9, %v3841_v26 }
 0x561   :  { %7965 = vmatmul.mubr.msk.f32.gmra.mrb[86].mxu1 %vm4405_vm12, %v4390_v46 }
 0x562   :  { %v3880_v13 = vpop.permute.xlu1 %3879  ;;  %7967 = vmatprep.mubr.msk.f32.mxu1 %vm8383_vm0, %v15404_v7 }
 0x563   :  { %v3768_v38 = vpop.permute.xlu0 %3767  ;;  %v4085_v43 = vsel %vm2784_vm4, %v4072_v52, %v3880_v13 }
 0x564   :  { %v4047_v15 = vsel %vm2742_vm1, %v15665_v35, %v3768_v38 }
 0x566   :  { %v3919_v5 = vpop.permute.xlu1 %3918 }
 0x567   :  { %v3807_v25 = vpop.permute.xlu0 %3806  ;;  %v4098_v3 = vsel %vm2798_vm5, %v4085_v43, %v3919_v5 }
 0x568   :  { %v4060_v48 = vsel %vm2756_vm2, %v4047_v15, %v3807_v25 }
 0x56a   :  { %v3955_v30 = vpop.permute.xlu1 %3954 }
 0x56b   :  { %v3843_v55 = vpop.permute.xlu0 %3842  ;;  %v4111_v36 = vsel %vm2812_vm6, %v4098_v3, %v3955_v30 }
 0x56c   :  { %v4073_v4 = vsel %vm2770_vm3, %v4060_v48, %v3843_v55 }
 0x56e   :  { %v3988_v8 = vpop.permute.xlu1 %3987 }
 0x56f   :  { %v3882_v14 = vpop.permute.xlu0 %3881  ;;  %v4124_v45 = vsel %vm2826_vm9, %v4111_v36, %v3988_v8 }
 0x570   :  { %v4086_v22 = vsel %vm2784_vm4, %v4073_v4, %v3882_v14 }
 0x571   :  { %v13065_v10 = vpop.f32.mrb[16].mxu1 }
 0x572   :  { %v7861_v19 = vpop.f32.mrb[17].mxu1  ;;  %v4022_v27 = vpop.permute.xlu1 %4021 }
 0x573   :  { %v3921_v47 = vpop.permute.xlu0 %3920  ;;  %v4137_v33 = vsel %vm2840_vm11, %v4124_v45, %v4022_v27 }
 0x574   :  { %v4272_v41 = vrot.slane %v4137_v33, 2  ;;  %v4099_v35 = vsel %vm2798_vm5, %v4086_v22, %v3921_v47 }
 0x576   :  { %v4273_v40 = vsel %vm2313_vm10, %v4270_v18, %v4272_v41  ;;  %v3957_v2 = vpop.permute.xlu1 %3956  ;;  %v5631_v18 = vld [vmem:[%s14630_s5 + $0x18] sm:$0xff] }
 0x577   :  { %v3990_v6 = vpop.permute.xlu0 %3989  ;;  %v4112_v20 = vsel %vm2812_vm6, %v4099_v35, %v3957_v2  ;;  %v4391_v51 = vmul.f32 %v4342_v11, %v4273_v40  ;;  %v8015_v57 = vpack.c.bf16 %v5631_v18, %v5630_v49  ;;  %v15782_v18 = vld [vmem:[#allocation96_spill] sm:$0xff] }
 0x578   :  { %v4125_v28 = vsel %vm2826_vm9, %v4112_v20, %v3990_v6 }
 0x579   :  { %v13080_v44 = vpop.f32.mrb[18].mxu1  ;;  %7968 = vmatmul.mubr.msk.f32.gmra.mrb[88].mxu1 %vm4405_vm12, %v4391_v51  ;;  %v15781_v51 = vld [vmem:[#allocation94_spill] sm:$0xff] }
 0x57a   :  { %v7864_v62 = vpop.f32.mrb[19].mxu1  ;;  %v4024_v60 = vpop.permute.xlu1 %4023  ;;  %7970 = vmatprep.mubr.msk.f32.mxu1 %vm8383_vm0, %v15404_v7  ;;  %8016 = vmatpush1.bf16.msra.mxu1 %v8015_v57 }
 0x57b   :  { %v3770_v0 = vpop.permute.xlu0 %3769  ;;  %v4138_v12 = vsel %vm2840_vm11, %v4125_v28, %v4024_v60  ;;  %8017 = vmatprep.subr.bf16.mxu1 %v15780_v34  ;;  %v4345_v60 = vld [vmem:[%s14632_s7 + $0x178] sm:$0xff] }
 0x57c   :  { %v4274_v17 = vrot.slane %v4138_v12, 2  ;;  %v4048_v50 = vsel %vm2742_vm1, %v15716_v32, %v3770_v0 }
 0x57e   :  { %v4275_v37 = vsel %vm2313_vm10, %v4272_v41, %v4274_v17  ;;  %v3809_v59 = vpop.permute.xlu1 %3808 }
 0x57f   :  { %v3845_v26 = vpop.permute.xlu0 %3844  ;;  %v4392_v46 = vmul.f32 %v4343_v54, %v4275_v37  ;;  %v4061_v31 = vsel %vm2756_vm2, %v4048_v50, %v3809_v59 }
 0x580   :  { %v4074_v30 = vsel %vm2770_vm3, %v4061_v31, %v3845_v26 }
 0x581   :  { %7971 = vmatmul.mubr.msk.f32.gmra.mrb[90].mxu1 %vm4405_vm12, %v4392_v46 }
 0x582   :  { %v3884_v13 = vpop.permute.xlu1 %3883  ;;  %7973 = vmatprep.mubr.msk.f32.mxu1 %vm8383_vm0, %v15404_v7 }
 0x583   :  { %v3772_v38 = vpop.permute.xlu0 %3771  ;;  %v4087_v55 = vsel %vm2784_vm4, %v4074_v30, %v3884_v13 }
 0x584   :  { %v4049_v8 = vsel %vm2742_vm1, %v15735_v56, %v3772_v38  ;;  %v4344_v56 = vld [vmem:[%s14632_s7 + $0x170] sm:$0xff] }
 0x586   :  { %v3923_v5 = vpop.permute.xlu1 %3922 }
 0x587   :  { %v3811_v25 = vpop.permute.xlu0 %3810  ;;  %v4100_v43 = vsel %vm2798_vm5, %v4087_v55, %v3923_v5 }
 0x588   :  { %v4062_v14 = vsel %vm2756_vm2, %v4049_v8, %v3811_v25  ;;  %v4346_v25 = vld [vmem:[%s14632_s7 + $0x180] sm:$0xff]  ;;  %v5635_v8 = vld [vmem:[%s14630_s5 + $0x38] sm:$0xff] }
 0x58a   :  { %v3959_v23 = vpop.permute.xlu1 %3958 }
 0x58b   :  { %v3847_v16 = vpop.permute.xlu0 %3846  ;;  %v4113_v3 = vsel %vm2812_vm6, %v4100_v43, %v3959_v23  ;;  %v15783_v43 = vld [vmem:[#allocation88_spill] sm:$0xff] }
 0x58c   :  { %v4075_v32 = vsel %vm2770_vm3, %v4062_v14, %v3847_v16 }
 0x58e   :  { %v3992_v9 = vpop.permute.xlu1 %3991 }
 0x58f   :  { %v3886_v52 = vpop.permute.xlu0 %3885  ;;  %v4126_v36 = vsel %vm2826_vm9, %v4113_v3, %v3992_v9 }
 0x590   :  { %v4088_v45 = vsel %vm2784_vm4, %v4075_v32, %v3886_v52  ;;  %v5634_v52 = vld [vmem:[%s14630_s5 + $0x30] sm:$0xff] }
 0x591   :  { %v8021_v32 = vpack.c.bf16 %v5635_v8, %v5634_v52 }
 0x592   :  { %v4026_v15 = vpop.permute.xlu1 %4025 }
 0x593   :  { %v3925_v19 = vpop.permute.xlu0 %3924  ;;  %v4139_v27 = vsel %vm2840_vm11, %v4126_v36, %v4026_v15 }
 0x594   :  { %v4101_v48 = vsel %vm2798_vm5, %v4088_v45, %v3925_v19  ;;  %v4276_v47 = vrot.slane %v4139_v27, 2  ;;  %v15784_v19 = vld [vmem:[#allocation37_spill] sm:$0xff] }
 0x595   :  { %v4114_v33 = vsel %vm2812_vm6, %v4101_v48, %v12211_v1 }
 0x596   :  { %v4127_v4 = vsel %vm2826_vm9, %v4114_v33, %v12185_v21  ;;  %v4277_v41 = vsel %vm2313_vm10, %v4274_v17, %v4276_v47  ;;  %v3774_v11 = vpop.permute.xlu1 %3773 }
 0x597   :  { %v4140_v22 = vsel %vm2840_vm11, %v4127_v4, %v15680_v29  ;;  %v4050_v35 = vsel %vm2742_vm1, %v15771_v24, %v3774_v11  ;;  %v13128_v40 = vpop.f32.mrb[20].mxu1  ;;  %v4393_v2 = vmul.f32 %v4344_v56, %v4277_v41  ;;  %v3849_v20 = vpop.permute.xlu0 %3848 }
 0x598   :  { %v4278_v6 = vrot.slane %v4140_v22, 2  ;;  %v4063_v62 = vsel %vm2756_vm2, %v4050_v35, %v15781_v51  ;;  %v7867_v28 = vpop.f32.mrb[21].mxu1 }
 0x599   :  { %7974 = vmatmul.mubr.msk.f32.gmra.mrb[92].mxu1 %vm4405_vm12, %v4393_v2  ;;  %v4076_v0 = vsel %vm2770_vm3, %v4063_v62, %v3849_v20 }
 0x59a   :  { %v4279_v12 = vsel %vm2313_vm10, %v4276_v47, %v4278_v6  ;;  %v3888_v24 = vpop.permute.xlu1 %3887  ;;  %7976 = vmatprep.mubr.msk.f32.mxu1 %vm8383_vm0, %v15404_v7 }
 0x59b   :  { %v4089_v17 = vsel %vm2784_vm4, %v4076_v0, %v3888_v24  ;;  %v13141_v54 = vpop.f32.mrb[22].mxu1  ;;  %v4394_v49 = vmul.f32 %v4345_v60, %v4279_v12 }
 0x59c   :  { %v4102_v57 = vsel %vm2798_vm5, %v4089_v17, %v15782_v18  ;;  %v7870_v37 = vpop.f32.mrb[23].mxu1 }
 0x59d   :  { %v4115_v59 = vsel %vm2812_vm6, %v4102_v57, %v12211_v1  ;;  %7977 = vmatmul.mubr.msk.f32.gmra.mrb[94].mxu1 %vm4405_vm12, %v4394_v49  ;;  %v5632_v1 = vld [vmem:[%s14630_s5 + $0x20] sm:$0xff] }
 0x59e   :  { %v4128_v26 = vsel %vm2826_vm9, %v4115_v59, %v12185_v21  ;;  %7979 = vmatprep.mubr.msk.f32.mxu1 %vm8383_vm0, %v15404_v7  ;;  %v5633_v21 = vld [vmem:[%s14630_s5 + $0x28] sm:$0xff] }
 0x59f   :  { %v4141_v46 = vsel %vm2840_vm11, %v4128_v26, %v15680_v29  ;;  %v13154_v13 = vpop.f32.mrb[24].mxu1  ;;  %v8018_v23 = vpack.c.bf16 %v5633_v21, %v5632_v1  ;;  %v5637_v1 = vld [vmem:[%s14630_s5 + $0x48] sm:$0xff] }
 0x5a0   :  { %v4280_v38 = vrot.slane %v4141_v46, 2  ;;  %v7873_v5 = vpop.f32.mrb[25].mxu1  ;;  %v4876_v16 = vrot.slane %v13154_v13, 2 }
 0x5a1   :  { %8019 = vmatpush1.bf16.msra.mxu1 %v8018_v23 }
 0x5a2   :  { %v4281_v50 = vsel %vm2313_vm10, %v4278_v6, %v4280_v38  ;;  %8020 = vmatprep.subr.bf16.mxu1 %v15780_v34 }
 0x5a3   :  { %v4684_v29 = vpop.f32.mrb[26].mxu1  ;;  %v4395_v31 = vmul.f32 %v4346_v25, %v4281_v50  ;;  %v5636_v25 = vld [vmem:[%s14630_s5 + $0x40] sm:$0xff] }
 0x5a4   :  { %v4877_v30 = vrot.slane %v4684_v29, 2  ;;  %v7876_v9 = vpop.f32.mrb[27].mxu1  ;;  %v8024_v50 = vpack.c.bf16 %v5637_v1, %v5636_v25  ;;  %v5638_v25 = vld [vmem:[%s14630_s5 + $0x50] sm:$0xff] }
 0x5a5   :  { %7980 = vmatmul.mubr.msk.f32.gmra.mrb[96].mxu1 %vm4405_vm12, %v4395_v31 }
 0x5a6   :  { %v13170_v55 = vsel %vm2313_vm10, %v4876_v16, %v4877_v30  ;;  %8022 = vmatpush1.bf16.msra.mxu1 %v8021_v32 }
 0x5a7   :  { %v4914_v14 = vmax.f32 %v15783_v43, %v13170_v55  ;;  %v4689_v3 = vpop.f32.mrb[28].mxu1  ;;  %8023 = vmatprep.subr.bf16.mxu1 %v15780_v34 }
 0x5a8   :  { %v4879_v36 = vrot.slane %v4689_v3, 2  ;;  %v7879_v15 = vpop.f32.mrb[29].mxu1 }
 0x5aa   :  { %v13181_v45 = vsel %vm2313_vm10, %v4877_v30, %v4879_v36  ;;  %8025 = vmatpush1.bf16.msra.mxu1 %v8024_v50 }
 0x5ab   :  { %v4915_v27 = vmax.f32 %v15784_v19, %v13181_v45  ;;  %v4694_v48 = vpop.f32.mrb[30].mxu1  ;;  %8026 = vmatprep.subr.bf16.mxu1 %v15780_v34  ;;  %v5645_v45 = vld [vmem:[%s14630_s5 + $0x88] sm:$0xff] }
 0x5ac   :  { %v4881_v47 = vrot.slane %v4694_v48, 2  ;;  %v7882_v56 = vpop.f32.mrb[31].mxu1 }
 0x5ae   :  { %v13187_v33 = vsel %vm2313_vm10, %v4879_v36, %v4881_v47 }
 0x5af   :  { %v4916_v4 = vmax.f32 %v12805_v53, %v13187_v33  ;;  %v4699_v41 = vpop.f32.mrb[32].mxu1 }
 0x5b0   :  { %v4883_v11 = vrot.slane %v4699_v41, 2  ;;  %v7885_v22 = vpop.f32.mrb[33].mxu1 }
 0x5b2   :  { %v13192_v35 = vsel %vm2313_vm10, %v4881_v47, %v4883_v11 }
 0x5b3   :  { %v4917_v2 = vmax.f32 %v12840_v61, %v13192_v35  ;;  %v4704_v6 = vpop.f32.mrb[34].mxu1 }
 0x5b4   :  { %v4885_v20 = vrot.slane %v4704_v6, 2  ;;  %v7888_v62 = vpop.f32.mrb[35].mxu1 }
 0x5b6   :  { %v13197_v28 = vsel %vm2313_vm10, %v4883_v11, %v4885_v20 }
 0x5b7   :  { %v4918_v60 = vmax.f32 %v12974_v63, %v13197_v28  ;;  %v4709_v0 = vpop.f32.mrb[36].mxu1 }
 0x5b8   :  { %v4887_v12 = vrot.slane %v4709_v0, 2  ;;  %v7891_v24 = vpop.f32.mrb[37].mxu1 }
 0x5ba   :  { %v13202_v17 = vsel %vm2313_vm10, %v4885_v20, %v4887_v12 }
 0x5bb   :  { %v4714_v18 = vpop.f32.mrb[38].mxu1 }
 0x5bc   :  { %v4889_v57 = vrot.slane %v4714_v18, 2  ;;  %v7894_v37 = vpop.f32.mrb[39].mxu1 }
 0x5be   :  { %v13207_v59 = vsel %vm2313_vm10, %v4887_v12, %v4889_v57 }
 0x5bf   :  { %v4719_v46 = vpop.f32.mrb[40].mxu1 }
 0x5c0   :  { %v4891_v38 = vrot.slane %v4719_v46, 2  ;;  %v7897_v5 = vpop.f32.mrb[41].mxu1 }
 0x5c2   :  { %v13218_v21 = vsel %vm2313_vm10, %v4889_v57, %v4891_v38 }
 0x5c3   :  { %v4724_v29 = vpop.f32.mrb[42].mxu1 }
 0x5c4   :  { %v4893_v31 = vrot.slane %v4724_v29, 2  ;;  %v7900_v16 = vpop.f32.mrb[43].mxu1 }
 0x5c6   :  { %v13224_v30 = vsel %vm2313_vm10, %v4891_v38, %v4893_v31 }
 0x5c7   :  { %v4729_v52 = vpop.f32.mrb[44].mxu1 }
 0x5c8   :  { %v4895_v8 = vrot.slane %v4729_v52, 2  ;;  %v7903_v3 = vpop.f32.mrb[45].mxu1  ;;  %v5640_v52 = vld [vmem:[%s14630_s5 + $0x60] sm:$0xff] }
 0x5ca   :  { %v13229_v32 = vsel %vm2313_vm10, %v4893_v31, %v4895_v8 }
 0x5cb   :  { %v4734_v15 = vpop.f32.mrb[46].mxu1 }
 0x5cc   :  { %v4897_v48 = vrot.slane %v4734_v15, 2  ;;  %v7906_v47 = vpop.f32.mrb[47].mxu1 }
 0x5ce   :  { %v13234_v56 = vsel %vm2313_vm10, %v4895_v8, %v4897_v48  ;;  %v5641_v8 = vld [vmem:[%s14630_s5 + $0x68] sm:$0xff] }
 0x5cf   :  { %v4739_v11 = vpop.f32.mrb[48].mxu1  ;;  %v8030_v15 = vpack.c.bf16 %v5641_v8, %v5640_v52 }
 0x5d0   :  { %v4899_v22 = vrot.slane %v4739_v11, 2  ;;  %v7909_v6 = vpop.f32.mrb[49].mxu1 }
 0x5d2   :  { %v13239_v20 = vsel %vm2313_vm10, %v4897_v48, %v4899_v22  ;;  %v13242_v62 = vmax.f32 %v13154_v13, %v4899_v22  ;;  %v5639_v13 = vld [vmem:[%s14630_s5 + $0x58] sm:$0xff] }
 0x5d3   :  { %v4744_v12 = vpop.f32.mrb[50].mxu1  ;;  %v8027_v1 = vpack.c.bf16 %v5639_v13, %v5638_v25 }
 0x5d4   :  { %v7912_v24 = vpop.f32.mrb[51].mxu1 }
 0x5d5   :  { %8028 = vmatpush1.bf16.msra.mxu1 %v8027_v1 }
 0x5d6   :  { %8029 = vmatprep.subr.bf16.mxu1 %v15780_v34 }
 0x5d7   :  { %v4749_v18 = vpop.f32.mrb[52].mxu1 }
 0x5d8   :  { %v7915_v57 = vpop.f32.mrb[53].mxu1 }
 0x5d9   :  { %8031 = vmatpush1.bf16.msra.mxu1 %v8030_v15  ;;  %v5642_v15 = vld [vmem:[%s14630_s5 + $0x70] sm:$0xff] }
 0x5da   :  { %8032 = vmatprep.subr.bf16.mxu1 %v15780_v34 }
 0x5db   :  { %v13246_v37 = vpop.f32.mrb[54].mxu1 }
 0x5dc   :  { %v7918_v46 = vpop.f32.mrb[55].mxu1 }
 0x5df   :  { %v13248_v38 = vpop.f32.mrb[56].mxu1 }
 0x5e0   :  { %v7921_v5 = vpop.f32.mrb[57].mxu1 }
 0x5e3   :  { %v13256_v50 = vpop.f32.mrb[58].mxu1 }
 0x5e4   :  { %v7924_v29 = vpop.f32.mrb[59].mxu1 }
 0x5e7   :  { %v13259_v31 = vpop.f32.mrb[60].mxu1 }
 0x5e8   :  { %v7927_v16 = vpop.f32.mrb[61].mxu1 }
 0x5eb   :  { %v13267_v3 = vpop.f32.mrb[62].mxu1 }
 0x5ec   :  { %v7930_v48 = vpop.f32.mrb[63].mxu1 }
 0x5ed   :  { %v5643_v48 = vld [vmem:[%s14630_s5 + $0x78] sm:$0xff] }
 0x5ef   :  { %v13270_v47 = vpop.f32.mrb[64].mxu1 }
 0x5f0   :  { %v7933_v22 = vpop.f32.mrb[65].mxu1 }
 0x5f3   :  { %v13272_v6 = vpop.f32.mrb[66].mxu1 }
 0x5f4   :  { %v7936_v24 = vpop.f32.mrb[67].mxu1 }
 0x5f5   :  { %v8033_v24 = vpack.c.bf16 %v5643_v48, %v5642_v15 }
 0x5f7   :  { %v13274_v57 = vpop.f32.mrb[68].mxu1  ;;  %8034 = vmatpush1.bf16.msra.mxu1 %v8033_v24 }
 0x5f8   :  { %v7939_v46 = vpop.f32.mrb[69].mxu1  ;;  %8035 = vmatprep.subr.bf16.mxu1 %v15780_v34 }
 0x5fb   :  { %v13276_v5 = vpop.f32.mrb[70].mxu1 }
 0x5fc   :  { %v7942_v25 = vpop.f32.mrb[71].mxu1 }
 0x5ff   :  { %v13278_v13 = vpop.f32.mrb[72].mxu1 }
 0x600   :  { %v7945_v1 = vpop.f32.mrb[73].mxu1  ;;  %v4940_v16 = vrot.slane %v13278_v13, 2 }
 0x603   :  { %v4804_v29 = vpop.f32.mrb[74].mxu1 }
 0x604   :  { %v4941_v52 = vrot.slane %v4804_v29, 2  ;;  %v7948_v8 = vpop.f32.mrb[75].mxu1 }
 0x606   :  { %v4942_v22 = vsel %vm2313_vm10, %v4940_v16, %v4941_v52 }
 0x607   :  { %v4978_v46 = vmax.f32 %v4739_v11, %v4942_v22  ;;  %v4809_v25 = vpop.f32.mrb[76].mxu1  ;;  %v13295_v11 = vld [vmem:[%s14629_s4] ss:$0 sm:$0xff] }
 0x608   :  { %v4943_v0 = vrot.slane %v4809_v25, 2  ;;  %v7951_v1 = vpop.f32.mrb[77].mxu1 }
 0x609   :  { %v5004_v23 = vrot.slane %v4978_v46, 4 }
 0x60a   :  { %v4944_v29 = vsel %vm2313_vm10, %v4941_v52, %v4943_v0 }
 0x60b   :  { %v4979_v8 = vmax.f32 %v4744_v12, %v4944_v29  ;;  %v4814_v41 = vpop.f32.mrb[78].mxu1 }
 0x60c   :  { %v4945_v36 = vrot.slane %v4814_v41, 2  ;;  %v7954_v9 = vpop.f32.mrb[79].mxu1 }
 0x60d   :  { %v5005_v26 = vrot.slane %v4979_v8, 4 }
 0x60e   :  { %v4946_v49 = vsel %vm2313_vm10, %v4943_v0, %v4945_v36 }
 0x60f   :  { %v5006_v16 = vsel %vm2319_vm7, %v5004_v23, %v5005_v26  ;;  %v4980_v15 = vmax.f32 %v4749_v18, %v4946_v49  ;;  %v4819_v48 = vpop.f32.mrb[80].mxu1 }
 0x610   :  { %v5042_v12 = vmax.f32 %v4914_v14, %v5006_v16  ;;  %v4947_v52 = vrot.slane %v4819_v48, 2  ;;  %v7957_v41 = vpop.f32.mrb[81].mxu1 }
 0x611   :  { %v5007_v9 = vrot.slane %v4980_v15, 4 }
 0x612   :  { %v4948_v22 = vsel %vm2313_vm10, %v4945_v36, %v4947_v52  ;;  %v5062_v0 = vadd.f32 %v13295_v11, %v5042_v12 }
 0x613   :  { %v5008_v23 = vsel %vm2319_vm7, %v5005_v26, %v5007_v9  ;;  %v4981_v49 = vmax.f32 %v13246_v37, %v4948_v22  ;;  %v5644_v26 = vld [vmem:[%s14630_s5 + $0x80] sm:$0xff] }
 0x614   :  { %v5043_v18 = vmax.f32 %v4915_v27, %v5008_v23  ;;  %v13307_v24 = vpop.f32.mrb[82].mxu1  ;;  %vm5075_vm13 = vcmp.gt.f32.partialorder %v5062_v0, 0.0  ;;  %v5088_v55 = vmul.f32 0.01, %v5062_v0  ;;  %v8036_v48 = vpack.c.bf16 %v5645_v45, %v5644_v26 }
 0x615   :  { %v5009_v43 = vrot.slane %v4981_v49, 4  ;;  %v4949_v14 = vrot.slane %v13307_v24, 2  ;;  %v7960_v46 = vpop.f32.mrb[83].mxu1 }
 0x616   :  { %v5063_v36 = vadd.f32 %v13295_v11, %v5043_v18  ;;  %v13311_v25 = vsel %vm5075_vm13, %v5062_v0, %v5088_v55  ;;  %8037 = vmatpush1.bf16.msra.mxu1 %v8036_v48 }
 0x617   :  { %v5010_v19 = vsel %vm2319_vm7, %v5007_v9, %v5009_v43  ;;  %v4950_v27 = vsel %vm2313_vm10, %v4947_v52, %v4949_v14  ;;  %5330 = vrot.lane.b32.xlu0 %v13311_v25, %s8375_s29  ;;  %v5172_v37 = vrot.slane %v13311_v25, 6  ;;  %v5125_v1 = vrot.slane %v13311_v25, 2 }
 0x618   :  { %v5089_v29 = vmul.f32 0.01, %v5063_v36  ;;  %v5044_v8 = vmax.f32 %v4916_v4, %v5010_v19  ;;  %v4982_v16 = vmax.f32 %v13248_v38, %v4950_v27  ;;  %vm5076_vm14 = vcmp.gt.f32.partialorder %v5063_v36, 0.0  ;;  %v5577_v4 = vld [vmem:[%s14633_s8 + $0x8] sm:$0xff] }
 0x619   :  { %v5196_v15 = vsel %vm2236_vm8, 0.0, %v5172_v37  ;;  %v5147_v33 = vsel %vm2313_vm10, 0.0, %v5125_v1  ;;  %v5148_v23 = vrot.slane %v13311_v25, 4 }
 0x61a   :  { %v5064_v12 = vadd.f32 %v13295_v11, %v5044_v8  ;;  %v5011_v52 = vrot.slane %v4982_v16, 4  ;;  %5291 = vrot.lane.b32.xlu1 %v5196_v15, %s8381_s23  ;;  %v13334_v41 = vsel %vm5076_vm14, %v5063_v36, %v5089_v29 }
 0x61b   :  { %v5126_v9 = vrot.slane %v13334_v41, 2  ;;  %v5149_v49 = vrot.slane %v13334_v41, 4  ;;  %v5170_v61 = vsel %vm2319_vm7, 0.0, %v5148_v23 }
 0x61c   :  { %vm5077_vm15 = vcmp.gt.f32.partialorder %v5064_v12, 0.0  ;;  %v5090_v22 = vmul.f32 0.01, %v5064_v12  ;;  %v5012_v53 = vsel %vm2319_vm7, %v5009_v43, %v5011_v52 }
 0x61d   :  { %v5045_v38 = vmax.f32 %v4917_v2, %v5012_v53  ;;  %v5127_v0 = vsel %vm2313_vm10, %v5125_v1, %v5126_v9  ;;  %v5150_v35 = vsel %vm2319_vm7, %v5148_v23, %v5149_v49  ;;  %v5173_v2 = vrot.slane %v13334_v41, 6 }
 0x61e   :  { %5214 = vrot.lane.b32.xlu1 %v5147_v33, %s8376_s13  ;;  %5369 = vrot.lane.b32.xlu0 %v5127_v0, %s8384_s26  ;;  %v13350_v18 = vsel %vm5077_vm15, %v5064_v12, %v5090_v22 }
 0x61f   :  { %v5603_v55 = vmul.f32 %v5577_v4, %v13350_v18  ;;  %v5151_v43 = vrot.slane %v13350_v18, 4  ;;  %v5065_v46 = vadd.f32 %v13295_v11, %v5045_v38  ;;  %v5174_v36 = vsel %vm2236_vm8, %v5172_v37, %v5173_v2 }
 0x620   :  { %v5175_v45 = vrot.slane %v13350_v18, 6  ;;  %v5128_v16 = vrot.slane %v13350_v18, 2 }
 0x621   :  { %7033 = vmatprep.mubr.msk.f32.mxu1 %vm2756_vm2, %v5603_v55  ;;  %v5152_v26 = vsel %vm2319_vm7, %v5149_v49, %v5151_v43  ;;  %v5091_v19 = vmul.f32 0.01, %v5065_v46  ;;  %vm5078_vm1 = vcmp.gt.f32.partialorder %v5065_v46, 0.0 }
 0x622   :  { %5253 = vrot.lane.b32.xlu1 %v5170_v61, %s8378_s18  ;;  %5255 = vrot.lane.b32.xlu0 %v5150_v35, %s8378_s18  ;;  %v5176_v8 = vsel %vm2236_vm8, %v5173_v2, %v5175_v45  ;;  %v5129_v12 = vsel %vm2313_vm10, %v5126_v9, %v5128_v16  ;;  %v15785_v35 = vmax.f32 %v12999_v42, %v13202_v17 }
 0x623   :  { %v13374_v37 = vsel %vm5078_vm1, %v5065_v46, %v5091_v19 }
 0x624   :  { %v5177_v22 = vrot.slane %v13374_v37, 6  ;;  %v5153_v53 = vrot.slane %v13374_v37, 4  ;;  %v5130_v24 = vrot.slane %v13374_v37, 2 }
 0x626   :  { %5332 = vrot.lane.b32.xlu1 %v13334_v41, %s8375_s29  ;;  %5334 = vrot.lane.b32.xlu0 %v13350_v18, %s8375_s29  ;;  %v5154_v23 = vsel %vm2319_vm7, %v5151_v43, %v5153_v53  ;;  %v5131_v61 = vsel %vm2313_vm10, %v5128_v16, %v5130_v24 }
 0x62a   :  { %5293 = vrot.lane.b32.xlu1 %v5174_v36, %s8381_s23  ;;  %5409 = vrot.lane.b32.xlu0 %v5152_v26, %s8385_s1 }
 0x62c   :  { %v4829_v27 = vpop.f32.mrb[84].mxu1 }
 0x62d   :  { %v4951_v1 = vrot.slane %v4829_v27, 2  ;;  %v7963_v29 = vpop.f32.mrb[85].mxu1 }
 0x62e   :  { %5216 = vrot.lane.b32.xlu1 %v5127_v0, %s8376_s13  ;;  %5446 = vrot.lane.b32.xlu0 %v5176_v8, %s8386_s3  ;;  %v5178_v0 = vsel %vm2236_vm8, %v5175_v45, %v5177_v22 }
 0x62f   :  { %v4952_v15 = vsel %vm2313_vm10, %v4949_v14, %v4951_v1 }
 0x630   :  { %v4983_v48 = vmax.f32 %v13256_v50, %v4952_v15 }
 0x632   :  { %v5013_v33 = vrot.slane %v4983_v48, 4  ;;  %5295 = vrot.lane.b32.xlu1 %v5176_v8, %s8381_s23  ;;  %5371 = vrot.lane.b32.xlu0 %v5129_v12, %s8384_s26 }
 0x634   :  { %v5014_v4 = vsel %vm2319_vm7, %v5011_v52, %v5013_v33  ;;  %v4834_v38 = vpop.f32.mrb[86].mxu1 }
 0x635   :  { %v5046_v50 = vmax.f32 %v4918_v60, %v5014_v4  ;;  %v4953_v14 = vrot.slane %v4834_v38, 2  ;;  %v7966_v9 = vpop.f32.mrb[87].mxu1 }
 0x636   :  { %5448 = vrot.lane.b32.xlu0 %v5178_v0, %s8386_s3  ;;  %5411 = vrot.lane.b32.xlu1 %v5154_v23, %s8385_s1 }
 0x637   :  { %v4954_v49 = vsel %vm2313_vm10, %v4951_v1, %v4953_v14  ;;  %v5066_v52 = vadd.f32 %v13295_v11, %v5046_v50 }
 0x638   :  { %v4984_v55 = vmax.f32 %v13259_v31, %v4954_v49 }
 0x639   :  { %v5092_v28 = vmul.f32 0.01, %v5066_v52  ;;  %vm5079_vm3 = vcmp.gt.f32.partialorder %v5066_v52, 0.0 }
 0x63a   :  { %v5015_v63 = vrot.slane %v4984_v55, 4  ;;  %5218 = vrot.lane.b32.xlu1 %v5129_v12, %s8376_s13  ;;  %5373 = vrot.lane.b32.xlu0 %v5131_v61, %s8384_s26 }
 0x63b   :  { %v13406_v31 = vsel %vm5079_vm3, %v5066_v52, %v5092_v28 }
 0x63c   :  { %v5016_v60 = vsel %vm2319_vm7, %v5013_v33, %v5015_v63  ;;  %v5155_v43 = vrot.slane %v13406_v31, 4  ;;  %v5179_v42 = vrot.slane %v13406_v31, 6  ;;  %v5132_v45 = vrot.slane %v13406_v31, 2 }
 0x63d   :  { %v5047_v2 = vmax.f32 %v15785_v35, %v5016_v60 }
 0x63e   :  { %5257 = vrot.lane.b32.xlu1 %v5152_v26, %s8378_s18  ;;  %5259 = vrot.lane.b32.xlu0 %v5154_v23, %s8378_s18  ;;  %v5156_v36 = vsel %vm2319_vm7, %v5153_v53, %v5155_v43  ;;  %v5180_v26 = vsel %vm2236_vm8, %v5177_v22, %v5179_v42  ;;  %v5133_v8 = vsel %vm2313_vm10, %v5130_v24, %v5132_v45 }
 0x63f   :  { %v5067_v46 = vadd.f32 %v13295_v11, %v5047_v2  ;;  %v15786_v24 = vmax.f32 %v13022_v39, %v13207_v59 }
 0x641   :  { %v5093_v17 = vmul.f32 0.01, %v5067_v46  ;;  %vm5080_vm5 = vcmp.gt.f32.partialorder %v5067_v46, 0.0 }
 0x642   :  { %5336 = vrot.lane.b32.xlu1 %v13374_v37, %s8375_s29  ;;  %5338 = vrot.lane.b32.xlu0 %v13406_v31, %s8375_s29 }
 0x643   :  { %v13422_v19 = vsel %vm5080_vm5, %v5067_v46, %v5093_v17  ;;  %vm5534_vm5 = vcmask 654336  }
 0x644   :  { %v5181_v16 = vrot.slane %v13422_v19, 6  ;;  %v5157_v22 = vrot.slane %v13422_v19, 4  ;;  %v5134_v53 = vrot.slane %v13422_v19, 2 }
 0x646   :  { %5297 = vrot.lane.b32.xlu1 %v5178_v0, %s8381_s23  ;;  %5413 = vrot.lane.b32.xlu0 %v5156_v36, %s8385_s1  ;;  %v5182_v12 = vsel %vm2236_vm8, %v5179_v42, %v5181_v16  ;;  %v5158_v9 = vsel %vm2319_vm7, %v5155_v43, %v5157_v22  ;;  %v5135_v0 = vsel %vm2313_vm10, %v5132_v45, %v5134_v53 }
 0x64a   :  { %5220 = vrot.lane.b32.xlu1 %v5131_v61, %s8376_s13  ;;  %5450 = vrot.lane.b32.xlu0 %v5180_v26, %s8386_s3 }
 0x64c   :  { %v4839_v27 = vpop.f32.mrb[88].mxu1 }
 0x64d   :  { %v4955_v1 = vrot.slane %v4839_v27, 2  ;;  %v7969_v29 = vpop.f32.mrb[89].mxu1 }
 0x64e   :  { %5299 = vrot.lane.b32.xlu1 %v5180_v26, %s8381_s23  ;;  %5375 = vrot.lane.b32.xlu0 %v5133_v8, %s8384_s26 }
 0x64f   :  { %v4956_v15 = vsel %vm2313_vm10, %v4953_v14, %v4955_v1 }
 0x650   :  { %v4985_v48 = vmax.f32 %v13267_v3, %v4956_v15 }
 0x652   :  { %v5017_v33 = vrot.slane %v4985_v48, 4  ;;  %5222 = vrot.lane.b32.xlu1 %v5133_v8, %s8376_s13  ;;  %5452 = vrot.lane.b32.xlu0 %v5182_v12, %s8386_s3 }
 0x654   :  { %v5018_v4 = vsel %vm2319_vm7, %v5015_v63, %v5017_v33  ;;  %v4844_v38 = vpop.f32.mrb[90].mxu1  ;;  %v15787_v63 = vmax.f32 %v13037_v58, %v13218_v21 }
 0x655   :  { %v5048_v50 = vmax.f32 %v15786_v24, %v5018_v4  ;;  %v4957_v14 = vrot.slane %v4844_v38, 2  ;;  %v7972_v3 = vpop.f32.mrb[91].mxu1  ;;  %v15788_v38 = vmax.f32 %v13065_v10, %v13224_v30 }
 0x656   :  { %5415 = vrot.lane.b32.xlu1 %v5158_v9, %s8385_s1  ;;  %5377 = vrot.lane.b32.xlu0 %v5135_v0, %s8384_s26 }
 0x657   :  { %v4958_v23 = vsel %vm2313_vm10, %v4955_v1, %v4957_v14  ;;  %v5068_v49 = vadd.f32 %v13295_v11, %v5048_v50 }
 0x658   :  { %v4986_v52 = vmax.f32 %v13270_v47, %v4958_v23  ;;  %v15789_v23 = vmax.f32 %v13080_v44, %v13229_v32 }
 0x659   :  { %vm5081_vm9 = vcmp.gt.f32.partialorder %v5068_v49, 0.0  ;;  %v5094_v55 = vmul.f32 0.01, %v5068_v49 }
 0x65a   :  { %v5019_v39 = vrot.slane %v4986_v52, 4  ;;  %5261 = vrot.lane.b32.xlu1 %v5156_v36, %s8378_s18  ;;  %5263 = vrot.lane.b32.xlu0 %v5158_v9, %s8378_s18 }
 0x65b   :  { %v13448_v59 = vsel %vm5081_vm9, %v5068_v49, %v5094_v55  ;;  %vm5548_vm9 = vcmask 785408  }
 0x65c   :  { %v5020_v61 = vsel %vm2319_vm7, %v5017_v33, %v5019_v39  ;;  %v5159_v60 = vrot.slane %v13448_v59, 4  ;;  %v5183_v2 = vrot.slane %v13448_v59, 6  ;;  %v5136_v21 = vrot.slane %v13448_v59, 2 }
 0x65d   :  { %v5049_v28 = vmax.f32 %v15787_v63, %v5020_v61 }
 0x65e   :  { %5340 = vrot.lane.b32.xlu1 %v13422_v19, %s8375_s29  ;;  %5342 = vrot.lane.b32.xlu0 %v13448_v59, %s8375_s29  ;;  %v5160_v35 = vsel %vm2319_vm7, %v5157_v22, %v5159_v60  ;;  %v5184_v58 = vsel %vm2236_vm8, %v5181_v16, %v5183_v2  ;;  %v5137_v36 = vsel %vm2313_vm10, %v5134_v53, %v5136_v21 }
 0x65f   :  { %v5069_v47 = vadd.f32 %v13295_v11, %v5049_v28 }
 0x661   :  { %v5095_v43 = vmul.f32 0.01, %v5069_v47  ;;  %vm5082_vm12 = vcmp.gt.f32.partialorder %v5069_v47, 0.0 }
 0x662   :  { %5301 = vrot.lane.b32.xlu1 %v5182_v12, %s8381_s23  ;;  %5417 = vrot.lane.b32.xlu0 %v5160_v35, %s8385_s1 }
 0x663   :  { %v13468_v46 = vsel %vm5082_vm12, %v5069_v47, %v5095_v43  ;;  %v15790_v43 = vmax.f32 %v13128_v40, %v13234_v56  ;;  %vm5562_vm12 = vcmask 916480  }
 0x664   :  { %v5185_v42 = vrot.slane %v13468_v46, 6  ;;  %v5138_v1 = vrot.slane %v13468_v46, 2  ;;  %v5161_v22 = vrot.slane %v13468_v46, 4 }
 0x666   :  { %5224 = vrot.lane.b32.xlu1 %v5135_v0, %s8376_s13  ;;  %5454 = vrot.lane.b32.xlu0 %v5184_v58, %s8386_s3  ;;  %v5186_v27 = vsel %vm2236_vm8, %v5183_v2, %v5185_v42  ;;  %v5139_v12 = vsel %vm2313_vm10, %v5136_v21, %v5138_v1  ;;  %v5162_v50 = vsel %vm2319_vm7, %v5159_v60, %v5161_v22 }
 0x667   :  { %v15791_v21 = vmax.f32 %v13141_v54, %v13239_v20  ;;  %v6214_v54 = vld [vmem:[%s14634_s9 + $0x508] sm:$0xff] }
 0x66a   :  { %5303 = vrot.lane.b32.xlu1 %v5184_v58, %s8381_s23  ;;  %5379 = vrot.lane.b32.xlu0 %v5137_v36, %s8384_s26 }
 0x66c   :  { %v4849_v17 = vpop.f32.mrb[92].mxu1 }
 0x66d   :  { %v4959_v26 = vrot.slane %v4849_v17, 2  ;;  %v7975_v45 = vpop.f32.mrb[93].mxu1  ;;  %v6229_v17 = vld [vmem:[%s14634_s9 + $0x580] sm:$0xff] }
 0x66e   :  { %5226 = vrot.lane.b32.xlu1 %v5137_v36, %s8376_s13  ;;  %5456 = vrot.lane.b32.xlu0 %v5186_v27, %s8386_s3  ;;  %v6213_v45 = vld [vmem:[%s14634_s9 + $0x500] sm:$0xff] }
 0x66f   :  { %v4960_v29 = vsel %vm2313_vm10, %v4957_v14, %v4959_v26 }
 0x670   :  { %v4987_v8 = vmax.f32 %v13272_v6, %v4960_v29  ;;  %v4854_v16 = vpop.f32.mrb[94].mxu1 }
 0x671   :  { %v4961_v15 = vrot.slane %v4854_v16, 2  ;;  %v7978_v48 = vpop.f32.mrb[95].mxu1  ;;  %v8200_v16 = vpack.c.bf16 %v6214_v54, %v6213_v45  ;;  %v5579_v54 = vld [vmem:[%s14633_s8 + $0x18] sm:$0xff] }
 0x672   :  { %v5021_v53 = vrot.slane %v4987_v8, 4  ;;  %5265 = vrot.lane.b32.xlu1 %v5160_v35, %s8378_s18  ;;  %5381 = vrot.lane.b32.xlu0 %v5139_v12, %s8384_s26 }
 0x673   :  { %v4962_v33 = vsel %vm2313_vm10, %v4959_v26, %v4961_v15  ;;  %v6230_v26 = vld [vmem:[%s14634_s9 + $0x588] sm:$0xff] }
 0x674   :  { %v5022_v4 = vsel %vm2319_vm7, %v5019_v39, %v5021_v53  ;;  %v4988_v6 = vmax.f32 %v13274_v57, %v4962_v33  ;;  %v8198_v40 = vpack.c.bf16 %v6230_v26, %v6229_v17 }
 0x675   :  { %v5050_v24 = vmax.f32 %v15788_v38, %v5022_v4 }
 0x676   :  { %v5023_v14 = vrot.slane %v4988_v6, 4  ;;  %5419 = vrot.lane.b32.xlu1 %v5162_v50, %s8385_s1  ;;  %5267 = vrot.lane.b32.xlu0 %v5162_v50, %s8378_s18 }
 0x677   :  { %v5070_v3 = vadd.f32 %v13295_v11, %v5050_v24  ;;  %8199 = vmatprep.subr.bf16.mxu0 %v8198_v40 }
 0x678   :  { %v5024_v9 = vsel %vm2319_vm7, %v5021_v53, %v5023_v14  ;;  %v4859_v0 = vpop.f32.mrb[96].mxu1  ;;  %8201 = vmatpush3.bf16.msra.mxu0 %v8200_v16 }
 0x679   :  { %v5051_v57 = vmax.f32 %v15789_v23, %v5024_v9  ;;  %v4963_v49 = vrot.slane %v4859_v0, 2  ;;  %v7981_v52 = vpop.f32.mrb[97].mxu1  ;;  %vm5083_vm13 = vcmp.gt.f32.partialorder %v5070_v3, 0.0  ;;  %v5096_v10 = vmul.f32 0.01, %v5070_v3 }
 0x67a   :  { %5344 = vrot.lane.b32.xlu1 %v13468_v46, %s8375_s29 }
 0x67b   :  { %v4964_v30 = vsel %vm2313_vm10, %v4961_v15, %v4963_v49  ;;  %v4990_v55 = vmax.f32 %v13278_v13, %v4963_v49  ;;  %v13506_v39 = vsel %vm5083_vm13, %v5070_v3, %v5096_v10  ;;  %v5071_v61 = vadd.f32 %v13295_v11, %v5051_v57 }
 0x67c   :  { %v4989_v63 = vmax.f32 %v13276_v5, %v4964_v30  ;;  %5346 = vrot.lane.b32.xlu0 %v13506_v39, %s8375_s29  ;;  %v5163_v44 = vrot.slane %v13506_v39, 4  ;;  %v5187_v47 = vrot.slane %v13506_v39, 6 }
 0x67d   :  { %v5027_v32 = vrot.slane %v4990_v55, 4  ;;  %v5097_v35 = vmul.f32 0.01, %v5071_v61  ;;  %vm5084_vm14 = vcmp.gt.f32.partialorder %v5071_v61, 0.0 }
 0x67e   :  { %v5025_v28 = vrot.slane %v4989_v63, 4  ;;  %5305 = vrot.lane.b32.xlu1 %v5186_v27, %s8381_s23  ;;  %v5164_v60 = vsel %vm2319_vm7, %v5161_v22, %v5163_v44  ;;  %v5188_v20 = vsel %vm2236_vm8, %v5185_v42, %v5187_v47  ;;  %v5140_v27 = vrot.slane %v13506_v39, 2  ;;  %v5252_v22 = vpop.permute.xlu0 %5251 }
 0x67f   :  { %v5054_v13 = vmax.f32 %v13242_v62, %v5027_v32  ;;  %v13547_v29 = vsel %vm5084_vm14, %v5071_v61, %v5097_v35 }
 0x680   :  { %v5026_v5 = vsel %vm2319_vm7, %v5023_v14, %v5025_v28  ;;  %v5028_v2 = vsel %vm2319_vm7, %v5025_v28, %v5027_v32  ;;  %5421 = vrot.lane.b32.xlu0 %v5164_v60, %s8385_s1  ;;  %v5141_v42 = vsel %vm2313_vm10, %v5138_v1, %v5140_v27  ;;  %v5142_v14 = vrot.slane %v13547_v29, 2 }
 0x681   :  { %v5052_v58 = vmax.f32 %v15790_v43, %v5026_v5  ;;  %v5053_v36 = vmax.f32 %v15791_v21, %v5028_v2  ;;  %v5074_v62 = vadd.f32 %v13295_v11, %v5054_v13  ;;  %v5165_v55 = vrot.slane %v13547_v29, 4 }
 0x682   :  { %5228 = vrot.lane.b32.xlu1 %v5139_v12, %s8376_s13  ;;  %v5189_v12 = vrot.slane %v13547_v29, 6  ;;  %v5143_v49 = vsel %vm2313_vm10, %v5140_v27, %v5142_v14 }
 0x683   :  { %vm5087_vm15 = vcmp.gt.f32.partialorder %v5074_v62, 0.0  ;;  %v5100_v56 = vmul.f32 0.01, %v5074_v62  ;;  %v5073_v8 = vadd.f32 %v13295_v11, %v5053_v36  ;;  %v5072_v30 = vadd.f32 %v13295_v11, %v5052_v58  ;;  %v5576_v36 = vld [vmem:[%s14633_s8] sm:$0xff] }
 0x684   :  { %5458 = vrot.lane.b32.xlu0 %v5188_v20, %s8386_s3  ;;  %v5190_v50 = vsel %vm2236_vm8, %v5187_v47, %v5189_v12  ;;  %v5166_v28 = vsel %vm2319_vm7, %v5163_v44, %v5165_v55  ;;  %v5482_v47 = vsel %vm2756_vm2, 0.0, %v15781_v51 }
 0x685   :  { %v13550_v15 = vsel %vm5087_vm15, %v5074_v62, %v5100_v56  ;;  %vm5086_vm1 = vcmp.gt.f32.partialorder %v5073_v8, 0.0  ;;  %v5099_v48 = vmul.f32 0.01, %v5073_v8  ;;  %v5098_v32 = vmul.f32 0.01, %v5072_v30 }
 0x686   :  { %5307 = vrot.lane.b32.xlu1 %v5188_v20, %s8381_s23  ;;  %v5200_v38 = vrot.slane %v13550_v15, 2  ;;  %v5204_v1 = vrot.slane %v13550_v15, 4  ;;  %v5208_v24 = vrot.slane %v13550_v15, 6  ;;  %vm5085_vm3 = vcmp.gt.f32.partialorder %v5072_v30, 0.0 }
 0x687   :  { %v13558_v53 = vsel %vm5086_vm1, %v5073_v8, %v5099_v48  ;;  %v13605_v13 = vsel %vm5085_vm3, %v5072_v30, %v5098_v32  ;;  %v5495_v35 = vsel %vm2784_vm4, %v5482_v47, %v5252_v22 }
 0x688   :  { %5383 = vrot.lane.b32.xlu0 %v5141_v42, %s8384_s26  ;;  %v5202_v33 = vrot.slane %v13558_v53, 4  ;;  %v13562_v4 = vrot.slane %v13558_v53, 6  ;;  %v5198_v6 = vrot.slane %v13558_v53, 2  ;;  %v13613_v44 = vrot.slane %v13605_v13, 4 }
 0x689   :  { %v5331_v9 = vpop.permute.xlu0 %5330  ;;  %v13618_v58 = vrot.slane %v13605_v13, 2  ;;  %v5191_v17 = vrot.slane %v13605_v13, 6 }
 0x68a   :  { %5230 = vrot.lane.b32.xlu1 %v5141_v42, %s8376_s13  ;;  %v13576_v3 = vsel %vm2313_vm10, %v5198_v6, %v5200_v38  ;;  %v13582_v23 = vsel %vm2319_vm7, %v5202_v33, %v5204_v1  ;;  %v13586_v57 = vsel %vm2236_vm8, %v13562_v4, %v5208_v24  ;;  %v5168_v62 = vsel %vm2319_vm7, %v5165_v55, %v13613_v44 }
 0x68b   :  { %v5145_v20 = vsel %vm2313_vm10, %v5142_v14, %v13618_v58  ;;  %v5192_v48 = vsel %vm2236_vm8, %v5189_v12, %v5191_v17  ;;  %v5605_v42 = vmul.f32 %v5579_v54, %v13374_v37  ;;  %v5203_v24 = vsel %vm2319_vm7, %v13613_v44, %v5202_v33  ;;  %v5581_v33 = vld [vmem:[%s14633_s8 + $0x28] sm:$0xff]  ;;  %v5580_v54 = vld [vmem:[%s14633_s8 + $0x20] sm:$0xff] }
 0x68c   :  { %5460 = vrot.lane.b32.xlu0 %v5190_v50, %s8386_s3  ;;  %v5292_v0 = vpop.permute.xlu1 %5291  ;;  %v5199_v30 = vsel %vm2313_vm10, %v13618_v58, %v5198_v6  ;;  %v6231_v6 = vld [vmem:[%s14634_s9 + $0x590] sm:$0xff] }
 0x68d   :  { %v5508_v5 = vsel %vm2812_vm6, %v5495_v35, %v5292_v0  ;;  %v5578_v0 = vld [vmem:[%s14633_s8 + $0x10] sm:$0xff]  ;;  %v6232_v35 = vld [vmem:[%s14634_s9 + $0x598] sm:$0xff] }
 0x68e   :  { %5269 = vrot.lane.b32.xlu1 %v5164_v60, %s8378_s18  ;;  %v5521_v51 = vsel %vm2840_vm11, %v5508_v5, %v5331_v9  ;;  %v8202_v5 = vpack.c.bf16 %v6232_v35, %v6231_v6 }
 0x690   :  { %v5370_v52 = vpop.permute.xlu0 %5369  ;;  %5385 = vrot.lane.b32.xlu0 %v5143_v49, %s8384_s26  ;;  %v5215_v10 = vpop.permute.xlu1 %5214  ;;  %8203 = vmatprep.subr.bf16.mxu0 %v8202_v5 }
 0x691   :  { %v5535_v21 = vsel %vm5534_vm5, %v5521_v51, %v5370_v52  ;;  %v5483_v27 = vsel %vm2756_vm2, 0.0, %v5215_v10  ;;  %v5194_v52 = vsel %vm2236_vm8, %v5191_v17, %v13562_v4  ;;  %v6216_v51 = vld [vmem:[%s14634_s9 + $0x518] sm:$0xff]  ;;  %v5211_v17 = vsel %vm2319_vm7, %v13586_v57, 0.0 }
 0x692   :  { %5348 = vrot.lane.b32.xlu1 %v13547_v29, %s8375_s29 }
 0x694   :  { %v13595_v61 = vpop.permute.xlu0 %5255  ;;  %5232 = vrot.lane.b32.xlu0 %v5143_v49, %s8376_s13  ;;  %v5254_v63 = vpop.permute.xlu1 %5253 }
 0x695   :  { %v5496_v16 = vsel %vm2784_vm4, %v5483_v27, %v5254_v63 }
 0x696   :  { %5423 = vrot.lane.b32.xlu1 %v5166_v28, %s8385_s1 }
 0x698   :  { %v13602_v60 = vpop.permute.xlu0 %5334  ;;  %5271 = vrot.lane.b32.xlu0 %v5166_v28, %s8378_s18  ;;  %v5333_v11 = vpop.permute.xlu1 %5332  ;;  %v5607_v28 = vmul.f32 %v5581_v33, %v13406_v31 }
 0x69a   :  { %5309 = vrot.lane.b32.xlu1 %v5190_v50, %s8381_s23 }
 0x69c   :  { %v5410_v2 = vpop.permute.xlu0 %5409  ;;  %5350 = vrot.lane.b32.xlu0 %v13605_v13, %s8375_s29  ;;  %v5294_v43 = vpop.permute.xlu1 %5293 }
 0x69d   :  { %v5549_v26 = vsel %vm5548_vm9, %v5535_v21, %v5410_v2  ;;  %v5509_v22 = vsel %vm2812_vm6, %v5496_v16, %v5294_v43  ;;  %v5207_v43 = vsel %vm2313_vm10, %v13582_v23, 0.0  ;;  %v6233_v16 = vld [vmem:[%s14634_s9 + $0x5a0] sm:$0xff] }
 0x69e   :  { %5352 = vrot.lane.b32.xlu1 %v13558_v53, %s8375_s29  ;;  %v5522_v12 = vsel %vm2840_vm11, %v5509_v22, %v5333_v11 }
 0x6a0   :  { %v5447_v45 = vpop.permute.xlu0 %5446  ;;  %5425 = vrot.lane.b32.xlu0 %v5168_v62, %s8385_s1  ;;  %v5217_v40 = vpop.permute.xlu1 %5216 }
 0x6a1   :  { %v5563_v56 = vsel %vm5562_vm12, %v5549_v26, %v5447_v45  ;;  %v5484_v2 = vsel %vm2756_vm2, %v13311_v25, %v5217_v40 }
 0x6a2   :  { %v5602_v8 = vmul.f32 %v5576_v36, %v5563_v56  ;;  %5387 = vrot.lane.b32.xlu1 %v5145_v20, %s8384_s26  ;;  %v5497_v25 = vsel %vm2784_vm4, %v5484_v2, %v13595_v61 }
 0x6a4   :  { %v5372_v38 = vpop.permute.xlu0 %5371  ;;  %5462 = vrot.lane.b32.xlu0 %v5192_v48, %s8386_s3  ;;  %5757 = vmatmul.mubr.f32.vlgmr.msra.gmra.mrb[98].mxu1 %v5602_v8  ;;  %v5296_v1 = vpop.permute.xlu1 %5295 }
 0x6a5   :  { %7034 = vmatprep.mubr.msk.f32.mxu1 %vm2756_vm2, %v5605_v42  ;;  %v5536_v50 = vsel %vm5534_vm5, %v5522_v12, %v5372_v38  ;;  %v5510_v23 = vsel %vm2812_vm6, %v5497_v25, %v5296_v1  ;;  %v6217_v42 = vld [vmem:[%s14634_s9 + $0x520] sm:$0xff]  ;;  %v6218_v1 = vld [vmem:[%s14634_s9 + $0x528] sm:$0xff] }
 0x6a6   :  { %5427 = vrot.lane.b32.xlu1 %v5203_v24, %s8385_s1  ;;  %v5523_v40 = vsel %vm2840_vm11, %v5510_v23, %v13602_v60  ;;  %v5583_v60 = vld [vmem:[%s14633_s8 + $0x38] sm:$0xff]  ;;  %v8208_v12 = vpack.c.bf16 %v6218_v1, %v6217_v42  ;;  %v5584_v25 = vld [vmem:[%s14633_s8 + $0x40] sm:$0xff] }
 0x6a7   :  { %v5609_v22 = vmul.f32 %v5583_v60, %v13422_v19 }
 0x6a8   :  { %v5449_v14 = vpop.permute.xlu0 %5448  ;;  %5311 = vrot.lane.b32.xlu0 %v5192_v48, %s8381_s23  ;;  %v5412_v9 = vpop.permute.xlu1 %5411  ;;  %v6234_v48 = vld [vmem:[%s14634_s9 + $0x5a8] sm:$0xff] }
 0x6a9   :  { %v5550_v49 = vsel %vm5548_vm9, %v5536_v50, %v5412_v9  ;;  %v8206_v38 = vpack.c.bf16 %v6234_v48, %v6233_v16 }
 0x6aa   :  { %v5564_v10 = vsel %vm5562_vm12, %v5550_v49, %v5449_v14  ;;  %5464 = vrot.lane.b32.xlu1 %v5194_v52, %s8386_s3 }
 0x6ab   :  { %v5604_v55 = vmul.f32 %v5578_v0, %v5564_v10 }
 0x6ac   :  { %v5374_v63 = vpop.permute.xlu0 %5373  ;;  %5389 = vrot.lane.b32.xlu0 %v5199_v30, %s8384_s26  ;;  %v5219_v32 = vpop.permute.xlu1 %5218  ;;  %v5585_v30 = vld [vmem:[%s14633_s8 + $0x48] sm:$0xff] }
 0x6ad   :  { %5762 = vmatmul.mubr.f32.gmra.mrb[100].mxu1 %v5604_v55  ;;  %v5537_v61 = vsel %vm5534_vm5, %v5523_v40, %v5374_v63  ;;  %v5485_v50 = vsel %vm2756_vm2, %v13334_v41, %v5219_v32 }
 0x6ae   :  { %5234 = vrot.lane.b32.xlu1 %v5145_v20, %s8376_s13  ;;  %7035 = vmatprep.mubr.msk.f32.mxu1 %vm2756_vm2, %v5607_v28 }
 0x6b0   :  { %v13675_v11 = vpop.permute.xlu0 %5259  ;;  %5391 = vrot.lane.b32.xlu0 %v13576_v3, %s8384_s26  ;;  %v5258_v47 = vpop.permute.xlu1 %5257  ;;  %v6215_v3 = vld [vmem:[%s14634_s9 + $0x510] sm:$0xff] }
 0x6b1   :  { %v5498_v14 = vsel %vm2784_vm4, %v5485_v50, %v5258_v47  ;;  %v5611_v47 = vmul.f32 %v5585_v30, %v13448_v59 }
 0x6b2   :  { %5273 = vrot.lane.b32.xlu1 %v5168_v62, %s8378_s18  ;;  %v8204_v62 = vpack.c.bf16 %v6216_v51, %v6215_v3 }
 0x6b4   :  { %v13696_v21 = vpop.permute.xlu0 %5338  ;;  %5429 = vrot.lane.b32.xlu0 %v5207_v43, %s8385_s1  ;;  %v5337_v36 = vpop.permute.xlu1 %5336  ;;  %8205 = vmatpush3.bf16.msra.mxu0 %v8204_v62 }
 0x6b5   :  { %8207 = vmatprep.subr.bf16.mxu0 %v8206_v38 }
 0x6b6   :  { %5313 = vrot.lane.b32.xlu1 %v5194_v52, %s8381_s23 }
 0x6b8   :  { %v5414_v26 = vpop.permute.xlu0 %5413  ;;  %5466 = vrot.lane.b32.xlu0 %v5211_v17, %s8386_s3  ;;  %v5298_v45 = vpop.permute.xlu1 %5297  ;;  %8209 = vmatpush3.bf16.msra.mxu0 %v8208_v12 }
 0x6b9   :  { %v5551_v56 = vsel %vm5548_vm9, %v5537_v61, %v5414_v26  ;;  %v5511_v9 = vsel %vm2812_vm6, %v5498_v14, %v5298_v45 }
 0x6ba   :  { %5431 = vrot.lane.b32.xlu1 %v15404_v7, %s8385_s1  ;;  %v5524_v49 = vsel %vm2840_vm11, %v5511_v9, %v5337_v36 }
 0x6bc   :  { %v5451_v20 = vpop.permute.xlu0 %5450  ;;  %5468 = vrot.lane.b32.xlu0 %v15404_v7, %s8386_s3  ;;  %v5221_v57 = vpop.permute.xlu1 %5220 }
 0x6bd   :  { %v5565_v27 = vsel %vm5562_vm12, %v5551_v56, %v5451_v20  ;;  %v5486_v6 = vsel %vm2756_vm2, %v13350_v18, %v5221_v57 }
 0x6be   :  { %v5606_v8 = vmul.f32 %v5580_v54, %v5565_v27  ;;  %5236 = vrot.lane.b32.xlu1 %v13618_v58, %s8376_s13  ;;  %v5499_v2 = vsel %vm2784_vm4, %v5486_v6, %v13675_v11  ;;  %v5587_v11 = vld [vmem:[%s14633_s8 + $0x58] sm:$0xff] }
 0x6bf   :  { %v5613_v40 = vmul.f32 %v5587_v11, %v13468_v46  ;;  %v5590_v11 = vld [vmem:[%s14633_s8 + $0x70] sm:$0xff] }
 0x6c0   :  { %v5376_v58 = vpop.permute.xlu0 %5375  ;;  %5275 = vrot.lane.b32.xlu0 %v13613_v44, %s8378_s18  ;;  %5767 = vmatmul.mubr.f32.gmra.mrb[102].mxu1 %v5606_v8  ;;  %v5300_v24 = vpop.permute.xlu1 %5299 }
 0x6c1   :  { %7036 = vmatprep.mubr.msk.f32.mxu1 %vm2756_vm2, %v5609_v22  ;;  %v5538_v41 = vsel %vm5534_vm5, %v5524_v49, %v5376_v58  ;;  %v5512_v43 = vsel %vm2812_vm6, %v5499_v2, %v5300_v24  ;;  %v5586_v22 = vld [vmem:[%s14633_s8 + $0x50] sm:$0xff] }
 0x6c2   :  { %5315 = vrot.lane.b32.xlu1 %v13562_v4, %s8381_s23  ;;  %v5582_v4 = vld [vmem:[%s14633_s8 + $0x30] sm:$0xff]  ;;  %v5525_v36 = vsel %vm2840_vm11, %v5512_v43, %v13696_v21 }
 0x6c4   :  { %v5453_v0 = vpop.permute.xlu0 %5452  ;;  %5354 = vrot.lane.b32.xlu0 %v13550_v15, %s8375_s29  ;;  %v5223_v44 = vpop.permute.xlu1 %5222 }
 0x6c5   :  { %v5487_v20 = vsel %vm2756_vm2, %v13374_v37, %v5223_v44  ;;  %v5589_v37 = vld [vmem:[%s14633_s8 + $0x68] sm:$0xff] }
 0x6c6   :  { %5393 = vrot.lane.b32.xlu1 %v15404_v7, %s8384_s26  ;;  %v5615_v50 = vmul.f32 %v5589_v37, %v13506_v39 }
 0x6c8   :  { %v5378_v52 = vpop.permute.xlu0 %5377  ;;  %v5416_v33 = vpop.permute.xlu1 %5415 }
 0x6c9   :  { %v5552_v10 = vsel %vm5548_vm9, %v5538_v41, %v5416_v33  ;;  %v5539_v62 = vsel %vm5534_vm5, %v5525_v36, %v5378_v52 }
 0x6ca   :  { %v5566_v55 = vsel %vm5562_vm12, %v5552_v10, %v5453_v0  ;;  %v5588_v10 = vld [vmem:[%s14633_s8 + $0x60] sm:$0xff] }
 0x6cb   :  { %v5608_v63 = vmul.f32 %v5582_v4, %v5566_v55  ;;  %v5591_v55 = vld [vmem:[%s14633_s8 + $0x78] sm:$0xff] }
 0x6cc   :  { %v5264_v32 = vpop.permute.xlu0 %5263  ;;  %v5262_v28 = vpop.permute.xlu1 %5261 }
 0x6cd   :  { %5772 = vmatmul.mubr.f32.gmra.mrb[104].mxu1 %v5608_v63  ;;  %v5500_v57 = vsel %vm2784_vm4, %v5487_v20, %v5262_v28 }
 0x6ce   :  { %7037 = vmatprep.mubr.msk.f32.mxu1 %vm2756_vm2, %v5611_v47  ;;  %v5617_v47 = vmul.f32 %v5591_v55, %v13547_v29  ;;  %v5212_v55 = vsel %vm2236_vm8, %v13550_v15, 0.0 }
 0x6d0   :  { %v5343_v35 = vpop.permute.xlu0 %5342  ;;  %v5341_v5 = vpop.permute.xlu1 %5340 }
 0x6d4   :  { %v5418_v3 = vpop.permute.xlu0 %5417  ;;  %v5302_v51 = vpop.permute.xlu1 %5301 }
 0x6d5   :  { %v5553_v18 = vsel %vm5548_vm9, %v5539_v62, %v5418_v3  ;;  %v5513_v60 = vsel %vm2812_vm6, %v5500_v57, %v5302_v51 }
 0x6d6   :  { %v5526_v16 = vsel %vm2840_vm11, %v5513_v60, %v5341_v5 }
 0x6d8   :  { %v5455_v23 = vpop.permute.xlu0 %5454  ;;  %v5225_v17 = vpop.permute.xlu1 %5224 }
 0x6d9   :  { %v5567_v26 = vsel %vm5562_vm12, %v5553_v18, %v5455_v23  ;;  %v5488_v14 = vsel %vm2756_vm2, %v13406_v31, %v5225_v17 }
 0x6da   :  { %v5610_v45 = vmul.f32 %v5584_v25, %v5567_v26  ;;  %v5501_v0 = vsel %vm2784_vm4, %v5488_v14, %v5264_v32 }
 0x6dc   :  { %v5380_v21 = vpop.permute.xlu0 %5379  ;;  %5777 = vmatmul.mubr.f32.gmra.mrb[106].mxu1 %v5610_v45  ;;  %v5304_v61 = vpop.permute.xlu1 %5303 }
 0x6dd   :  { %7038 = vmatprep.mubr.msk.f32.mxu1 %vm2756_vm2, %v5613_v40  ;;  %v5540_v48 = vsel %vm5534_vm5, %v5526_v16, %v5380_v21  ;;  %v5514_v49 = vsel %vm2812_vm6, %v5501_v0, %v5304_v61  ;;  %v6236_v0 = vld [vmem:[%s14634_s9 + $0x5b8] sm:$0xff] }
 0x6de   :  { %v5527_v52 = vsel %vm2840_vm11, %v5514_v49, %v5343_v35 }
 0x6e0   :  { %v5457_v54 = vpop.permute.xlu0 %5456  ;;  %v5227_v56 = vpop.permute.xlu1 %5226 }
 0x6e1   :  { %v5489_v43 = vsel %vm2756_vm2, %v13422_v19, %v5227_v56  ;;  %v5593_v19 = vld [vmem:[%s14633_s8 + $0x88] sm:$0xff] }
 0x6e4   :  { %v5382_v27 = vpop.permute.xlu0 %5381  ;;  %v5266_v8 = vpop.permute.xlu1 %5265 }
 0x6e5   :  { %v5541_v4 = vsel %vm5534_vm5, %v5527_v52, %v5382_v27  ;;  %v5502_v51 = vsel %vm2784_vm4, %v5489_v43, %v5266_v8 }
 0x6e8   :  { %v5420_v42 = vpop.permute.xlu1 %5419  ;;  %v5268_v1 = vpop.permute.xlu0 %5267 }
 0x6e9   :  { %v5554_v38 = vsel %vm5548_vm9, %v5540_v48, %v5420_v42 }
 0x6ea   :  { %v5568_v58 = vsel %vm5562_vm12, %v5554_v38, %v5457_v54  ;;  %v5619_v54 = vmul.f32 %v5593_v19, %v13605_v13 }
 0x6eb   :  { %v5612_v24 = vmul.f32 %v5586_v22, %v5568_v58  ;;  %v5595_v58 = vld [vmem:[%s14633_s8 + $0x98] sm:$0xff] }
 0x6ec   :  { %v5345_v12 = vpop.permute.xlu1 %5344  ;;  %v5621_v14 = vmul.f32 %v5595_v58, %v13558_v53  ;;  %v6220_v53 = vld [vmem:[%s14634_s9 + $0x538] sm:$0xff] }
 0x6ed   :  { %5782 = vmatmul.mubr.f32.gmra.mrb[108].mxu1 %v5612_v24 }
 0x6ee   :  { %v5347_v9 = vpop.permute.xlu0 %5346  ;;  %7039 = vmatprep.mubr.msk.f32.mxu1 %vm2756_vm2, %v5615_v50 }
 0x6f0   :  { %v5306_v44 = vpop.permute.xlu1 %5305 }
 0x6f1   :  { %v5515_v36 = vsel %vm2812_vm6, %v5502_v51, %v5306_v44  ;;  %v6219_v44 = vld [vmem:[%s14634_s9 + $0x530] sm:$0xff] }
 0x6f2   :  { %v5422_v41 = vpop.permute.xlu0 %5421  ;;  %v5528_v18 = vsel %vm2840_vm11, %v5515_v36, %v5345_v12 }
 0x6f3   :  { %v5555_v31 = vsel %vm5548_vm9, %v5541_v4, %v5422_v41  ;;  %v5594_v4 = vld [vmem:[%s14633_s8 + $0x90] sm:$0xff] }
 0x6f4   :  { %v5229_v33 = vpop.permute.xlu1 %5228 }
 0x6f5   :  { %v5490_v56 = vsel %vm2756_vm2, %v13448_v59, %v5229_v33  ;;  %v5592_v59 = vld [vmem:[%s14633_s8 + $0x80] sm:$0xff] }
 0x6f6   :  { %v5459_v30 = vpop.permute.xlu0 %5458  ;;  %v5503_v57 = vsel %vm2784_vm4, %v5490_v56, %v5268_v1  ;;  %v5601_v56 = vld [vmem:[%s14633_s8 + $0xc8] sm:$0x3] }
 0x6f7   :  { %v5569_v63 = vsel %vm5562_vm12, %v5555_v31, %v5459_v30 }
 0x6f8   :  { %v5614_v32 = vmul.f32 %v5588_v10, %v5569_v63  ;;  %v5308_v28 = vpop.permute.xlu1 %5307  ;;  %v8212_v10 = vpack.c.bf16 %v6220_v53, %v6219_v44  ;;  %v5597_v63 = vld [vmem:[%s14633_s8 + $0xa8] sm:$0xff]  ;;  %v6221_v44 = vld [vmem:[%s14634_s9 + $0x540] sm:$0xff] }
 0x6f9   :  { %v5516_v27 = vsel %vm2812_vm6, %v5503_v57, %v5308_v28  ;;  %v5598_v57 = vld [vmem:[%s14633_s8 + $0xb0] sm:$0xff]  ;;  %v6069_v53 = vld [vmem:[%s14634_s9 + $0x80] sm:$0xff] }
 0x6fa   :  { %v5384_v6 = vpop.permute.xlu0 %5383  ;;  %5787 = vmatmul.mubr.f32.gmra.mrb[110].mxu1 %v5614_v32  ;;  %v5529_v16 = vsel %vm2840_vm11, %v5516_v27, %v5347_v9  ;;  %v6235_v9 = vld [vmem:[%s14634_s9 + $0x5b0] sm:$0xff] }
 0x6fb   :  { %7040 = vmatprep.mubr.msk.f32.mxu1 %vm2756_vm2, %v5617_v47  ;;  %v5542_v23 = vsel %vm5534_vm5, %v5528_v18, %v5384_v6  ;;  %v8210_v52 = vpack.c.bf16 %v6236_v0, %v6235_v9  ;;  %v5623_v6 = vmul.f32 %v5597_v63, %v5212_v55  ;;  %v6237_v9 = vld [vmem:[%s14634_s9 + $0x5c0] sm:$0xff]  ;;  %v6238_v0 = vld [vmem:[%s14634_s9 + $0x5c8] sm:$0xff]  ;;  %v6072_v55 = vld [vmem:[%s14634_s9 + $0x98] sm:$0xff] }
 0x6fc   :  { %v5231_v35 = vpop.permute.xlu1 %5230 }
 0x6fd   :  { %v5491_v42 = vsel %vm2756_vm2, %v13468_v46, %v5231_v35  ;;  %8211 = vmatprep.subr.bf16.mxu0 %v8210_v52 }
 0x6fe   :  { %v5461_v5 = vpop.permute.xlu0 %5460  ;;  %8213 = vmatpush3.bf16.msra.mxu0 %v8212_v10 }
 0x700   :  { %v5270_v2 = vpop.permute.xlu1 %5269 }
 0x701   :  { %v5504_v38 = vsel %vm2784_vm4, %v5491_v42, %v5270_v2 }
 0x702   :  { %v5386_v3 = vpop.permute.xlu0 %5385 }
 0x703   :  { %v5543_v22 = vsel %vm5534_vm5, %v5529_v16, %v5386_v3 }
 0x704   :  { %v5349_v62 = vpop.permute.xlu1 %5348 }
 0x706   :  { %v5233_v25 = vpop.permute.xlu0 %5232 }
 0x707   :  { %v5492_v2 = vsel %vm2756_vm2, %v13506_v39, %v5233_v25 }
 0x708   :  { %v5424_v17 = vpop.permute.xlu1 %5423 }
 0x709   :  { %v5556_v26 = vsel %vm5548_vm9, %v5542_v23, %v5424_v17  ;;  %v5599_v17 = vld [vmem:[%s14633_s8 + $0xb8] sm:$0xff] }
 0x70a   :  { %v5570_v45 = vsel %vm5562_vm12, %v5556_v26, %v5461_v5  ;;  %v5272_v40 = vpop.permute.xlu0 %5271 }
 0x70b   :  { %v5616_v21 = vmul.f32 %v5590_v11, %v5570_v45  ;;  %v5505_v15 = vsel %vm2784_vm4, %v5492_v2, %v5272_v40  ;;  %v5596_v11 = vld [vmem:[%s14633_s8 + $0xa0] sm:$0xff] }
 0x70c   :  { %v5310_v61 = vpop.permute.xlu1 %5309  ;;  %v6057_v2 = vld [vmem:[%s14634_s9 + $0x20] sm:$0xff] }
 0x70d   :  { %5792 = vmatmul.mubr.f32.gmra.mrb[112].mxu1 %v5616_v21  ;;  %v5517_v24 = vsel %vm2812_vm6, %v5504_v38, %v5310_v61  ;;  %v5625_v21 = vmul.f32 0.0, %v5599_v17 }
 0x70e   :  { %v5351_v20 = vpop.permute.xlu0 %5350  ;;  %7041 = vmatprep.mubr.msk.f32.mxu1 %vm2756_vm2, %v5619_v54  ;;  %v5530_v49 = vsel %vm2840_vm11, %v5517_v24, %v5349_v62 }
 0x710   :  { %v5353_v60 = vpop.permute.xlu1 %5352 }
 0x712   :  { %v5426_v8 = vpop.permute.xlu0 %5425 }
 0x713   :  { %v5557_v37 = vsel %vm5548_vm9, %v5543_v22, %v5426_v8  ;;  %v5627_v8 = vmul.f32 0.0, %v5601_v56  ;;  %v6063_v56 = vld [vmem:[%s14634_s9 + $0x50] sm:$0xff] }
 0x714   :  { %v5388_v48 = vpop.permute.xlu1 %5387 }
 0x715   :  { %v5544_v33 = vsel %vm5534_vm5, %v5530_v49, %v5388_v48  ;;  %v8214_v49 = vpack.c.bf16 %v6238_v0, %v6237_v9 }
 0x716   :  { %v5463_v1 = vpop.permute.xlu0 %5462 }
 0x717   :  { %v5571_v12 = vsel %vm5562_vm12, %v5557_v37, %v5463_v1  ;;  %8215 = vmatprep.subr.bf16.mxu0 %v8214_v49 }
 0x718   :  { %v5618_v46 = vmul.f32 %v5592_v59, %v5571_v12  ;;  %v5428_v50 = vpop.permute.xlu1 %5427 }
 0x719   :  { %v5558_v31 = vsel %vm5548_vm9, %v5544_v33, %v5428_v50  ;;  %v6070_v33 = vld [vmem:[%s14634_s9 + $0x88] sm:$0xff] }
 0x71a   :  { %v5312_v41 = vpop.permute.xlu0 %5311  ;;  %5797 = vmatmul.mubr.f32.gmra.mrb[114].mxu1 %v5618_v46  ;;  %v5600_v46 = vld [vmem:[%s14633_s8 + $0xc0] sm:$0x3]  ;;  %v8038_v10 = vpack.c.bf16 %v6070_v33, %v6069_v53 }
 0x71b   :  { %7042 = vmatprep.mubr.msk.f32.mxu1 %vm2756_vm2, %v5621_v14  ;;  %v5518_v3 = vsel %vm2812_vm6, %v5505_v15, %v5312_v41  ;;  %v6222_v41 = vld [vmem:[%s14634_s9 + $0x548] sm:$0xff] }
 0x71c   :  { %v5465_v30 = vpop.permute.xlu1 %5464  ;;  %v5531_v62 = vsel %vm2840_vm11, %v5518_v3, %v5351_v20  ;;  %v8216_v52 = vpack.c.bf16 %v6222_v41, %v6221_v44  ;;  %8039 = vmatprep.subr.bf16.mxu1 %v8038_v10  ;;  %v6075_v3 = vld [vmem:[%s14634_s9 + $0xb0] sm:$0xff] }
 0x71d   :  { %v5572_v32 = vsel %vm5562_vm12, %v5558_v31, %v5465_v30  ;;  %v6054_v31 = vld [vmem:[%s14634_s9 + $0x8] sm:$0xff]  ;;  %v6071_v30 = vld [vmem:[%s14634_s9 + $0x90] sm:$0xff] }
 0x71e   :  { %v5620_v28 = vmul.f32 %v5594_v4, %v5572_v32  ;;  %v5390_v47 = vpop.permute.xlu0 %5389  ;;  %8217 = vmatpush3.bf16.msra.mxu0 %v8216_v52  ;;  %v6053_v4 = vld [vmem:[%s14634_s9] sm:$0xff]  ;;  %v8042_v32 = vpack.c.bf16 %v6072_v55, %v6071_v30  ;;  %v6068_v30 = vld [vmem:[%s14634_s9 + $0x78] sm:$0xff] }
 0x71f   :  { %v5545_v39 = vsel %vm5534_vm5, %v5531_v62, %v5390_v47  ;;  %v8040_v63 = vpack.c.bf16 %v6054_v31, %v6053_v4  ;;  %v6056_v47 = vld [vmem:[%s14634_s9 + $0x18] sm:$0xff]  ;;  %v6067_v31 = vld [vmem:[%s14634_s9 + $0x70] sm:$0xff]  ;;  %v6101_v55 = vld [vmem:[%s14634_s9 + $0x180] sm:$0xff] }
 0x720   :  { %5802 = vmatmul.mubr.f32.gmra.mrb[116].mxu1 %v5620_v28  ;;  %v5235_v35 = vpop.permute.xlu1 %5234  ;;  %v6055_v28 = vld [vmem:[%s14634_s9 + $0x10] sm:$0xff] }
 0x721   :  { %7043 = vmatprep.mubr.msk.f32.mxu1 %vm2756_vm2, %v5623_v6  ;;  %v5493_v36 = vsel %vm2756_vm2, %v13547_v29, %v5235_v35  ;;  %8041 = vmatpush3.bf16.msra.mxu1 %v8040_v63  ;;  %v8044_v6 = vpack.c.bf16 %v6056_v47, %v6055_v28  ;;  %v6073_v35 = vld [vmem:[%s14634_s9 + $0xa0] sm:$0xff]  ;;  %v8068_v47 = vpack.c.bf16 %v6068_v30, %v6067_v31  ;;  %v6227_v30 = vld [vmem:[%s14634_s9 + $0x570] sm:$0xff] }
 0x722   :  { %v5392_v5 = vpop.permute.xlu0 %5391  ;;  %8043 = vmatprep.subr.bf16.mxu1 %v8042_v32 }
 0x724   :  { %v5274_v43 = vpop.permute.xlu1 %5273 }
 0x725   :  { %v5506_v18 = vsel %vm2784_vm4, %v5493_v36, %v5274_v43  ;;  %8045 = vmatpush3.bf16.msra.mxu1 %v8044_v6  ;;  %v6058_v43 = vld [vmem:[%s14634_s9 + $0x28] sm:$0xff] }
 0x726   :  { %v5430_v51 = vpop.permute.xlu0 %5429  ;;  %v8048_v36 = vpack.c.bf16 %v6058_v43, %v6057_v2  ;;  %v6102_v6 = vld [vmem:[%s14634_s9 + $0x188] sm:$0xff] }
 0x727   :  { %v5559_v26 = vsel %vm5548_vm9, %v5545_v39, %v5430_v51  ;;  %v6076_v51 = vld [vmem:[%s14634_s9 + $0xb8] sm:$0xff]  ;;  %v6077_v39 = vld [vmem:[%s14634_s9 + $0xc0] sm:$0xff] }
 0x728   :  { %v5314_v23 = vpop.permute.xlu1 %5313  ;;  %v8050_v62 = vpack.c.bf16 %v6076_v51, %v6075_v3 }
 0x729   :  { %v5519_v25 = vsel %vm2812_vm6, %v5506_v18, %v5314_v23  ;;  %v6059_v18 = vld [vmem:[%s14634_s9 + $0x30] sm:$0xff]  ;;  %v6060_v23 = vld [vmem:[%s14634_s9 + $0x38] sm:$0xff] }
 0x72a   :  { %v5532_v29 = vsel %vm2840_vm11, %v5519_v25, %v5353_v60  ;;  %v5467_v19 = vpop.permute.xlu0 %5466  ;;  %v8052_v17 = vpack.c.bf16 %v6060_v23, %v6059_v18  ;;  %v6078_v25 = vld [vmem:[%s14634_s9 + $0xc8] sm:$0xff] }
 0x72b   :  { %v5573_v45 = vsel %vm5562_vm12, %v5559_v26, %v5467_v19  ;;  %v5546_v40 = vsel %vm5534_vm5, %v5532_v29, %v5392_v5  ;;  %v6074_v5 = vld [vmem:[%s14634_s9 + $0xa8] sm:$0xff]  ;;  %v8054_v26 = vpack.c.bf16 %v6078_v25, %v6077_v39 }
 0x72c   :  { %v5622_v61 = vmul.f32 %v5596_v11, %v5573_v45  ;;  %v5432_v54 = vpop.permute.xlu1 %5431  ;;  %v8046_v15 = vpack.c.bf16 %v6074_v5, %v6073_v35  ;;  %v6061_v11 = vld [vmem:[%s14634_s9 + $0x40] sm:$0xff]  ;;  %v6062_v29 = vld [vmem:[%s14634_s9 + $0x48] sm:$0xff]  ;;  %v8070_v35 = vpack.c.bf16 %v6102_v6, %v6101_v55  ;;  %v6228_v55 = vld [vmem:[%s14634_s9 + $0x578] sm:$0xff] }
 0x72d   :  { %v5560_v20 = vsel %vm5548_vm9, %v5546_v40, %v5432_v54  ;;  %v8056_v19 = vpack.c.bf16 %v6062_v29, %v6061_v11  ;;  %v13988_v40 = vld [vmem:[%s14631_s6] ss:$0 sm:$0xff] }
 0x72e   :  { %v5469_v27 = vpop.permute.xlu0 %5468  ;;  %5807 = vmatmul.mubr.f32.gmra.mrb[118].mxu1 %v5622_v61  ;;  %8047 = vmatprep.subr.bf16.mxu1 %v8046_v15  ;;  %v6079_v61 = vld [vmem:[%s14634_s9 + $0xd0] sm:$0xff] }
 0x72f   :  { %v5574_v60 = vsel %vm5562_vm12, %v5560_v20, %v5469_v27  ;;  %7044 = vmatprep.mubr.msk.f32.mxu1 %vm2756_vm2, %v5625_v21  ;;  %8049 = vmatpush3.bf16.msra.mxu1 %v8048_v36 }
 0x730   :  { %v5624_v16 = vmul.f32 %v5598_v57, %v5574_v60  ;;  %v5237_v48 = vpop.permute.xlu1 %5236  ;;  %8051 = vmatprep.subr.bf16.mxu1 %v8050_v62  ;;  %v6064_v57 = vld [vmem:[%s14634_s9 + $0x58] sm:$0xff] }
 0x731   :  { %v5494_v42 = vsel %vm2756_vm2, %v13605_v13, %v5237_v48  ;;  %v6240_v60 = vld [vmem:[%s14634_s9 + $0x5d8] sm:$0xff] }
 0x732   :  { %v5276_v22 = vpop.permute.xlu0 %5275  ;;  %5812 = vmatmul.mubr.f32.gmra.mrb[120].mxu1 %v5624_v16  ;;  %v8060_v16 = vpack.c.bf16 %v6064_v57, %v6063_v56 }
 0x733   :  { %v5507_v59 = vsel %vm2784_vm4, %v5494_v42, %v5276_v22  ;;  %7045 = vmatprep.mubr.msk.f32.mxu1 %vm2756_vm2, %v5627_v8  ;;  %8053 = vmatpush3.bf16.msra.mxu1 %v8052_v17  ;;  %v6223_v42 = vld [vmem:[%s14634_s9 + $0x550] sm:$0xff]  ;;  %v6224_v22 = vld [vmem:[%s14634_s9 + $0x558] sm:$0xff] }
 0x734   :  { %v5316_v38 = vpop.permute.xlu1 %5315  ;;  %8055 = vmatprep.subr.bf16.mxu1 %v8054_v26 }
 0x735   :  { %v5520_v37 = vsel %vm2812_vm6, %v5507_v59, %v5316_v38  ;;  %v6081_v59 = vld [vmem:[%s14634_s9 + $0xe0] sm:$0xff]  ;;  %v8220_v38 = vpack.c.bf16 %v6224_v22, %v6223_v42 }
 0x736   :  { %v5355_v1 = vpop.permute.xlu0 %5354 }
 0x737   :  { %v5533_v58 = vsel %vm2840_vm11, %v5520_v37, %v5355_v1  ;;  %8057 = vmatpush3.bf16.msra.mxu1 %v8056_v19  ;;  %v6082_v37 = vld [vmem:[%s14634_s9 + $0xe8] sm:$0xff]  ;;  %v6065_v1 = vld [vmem:[%s14634_s9 + $0x60] sm:$0xff] }
 0x738   :  { %v5394_v24 = vpop.permute.xlu1 %5393  ;;  %v6241_v19 = vld [vmem:[%s14634_s9 + $0x5e0] sm:$0xff] }
 0x739   :  { %v5547_v12 = vsel %vm5534_vm5, %v5533_v58, %v5394_v24  ;;  %v6066_v58 = vld [vmem:[%s14634_s9 + $0x68] sm:$0xff]  ;;  %v8062_v24 = vpack.c.bf16 %v6082_v37, %v6081_v59 }
 0x73a   :  { %v5561_v13 = vsel %vm5548_vm9, %v5547_v12, %v5432_v54  ;;  %v6080_v54 = vld [vmem:[%s14634_s9 + $0xd8] sm:$0xff]  ;;  %v8064_v12 = vpack.c.bf16 %v6066_v58, %v6065_v1 }
 0x73b   :  { %v5575_v50 = vsel %vm5562_vm12, %v5561_v13, %v5469_v27  ;;  %v8058_v20 = vpack.c.bf16 %v6080_v54, %v6079_v61  ;;  %v6239_v27 = vld [vmem:[%s14634_s9 + $0x5d0] sm:$0xff]  ;;  %v6225_v61 = vld [vmem:[%s14634_s9 + $0x560] sm:$0xff]  ;;  %v6226_v54 = vld [vmem:[%s14634_s9 + $0x568] sm:$0xff] }
 0x73c   :  { %v5626_v14 = vmul.f32 %v5600_v46, %v5575_v50  ;;  %v8218_v48 = vpack.c.bf16 %v6240_v60, %v6239_v27  ;;  %v6083_v50 = vld [vmem:[%s14634_s9 + $0xf0] sm:$0xff]  ;;  %v8224_v27 = vpack.c.bf16 %v6226_v54, %v6225_v61 }
 0x73d   :  { %8059 = vmatprep.subr.bf16.mxu1 %v8058_v20 }
 0x73e   :  { %5817 = vmatmul.mubr.f32.gmra.mrb[122].mxu1 %v5626_v14  ;;  %8219 = vmatprep.subr.bf16.mxu0 %v8218_v48  ;;  %v6084_v14 = vld [vmem:[%s14634_s9 + $0xf8] sm:$0xff] }
 0x73f   :  { %8061 = vmatpush3.bf16.msra.mxu1 %v8060_v16  ;;  %8221 = vmatpush3.bf16.msra.mxu0 %v8220_v38  ;;  %v8066_v44 = vpack.c.bf16 %v6084_v14, %v6083_v50 }
 0x740   :  { %8063 = vmatprep.subr.bf16.mxu1 %v8062_v24 }
 0x743   :  { %8065 = vmatpush3.bf16.msra.mxu1 %v8064_v12 }
 0x744   :  { %8067 = vmatprep.subr.bf16.mxu1 %v8066_v44 }
 0x747   :  { %8069 = vmatpush3.bf16.msra.mxu1 %v8068_v47 }
 0x748   :  { %8071 = vmatprep.subr.bf16.mxu1 %v8070_v35 }
 0x777   :  { %v5758_v45 = vpop.f32.mrb[98].mxu1 }
 0x778   :  { %v5760_v21 = vpop.f32.mrb[99].mxu1  ;;  %v5759_v8 = vadd.f32 %v13988_v40, %v5758_v45  ;;  %v6242_v45 = vld [vmem:[%s14634_s9 + $0x5e8] sm:$0xff] }
 0x779   :  { %v8222_v21 = vpack.c.bf16 %v6242_v45, %v6241_v19 }
 0x77a   :  { %v5835_v46 = vmul.f32 0.01, %v5759_v8  ;;  %vm5822_vm8 = vcmp.gt.f32.partialorder %v5759_v8, 0.0 }
 0x77b   :  { %8223 = vmatprep.subr.bf16.mxu0 %v8222_v21 }
 0x77c   :  { %v14034_v49 = vsel %vm5822_vm8, %v5759_v8, %v5835_v46  ;;  %8225 = vmatpush3.bf16.msra.mxu0 %v8224_v27 }
 0x77d   :  { %v5862_v53 = vrot.slane %v14034_v49, 2  ;;  %v5866_v33 = vrot.slane %v14034_v49, 4  ;;  %v5870_v5 = vrot.slane %v14034_v49, 6 }
 0x780   :  { %v5763_v13 = vpop.f32.mrb[100].mxu1 }
 0x781   :  { %v5764_v9 = vadd.f32 %v13988_v40, %v5763_v13  ;;  %v5765_v0 = vpop.f32.mrb[101].mxu1 }
 0x783   :  { %vm5823_vm10 = vcmp.gt.f32.partialorder %v5764_v9, 0.0  ;;  %v5836_v41 = vmul.f32 0.01, %v5764_v9 }
 0x785   :  { %v14036_v52 = vsel %vm5823_vm10, %v5764_v9, %v5836_v41 }
 0x786   :  { %v5875_v4 = vrot.slane %v14036_v52, 2  ;;  %v5879_v10 = vrot.slane %v14036_v52, 4  ;;  %v5883_v63 = vrot.slane %v14036_v52, 6 }
 0x788   :  { %v8257_v32 = vpack.i.bf16 %v5866_v33, %v5879_v10  ;;  %v8252_v28 = vpack.i.bf16 %v5862_v53, %v5875_v4  ;;  %v8262_v2 = vpack.i.bf16 %v5870_v5, %v5883_v63  ;;  %v6243_v4 = vld [vmem:[%s14634_s9 + $0x5f0] sm:$0xff]  ;;  %v6244_v10 = vld [vmem:[%s14634_s9 + $0x5f8] sm:$0xff] }
 0x789   :  { %v8226_v31 = vpack.c.bf16 %v6244_v10, %v6243_v4 }
 0x78a   :  { %8258 = vrot.lane.b32.xlu1 %v8257_v32, %s8375_s29  ;;  %8253 = vrot.lane.b32.xlu0 %v8252_v28, %s8378_s18  ;;  %v8228_v32 = vpack.c.bf16 %v6228_v55, %v6227_v30 }
 0x78b   :  { %8227 = vmatprep.subr.bf16.mxu0 %v8226_v31 }
 0x78c   :  { %8229 = vmatpush3.bf16.msra.mxu0 %v8228_v32 }
 0x78e   :  { %8263 = vrot.lane.b32.xlu0 %v8262_v2, %s8385_s1 }
 0x793   :  { %v5768_v15 = vpop.f32.mrb[102].mxu1 }
 0x794   :  { %v5770_v43 = vpop.f32.mrb[103].mxu1  ;;  %v5769_v3 = vadd.f32 %v13988_v40, %v5768_v15 }
 0x796   :  { %v5837_v51 = vmul.f32 0.01, %v5769_v3  ;;  %vm5824_vm7 = vcmp.gt.f32.partialorder %v5769_v3, 0.0 }
 0x798   :  { %v14061_v23 = vsel %vm5824_vm7, %v5769_v3, %v5837_v51 }
 0x799   :  { %v5888_v25 = vrot.slane %v14061_v23, 2  ;;  %v5892_v11 = vrot.slane %v14061_v23, 4  ;;  %v5896_v60 = vrot.slane %v14061_v23, 6 }
 0x7a0   :  { %v5773_v36 = vpop.f32.mrb[104].mxu1 }
 0x7a1   :  { %v5774_v62 = vadd.f32 %v13988_v40, %v5773_v36  ;;  %v5775_v18 = vpop.f32.mrb[105].mxu1 }
 0x7a3   :  { %vm5825_vm2 = vcmp.gt.f32.partialorder %v5774_v62, 0.0  ;;  %v5838_v17 = vmul.f32 0.01, %v5774_v62 }
 0x7a5   :  { %v14063_v39 = vsel %vm5825_vm2, %v5774_v62, %v5838_v17 }
 0x7a6   :  { %v5901_v26 = vrot.slane %v14063_v39, 2  ;;  %v5905_v29 = vrot.slane %v14063_v39, 4  ;;  %v5909_v56 = vrot.slane %v14063_v39, 6 }
 0x7a8   :  { %v8272_v20 = vpack.i.bf16 %v5892_v11, %v5905_v29  ;;  %v8267_v57 = vpack.i.bf16 %v5888_v25, %v5901_v26  ;;  %v8277_v8 = vpack.i.bf16 %v5896_v60, %v5909_v56 }
 0x7aa   :  { %8273 = vrot.lane.b32.xlu0 %v8272_v20, %s8375_s29  ;;  %8268 = vrot.lane.b32.xlu1 %v8267_v57, %s8378_s18 }
 0x7ae   :  { %8278 = vrot.lane.b32.xlu1 %v8277_v8, %s8385_s1 }
 0x7af   :  { %v5778_v16 = vpop.f32.mrb[106].mxu1 }
 0x7b0   :  { %v5780_v48 = vpop.f32.mrb[107].mxu1  ;;  %v5779_v42 = vadd.f32 %v13988_v40, %v5778_v16 }
 0x7b2   :  { %v5839_v22 = vmul.f32 0.01, %v5779_v42  ;;  %vm5826_vm6 = vcmp.gt.f32.partialorder %v5779_v42, 0.0 }
 0x7b4   :  { %v14088_v1 = vsel %vm5826_vm6, %v5779_v42, %v5839_v22 }
 0x7b5   :  { %v5926_v12 = vrot.slane %v14088_v1, 2  ;;  %v5930_v46 = vrot.slane %v14088_v1, 4  ;;  %v5934_v44 = vrot.slane %v14088_v1, 6 }
 0x7c0   :  { %v5783_v59 = vpop.f32.mrb[108].mxu1 }
 0x7c1   :  { %v5784_v38 = vadd.f32 %v13988_v40, %v5783_v59  ;;  %v5785_v37 = vpop.f32.mrb[109].mxu1 }
 0x7c3   :  { %vm5827_vm13 = vcmp.gt.f32.partialorder %v5784_v38, 0.0  ;;  %v5840_v58 = vmul.f32 0.01, %v5784_v38 }
 0x7c5   :  { %v14090_v24 = vsel %vm5827_vm13, %v5784_v38, %v5840_v58 }
 0x7c6   :  { %v5939_v13 = vrot.slane %v14090_v24, 2  ;;  %v5943_v50 = vrot.slane %v14090_v24, 4  ;;  %v5947_v14 = vrot.slane %v14090_v24, 6 }
 0x7c8   :  { %v8287_v9 = vpack.i.bf16 %v5930_v46, %v5943_v50  ;;  %v8282_v0 = vpack.i.bf16 %v5926_v12, %v5939_v13  ;;  %v8292_v41 = vpack.i.bf16 %v5934_v44, %v5947_v14  ;;  %v6086_v44 = vld [vmem:[%s14634_s9 + $0x108] sm:$0xff] }
 0x7ca   :  { %8288 = vrot.lane.b32.xlu1 %v8287_v9, %s8375_s29  ;;  %8283 = vrot.lane.b32.xlu0 %v8282_v0, %s8378_s18  ;;  %v6085_v0 = vld [vmem:[%s14634_s9 + $0x100] sm:$0xff] }
 0x7cd   :  { %v5788_v53 = vpop.f32.mrb[110].mxu1 }
 0x7ce   :  { %v5790_v33 = vpop.f32.mrb[111].mxu1  ;;  %8293 = vrot.lane.b32.xlu0 %v8292_v41, %s8385_s1  ;;  %v5789_v63 = vadd.f32 %v13988_v40, %v5788_v53  ;;  %v6103_v53 = vld [vmem:[%s14634_s9 + $0x190] sm:$0xff] }
 0x7d0   :  { %v5841_v28 = vmul.f32 0.01, %v5789_v63  ;;  %vm5828_vm14 = vcmp.gt.f32.partialorder %v5789_v63, 0.0 }
 0x7d2   :  { %v14115_v5 = vsel %vm5828_vm14, %v5789_v63, %v5841_v28  ;;  %v8072_v63 = vpack.c.bf16 %v6086_v44, %v6085_v0 }
 0x7d3   :  { %v5952_v43 = vrot.slane %v14115_v5, 2  ;;  %v5956_v3 = vrot.slane %v14115_v5, 4  ;;  %v5960_v25 = vrot.slane %v14115_v5, 6 }
 0x7e0   :  { %v5793_v47 = vpop.f32.mrb[112].mxu1 }
 0x7e1   :  { %v5794_v6 = vadd.f32 %v13988_v40, %v5793_v47  ;;  %v5795_v35 = vpop.f32.mrb[113].mxu1 }
 0x7e2   :  { %v6088_v35 = vld [vmem:[%s14634_s9 + $0x118] sm:$0xff] }
 0x7e3   :  { %vm5829_vm15 = vcmp.gt.f32.partialorder %v5794_v6, 0.0  ;;  %v5842_v2 = vmul.f32 0.01, %v5794_v6 }
 0x7e5   :  { %v14117_v15 = vsel %vm5829_vm15, %v5794_v6, %v5842_v2  ;;  %v6087_v6 = vld [vmem:[%s14634_s9 + $0x110] sm:$0xff] }
 0x7e6   :  { %v5965_v51 = vrot.slane %v14117_v15, 2  ;;  %v5969_v36 = vrot.slane %v14117_v15, 4  ;;  %v5973_v62 = vrot.slane %v14117_v15, 6 }
 0x7e8   :  { %v8302_v18 = vpack.i.bf16 %v5956_v3, %v5969_v36  ;;  %v8297_v17 = vpack.i.bf16 %v5952_v43, %v5965_v51  ;;  %v8307_v11 = vpack.i.bf16 %v5960_v25, %v5973_v62  ;;  %v6105_v43 = vld [vmem:[%s14634_s9 + $0x1a0] sm:$0xff]  ;;  %v6106_v3 = vld [vmem:[%s14634_s9 + $0x1a8] sm:$0xff] }
 0x7e9   :  { %v6089_v25 = vld [vmem:[%s14634_s9 + $0x120] sm:$0xff] }
 0x7ea   :  { %8303 = vrot.lane.b32.xlu0 %v8302_v18, %s8375_s29  ;;  %8298 = vrot.lane.b32.xlu1 %v8297_v17, %s8378_s18  ;;  %v8076_v18 = vpack.c.bf16 %v6088_v35, %v6087_v6  ;;  %v8078_v17 = vpack.c.bf16 %v6106_v3, %v6105_v43  ;;  %v6099_v6 = vld [vmem:[%s14634_s9 + $0x170] sm:$0xff]  ;;  %v6100_v35 = vld [vmem:[%s14634_s9 + $0x178] sm:$0xff] }
 0x7eb   :  { %v6133_v3 = vld [vmem:[%s14634_s9 + $0x280] sm:$0xff] }
 0x7ed   :  { %v5798_v26 = vpop.f32.mrb[114].mxu1 }
 0x7ee   :  { %v5799_v29 = vadd.f32 %v13988_v40, %v5798_v26  ;;  %v5800_v19 = vpop.f32.mrb[115].mxu1  ;;  %8308 = vrot.lane.b32.xlu1 %v8307_v11, %s8385_s1  ;;  %v6090_v11 = vld [vmem:[%s14634_s9 + $0x128] sm:$0xff] }
 0x7ef   :  { %v6108_v19 = vld [vmem:[%s14634_s9 + $0x1b8] sm:$0xff] }
 0x7f0   :  { %v5843_v45 = vmul.f32 0.01, %v5799_v29  ;;  %vm5830_vm1 = vcmp.gt.f32.partialorder %v5799_v29, 0.0 }
 0x7f2   :  { %v14130_v56 = vsel %vm5830_vm1, %v5799_v29, %v5843_v45 }
 0x7f3   :  { %v5803_v21 = vpop.f32.mrb[116].mxu1  ;;  %v5990_v27 = vrot.slane %v14130_v56, 2  ;;  %v5994_v60 = vrot.slane %v14130_v56, 4  ;;  %v5998_v37 = vrot.slane %v14130_v56, 6 }
 0x7f4   :  { %v5804_v61 = vadd.f32 %v13988_v40, %v5803_v21  ;;  %v5805_v54 = vpop.f32.mrb[117].mxu1  ;;  %v8080_v21 = vpack.c.bf16 %v6090_v11, %v6089_v25  ;;  %v8100_v25 = vpack.c.bf16 %v6100_v35, %v6099_v6  ;;  %v6145_v6 = vld [vmem:[%s14634_s9 + $0x2e0] sm:$0xff]  ;;  %v6146_v35 = vld [vmem:[%s14634_s9 + $0x2e8] sm:$0xff] }
 0x7f6   :  { %vm5831_vm3 = vcmp.gt.f32.partialorder %v5804_v61, 0.0  ;;  %v5844_v20 = vmul.f32 0.01, %v5804_v61 }
 0x7f8   :  { %v14132_v57 = vsel %vm5831_vm3, %v5804_v61, %v5844_v20 }
 0x7f9   :  { %v6003_v8 = vrot.slane %v14132_v57, 2  ;;  %v6007_v16 = vrot.slane %v14132_v57, 4  ;;  %v6011_v48 = vrot.slane %v14132_v57, 6 }
 0x7fb   :  { %v8317_v42 = vpack.i.bf16 %v5994_v60, %v6007_v16  ;;  %v8312_v22 = vpack.i.bf16 %v5990_v27, %v6003_v8  ;;  %v8322_v14 = vpack.i.bf16 %v5998_v37, %v6011_v48  ;;  %v6091_v60 = vld [vmem:[%s14634_s9 + $0x130] sm:$0xff]  ;;  %v6092_v8 = vld [vmem:[%s14634_s9 + $0x138] sm:$0xff]  ;;  %v6109_v48 = vld [vmem:[%s14634_s9 + $0x1c0] sm:$0xff] }
 0x7fc   :  { %v8254_v59 = vpop.permute.xlu0 %8253  ;;  %v8259_v38 = vpop.permute.xlu1 %8258  ;;  %v8084_v37 = vpack.c.bf16 %v6092_v8, %v6091_v60 }
 0x7fd   :  { %v8256_v58 = vunpack.i.h.bf16 %v8254_v59  ;;  %v8255_v12 = vunpack.i.l.bf16 %v8254_v59  ;;  %8318 = vrot.lane.b32.xlu1 %v8317_v42, %s8375_s29  ;;  %8313 = vrot.lane.b32.xlu0 %v8312_v22, %s8378_s18  ;;  %v8261_v46 = vunpack.i.h.bf16 %v8259_v38  ;;  %v8260_v13 = vunpack.i.l.bf16 %v8259_v38  ;;  %v6110_v42 = vld [vmem:[%s14634_s9 + $0x1c8] sm:$0xff] }
 0x7ff   :  { %v5913_v50 = vsel %vm2784_vm4, %v14034_v49, %v8256_v58  ;;  %v5916_v9 = vsel %vm2784_vm4, %v14036_v52, %v8255_v12  ;;  %v6104_v49 = vld [vmem:[%s14634_s9 + $0x198] sm:$0xff]  ;;  %v8086_v12 = vpack.c.bf16 %v6110_v42, %v6109_v48 }
 0x800   :  { %v8264_v41 = vpop.permute.xlu0 %8263  ;;  %v5914_v10 = vsel %vm2840_vm11, %v5913_v50, %v8261_v46  ;;  %v5917_v55 = vsel %vm2840_vm11, %v5916_v9, %v8260_v13  ;;  %v8074_v47 = vpack.c.bf16 %v6104_v49, %v6103_v53  ;;  %v6093_v46 = vld [vmem:[%s14634_s9 + $0x140] sm:$0xff]  ;;  %v6094_v13 = vld [vmem:[%s14634_s9 + $0x148] sm:$0xff]  ;;  %v6111_v50 = vld [vmem:[%s14634_s9 + $0x1d0] sm:$0xff] }
 0x801   :  { %v8266_v33 = vunpack.i.h.bf16 %v8264_v41  ;;  %v8265_v4 = vunpack.i.l.bf16 %v8264_v41  ;;  %v5808_v52 = vpop.f32.mrb[118].mxu1  ;;  %8323 = vrot.lane.b32.xlu0 %v8322_v14, %s8385_s1  ;;  %v6112_v14 = vld [vmem:[%s14634_s9 + $0x1d8] sm:$0xff]  ;;  %v8088_v41 = vpack.c.bf16 %v6094_v13, %v6093_v46  ;;  %v6095_v49 = vld [vmem:[%s14634_s9 + $0x150] sm:$0xff]  ;;  %v6121_v46 = vld [vmem:[%s14634_s9 + $0x220] sm:$0xff] }
 0x802   :  { %v5809_v31 = vadd.f32 %v13988_v40, %v5808_v52  ;;  %v5810_v30 = vpop.f32.mrb[119].mxu1  ;;  %v8090_v53 = vpack.c.bf16 %v6112_v14, %v6111_v50  ;;  %v6114_v52 = vld [vmem:[%s14634_s9 + $0x1e8] sm:$0xff]  ;;  %v6139_v50 = vld [vmem:[%s14634_s9 + $0x2b0] sm:$0xff]  ;;  %v6140_v14 = vld [vmem:[%s14634_s9 + $0x2b8] sm:$0xff] }
 0x803   :  { %v5918_v32 = vsel %vm5548_vm9, %v5917_v55, %v8265_v4  ;;  %v5915_v28 = vsel %vm5548_vm9, %v5914_v10, %v8266_v33  ;;  %v6096_v33 = vld [vmem:[%s14634_s9 + $0x158] sm:$0xff]  ;;  %v6113_v4 = vld [vmem:[%s14634_s9 + $0x1e0] sm:$0xff]  ;;  %v6098_v55 = vld [vmem:[%s14634_s9 + $0x168] sm:$0xff] }
 0x804   :  { %v5845_v2 = vmul.f32 0.01, %v5809_v31  ;;  %6323 = vmatprep.mubr.f32.mxu1 %v5918_v32  ;;  %vm5832_vm5 = vcmp.gt.f32.partialorder %v5809_v31, 0.0  ;;  %v8092_v10 = vpack.c.bf16 %v6096_v33, %v6095_v49  ;;  %v6097_v30 = vld [vmem:[%s14634_s9 + $0x160] sm:$0xff]  ;;  %v6116_v32 = vld [vmem:[%s14634_s9 + $0x1f8] sm:$0xff]  ;;  %v6122_v13 = vld [vmem:[%s14634_s9 + $0x228] sm:$0xff] }
 0x805   :  { %v5813_v51 = vpop.f32.mrb[120].mxu1  ;;  %6324 = vmatmul.mubr.f32.vlgmr.msra.gmra.mrb[124].mxu1 %v5915_v28  ;;  %v8096_v28 = vpack.c.bf16 %v6098_v55, %v6097_v30  ;;  %v6141_v49 = vld [vmem:[%s14634_s9 + $0x2c0] sm:$0xff]  ;;  %v6142_v33 = vld [vmem:[%s14634_s9 + $0x2c8] sm:$0xff]  ;;  %v6143_v30 = vld [vmem:[%s14634_s9 + $0x2d0] sm:$0xff] }
 0x806   :  { %v5814_v36 = vadd.f32 %v13988_v40, %v5813_v51  ;;  %8073 = vmatpush3.bf16.msra.mxu1 %v8072_v63  ;;  %v5815_v62 = vpop.f32.mrb[121].mxu1  ;;  %v14183_v26 = vsel %vm5832_vm5, %v5809_v31, %v5845_v2  ;;  %v6107_v40 = vld [vmem:[%s14634_s9 + $0x1b0] sm:$0xff]  ;;  %v8094_v31 = vpack.c.bf16 %v6114_v52, %v6113_v4  ;;  %v6134_v51 = vld [vmem:[%s14634_s9 + $0x288] sm:$0xff]  ;;  %v8118_v52 = vpack.c.bf16 %v6142_v33, %v6141_v49  ;;  %v6144_v55 = vld [vmem:[%s14634_s9 + $0x2d8] sm:$0xff] }
 0x807   :  { %8075 = vmatprep.subr.bf16.mxu1 %v8074_v47  ;;  %v6016_v61 = vrot.slane %v14183_v26, 2  ;;  %v6020_v54 = vrot.slane %v14183_v26, 4  ;;  %v8082_v16 = vpack.c.bf16 %v6108_v19, %v6107_v40  ;;  %v6024_v58 = vrot.slane %v14183_v26, 6  ;;  %v6115_v63 = vld [vmem:[%s14634_s9 + $0x1f0] sm:$0xff]  ;;  %v6117_v19 = vld [vmem:[%s14634_s9 + $0x200] sm:$0xff]  ;;  %v6154_v33 = vld [vmem:[%s14634_s9 + $0x328] sm:$0xff] }
 0x808   :  { %vm5833_vm12 = vcmp.gt.f32.partialorder %v5814_v36, 0.0  ;;  %v5846_v29 = vmul.f32 0.01, %v5814_v36  ;;  %v8098_v47 = vpack.c.bf16 %v6116_v32, %v6115_v63  ;;  %v8102_v40 = vpack.c.bf16 %v6134_v51, %v6133_v3  ;;  %v6129_v3 = vld [vmem:[%s14634_s9 + $0x260] sm:$0xff]  ;;  %v6130_v51 = vld [vmem:[%s14634_s9 + $0x268] sm:$0xff] }
 0x809   :  { %v8122_v32 = vpack.c.bf16 %v6144_v55, %v6143_v30  ;;  %v6153_v49 = vld [vmem:[%s14634_s9 + $0x320] sm:$0xff]  ;;  %v6155_v30 = vld [vmem:[%s14634_s9 + $0x330] sm:$0xff]  ;;  %v6156_v55 = vld [vmem:[%s14634_s9 + $0x338] sm:$0xff] }
 0x80a   :  { %v14191_v45 = vsel %vm5833_vm12, %v5814_v36, %v5846_v29  ;;  %8077 = vmatpush3.bf16.msra.mxu1 %v8076_v18 }
 0x80b   :  { %v6029_v20 = vrot.slane %v14191_v45, 2  ;;  %v6033_v27 = vrot.slane %v14191_v45, 4  ;;  %8079 = vmatprep.subr.bf16.mxu1 %v8078_v17  ;;  %v6037_v22 = vrot.slane %v14191_v45, 6 }
 0x80d   :  { %v8332_v59 = vpack.i.bf16 %v6020_v54, %v6033_v27  ;;  %v8327_v38 = vpack.i.bf16 %v6016_v61, %v6029_v20  ;;  %v8337_v0 = vpack.i.bf16 %v6024_v58, %v6037_v22  ;;  %v6135_v54 = vld [vmem:[%s14634_s9 + $0x290] sm:$0xff] }
 0x80e   :  { %8081 = vmatpush3.bf16.msra.mxu1 %v8080_v21  ;;  %v6118_v21 = vld [vmem:[%s14634_s9 + $0x208] sm:$0xff]  ;;  %v6119_v22 = vld [vmem:[%s14634_s9 + $0x210] sm:$0xff] }
 0x80f   :  { %8333 = vrot.lane.b32.xlu0 %v8332_v59, %s8375_s29  ;;  %8328 = vrot.lane.b32.xlu1 %v8327_v38, %s8378_s18  ;;  %v8104_v8 = vpack.c.bf16 %v6118_v21, %v6117_v19  ;;  %v6120_v59 = vld [vmem:[%s14634_s9 + $0x218] sm:$0xff]  ;;  %v6137_v38 = vld [vmem:[%s14634_s9 + $0x2a0] sm:$0xff] }
 0x810   :  { %8083 = vmatprep.subr.bf16.mxu1 %v8082_v16  ;;  %v8108_v58 = vpack.c.bf16 %v6120_v59, %v6119_v22  ;;  %v6165_v19 = vld [vmem:[%s14634_s9 + $0x380] sm:$0xff]  ;;  %v6166_v21 = vld [vmem:[%s14634_s9 + $0x388] sm:$0xff]  ;;  %v6167_v22 = vld [vmem:[%s14634_s9 + $0x390] sm:$0xff] }
 0x811   :  { %v14225_v9 = vpop.f32.mrb[122].mxu1 }
 0x812   :  { %8085 = vmatpush3.bf16.msra.mxu1 %v8084_v37  ;;  %v5820_v44 = vpop.f32.mrb[123].mxu1  ;;  %v6138_v37 = vld [vmem:[%s14634_s9 + $0x2a8] sm:$0xff] }
 0x813   :  { %8338 = vrot.lane.b32.xlu1 %v8337_v0, %s8385_s1  ;;  %8087 = vmatprep.subr.bf16.mxu1 %v8086_v12  ;;  %v8110_v12 = vpack.c.bf16 %v6138_v37, %v6137_v38  ;;  %v8112_v0 = vpack.c.bf16 %v6122_v13, %v6121_v46  ;;  %v8114_v44 = vpack.c.bf16 %v6140_v14, %v6139_v50  ;;  %v6151_v50 = vld [vmem:[%s14634_s9 + $0x310] sm:$0xff]  ;;  %v6152_v14 = vld [vmem:[%s14634_s9 + $0x318] sm:$0xff] }
 0x816   :  { %8089 = vmatpush3.bf16.msra.mxu1 %v8088_v41  ;;  %v6123_v41 = vld [vmem:[%s14634_s9 + $0x230] sm:$0xff] }
 0x817   :  { %8091 = vmatprep.subr.bf16.mxu1 %v8090_v53  ;;  %v6124_v53 = vld [vmem:[%s14634_s9 + $0x238] sm:$0xff] }
 0x818   :  { %v8116_v4 = vpack.c.bf16 %v6124_v53, %v6123_v41  ;;  %v8140_v41 = vpack.c.bf16 %v6152_v14, %v6151_v50 }
 0x81a   :  { %8093 = vmatpush3.bf16.msra.mxu1 %v8092_v10  ;;  %v6125_v10 = vld [vmem:[%s14634_s9 + $0x240] sm:$0xff] }
 0x81b   :  { %8095 = vmatprep.subr.bf16.mxu1 %v8094_v31  ;;  %v6126_v31 = vld [vmem:[%s14634_s9 + $0x248] sm:$0xff] }
 0x81c   :  { %v8274_v2 = vpop.permute.xlu0 %8273  ;;  %v8269_v43 = vpop.permute.xlu1 %8268  ;;  %v8120_v63 = vpack.c.bf16 %v6126_v31, %v6125_v10  ;;  %v8144_v10 = vpack.c.bf16 %v6154_v33, %v6153_v49  ;;  %v6183_v49 = vld [vmem:[%s14634_s9 + $0x410] sm:$0xff]  ;;  %v6184_v33 = vld [vmem:[%s14634_s9 + $0x418] sm:$0xff] }
 0x81d   :  { %v8271_v36 = vunpack.i.h.bf16 %v8269_v43  ;;  %v8270_v62 = vunpack.i.l.bf16 %v8269_v43  ;;  %v8276_v18 = vunpack.i.h.bf16 %v8274_v2  ;;  %v8275_v17 = vunpack.i.l.bf16 %v8274_v2 }
 0x81e   :  { %8097 = vmatpush3.bf16.msra.mxu1 %v8096_v28  ;;  %v6127_v28 = vld [vmem:[%s14634_s9 + $0x250] sm:$0xff]  ;;  %v8126_v43 = vpack.c.bf16 %v6146_v35, %v6145_v6  ;;  %v6157_v6 = vld [vmem:[%s14634_s9 + $0x340] sm:$0xff]  ;;  %v6158_v35 = vld [vmem:[%s14634_s9 + $0x348] sm:$0xff] }
 0x81f   :  { %v5919_v11 = vsel %vm2784_vm4, %v14061_v23, %v8271_v36  ;;  %8099 = vmatprep.subr.bf16.mxu1 %v8098_v47  ;;  %v5922_v29 = vsel %vm2784_vm4, %v14063_v39, %v8270_v62  ;;  %v6136_v23 = vld [vmem:[%s14634_s9 + $0x298] sm:$0xff]  ;;  %v6147_v36 = vld [vmem:[%s14634_s9 + $0x2f0] sm:$0xff] }
 0x820   :  { %v8279_v61 = vpop.permute.xlu1 %8278  ;;  %v5923_v27 = vsel %vm2840_vm11, %v5922_v29, %v8275_v17  ;;  %v5920_v60 = vsel %vm2840_vm11, %v5919_v11, %v8276_v18  ;;  %v8106_v42 = vpack.c.bf16 %v6136_v23, %v6135_v54  ;;  %v6128_v47 = vld [vmem:[%s14634_s9 + $0x258] sm:$0xff]  ;;  %v8128_v18 = vpack.c.bf16 %v6130_v51, %v6129_v3 }
 0x821   :  { %v8281_v20 = vunpack.i.h.bf16 %v8279_v61  ;;  %v8280_v39 = vunpack.i.l.bf16 %v8279_v61  ;;  %v8124_v2 = vpack.c.bf16 %v6128_v47, %v6127_v28  ;;  %v6148_v62 = vld [vmem:[%s14634_s9 + $0x2f8] sm:$0xff]  ;;  %v8148_v28 = vpack.c.bf16 %v6156_v55, %v6155_v30  ;;  %v6185_v30 = vld [vmem:[%s14634_s9 + $0x420] sm:$0xff]  ;;  %v6186_v55 = vld [vmem:[%s14634_s9 + $0x428] sm:$0xff] }
 0x822   :  { %8101 = vmatpush3.bf16.msra.mxu1 %v8100_v25  ;;  %v8130_v17 = vpack.c.bf16 %v6148_v62, %v6147_v36  ;;  %v6131_v25 = vld [vmem:[%s14634_s9 + $0x270] sm:$0xff]  ;;  %v6132_v11 = vld [vmem:[%s14634_s9 + $0x278] sm:$0xff]  ;;  %v8152_v3 = vpack.c.bf16 %v6158_v35, %v6157_v6 }
 0x823   :  { %v5924_v16 = vsel %vm5548_vm9, %v5923_v27, %v8280_v39  ;;  %8103 = vmatprep.subr.bf16.mxu1 %v8102_v40  ;;  %v5921_v48 = vsel %vm5548_vm9, %v5920_v60, %v8281_v20  ;;  %v8132_v39 = vpack.c.bf16 %v6132_v11, %v6131_v25  ;;  %v6159_v36 = vld [vmem:[%s14634_s9 + $0x350] sm:$0xff]  ;;  %v6160_v62 = vld [vmem:[%s14634_s9 + $0x358] sm:$0xff] }
 0x824   :  { %6393 = vmatprep.mubr.f32.mxu1 %v5924_v16  ;;  %v6149_v16 = vld [vmem:[%s14634_s9 + $0x300] sm:$0xff]  ;;  %v8156_v25 = vpack.c.bf16 %v6160_v62, %v6159_v36  ;;  %v6187_v6 = vld [vmem:[%s14634_s9 + $0x430] sm:$0xff]  ;;  %v6188_v35 = vld [vmem:[%s14634_s9 + $0x438] sm:$0xff] }
 0x825   :  { %6394 = vmatmul.mubr.f32.vlgmr.msra.gmra.mrb[126].mxu1 %v5921_v48  ;;  %v6150_v48 = vld [vmem:[%s14634_s9 + $0x308] sm:$0xff] }
 0x826   :  { %8105 = vmatpush3.bf16.msra.mxu1 %v8104_v8  ;;  %v8134_v8 = vpack.c.bf16 %v6166_v21, %v6165_v19  ;;  %v6179_v19 = vld [vmem:[%s14634_s9 + $0x3f0] sm:$0xff]  ;;  %v6180_v21 = vld [vmem:[%s14634_s9 + $0x3f8] sm:$0xff] }
 0x827   :  { %8107 = vmatprep.subr.bf16.mxu1 %v8106_v42 }
 0x82a   :  { %8109 = vmatpush3.bf16.msra.mxu1 %v8108_v58  ;;  %v8136_v58 = vpack.c.bf16 %v6150_v48, %v6149_v16 }
 0x82b   :  { %8111 = vmatprep.subr.bf16.mxu1 %v8110_v12 }
 0x82e   :  { %8113 = vmatpush3.bf16.msra.mxu1 %v8112_v0  ;;  %v6169_v0 = vld [vmem:[%s14634_s9 + $0x3a0] sm:$0xff] }
 0x82f   :  { %8115 = vmatprep.subr.bf16.mxu1 %v8114_v44  ;;  %v6170_v44 = vld [vmem:[%s14634_s9 + $0x3a8] sm:$0xff] }
 0x830   :  { %v8142_v53 = vpack.c.bf16 %v6170_v44, %v6169_v0 }
 0x832   :  { %8117 = vmatpush3.bf16.msra.mxu1 %v8116_v4  ;;  %v6171_v4 = vld [vmem:[%s14634_s9 + $0x3b0] sm:$0xff] }
 0x833   :  { %8119 = vmatprep.subr.bf16.mxu1 %v8118_v52  ;;  %v6172_v52 = vld [vmem:[%s14634_s9 + $0x3b8] sm:$0xff] }
 0x834   :  { %v8146_v31 = vpack.c.bf16 %v6172_v52, %v6171_v4  ;;  %v6201_v4 = vld [vmem:[%s14634_s9 + $0x4a0] sm:$0xff]  ;;  %v6202_v52 = vld [vmem:[%s14634_s9 + $0x4a8] sm:$0xff] }
 0x836   :  { %8121 = vmatpush3.bf16.msra.mxu1 %v8120_v63  ;;  %v6173_v63 = vld [vmem:[%s14634_s9 + $0x3c0] sm:$0xff] }
 0x837   :  { %8123 = vmatprep.subr.bf16.mxu1 %v8122_v32  ;;  %v6174_v32 = vld [vmem:[%s14634_s9 + $0x3c8] sm:$0xff] }
 0x838   :  { %v8150_v47 = vpack.c.bf16 %v6174_v32, %v6173_v63  ;;  %v6203_v63 = vld [vmem:[%s14634_s9 + $0x4b0] sm:$0xff]  ;;  %v6204_v32 = vld [vmem:[%s14634_s9 + $0x4b8] sm:$0xff] }
 0x83a   :  { %8125 = vmatpush3.bf16.msra.mxu1 %v8124_v2  ;;  %v6175_v2 = vld [vmem:[%s14634_s9 + $0x3d0] sm:$0xff] }
 0x83b   :  { %8127 = vmatprep.subr.bf16.mxu1 %v8126_v43  ;;  %v6176_v43 = vld [vmem:[%s14634_s9 + $0x3d8] sm:$0xff] }
 0x83c   :  { %v8284_v29 = vpop.permute.xlu0 %8283  ;;  %v8289_v40 = vpop.permute.xlu1 %8288  ;;  %v8154_v51 = vpack.c.bf16 %v6176_v43, %v6175_v2  ;;  %v6205_v2 = vld [vmem:[%s14634_s9 + $0x4c0] sm:$0xff]  ;;  %v6206_v43 = vld [vmem:[%s14634_s9 + $0x4c8] sm:$0xff] }
 0x83d   :  { %v8286_v61 = vunpack.i.h.bf16 %v8284_v29  ;;  %v8285_v54 = vunpack.i.l.bf16 %v8284_v29  ;;  %v8291_v23 = vunpack.i.h.bf16 %v8289_v40  ;;  %v8290_v20 = vunpack.i.l.bf16 %v8289_v40  ;;  %v6161_v29 = vld [vmem:[%s14634_s9 + $0x360] sm:$0xff]  ;;  %v6162_v40 = vld [vmem:[%s14634_s9 + $0x368] sm:$0xff] }
 0x83e   :  { %8129 = vmatpush3.bf16.msra.mxu1 %v8128_v18  ;;  %v6177_v18 = vld [vmem:[%s14634_s9 + $0x3e0] sm:$0xff]  ;;  %v8182_v62 = vpack.c.bf16 %v6206_v43, %v6205_v2 }
 0x83f   :  { %v5977_v27 = vsel %vm2784_vm4, %v14088_v1, %v8286_v61  ;;  %8131 = vmatprep.subr.bf16.mxu1 %v8130_v17  ;;  %v5980_v60 = vsel %vm2784_vm4, %v14090_v24, %v8285_v54  ;;  %v6168_v1 = vld [vmem:[%s14634_s9 + $0x398] sm:$0xff]  ;;  %v6178_v17 = vld [vmem:[%s14634_s9 + $0x3e8] sm:$0xff]  ;;  %v8160_v61 = vpack.c.bf16 %v6162_v40, %v6161_v29  ;;  %v8162_v54 = vpack.c.bf16 %v6180_v21, %v6179_v19 }
 0x840   :  { %v8294_v42 = vpop.permute.xlu0 %8293  ;;  %v5981_v38 = vsel %vm2840_vm11, %v5980_v60, %v8290_v20  ;;  %v5978_v37 = vsel %vm2840_vm11, %v5977_v27, %v8291_v23  ;;  %v8138_v13 = vpack.c.bf16 %v6168_v1, %v6167_v22  ;;  %v8158_v11 = vpack.c.bf16 %v6178_v17, %v6177_v18  ;;  %v6163_v23 = vld [vmem:[%s14634_s9 + $0x370] sm:$0xff]  ;;  %v6164_v20 = vld [vmem:[%s14634_s9 + $0x378] sm:$0xff]  ;;  %v6197_v60 = vld [vmem:[%s14634_s9 + $0x480] sm:$0xff] }
 0x841   :  { %v8296_v59 = vunpack.i.h.bf16 %v8294_v42  ;;  %v8295_v24 = vunpack.i.l.bf16 %v8294_v42  ;;  %v8164_v1 = vpack.c.bf16 %v6164_v20, %v6163_v23  ;;  %v6189_v18 = vld [vmem:[%s14634_s9 + $0x440] sm:$0xff]  ;;  %v6190_v17 = vld [vmem:[%s14634_s9 + $0x448] sm:$0xff]  ;;  %v6208_v29 = vld [vmem:[%s14634_s9 + $0x4d8] sm:$0xff] }
 0x842   :  { %8133 = vmatpush3.bf16.msra.mxu1 %v8132_v39  ;;  %v8184_v19 = vpack.c.bf16 %v6190_v17, %v6189_v18  ;;  %v6191_v23 = vld [vmem:[%s14634_s9 + $0x450] sm:$0xff]  ;;  %v6192_v20 = vld [vmem:[%s14634_s9 + $0x458] sm:$0xff] }
 0x843   :  { %v5982_v12 = vsel %vm5548_vm9, %v5981_v38, %v8295_v24  ;;  %8135 = vmatprep.subr.bf16.mxu1 %v8134_v8  ;;  %v5979_v46 = vsel %vm5548_vm9, %v5978_v37, %v8296_v59  ;;  %v6198_v8 = vld [vmem:[%s14634_s9 + $0x488] sm:$0xff]  ;;  %v6181_v37 = vld [vmem:[%s14634_s9 + $0x400] sm:$0xff] }
 0x844   :  { %6463 = vmatprep.mubr.f32.mxu1 %v5982_v12  ;;  %v8166_v38 = vpack.c.bf16 %v6198_v8, %v6197_v60 }
 0x845   :  { %6464 = vmatmul.mubr.f32.vlgmr.msra.gmra.mrb[128].mxu1 %v5979_v46  ;;  %v6199_v46 = vld [vmem:[%s14634_s9 + $0x490] sm:$0xff] }
 0x846   :  { %8137 = vmatpush3.bf16.msra.mxu1 %v8136_v58  ;;  %v6182_v58 = vld [vmem:[%s14634_s9 + $0x408] sm:$0xff] }
 0x847   :  { %8139 = vmatprep.subr.bf16.mxu1 %v8138_v13  ;;  %v8168_v0 = vpack.c.bf16 %v6182_v58, %v6181_v37  ;;  %v6195_v37 = vld [vmem:[%s14634_s9 + $0x470] sm:$0xff]  ;;  %v6196_v58 = vld [vmem:[%s14634_s9 + $0x478] sm:$0xff] }
 0x84a   :  { %8141 = vmatpush3.bf16.msra.mxu1 %v8140_v41 }
 0x84b   :  { %8143 = vmatprep.subr.bf16.mxu1 %v8142_v53 }
 0x84e   :  { %8145 = vmatpush3.bf16.msra.mxu1 %v8144_v10  ;;  %v8172_v10 = vpack.c.bf16 %v6184_v33, %v6183_v49 }
 0x84f   :  { %8147 = vmatprep.subr.bf16.mxu1 %v8146_v31  ;;  %v8174_v31 = vpack.c.bf16 %v6202_v52, %v6201_v4 }
 0x852   :  { %8149 = vmatpush3.bf16.msra.mxu1 %v8148_v28  ;;  %v8176_v28 = vpack.c.bf16 %v6186_v55, %v6185_v30 }
 0x853   :  { %8151 = vmatprep.subr.bf16.mxu1 %v8150_v47  ;;  %v8178_v47 = vpack.c.bf16 %v6204_v32, %v6203_v63 }
 0x856   :  { %8153 = vmatpush3.bf16.msra.mxu1 %v8152_v3  ;;  %v8180_v3 = vpack.c.bf16 %v6188_v35, %v6187_v6 }
 0x857   :  { %8155 = vmatprep.subr.bf16.mxu1 %v8154_v51 }
 0x85a   :  { %8157 = vmatpush3.bf16.msra.mxu1 %v8156_v25 }
 0x85b   :  { %8159 = vmatprep.subr.bf16.mxu1 %v8158_v11  ;;  %v6207_v11 = vld [vmem:[%s14634_s9 + $0x4d0] sm:$0xff] }
 0x85c   :  { %v8304_v39 = vpop.permute.xlu0 %8303  ;;  %v8299_v27 = vpop.permute.xlu1 %8298 }
 0x85d   :  { %v8301_v16 = vunpack.i.h.bf16 %v8299_v27  ;;  %v8300_v48 = vunpack.i.l.bf16 %v8299_v27  ;;  %v8306_v42 = vunpack.i.h.bf16 %v8304_v39  ;;  %v8305_v22 = vunpack.i.l.bf16 %v8304_v39  ;;  %v6209_v27 = vld [vmem:[%s14634_s9 + $0x4e0] sm:$0xff] }
 0x85e   :  { %8161 = vmatpush3.bf16.msra.mxu1 %v8160_v61 }
 0x85f   :  { %v5983_v59 = vsel %vm2784_vm4, %v14115_v5, %v8301_v16  ;;  %8163 = vmatprep.subr.bf16.mxu1 %v8162_v54  ;;  %v5986_v24 = vsel %vm2784_vm4, %v14117_v15, %v8300_v48  ;;  %v6200_v5 = vld [vmem:[%s14634_s9 + $0x498] sm:$0xff]  ;;  %v8186_v54 = vpack.c.bf16 %v6208_v29, %v6207_v11  ;;  %v8188_v16 = vpack.c.bf16 %v6192_v20, %v6191_v23 }
 0x860   :  { %v8309_v12 = vpop.permute.xlu1 %8308  ;;  %v5987_v50 = vsel %vm2840_vm11, %v5986_v24, %v8305_v22  ;;  %v5984_v14 = vsel %vm2840_vm11, %v5983_v59, %v8306_v42  ;;  %v8170_v53 = vpack.c.bf16 %v6200_v5, %v6199_v46  ;;  %v6193_v42 = vld [vmem:[%s14634_s9 + $0x460] sm:$0xff]  ;;  %v6194_v22 = vld [vmem:[%s14634_s9 + $0x468] sm:$0xff]  ;;  %v6212_v59 = vld [vmem:[%s14634_s9 + $0x4f8] sm:$0xff]  ;;  %v8196_v46 = vpack.c.bf16 %v6196_v58, %v6195_v37 }
 0x861   :  { %v8311_v13 = vunpack.i.h.bf16 %v8309_v12  ;;  %v8310_v15 = vunpack.i.l.bf16 %v8309_v12  ;;  %v8192_v24 = vpack.c.bf16 %v6194_v22, %v6193_v42 }
 0x862   :  { %8165 = vmatpush3.bf16.msra.mxu1 %v8164_v1  ;;  %v6211_v1 = vld [vmem:[%s14634_s9 + $0x4f0] sm:$0xff] }
 0x863   :  { %v5988_v44 = vsel %vm5548_vm9, %v5987_v50, %v8310_v15  ;;  %8167 = vmatprep.subr.bf16.mxu1 %v8166_v38  ;;  %v5985_v41 = vsel %vm5548_vm9, %v5984_v14, %v8311_v13  ;;  %v8194_v38 = vpack.c.bf16 %v6212_v59, %v6211_v1  ;;  %v6245_v13 = vld [vmem:[%s14634_s9 + $0x600] sm:$0xff]  ;;  %v6246_v15 = vld [vmem:[%s14634_s9 + $0x608] sm:$0xff] }
 0x864   :  { %6533 = vmatprep.mubr.f32.mxu1 %v5988_v44  ;;  %v8231_v49 = vpack.c.bf16 %v6246_v15, %v6245_v13 }
 0x865   :  { %6534 = vmatmul.mubr.f32.vlgmr.msra.gmra.mrb[130].mxu1 %v5985_v41 }
 0x866   :  { %8169 = vmatpush3.bf16.msra.mxu1 %v8168_v0 }
 0x867   :  { %8171 = vmatprep.subr.bf16.mxu1 %v8170_v53 }
 0x86a   :  { %8173 = vmatpush3.bf16.msra.mxu1 %v8172_v10  ;;  %v6247_v10 = vld [vmem:[%s14634_s9 + $0x610] sm:$0xff] }
 0x86b   :  { %8175 = vmatprep.subr.bf16.mxu1 %v8174_v31  ;;  %v8347_v31 = vld [vmem:[%s14631_s6] ss:$0 sm:$0xff] }
 0x86c   :  { %v5819_v30 = vadd.f32 %v8347_v31, %v14225_v9 }
 0x86e   :  { %8177 = vmatpush3.bf16.msra.mxu1 %v8176_v28  ;;  %v5847_v9 = vmul.f32 0.01, %v5819_v30  ;;  %vm5834_vm8 = vcmp.gt.f32.partialorder %v5819_v30, 0.0 }
 0x86f   :  { %v8314_v51 = vpop.permute.xlu0 %8313  ;;  %v8319_v36 = vpop.permute.xlu1 %8318  ;;  %8179 = vmatprep.subr.bf16.mxu1 %v8178_v47 }
 0x870   :  { %v8315_v25 = vunpack.i.l.bf16 %v8314_v51  ;;  %v8320_v40 = vunpack.i.l.bf16 %v8319_v36  ;;  %v8316_v12 = vunpack.i.h.bf16 %v8314_v51  ;;  %v8321_v5 = vunpack.i.h.bf16 %v8319_v36 }
 0x872   :  { %8181 = vmatpush3.bf16.msra.mxu1 %v8180_v3  ;;  %v6044_v21 = vsel %vm2784_vm4, %v14132_v57, %v8315_v25  ;;  %v6210_v57 = vld [vmem:[%s14634_s9 + $0x4e8] sm:$0xff]  ;;  %v6041_v50 = vsel %vm2784_vm4, %v14130_v56, %v8316_v12  ;;  %v6248_v56 = vld [vmem:[%s14634_s9 + $0x618] sm:$0xff]  ;;  %v5860_v3 = vsel %vm5834_vm8, %v5819_v30, %v5847_v9 }
 0x873   :  { %v8324_v61 = vpop.permute.xlu0 %8323  ;;  %8183 = vmatprep.subr.bf16.mxu1 %v8182_v62  ;;  %v6045_v60 = vsel %vm2840_vm11, %v6044_v21, %v8320_v40  ;;  %v8190_v48 = vpack.c.bf16 %v6210_v57, %v6209_v27  ;;  %v6042_v52 = vsel %vm2840_vm11, %v6041_v50, %v8321_v5  ;;  %v8234_v35 = vpack.c.bf16 %v6248_v56, %v6247_v10 }
 0x874   :  { %v8325_v39 = vunpack.i.l.bf16 %v8324_v61  ;;  %v8326_v14 = vunpack.i.h.bf16 %v8324_v61 }
 0x876   :  { %8185 = vmatpush3.bf16.msra.mxu1 %v8184_v19  ;;  %v6046_v8 = vsel %vm5548_vm9, %v6045_v60, %v8325_v39  ;;  %v6043_v63 = vsel %vm5548_vm9, %v6042_v52, %v8326_v14 }
 0x877   :  { %6603 = vmatprep.mubr.f32.mxu1 %v6046_v8  ;;  %8187 = vmatprep.subr.bf16.mxu1 %v8186_v54 }
 0x87a   :  { %8189 = vmatpush3.bf16.msra.mxu1 %v8188_v16 }
 0x87b   :  { %8191 = vmatprep.subr.bf16.mxu1 %v8190_v48 }
 0x87e   :  { %8193 = vmatpush3.bf16.msra.mxu1 %v8192_v24 }
 0x87f   :  { %8195 = vmatprep.subr.bf16.mxu1 %v8194_v38 }
 0x881   :  { %v8334_v0 = vpop.permute.xlu0 %8333  ;;  %v8329_v44 = vpop.permute.xlu1 %8328 }
 0x882   :  { %v8331_v41 = vunpack.i.h.bf16 %v8329_v44  ;;  %v8330_v53 = vunpack.i.l.bf16 %v8329_v44  ;;  %8197 = vmatpush3.bf16.msra.mxu1 %v8196_v46  ;;  %v8336_v33 = vunpack.i.h.bf16 %v8334_v0  ;;  %v8335_v4 = vunpack.i.l.bf16 %v8334_v0 }
 0x883   :  { %8230 = vmatprep.subr.bf16.mxu1 %v15780_v34 }
 0x884   :  { %v6047_v55 = vsel %vm2784_vm4, %v14183_v26, %v8331_v41  ;;  %v6050_v32 = vsel %vm2784_vm4, %v14191_v45, %v8330_v53 }
 0x885   :  { %6604 = vmatmul.mubr.f32.vlgmr.msra.gmra.mrb[132].mxu1 %v6043_v63  ;;  %v8339_v28 = vpop.permute.xlu1 %8338  ;;  %v6048_v2 = vsel %vm2840_vm11, %v6047_v55, %v8336_v33  ;;  %v6051_v26 = vsel %vm2840_vm11, %v6050_v32, %v8335_v4 }
 0x886   :  { %v8341_v47 = vunpack.i.h.bf16 %v8339_v28  ;;  %v8340_v6 = vunpack.i.l.bf16 %v8339_v28  ;;  %8232 = vmatpush3.bf16.msra.mxu1 %v8231_v49  ;;  %7990 = vmatprep.mubr.msk.f32.mxu1 %vm8383_vm0, %v15404_v7  ;;  %vm6749_vm0 = vcmask 74752  }
 0x887   :  { %8233 = vmatprep.subr.bf16.mxu1 %v15780_v34  ;;  %v7046_v34 = vld [vmem:[%s14635_s10] ss:$0 sm:$0xff]  ;;  %s8387_s10 = smov [#allocation2]  }
 0x888   :  { %v6049_v43 = vsel %vm5548_vm9, %v6048_v2, %v8341_v47  ;;  %v6052_v45 = vsel %vm5548_vm9, %v6051_v26, %v8340_v6  ;;  %s6776_s2 = sshll.u32 %s8387_s10, 4  ;;  %s6777_s2 = int_to_ptr.vmem [resolvable:$true] %s6776_s2 }
 0x889   :  { %6673 = vmatprep.mubr.f32.mxu0 %v6052_v45  ;;  %s8348_s5 = scalar_lea.vmem %s6777_s2, 32  ;;  %p8353_p1 = scmp.lt.s32.totalorder %s6777_s2, %s6777_s2 }
 0x88a   :  { %8235 = vmatpush3.bf16.msra.mxu1 %v8234_v35  ;;  %6674 = vmatmul.mubr.f32.vlgmr.msra.gmra.mrb[196].mxu0 %v6049_v43  ;;  %p8349_p0 = scmp.ne.s32.totalorder %s6777_s2, %s8348_s5  ;;  %p8354_p2 = scmp.lt.s32.totalorder %s8348_s5, %s8348_s5 }
 0x88c   :  { %p8355_p3 = por %p8354_p2, %p8353_p1 }
 0x88d   :  { %7991 = vmatmul.mubr.msk.f32.vlgmr.msra.gmra.mrb[134].mxu1 %vm2784_vm4, %v5860_v3 }
 0x88e   :  { %p8356_p4 = pnand %p8355_p3, %p8349_p0 }
 0x8d8   :  { %v7336_v51 = vpop.f32.mrb[124].mxu1 }
 0x8d9   :  { %v7337_v7 = vpop.f32.mrb[125].mxu1 }
 0x8da   :  { %v7338_v36 = vadd.f32 %v7337_v7, %v7336_v51 }
 0x8dc   :  { %v6326_v17 = vadd.f32 %v7338_v36, %v7046_v34 }
 0x8f8   :  { %v7371_v62 = vpop.f32.mrb[126].mxu1 }
 0x8f9   :  { %v7372_v18 = vpop.f32.mrb[127].mxu1 }
 0x8fa   :  { %v7373_v25 = vadd.f32 %v7372_v18, %v7371_v62 }
 0x8fc   :  { %v6396_v11 = vadd.f32 %v7373_v25, %v6326_v17 }
 0x918   :  { %v7406_v29 = vpop.f32.mrb[128].mxu1 }
 0x919   :  { %v7407_v40 = vpop.f32.mrb[129].mxu1 }
 0x91a   :  { %v7408_v19 = vadd.f32 %v7407_v40, %v7406_v29 }
 0x91c   :  { %v6466_v21 = vadd.f32 %v7408_v19, %v6396_v11 }
 0x938   :  { %v7441_v61 = vpop.f32.mrb[130].mxu1 }
 0x939   :  { %v7442_v54 = vpop.f32.mrb[131].mxu1 }
 0x93a   :  { %v7443_v23 = vadd.f32 %v7442_v54, %v7441_v61 }
 0x93c   :  { %v6536_v20 = vadd.f32 %v7443_v23, %v6466_v21 }
 0x958   :  { %v7476_v39 = vpop.f32.mrb[132].mxu1 }
 0x959   :  { %v7477_v27 = vpop.f32.mrb[133].mxu1 }
 0x95a   :  { %v7478_v57 = vadd.f32 %v7477_v27, %v7476_v39 }
 0x95c   :  { %v6606_v60 = vadd.f32 %v7478_v57, %v6536_v20 }
 0x95d   :  { %v7511_v8 = vpop.f32.mrb[196].mxu0 }
 0x95e   :  { %v7512_v16 = vpop.f32.mrb[197].mxu0 }
 0x95f   :  { %v7513_v48 = vadd.f32 %v7512_v16, %v7511_v8 }
 0x960   :  { %v6745_v42 = vpop.f32.mrb[134].mxu1 }
 0x961   :  { %v6676_v22 = vadd.f32 %v7513_v48, %v6606_v60  ;;  %v7992_v1 = vpop.f32.mrb[135].mxu1 }
 0x963   :  { %v6746_v59 = vadd.f32 %v6745_v42, %v6676_v22 }
 0x965   :  { %v6750_v24 = vsel %vm6749_vm0, %v6746_v59, -inf }
 0x966   :  { %v6751_v38 = vrot.slane %v6750_v24, 4 }
 0x968   :  { %v6752_v37 = vmax.f32 %v6750_v24, %v6751_v38 }
 0x96a   :  { %v6753_v58 = vrot.slane %v6752_v37, 2 }
 0x96c   :  { %v6754_v12 = vmax.f32 %v6752_v37, %v6753_v58 }
 0x96e   :  { %v6755_v46 = vrot.slane %v6754_v12, 1 }
 0x970   :  { %v6756_v5 = vmax.f32 %v6754_v12, %v6755_v46 }
 0x972   :  { %v6757_v13 = vsub.f32 %v6746_v59, %v6756_v5 }
 0x974   :  { %v6758_v15 = vmul.f32 1.442695, %v6757_v13 }
 0x976   :  { %8342 = vpow2.f32 %v6758_v15 }
 0x980   :  { %v8343_v50 = vpop.eup %8342 }
 0x981   :  { %v6760_v14 = vsel %vm6749_vm0, %v8343_v50, 0.0 }
 0x982   :  { %v6761_v0 = vrot.slane %v6760_v14, 4 }
 0x984   :  { %v6762_v44 = vadd.f32 %v6761_v0, %v6760_v14 }
 0x986   :  { %v6763_v41 = vrot.slane %v6762_v44, 2 }
 0x988   :  { %v6764_v53 = vadd.f32 %v6763_v41, %v6762_v44 }
 0x98a   :  { %v6765_v49 = vrot.slane %v6764_v53, 1 }
 0x98c   :  { %v6766_v33 = vadd.f32 %v6765_v49, %v6764_v53 }
 0x98e   :  { %8344 = vrcp.f32 %v6766_v33 }
 0x998   :  { %v8345_v4 = vpop.eup %8344 }
 0x999   :  { %v6768_v52 = vmul.f32 %v8345_v4, %v8343_v50 }
 0x99b   :  { %6769 = vst.msk [vmem:[#allocation2] sm:$0x3] %vm6749_vm0, %v6768_v52 }
 0x99c   :  { %8359 = shalt.err (!%p8356_p4)
}
 0x99d   :  { %s8360_s24 = scalar_lea.hbm %s14636_s11, 32 }
 0x99e   :  { %p8361_p5 = scmp.ne.s32.totalorder %s14636_s11, %s8360_s24  ;;  %p8364_p6 = scmp.lt.u32.totalorder %s8360_s24, %s14636_s11 }
 0x9a0   :  { %p8366_p7 = pnand %p8364_p6, %p8361_p5 }
 0x9a2   :  { %8369 = shalt.err (!%p8366_p7)
}
 0x9a3   :  { %6779 = dma.vmem_to_hbm [thread:$0]  %s6777_s2, 32, %s14636_s11, [#allocation3]  }
 0x9a4   :  { %8370 = dma.done.wait [#allocation3], 32  }
 0x9a5   :  { %8371 = vsyncadd [#allocation3], 4294967264 }
 0x9a6   :  { %6783 = vsyncpa [#allocation3], 1 }

</bundles_post_ra>
